<compile_context>
chip_gen: v6e
topology: v6e:2x2x1
jax: 0.10.0
libtpu: 0.0.40
codegen_flags: <defaults>
</compile_context>

<pallas_src>
import functools

import numpy as np
import jax
import jax.numpy as jnp
from jax import lax
from jax.experimental import pallas as pl
from jax.experimental.pallas import tpu as pltpu

_BN_EPS = 1e-5


# ----------------------------------------------------------------------------
# In-kernel separable resampling (fused 2x2 avg-pool and bicubic 2x upsample).
# Activations stay in the channels-major flattened (C, H*W) layout the convs use.
# ----------------------------------------------------------------------------
def _sep_resample(x, mwT, h_taps):
    """x: (C, Hin*Win) f32; mwT: (Win, Wout) bf16; h_taps: static per-output-row
    (input_row, coeff) taps.  Returns (C, Hout*Wout) f32."""
    nc, hw_in = x.shape
    w_in = mwT.shape[0]
    h_in = hw_in // w_in
    # Stack image rows along sublanes: (Hin*C, Win), row index = h*C + c.
    stack = jnp.concatenate(
        [x[:, h * w_in:(h + 1) * w_in] for h in range(h_in)], axis=0)
    # W-axis pass: one MXU matmul against the tiny per-level matrix.
    u = jnp.dot(stack.astype(jnp.bfloat16), mwT,
                preferred_element_type=jnp.float32)           # (Hin*C, Wout)
    # H-axis pass: static sparse row combinations (compile-time coefficients).
    pieces = []
    for taps in h_taps:
        h0, coef0 = taps[0]
        r = coef0 * u[h0 * nc:(h0 + 1) * nc, :]
        for h, coef in taps[1:]:
            r = r + coef * u[h * nc:(h + 1) * nc, :]
        pieces.append(r)
    return jnp.concatenate(pieces, axis=1)                    # (C, Hout*Wout) f32


# ----------------------------------------------------------------------------
# Fused HourGlass-block Pallas kernel
#   [optional 2x2 avg-pool] -> ConvBlock (3x fused BN+ReLU+3x3 conv, concat,
#   residual) -> [optional bicubic 2x upsample + skip add]
# ----------------------------------------------------------------------------
def _hg_block_kernel(*args, conv_hw, has_pre, has_post, pre_h_taps, post_h_taps):
    i = 0
    x_ref = args[i]; i += 1
    pre_w_ref = None
    if has_pre:
        pre_w_ref = args[i]; i += 1
    w1_ref, s1_ref, b1_ref = args[i], args[i + 1], args[i + 2]; i += 3
    w2_ref, s2_ref, b2_ref = args[i], args[i + 1], args[i + 2]; i += 3
    w3_ref, s3_ref, b3_ref = args[i], args[i + 1], args[i + 2]; i += 3
    post_w_ref = skip_ref = None
    if has_post:
        post_w_ref, skip_ref = args[i], args[i + 1]; i += 2
    o_ref = args[i]

    H, W = conv_hw
    HW = H * W

    x = x_ref[...]                                            # (C, HW_in) f32
    if has_pre:
        # fused 2x2 average pool down to the conv resolution (b2_* branch)
        x = _sep_resample(x, pre_w_ref[...], pre_h_taps)
    C = x.shape[0]

    # column-within-row index of every flattened spatial position (lane axis)
    colw = lax.broadcasted_iota(jnp.int32, (1, HW), 1)
    colw = (colw & (W - 1)) if (W & (W - 1)) == 0 else (colw % W)
    keep_m1 = colw <= W - 2    # zero source col W-1 before shifting (ox = -1 taps)
    keep_p1 = colw >= 1        # zero source col 0   before shifting (ox = +1 taps)

    def conv3x3(act, w_ref):
        # act: (cin, HW) f32; w_ref: (cout, 9*cin) bf16 (taps stacked along K).
        # Taps are static lane slices of zero-padded buffers (padding = vertical
        # halo, hoisted column masks = horizontal halo), concatenated along
        # sublanes so the whole conv is ONE MXU matmul with K = 9*cin.
        cin = act.shape[0]
        pad = jnp.zeros((cin, W + 1), jnp.float32)
        srcs = {
            -1: jnp.concatenate([pad, jnp.where(keep_m1, act, 0.0), pad], axis=1),
            0: jnp.concatenate([pad, act, pad], axis=1),
            1: jnp.concatenate([pad, jnp.where(keep_p1, act, 0.0), pad], axis=1),
        }
        taps = []
        for k in range(9):
            oy, ox = k // 3 - 1, k % 3 - 1
            start = (W + 1) + oy * W + ox
            taps.append(srcs[ox][:, start:start + HW])
        a9 = jnp.concatenate(taps, axis=0).astype(jnp.bfloat16)   # (9*cin, HW)
        return jnp.dot(w_ref[...], a9, preferred_element_type=jnp.float32)

    # ConvBlock: out_k = conv3x3(relu(bn_k(.))); channel concat; residual.
    a1 = jnp.maximum(x * s1_ref[...] + b1_ref[...], 0.0)
    out1 = conv3x3(a1, w1_ref)
    a2 = jnp.maximum(out1 * s2_ref[...] + b2_ref[...], 0.0)
    out2 = conv3x3(a2, w2_ref)
    a3 = jnp.maximum(out2 * s3_ref[...] + b3_ref[...], 0.0)
    out3 = conv3x3(a3, w3_ref)

    y = jnp.concatenate([out1, out2, out3], axis=0) + x       # residual (in == out)

    if has_post:
        # fused separable bicubic 2x upsample + skip add on the full (C, HW) slab
        up = _sep_resample(y, post_w_ref[...], post_h_taps)
        o_ref[...] = up + skip_ref[...]
    else:
        o_ref[...] = y


def hg_block(x, kp, *, conv_hw, pre=None, post=None, skip=None):
    """One fused HourGlass ConvBlock.

    x: (N, C, HW_in) channels-major flattened activations (f32).
    pre:  (pool_wT, pool_h_taps)      -> fuse a leading 2x2 avg-pool (b2_* branch).
    post: (up_wT, up_h_taps) + skip   -> fuse a trailing bicubic 2x upsample + skip add.
    """
    N, C, HW_in = x.shape
    H, W = conv_hw
    HW = H * W
    has_pre = pre is not None
    has_post = post is not None
    HW_out = 4 * HW if has_post else HW
    assert HW_in == (4 * HW if has_pre else HW)

    in_specs = [pl.BlockSpec((None, C, HW_in), lambda n: (n, 0, 0))]
    args = [x]
    pre_taps, post_taps = (), ()
    if has_pre:
        pre_wT, pre_taps = pre
        in_specs.append(pl.BlockSpec(pre_wT.shape, lambda n: (0, 0)))
        args.append(pre_wT)
    for j in ("1", "2", "3"):
        w_, s_, b_ = kp["w" + j], kp["s" + j], kp["b" + j]
        in_specs += [pl.BlockSpec(w_.shape, lambda n: (0, 0)),
                     pl.BlockSpec(s_.shape, lambda n: (0, 0)),
                     pl.BlockSpec(b_.shape, lambda n: (0, 0))]
        args += [w_, s_, b_]
    if has_post:
        post_wT, post_taps = post
        in_specs += [pl.BlockSpec(post_wT.shape, lambda n: (0, 0)),
                     pl.BlockSpec((None, C, HW_out), lambda n: (n, 0, 0))]
        args += [post_wT, skip]

    kernel = functools.partial(
        _hg_block_kernel, conv_hw=conv_hw, has_pre=has_pre, has_post=has_post,
        pre_h_taps=pre_taps, post_h_taps=post_taps)

    # Advisory cost estimate so XLA schedules the 8 sequential block calls well.
    c2, c4 = C // 2, C // 4
    flops = 2 * 9 * HW * (c2 * C + c4 * c2 + c4 * c4)
    if has_pre:
        flops += 2 * C * HW_in * W
    if has_post:
        flops += 4 * C * HW * W
    in_bytes = sum(int(np.prod(a.shape)) * np.dtype(a.dtype).itemsize for a in args)
    cost = pl.CostEstimate(flops=int(N * flops), transcendentals=0,
                           bytes_accessed=int(in_bytes + N * C * HW_out * 4))

    return pl.pallas_call(
        kernel,
        out_shape=jax.ShapeDtypeStruct((N, C, HW_out), jnp.float32),
        grid_spec=pltpu.PrefetchScalarGridSpec(
            num_scalar_prefetch=0,
            grid=(N,),
            in_specs=in_specs,
            out_specs=pl.BlockSpec((None, C, HW_out), lambda n: (n, 0, 0)),
        ),
        compiler_params=pltpu.CompilerParams(
            dimension_semantics=("parallel",),
            # modest explicit scoped-VMEM budget (>= default on all generations,
            # well under v7x's 64 MiB physical); re-derive when tiling real sizes.
            vmem_limit_bytes=32 * 1024 * 1024,
        ),
        cost_estimate=cost,
    )(*args)


# ----------------------------------------------------------------------------
# Resampling operators (built once with numpy)
# ----------------------------------------------------------------------------
def _avg_pool_matrix(n):
    m = np.zeros((n // 2, n), np.float32)
    for i in range(n // 2):
        m[i, 2 * i] = 0.5
        m[i, 2 * i + 1] = 0.5
    return m


def _bicubic_up2x_matrix(n_in):
    """Matches torch F.interpolate(scale_factor=2, mode='bicubic', align_corners=True)."""
    A = -0.75
    n_out = 2 * n_in

    def w1(t):
        return ((A + 2.0) * t - (A + 3.0)) * t * t + 1.0

    def w2(t):
        return ((A * t - 5.0 * A) * t + 8.0 * A) * t - 4.0 * A

    scale = (n_in - 1.0) / (n_out - 1.0) if n_out > 1 else 0.0
    m = np.zeros((n_out, n_in), np.float64)
    for i in range(n_out):
        xpos = scale * i
        xf = int(np.floor(xpos))
        t = xpos - xf
        coeffs = (w2(t + 1.0), w1(t), w1(1.0 - t), w2(2.0 - t))
        for k, cf in enumerate(coeffs):
            idx = min(max(xf - 1 + k, 0), n_in - 1)
            m[i, idx] += cf
    return m.astype(np.float32)


def _nonzero_row_taps(m):
    """Static (input_row, coeff) taps per output row of a sparse resampling matrix."""
    rows = []
    for row in np.asarray(m):
        nz = np.nonzero(row)[0]
        rows.append(tuple((int(j), float(row[j])) for j in nz))
    return tuple(rows)


def build_resample_mats(depth, H, W):
    """Per level: separable pool / bicubic-up operators for the kernels, plus the
    dense (Bh, Bw) matrices for the pure-JAX reference."""
    mats, ref_up = {}, {}
    h, w = H, W
    for level in range(depth, 0, -1):
        assert h % 2 == 0 and w % 2 == 0, "even spatial dims required at every level"
        pw, ph = _avg_pool_matrix(w), _avg_pool_matrix(h)
        bw, bh = _bicubic_up2x_matrix(w // 2), _bicubic_up2x_matrix(h // 2)
        mats[level] = {
            "pool_wT": jnp.asarray(pw.T, dtype=jnp.bfloat16),   # (w, w/2)
            "pool_h_taps": _nonzero_row_taps(ph),                # h/2 rows, 2 taps each
            "up_wT": jnp.asarray(bw.T, dtype=jnp.bfloat16),      # (w/2, w)
            "up_h_taps": _nonzero_row_taps(bh),                  # h rows, <=4 taps each
        }
        ref_up[level] = (jnp.asarray(bh), jnp.asarray(bw))
        h, w = h // 2, w // 2
    return mats, ref_up


# ----------------------------------------------------------------------------
# Parameters (deterministic synthetic init)
# ----------------------------------------------------------------------------
def _init_bn(key, c):
    k1, k2, k3, k4 = jax.random.split(key, 4)
    gamma = 1.0 + 0.1 * jax.random.normal(k1, (c,), jnp.float32)
    beta = 0.1 * jax.random.normal(k2, (c,), jnp.float32)
    running_mean = 0.1 * jax.random.normal(k3, (c,), jnp.float32)
    running_var = 1.0 + 0.1 * jnp.abs(jax.random.normal(k4, (c,), jnp.float32))
    scale = gamma / jnp.sqrt(running_var + _BN_EPS)
    shift = beta - running_mean * scale
    return scale.reshape(c, 1), shift.reshape(c, 1)


def _init_conv3x3(key, cin, cout):
    w = jax.random.normal(key, (3, 3, cout, cin), jnp.float32) / np.sqrt(9.0 * cin)
    return w.reshape(9, cout, cin)   # tap index k = ky*3 + kx


def init_conv_block(key, c):
    c2, c4 = c // 2, c // 4
    kw1, kw2, kw3, kb1, kb2, kb3 = jax.random.split(key, 6)
    s1, b1 = _init_bn(kb1, c)
    s2, b2 = _init_bn(kb2, c2)
    s3, b3 = _init_bn(kb3, c4)
    return {"w1": _init_conv3x3(kw1, c, c2), "s1": s1, "b1": b1,
            "w2": _init_conv3x3(kw2, c2, c4), "s2": s2, "b2": b2,
            "w3": _init_conv3x3(kw3, c4, c4), "s3": s3, "b3": b3}


def pack_conv_block(p):
    """Canonical f32 ConvBlock params -> kernel layout: stacked-K bf16 conv weights
    (Cout, 9*Cin) with column index k*Cin + cin; BN scale/shift kept in f32."""
    def pack_w(w9):
        _, cout, cin = w9.shape
        return jnp.transpose(w9, (1, 0, 2)).reshape(cout, 9 * cin).astype(jnp.bfloat16)
    out = {}
    for j in ("1", "2", "3"):
        out["w" + j] = pack_w(p["w" + j])
        out["s" + j] = p["s" + j]
        out["b" + j] = p["b" + j]
    return out


def init_hourglass(key, depth, features):
    params = {}
    keys = jax.random.split(key, depth * 4)
    i = 0
    for level in range(depth, 0, -1):
        params[f"b1_{level}"] = init_conv_block(keys[i], features); i += 1
        params[f"b2_{level}"] = init_conv_block(keys[i], features); i += 1
        if level == 1:
            params[f"b2_plus_{level}"] = init_conv_block(keys[i], features)
        i += 1
        params[f"b3_{level}"] = init_conv_block(keys[i], features); i += 1
    return params


# ----------------------------------------------------------------------------
# HourGlass forward recursion (all fused Pallas calls)
# ----------------------------------------------------------------------------
def _hg_level(level, x, kparams, mats, hw):
    H, W = hw
    m = mats[level]
    up1 = hg_block(x, kparams[f"b1_{level}"], conv_hw=hw)
    low1 = hg_block(x, kparams[f"b2_{level}"], conv_hw=(H // 2, W // 2),
                    pre=(m["pool_wT"], m["pool_h_taps"]))          # fused avg-pool
    if level > 1:
        low2 = _hg_level(level - 1, low1, kparams, mats, (H // 2, W // 2))
    else:
        low2 = hg_block(low1, kparams[f"b2_plus_{level}"], conv_hw=(H // 2, W // 2))
    # b3 block with fused separable bicubic 2x upsample + skip-add of up1
    return hg_block(low2, kparams[f"b3_{level}"], conv_hw=(H // 2, W // 2),
                    post=(m["up_wT"], m["up_h_taps"]), skip=up1)


def hourglass_forward(x_nchw, kparams, mats, depth):
    N, C, H, W = x_nchw.shape
    x = x_nchw.reshape(N, C, H * W).astype(jnp.float32)   # free reshape, no transpose
    y = _hg_level(depth, x, kparams, mats, (H, W))
    return y.reshape(N, C, H, W)


# ----------------------------------------------------------------------------
# Pure-JAX f32 reference (correctness check only)
# ----------------------------------------------------------------------------
def _conv_block_ref(x, p):
    def bn_relu_conv(h, w9, s, b):
        cin = h.shape[1]
        cout = w9.shape[1]
        a = jnp.maximum(h * s.reshape(1, cin, 1, 1) + b.reshape(1, cin, 1, 1), 0.0)
        w_oihw = jnp.transpose(w9.reshape(3, 3, cout, cin), (2, 3, 0, 1))
        return lax.conv_general_dilated(
            a, w_oihw, window_strides=(1, 1), padding=((1, 1), (1, 1)),
            dimension_numbers=("NCHW", "OIHW", "NCHW"),
            precision=lax.Precision.HIGHEST)
    o1 = bn_relu_conv(x, p["w1"], p["s1"], p["b1"])
    o2 = bn_relu_conv(o1, p["w2"], p["s2"], p["b2"])
    o3 = bn_relu_conv(o2, p["w3"], p["s3"], p["b3"])
    return jnp.concatenate([o1, o2, o3], axis=1) + x


def _avg_pool_ref(x):
    N, C, H, W = x.shape
    return x.reshape(N, C, H // 2, 2, W // 2, 2).mean(axis=(3, 5))


def _hg_level_ref(level, x, params, ref_up):
    up1 = _conv_block_ref(x, params[f"b1_{level}"])
    low1 = _conv_block_ref(_avg_pool_ref(x), params[f"b2_{level}"])
    if level > 1:
        low2 = _hg_level_ref(level - 1, low1, params, ref_up)
    else:
        low2 = _conv_block_ref(low1, params[f"b2_plus_{level}"])
    low3 = _conv_block_ref(low2, params[f"b3_{level}"])
    bh, bw = ref_up[level]
    up2 = jnp.einsum("ah,bw,nchw->ncab", bh, bw, low3,
                     precision=lax.Precision.HIGHEST)
    return up1 + up2


# ----------------------------------------------------------------------------
if __name__ == "__main__":
    # HourGlass(num_modules=1, depth=2, num_features=16, norm='batch', base=64)
    N, C, H, W = 2, 16, 16, 16
    DEPTH = 2

    key = jax.random.PRNGKey(0)
    kx, kp = jax.random.split(key)
    x = jax.random.normal(kx, (N, C, H, W), jnp.float32)
    params = init_hourglass(kp, DEPTH, C)                           # canonical f32
    kparams = {k: pack_conv_block(v) for k, v in params.items()}    # kernel layout
    mats, ref_up = build_resample_mats(DEPTH, H, W)

    fwd = jax.jit(functools.partial(hourglass_forward, mats=mats, depth=DEPTH))
    out = jax.block_until_ready(fwd(x, kparams))

    assert out.shape == (N, C, H, W), out.shape
    assert out.dtype == jnp.float32
    assert bool(jnp.all(jnp.isfinite(out)))

    # Pure-JAX f32 reference; the kernel feeds the MXU bf16 operands (f32 accum),
    # so tolerances are set for bf16-level agreement across the block cascade.
    ref = _hg_level_ref(DEPTH, x, params, ref_up)
    err = jnp.abs(out - ref)
    max_err = float(jnp.max(err))
    mean_err = float(jnp.mean(err))
    scale = float(jnp.max(jnp.abs(ref)))
    assert max_err < 0.05 * scale + 0.05, (max_err, scale)
    assert mean_err < 0.02, mean_err

    print("KERNEL_OK")
</pallas_src>

<mosaic_0001>
module attributes {stable_mosaic.version = 11 : i64} {
  func.func @_hg_block_kernel(%arg0: i32, %arg1: memref<1x16x64xf32, #tpu.memory_space<vmem>>, %arg2: memref<8x4xbf16, #tpu.memory_space<vmem>>, %arg3: memref<8x144xbf16, #tpu.memory_space<vmem>>, %arg4: memref<16x1xf32, #tpu.memory_space<vmem>>, %arg5: memref<16x1xf32, #tpu.memory_space<vmem>>, %arg6: memref<4x72xbf16, #tpu.memory_space<vmem>>, %arg7: memref<8x1xf32, #tpu.memory_space<vmem>>, %arg8: memref<8x1xf32, #tpu.memory_space<vmem>>, %arg9: memref<4x36xbf16, #tpu.memory_space<vmem>>, %arg10: memref<4x1xf32, #tpu.memory_space<vmem>>, %arg11: memref<4x1xf32, #tpu.memory_space<vmem>>, %arg12: memref<1x16x16xf32, #tpu.memory_space<vmem>>) attributes {dimension_semantics = [#tpu.dimension_semantics<parallel>], iteration_bounds = array<i64: 2>, scalar_prefetch = 0 : i64, scratch_operands = 0 : i64, tpu.core_type = #tpu.core_type<tc>, window_params = [{transform_indices = @transform_0, window_bounds = array<i64: 1, 16, 64>}, {pipeline_mode = #tpu.pipeline_mode<synchronous>, transform_indices = @transform_1, window_bounds = array<i64: 8, 4>}, {pipeline_mode = #tpu.pipeline_mode<synchronous>, transform_indices = @transform_2, window_bounds = array<i64: 8, 144>}, {pipeline_mode = #tpu.pipeline_mode<synchronous>, transform_indices = @transform_3, window_bounds = array<i64: 16, 1>}, {pipeline_mode = #tpu.pipeline_mode<synchronous>, transform_indices = @transform_4, window_bounds = array<i64: 16, 1>}, {pipeline_mode = #tpu.pipeline_mode<synchronous>, transform_indices = @transform_5, window_bounds = array<i64: 4, 72>}, {pipeline_mode = #tpu.pipeline_mode<synchronous>, transform_indices = @transform_6, window_bounds = array<i64: 8, 1>}, {pipeline_mode = #tpu.pipeline_mode<synchronous>, transform_indices = @transform_7, window_bounds = array<i64: 8, 1>}, {pipeline_mode = #tpu.pipeline_mode<synchronous>, transform_indices = @transform_8, window_bounds = array<i64: 4, 36>}, {pipeline_mode = #tpu.pipeline_mode<synchronous>, transform_indices = @transform_9, window_bounds = array<i64: 4, 1>}, {pipeline_mode = #tpu.pipeline_mode<synchronous>, transform_indices = @transform_10, window_bounds = array<i64: 4, 1>}, {transform_indices = @transform_11, window_bounds = array<i64: 1, 16, 16>}]} {
    %c0 = arith.constant 0 : index
    %c0_0 = arith.constant 0 : index
    %c0_1 = arith.constant 0 : index
    %0 = vector.load %arg1[%c0, %c0_0, %c0_1] : memref<1x16x64xf32, #tpu.memory_space<vmem>>, vector<1x16x64xf32>
    %1 = vector.shape_cast %0 : vector<1x16x64xf32> to vector<16x64xf32>
    %c0_2 = arith.constant 0 : index
    %c0_3 = arith.constant 0 : index
    %2 = vector.load %arg2[%c0_2, %c0_3] : memref<8x4xbf16, #tpu.memory_space<vmem>>, vector<8x4xbf16>
    %3 = vector.extract_strided_slice %1 {offsets = [0, 0], sizes = [16, 8], strides = [1, 1]} : vector<16x64xf32> to vector<16x8xf32>
    %4 = vector.extract_strided_slice %1 {offsets = [0, 8], sizes = [16, 8], strides = [1, 1]} : vector<16x64xf32> to vector<16x8xf32>
    %5 = vector.extract_strided_slice %1 {offsets = [0, 16], sizes = [16, 8], strides = [1, 1]} : vector<16x64xf32> to vector<16x8xf32>
    %6 = vector.extract_strided_slice %1 {offsets = [0, 24], sizes = [16, 8], strides = [1, 1]} : vector<16x64xf32> to vector<16x8xf32>
    %7 = vector.extract_strided_slice %1 {offsets = [0, 32], sizes = [16, 8], strides = [1, 1]} : vector<16x64xf32> to vector<16x8xf32>
    %8 = vector.extract_strided_slice %1 {offsets = [0, 40], sizes = [16, 8], strides = [1, 1]} : vector<16x64xf32> to vector<16x8xf32>
    %9 = vector.extract_strided_slice %1 {offsets = [0, 48], sizes = [16, 8], strides = [1, 1]} : vector<16x64xf32> to vector<16x8xf32>
    %10 = vector.extract_strided_slice %1 {offsets = [0, 56], sizes = [16, 8], strides = [1, 1]} : vector<16x64xf32> to vector<16x8xf32>
    %11 = tpu.concatenate %3, %4, %5, %6, %7, %8, %9, %10 in 0 : vector<16x8xf32>, vector<16x8xf32>, vector<16x8xf32>, vector<16x8xf32>, vector<16x8xf32>, vector<16x8xf32>, vector<16x8xf32>, vector<16x8xf32> -> vector<128x8xf32>
    %12 = arith.truncf %11 : vector<128x8xf32> to vector<128x8xbf16>
    %cst = arith.constant dense<0.000000e+00> : vector<128x4xf32>
    %13 = tpu.matmul %12, %2, %cst {dimension_numbers = #tpu.dot_dimension_numbers<[1], [0], [0], [1], [0, 0, 1, 1], [], []>} : vector<128x8xbf16>, vector<8x4xbf16>, vector<128x4xf32> -> vector<128x4xf32>
    %14 = vector.extract_strided_slice %13 {offsets = [0, 0], sizes = [16, 4], strides = [1, 1]} : vector<128x4xf32> to vector<16x4xf32>
    %cst_4 = arith.constant 5.000000e-01 : f32
    %15 = vector.broadcast %cst_4 : f32 to vector<16x4xf32>
    %16 = arith.mulf %15, %14 : vector<16x4xf32>
    %17 = vector.extract_strided_slice %13 {offsets = [16, 0], sizes = [16, 4], strides = [1, 1]} : vector<128x4xf32> to vector<16x4xf32>
    %cst_5 = arith.constant 5.000000e-01 : f32
    %18 = vector.broadcast %cst_5 : f32 to vector<16x4xf32>
    %19 = arith.mulf %18, %17 : vector<16x4xf32>
    %20 = arith.addf %16, %19 : vector<16x4xf32>
    %21 = vector.extract_strided_slice %13 {offsets = [32, 0], sizes = [16, 4], strides = [1, 1]} : vector<128x4xf32> to vector<16x4xf32>
    %cst_6 = arith.constant 5.000000e-01 : f32
    %22 = vector.broadcast %cst_6 : f32 to vector<16x4xf32>
    %23 = arith.mulf %22, %21 : vector<16x4xf32>
    %24 = vector.extract_strided_slice %13 {offsets = [48, 0], sizes = [16, 4], strides = [1, 1]} : vector<128x4xf32> to vector<16x4xf32>
    %cst_7 = arith.constant 5.000000e-01 : f32
    %25 = vector.broadcast %cst_7 : f32 to vector<16x4xf32>
    %26 = arith.mulf %25, %24 : vector<16x4xf32>
    %27 = arith.addf %23, %26 : vector<16x4xf32>
    %28 = vector.extract_strided_slice %13 {offsets = [64, 0], sizes = [16, 4], strides = [1, 1]} : vector<128x4xf32> to vector<16x4xf32>
    %cst_8 = arith.constant 5.000000e-01 : f32
    %29 = vector.broadcast %cst_8 : f32 to vector<16x4xf32>
    %30 = arith.mulf %29, %28 : vector<16x4xf32>
    %31 = vector.extract_strided_slice %13 {offsets = [80, 0], sizes = [16, 4], strides = [1, 1]} : vector<128x4xf32> to vector<16x4xf32>
    %cst_9 = arith.constant 5.000000e-01 : f32
    %32 = vector.broadcast %cst_9 : f32 to vector<16x4xf32>
    %33 = arith.mulf %32, %31 : vector<16x4xf32>
    %34 = arith.addf %30, %33 : vector<16x4xf32>
    %35 = vector.extract_strided_slice %13 {offsets = [96, 0], sizes = [16, 4], strides = [1, 1]} : vector<128x4xf32> to vector<16x4xf32>
    %cst_10 = arith.constant 5.000000e-01 : f32
    %36 = vector.broadcast %cst_10 : f32 to vector<16x4xf32>
    %37 = arith.mulf %36, %35 : vector<16x4xf32>
    %38 = vector.extract_strided_slice %13 {offsets = [112, 0], sizes = [16, 4], strides = [1, 1]} : vector<128x4xf32> to vector<16x4xf32>
    %cst_11 = arith.constant 5.000000e-01 : f32
    %39 = vector.broadcast %cst_11 : f32 to vector<16x4xf32>
    %40 = arith.mulf %39, %38 : vector<16x4xf32>
    %41 = arith.addf %37, %40 : vector<16x4xf32>
    %42 = tpu.concatenate %20, %27, %34, %41 in 1 : vector<16x4xf32>, vector<16x4xf32>, vector<16x4xf32>, vector<16x4xf32> -> vector<16x16xf32>
    %43 = tpu.iota {dimensions = array<i32: 1>} : vector<1x16xi32>
    %c3_i32 = arith.constant 3 : i32
    %44 = vector.broadcast %c3_i32 : i32 to vector<1x16xi32>
    %45 = arith.andi %43, %44 : vector<1x16xi32>
    %c2_i32 = arith.constant 2 : i32
    %46 = vector.broadcast %c2_i32 : i32 to vector<1x16xi32>
    %47 = arith.cmpi sle, %45, %46 : vector<1x16xi32>
    %c1_i32 = arith.constant 1 : i32
    %48 = vector.broadcast %c1_i32 : i32 to vector<1x16xi32>
    %49 = arith.cmpi sge, %45, %48 : vector<1x16xi32>
    %c0_12 = arith.constant 0 : index
    %c0_13 = arith.constant 0 : index
    %50 = vector.load %arg4[%c0_12, %c0_13] : memref<16x1xf32, #tpu.memory_space<vmem>>, vector<16x1xf32>
    %51 = vector.broadcast %50 : vector<16x1xf32> to vector<16x16xf32>
    %52 = arith.mulf %42, %51 : vector<16x16xf32>
    %c0_14 = arith.constant 0 : index
    %c0_15 = arith.constant 0 : index
    %53 = vector.load %arg5[%c0_14, %c0_15] : memref<16x1xf32, #tpu.memory_space<vmem>>, vector<16x1xf32>
    %54 = vector.broadcast %53 : vector<16x1xf32> to vector<16x16xf32>
    %55 = arith.addf %52, %54 : vector<16x16xf32>
    %cst_16 = arith.constant 0.000000e+00 : f32
    %56 = vector.broadcast %cst_16 : f32 to vector<16x16xf32>
    %57 = arith.maximumf %55, %56 : vector<16x16xf32>
    %cst_17 = arith.constant 0.000000e+00 : f32
    %58 = vector.broadcast %cst_17 : f32 to vector<16x5xf32>
    %cst_18 = arith.constant 0.000000e+00 : f32
    %59 = vector.shape_cast %47 : vector<1x16xi1> to vector<1x16xi1>
    %60 = vector.broadcast %59 : vector<1x16xi1> to vector<16x16xi1>
    %61 = vector.broadcast %cst_18 : f32 to vector<16x16xf32>
    %62 = arith.select %60, %57, %61 : vector<16x16xi1>, vector<16x16xf32>
    %63 = tpu.concatenate %58, %62, %58 in 1 : vector<16x5xf32>, vector<16x16xf32>, vector<16x5xf32> -> vector<16x26xf32>
    %64 = tpu.concatenate %58, %57, %58 in 1 : vector<16x5xf32>, vector<16x16xf32>, vector<16x5xf32> -> vector<16x26xf32>
    %cst_19 = arith.constant 0.000000e+00 : f32
    %65 = vector.shape_cast %49 : vector<1x16xi1> to vector<1x16xi1>
    %66 = vector.broadcast %65 : vector<1x16xi1> to vector<16x16xi1>
    %67 = vector.broadcast %cst_19 : f32 to vector<16x16xf32>
    %68 = arith.select %66, %57, %67 : vector<16x16xi1>, vector<16x16xf32>
    %69 = tpu.concatenate %58, %68, %58 in 1 : vector<16x5xf32>, vector<16x16xf32>, vector<16x5xf32> -> vector<16x26xf32>
    %70 = vector.extract_strided_slice %63 {offsets = [0, 0], sizes = [16, 16], strides = [1, 1]} : vector<16x26xf32> to vector<16x16xf32>
    %71 = vector.extract_strided_slice %64 {offsets = [0, 1], sizes = [16, 16], strides = [1, 1]} : vector<16x26xf32> to vector<16x16xf32>
    %72 = vector.extract_strided_slice %69 {offsets = [0, 2], sizes = [16, 16], strides = [1, 1]} : vector<16x26xf32> to vector<16x16xf32>
    %73 = vector.extract_strided_slice %63 {offsets = [0, 4], sizes = [16, 16], strides = [1, 1]} : vector<16x26xf32> to vector<16x16xf32>
    %74 = vector.extract_strided_slice %64 {offsets = [0, 5], sizes = [16, 16], strides = [1, 1]} : vector<16x26xf32> to vector<16x16xf32>
    %75 = vector.extract_strided_slice %69 {offsets = [0, 6], sizes = [16, 16], strides = [1, 1]} : vector<16x26xf32> to vector<16x16xf32>
    %76 = vector.extract_strided_slice %63 {offsets = [0, 8], sizes = [16, 16], strides = [1, 1]} : vector<16x26xf32> to vector<16x16xf32>
    %77 = vector.extract_strided_slice %64 {offsets = [0, 9], sizes = [16, 16], strides = [1, 1]} : vector<16x26xf32> to vector<16x16xf32>
    %78 = vector.extract_strided_slice %69 {offsets = [0, 10], sizes = [16, 16], strides = [1, 1]} : vector<16x26xf32> to vector<16x16xf32>
    %79 = tpu.concatenate %70, %71, %72, %73, %74, %75, %76, %77, %78 in 0 : vector<16x16xf32>, vector<16x16xf32>, vector<16x16xf32>, vector<16x16xf32>, vector<16x16xf32>, vector<16x16xf32>, vector<16x16xf32>, vector<16x16xf32>, vector<16x16xf32> -> vector<144x16xf32>
    %80 = arith.truncf %79 : vector<144x16xf32> to vector<144x16xbf16>
    %c0_20 = arith.constant 0 : index
    %c0_21 = arith.constant 0 : index
    %81 = vector.load %arg3[%c0_20, %c0_21] : memref<8x144xbf16, #tpu.memory_space<vmem>>, vector<8x144xbf16>
    %cst_22 = arith.constant dense<0.000000e+00> : vector<8x16xf32>
    %82 = tpu.matmul %81, %80, %cst_22 {dimension_numbers = #tpu.dot_dimension_numbers<[1], [0], [0], [1], [0, 0, 1, 1], [], []>} : vector<8x144xbf16>, vector<144x16xbf16>, vector<8x16xf32> -> vector<8x16xf32>
    %c0_23 = arith.constant 0 : index
    %c0_24 = arith.constant 0 : index
    %83 = vector.load %arg7[%c0_23, %c0_24] : memref<8x1xf32, #tpu.memory_space<vmem>>, vector<8x1xf32>
    %84 = vector.broadcast %83 : vector<8x1xf32> to vector<8x16xf32>
    %85 = arith.mulf %82, %84 : vector<8x16xf32>
    %c0_25 = arith.constant 0 : index
    %c0_26 = arith.constant 0 : index
    %86 = vector.load %arg8[%c0_25, %c0_26] : memref<8x1xf32, #tpu.memory_space<vmem>>, vector<8x1xf32>
    %87 = vector.broadcast %86 : vector<8x1xf32> to vector<8x16xf32>
    %88 = arith.addf %85, %87 : vector<8x16xf32>
    %cst_27 = arith.constant 0.000000e+00 : f32
    %89 = vector.broadcast %cst_27 : f32 to vector<8x16xf32>
    %90 = arith.maximumf %88, %89 : vector<8x16xf32>
    %cst_28 = arith.constant 0.000000e+00 : f32
    %91 = vector.broadcast %cst_28 : f32 to vector<8x5xf32>
    %cst_29 = arith.constant 0.000000e+00 : f32
    %92 = vector.shape_cast %47 : vector<1x16xi1> to vector<1x16xi1>
    %93 = vector.broadcast %92 : vector<1x16xi1> to vector<8x16xi1>
    %94 = vector.broadcast %cst_29 : f32 to vector<8x16xf32>
    %95 = arith.select %93, %90, %94 : vector<8x16xi1>, vector<8x16xf32>
    %96 = tpu.concatenate %91, %95, %91 in 1 : vector<8x5xf32>, vector<8x16xf32>, vector<8x5xf32> -> vector<8x26xf32>
    %97 = tpu.concatenate %91, %90, %91 in 1 : vector<8x5xf32>, vector<8x16xf32>, vector<8x5xf32> -> vector<8x26xf32>
    %cst_30 = arith.constant 0.000000e+00 : f32
    %98 = vector.shape_cast %49 : vector<1x16xi1> to vector<1x16xi1>
    %99 = vector.broadcast %98 : vector<1x16xi1> to vector<8x16xi1>
    %100 = vector.broadcast %cst_30 : f32 to vector<8x16xf32>
    %101 = arith.select %99, %90, %100 : vector<8x16xi1>, vector<8x16xf32>
    %102 = tpu.concatenate %91, %101, %91 in 1 : vector<8x5xf32>, vector<8x16xf32>, vector<8x5xf32> -> vector<8x26xf32>
    %103 = vector.extract_strided_slice %96 {offsets = [0, 0], sizes = [8, 16], strides = [1, 1]} : vector<8x26xf32> to vector<8x16xf32>
    %104 = vector.extract_strided_slice %97 {offsets = [0, 1], sizes = [8, 16], strides = [1, 1]} : vector<8x26xf32> to vector<8x16xf32>
    %105 = vector.extract_strided_slice %102 {offsets = [0, 2], sizes = [8, 16], strides = [1, 1]} : vector<8x26xf32> to vector<8x16xf32>
    %106 = vector.extract_strided_slice %96 {offsets = [0, 4], sizes = [8, 16], strides = [1, 1]} : vector<8x26xf32> to vector<8x16xf32>
    %107 = vector.extract_strided_slice %97 {offsets = [0, 5], sizes = [8, 16], strides = [1, 1]} : vector<8x26xf32> to vector<8x16xf32>
    %108 = vector.extract_strided_slice %102 {offsets = [0, 6], sizes = [8, 16], strides = [1, 1]} : vector<8x26xf32> to vector<8x16xf32>
    %109 = vector.extract_strided_slice %96 {offsets = [0, 8], sizes = [8, 16], strides = [1, 1]} : vector<8x26xf32> to vector<8x16xf32>
    %110 = vector.extract_strided_slice %97 {offsets = [0, 9], sizes = [8, 16], strides = [1, 1]} : vector<8x26xf32> to vector<8x16xf32>
    %111 = vector.extract_strided_slice %102 {offsets = [0, 10], sizes = [8, 16], strides = [1, 1]} : vector<8x26xf32> to vector<8x16xf32>
    %112 = tpu.concatenate %103, %104, %105, %106, %107, %108, %109, %110, %111 in 0 : vector<8x16xf32>, vector<8x16xf32>, vector<8x16xf32>, vector<8x16xf32>, vector<8x16xf32>, vector<8x16xf32>, vector<8x16xf32>, vector<8x16xf32>, vector<8x16xf32> -> vector<72x16xf32>
    %113 = arith.truncf %112 : vector<72x16xf32> to vector<72x16xbf16>
    %c0_31 = arith.constant 0 : index
    %c0_32 = arith.constant 0 : index
    %114 = vector.load %arg6[%c0_31, %c0_32] : memref<4x72xbf16, #tpu.memory_space<vmem>>, vector<4x72xbf16>
    %cst_33 = arith.constant dense<0.000000e+00> : vector<4x16xf32>
    %115 = tpu.matmul %114, %113, %cst_33 {dimension_numbers = #tpu.dot_dimension_numbers<[1], [0], [0], [1], [0, 0, 1, 1], [], []>} : vector<4x72xbf16>, vector<72x16xbf16>, vector<4x16xf32> -> vector<4x16xf32>
    %c0_34 = arith.constant 0 : index
    %c0_35 = arith.constant 0 : index
    %116 = vector.load %arg10[%c0_34, %c0_35] : memref<4x1xf32, #tpu.memory_space<vmem>>, vector<4x1xf32>
    %117 = vector.broadcast %116 : vector<4x1xf32> to vector<4x16xf32>
    %118 = arith.mulf %115, %117 : vector<4x16xf32>
    %c0_36 = arith.constant 0 : index
    %c0_37 = arith.constant 0 : index
    %119 = vector.load %arg11[%c0_36, %c0_37] : memref<4x1xf32, #tpu.memory_space<vmem>>, vector<4x1xf32>
    %120 = vector.broadcast %119 : vector<4x1xf32> to vector<4x16xf32>
    %121 = arith.addf %118, %120 : vector<4x16xf32>
    %cst_38 = arith.constant 0.000000e+00 : f32
    %122 = vector.broadcast %cst_38 : f32 to vector<4x16xf32>
    %123 = arith.maximumf %121, %122 : vector<4x16xf32>
    %cst_39 = arith.constant 0.000000e+00 : f32
    %124 = vector.broadcast %cst_39 : f32 to vector<4x5xf32>
    %cst_40 = arith.constant 0.000000e+00 : f32
    %125 = vector.shape_cast %47 : vector<1x16xi1> to vector<1x16xi1>
    %126 = vector.broadcast %125 : vector<1x16xi1> to vector<4x16xi1>
    %127 = vector.broadcast %cst_40 : f32 to vector<4x16xf32>
    %128 = arith.select %126, %123, %127 : vector<4x16xi1>, vector<4x16xf32>
    %129 = tpu.concatenate %124, %128, %124 in 1 : vector<4x5xf32>, vector<4x16xf32>, vector<4x5xf32> -> vector<4x26xf32>
    %130 = tpu.concatenate %124, %123, %124 in 1 : vector<4x5xf32>, vector<4x16xf32>, vector<4x5xf32> -> vector<4x26xf32>
    %cst_41 = arith.constant 0.000000e+00 : f32
    %131 = vector.shape_cast %49 : vector<1x16xi1> to vector<1x16xi1>
    %132 = vector.broadcast %131 : vector<1x16xi1> to vector<4x16xi1>
    %133 = vector.broadcast %cst_41 : f32 to vector<4x16xf32>
    %134 = arith.select %132, %123, %133 : vector<4x16xi1>, vector<4x16xf32>
    %135 = tpu.concatenate %124, %134, %124 in 1 : vector<4x5xf32>, vector<4x16xf32>, vector<4x5xf32> -> vector<4x26xf32>
    %136 = vector.extract_strided_slice %129 {offsets = [0, 0], sizes = [4, 16], strides = [1, 1]} : vector<4x26xf32> to vector<4x16xf32>
    %137 = vector.extract_strided_slice %130 {offsets = [0, 1], sizes = [4, 16], strides = [1, 1]} : vector<4x26xf32> to vector<4x16xf32>
    %138 = vector.extract_strided_slice %135 {offsets = [0, 2], sizes = [4, 16], strides = [1, 1]} : vector<4x26xf32> to vector<4x16xf32>
    %139 = vector.extract_strided_slice %129 {offsets = [0, 4], sizes = [4, 16], strides = [1, 1]} : vector<4x26xf32> to vector<4x16xf32>
    %140 = vector.extract_strided_slice %130 {offsets = [0, 5], sizes = [4, 16], strides = [1, 1]} : vector<4x26xf32> to vector<4x16xf32>
    %141 = vector.extract_strided_slice %135 {offsets = [0, 6], sizes = [4, 16], strides = [1, 1]} : vector<4x26xf32> to vector<4x16xf32>
    %142 = vector.extract_strided_slice %129 {offsets = [0, 8], sizes = [4, 16], strides = [1, 1]} : vector<4x26xf32> to vector<4x16xf32>
    %143 = vector.extract_strided_slice %130 {offsets = [0, 9], sizes = [4, 16], strides = [1, 1]} : vector<4x26xf32> to vector<4x16xf32>
    %144 = vector.extract_strided_slice %135 {offsets = [0, 10], sizes = [4, 16], strides = [1, 1]} : vector<4x26xf32> to vector<4x16xf32>
    %145 = tpu.concatenate %136, %137, %138, %139, %140, %141, %142, %143, %144 in 0 : vector<4x16xf32>, vector<4x16xf32>, vector<4x16xf32>, vector<4x16xf32>, vector<4x16xf32>, vector<4x16xf32>, vector<4x16xf32>, vector<4x16xf32>, vector<4x16xf32> -> vector<36x16xf32>
    %146 = arith.truncf %145 : vector<36x16xf32> to vector<36x16xbf16>
    %c0_42 = arith.constant 0 : index
    %c0_43 = arith.constant 0 : index
    %147 = vector.load %arg9[%c0_42, %c0_43] : memref<4x36xbf16, #tpu.memory_space<vmem>>, vector<4x36xbf16>
    %cst_44 = arith.constant dense<0.000000e+00> : vector<4x16xf32>
    %148 = tpu.matmul %147, %146, %cst_44 {dimension_numbers = #tpu.dot_dimension_numbers<[1], [0], [0], [1], [0, 0, 1, 1], [], []>} : vector<4x36xbf16>, vector<36x16xbf16>, vector<4x16xf32> -> vector<4x16xf32>
    %149 = tpu.concatenate %82, %115, %148 in 0 : vector<8x16xf32>, vector<4x16xf32>, vector<4x16xf32> -> vector<16x16xf32>
    %150 = arith.addf %149, %42 : vector<16x16xf32>
    %c0_45 = arith.constant 0 : index
    %c0_46 = arith.constant 0 : index
    %c0_47 = arith.constant 0 : index
    %151 = vector.load %arg12[%c0_45, %c0_46, %c0_47] : memref<1x16x16xf32, #tpu.memory_space<vmem>>, vector<1x16x16xf32>
    %152 = vector.shape_cast %151 : vector<1x16x16xf32> to vector<16x16xf32>
    %153 = vector.shape_cast %150 : vector<16x16xf32> to vector<1x16x16xf32>
    tpu.vector_store %arg12[%c0_45, %c0_46, %c0_47], %153 {strides = array<i32>} : memref<1x16x16xf32, #tpu.memory_space<vmem>>, vector<1x16x16xf32>,
    return
  }
  func.func @transform_0(%arg0: i32) -> (i32, i32, i32) {
    %c0_i32 = arith.constant 0 : i32
    %c0_i32_0 = arith.constant 0 : i32
    %c0_i32_1 = arith.constant 0 : i32
    return %arg0, %c0_i32, %c0_i32_0 : i32, i32, i32
  }
  func.func @transform_1(%arg0: i32) -> (i32, i32) {
    %c0_i32 = arith.constant 0 : i32
    %c0_i32_0 = arith.constant 0 : i32
    %c0_i32_1 = arith.constant 0 : i32
    return %c0_i32, %c0_i32_0 : i32, i32
  }
  func.func @transform_2(%arg0: i32) -> (i32, i32) {
    %c0_i32 = arith.constant 0 : i32
    %c0_i32_0 = arith.constant 0 : i32
    %c0_i32_1 = arith.constant 0 : i32
    return %c0_i32, %c0_i32_0 : i32, i32
  }
  func.func @transform_3(%arg0: i32) -> (i32, i32) {
    %c0_i32 = arith.constant 0 : i32
    %c0_i32_0 = arith.constant 0 : i32
    %c0_i32_1 = arith.constant 0 : i32
    return %c0_i32, %c0_i32_0 : i32, i32
  }
  func.func @transform_4(%arg0: i32) -> (i32, i32) {
    %c0_i32 = arith.constant 0 : i32
    %c0_i32_0 = arith.constant 0 : i32
    %c0_i32_1 = arith.constant 0 : i32
    return %c0_i32, %c0_i32_0 : i32, i32
  }
  func.func @transform_5(%arg0: i32) -> (i32, i32) {
    %c0_i32 = arith.constant 0 : i32
    %c0_i32_0 = arith.constant 0 : i32
    %c0_i32_1 = arith.constant 0 : i32
    return %c0_i32, %c0_i32_0 : i32, i32
  }
  func.func @transform_6(%arg0: i32) -> (i32, i32) {
    %c0_i32 = arith.constant 0 : i32
    %c0_i32_0 = arith.constant 0 : i32
    %c0_i32_1 = arith.constant 0 : i32
    return %c0_i32, %c0_i32_0 : i32, i32
  }
  func.func @transform_7(%arg0: i32) -> (i32, i32) {
    %c0_i32 = arith.constant 0 : i32
    %c0_i32_0 = arith.constant 0 : i32
    %c0_i32_1 = arith.constant 0 : i32
    return %c0_i32, %c0_i32_0 : i32, i32
  }
  func.func @transform_8(%arg0: i32) -> (i32, i32) {
    %c0_i32 = arith.constant 0 : i32
    %c0_i32_0 = arith.constant 0 : i32
    %c0_i32_1 = arith.constant 0 : i32
    return %c0_i32, %c0_i32_0 : i32, i32
  }
  func.func @transform_9(%arg0: i32) -> (i32, i32) {
    %c0_i32 = arith.constant 0 : i32
    %c0_i32_0 = arith.constant 0 : i32
    %c0_i32_1 = arith.constant 0 : i32
    return %c0_i32, %c0_i32_0 : i32, i32
  }
  func.func @transform_10(%arg0: i32) -> (i32, i32) {
    %c0_i32 = arith.constant 0 : i32
    %c0_i32_0 = arith.constant 0 : i32
    %c0_i32_1 = arith.constant 0 : i32
    return %c0_i32, %c0_i32_0 : i32, i32
  }
  func.func @transform_11(%arg0: i32) -> (i32, i32, i32) {
    %c0_i32 = arith.constant 0 : i32
    %c0_i32_0 = arith.constant 0 : i32
    %c0_i32_1 = arith.constant 0 : i32
    return %arg0, %c0_i32, %c0_i32_0 : i32, i32, i32
  }
}

module attributes {stable_mosaic.version = 11 : i64} {
  func.func @_hg_block_kernel(%arg0: i32, %arg1: memref<1x16x256xf32, #tpu.memory_space<vmem>>, %arg2: memref<8x144xbf16, #tpu.memory_space<vmem>>, %arg3: memref<16x1xf32, #tpu.memory_space<vmem>>, %arg4: memref<16x1xf32, #tpu.memory_space<vmem>>, %arg5: memref<4x72xbf16, #tpu.memory_space<vmem>>, %arg6: memref<8x1xf32, #tpu.memory_space<vmem>>, %arg7: memref<8x1xf32, #tpu.memory_space<vmem>>, %arg8: memref<4x36xbf16, #tpu.memory_space<vmem>>, %arg9: memref<4x1xf32, #tpu.memory_space<vmem>>, %arg10: memref<4x1xf32, #tpu.memory_space<vmem>>, %arg11: memref<1x16x256xf32, #tpu.memory_space<vmem>>) attributes {dimension_semantics = [#tpu.dimension_semantics<parallel>], iteration_bounds = array<i64: 2>, scalar_prefetch = 0 : i64, scratch_operands = 0 : i64, tpu.core_type = #tpu.core_type<tc>, window_params = [{transform_indices = @transform_0, window_bounds = array<i64: 1, 16, 256>}, {pipeline_mode = #tpu.pipeline_mode<synchronous>, transform_indices = @transform_1, window_bounds = array<i64: 8, 144>}, {pipeline_mode = #tpu.pipeline_mode<synchronous>, transform_indices = @transform_2, window_bounds = array<i64: 16, 1>}, {pipeline_mode = #tpu.pipeline_mode<synchronous>, transform_indices = @transform_3, window_bounds = array<i64: 16, 1>}, {pipeline_mode = #tpu.pipeline_mode<synchronous>, transform_indices = @transform_4, window_bounds = array<i64: 4, 72>}, {pipeline_mode = #tpu.pipeline_mode<synchronous>, transform_indices = @transform_5, window_bounds = array<i64: 8, 1>}, {pipeline_mode = #tpu.pipeline_mode<synchronous>, transform_indices = @transform_6, window_bounds = array<i64: 8, 1>}, {pipeline_mode = #tpu.pipeline_mode<synchronous>, transform_indices = @transform_7, window_bounds = array<i64: 4, 36>}, {pipeline_mode = #tpu.pipeline_mode<synchronous>, transform_indices = @transform_8, window_bounds = array<i64: 4, 1>}, {pipeline_mode = #tpu.pipeline_mode<synchronous>, transform_indices = @transform_9, window_bounds = array<i64: 4, 1>}, {transform_indices = @transform_10, window_bounds = array<i64: 1, 16, 256>}]} {
    %c0 = arith.constant 0 : index
    %c0_0 = arith.constant 0 : index
    %c0_1 = arith.constant 0 : index
    %0 = vector.load %arg1[%c0, %c0_0, %c0_1] : memref<1x16x256xf32, #tpu.memory_space<vmem>>, vector<1x16x256xf32>
    %1 = vector.shape_cast %0 : vector<1x16x256xf32> to vector<16x256xf32>
    %2 = tpu.iota {dimensions = array<i32: 1>} : vector<1x256xi32>
    %c15_i32 = arith.constant 15 : i32
    %3 = vector.broadcast %c15_i32 : i32 to vector<1x256xi32>
    %4 = arith.andi %2, %3 : vector<1x256xi32>
    %c14_i32 = arith.constant 14 : i32
    %5 = vector.broadcast %c14_i32 : i32 to vector<1x256xi32>
    %6 = arith.cmpi sle, %4, %5 : vector<1x256xi32>
    %c1_i32 = arith.constant 1 : i32
    %7 = vector.broadcast %c1_i32 : i32 to vector<1x256xi32>
    %8 = arith.cmpi sge, %4, %7 : vector<1x256xi32>
    %c0_2 = arith.constant 0 : index
    %c0_3 = arith.constant 0 : index
    %9 = vector.load %arg3[%c0_2, %c0_3] : memref<16x1xf32, #tpu.memory_space<vmem>>, vector<16x1xf32>
    %10 = vector.broadcast %9 : vector<16x1xf32> to vector<16x256xf32>
    %11 = arith.mulf %1, %10 : vector<16x256xf32>
    %c0_4 = arith.constant 0 : index
    %c0_5 = arith.constant 0 : index
    %12 = vector.load %arg4[%c0_4, %c0_5] : memref<16x1xf32, #tpu.memory_space<vmem>>, vector<16x1xf32>
    %13 = vector.broadcast %12 : vector<16x1xf32> to vector<16x256xf32>
    %14 = arith.addf %11, %13 : vector<16x256xf32>
    %cst = arith.constant 0.000000e+00 : f32
    %15 = vector.broadcast %cst : f32 to vector<16x256xf32>
    %16 = arith.maximumf %14, %15 : vector<16x256xf32>
    %cst_6 = arith.constant 0.000000e+00 : f32
    %17 = vector.broadcast %cst_6 : f32 to vector<16x17xf32>
    %cst_7 = arith.constant 0.000000e+00 : f32
    %18 = vector.shape_cast %6 : vector<1x256xi1> to vector<1x256xi1>
    %19 = vector.broadcast %18 : vector<1x256xi1> to vector<16x256xi1>
    %20 = vector.broadcast %cst_7 : f32 to vector<16x256xf32>
    %21 = arith.select %19, %16, %20 : vector<16x256xi1>, vector<16x256xf32>
    %22 = tpu.concatenate %17, %21, %17 in 1 : vector<16x17xf32>, vector<16x256xf32>, vector<16x17xf32> -> vector<16x290xf32>
    %23 = tpu.concatenate %17, %16, %17 in 1 : vector<16x17xf32>, vector<16x256xf32>, vector<16x17xf32> -> vector<16x290xf32>
    %cst_8 = arith.constant 0.000000e+00 : f32
    %24 = vector.shape_cast %8 : vector<1x256xi1> to vector<1x256xi1>
    %25 = vector.broadcast %24 : vector<1x256xi1> to vector<16x256xi1>
    %26 = vector.broadcast %cst_8 : f32 to vector<16x256xf32>
    %27 = arith.select %25, %16, %26 : vector<16x256xi1>, vector<16x256xf32>
    %28 = tpu.concatenate %17, %27, %17 in 1 : vector<16x17xf32>, vector<16x256xf32>, vector<16x17xf32> -> vector<16x290xf32>
    %29 = vector.extract_strided_slice %22 {offsets = [0, 0], sizes = [16, 256], strides = [1, 1]} : vector<16x290xf32> to vector<16x256xf32>
    %30 = vector.extract_strided_slice %23 {offsets = [0, 1], sizes = [16, 256], strides = [1, 1]} : vector<16x290xf32> to vector<16x256xf32>
    %31 = vector.extract_strided_slice %28 {offsets = [0, 2], sizes = [16, 256], strides = [1, 1]} : vector<16x290xf32> to vector<16x256xf32>
    %32 = vector.extract_strided_slice %22 {offsets = [0, 16], sizes = [16, 256], strides = [1, 1]} : vector<16x290xf32> to vector<16x256xf32>
    %33 = vector.extract_strided_slice %23 {offsets = [0, 17], sizes = [16, 256], strides = [1, 1]} : vector<16x290xf32> to vector<16x256xf32>
    %34 = vector.extract_strided_slice %28 {offsets = [0, 18], sizes = [16, 256], strides = [1, 1]} : vector<16x290xf32> to vector<16x256xf32>
    %35 = vector.extract_strided_slice %22 {offsets = [0, 32], sizes = [16, 256], strides = [1, 1]} : vector<16x290xf32> to vector<16x256xf32>
    %36 = vector.extract_strided_slice %23 {offsets = [0, 33], sizes = [16, 256], strides = [1, 1]} : vector<16x290xf32> to vector<16x256xf32>
    %37 = vector.extract_strided_slice %28 {offsets = [0, 34], sizes = [16, 256], strides = [1, 1]} : vector<16x290xf32> to vector<16x256xf32>
    %38 = tpu.concatenate %29, %30, %31, %32, %33, %34, %35, %36, %37 in 0 : vector<16x256xf32>, vector<16x256xf32>, vector<16x256xf32>, vector<16x256xf32>, vector<16x256xf32>, vector<16x256xf32>, vector<16x256xf32>, vector<16x256xf32>, vector<16x256xf32> -> vector<144x256xf32>
    %39 = arith.truncf %38 : vector<144x256xf32> to vector<144x256xbf16>
    %c0_9 = arith.constant 0 : index
    %c0_10 = arith.constant 0 : index
    %40 = vector.load %arg2[%c0_9, %c0_10] : memref<8x144xbf16, #tpu.memory_space<vmem>>, vector<8x144xbf16>
    %cst_11 = arith.constant dense<0.000000e+00> : vector<8x256xf32>
    %41 = tpu.matmul %40, %39, %cst_11 {dimension_numbers = #tpu.dot_dimension_numbers<[1], [0], [0], [1], [0, 0, 1, 1], [], []>} : vector<8x144xbf16>, vector<144x256xbf16>, vector<8x256xf32> -> vector<8x256xf32>
    %c0_12 = arith.constant 0 : index
    %c0_13 = arith.constant 0 : index
    %42 = vector.load %arg6[%c0_12, %c0_13] : memref<8x1xf32, #tpu.memory_space<vmem>>, vector<8x1xf32>
    %43 = vector.broadcast %42 : vector<8x1xf32> to vector<8x256xf32>
    %44 = arith.mulf %41, %43 : vector<8x256xf32>
    %c0_14 = arith.constant 0 : index
    %c0_15 = arith.constant 0 : index
    %45 = vector.load %arg7[%c0_14, %c0_15] : memref<8x1xf32, #tpu.memory_space<vmem>>, vector<8x1xf32>
    %46 = vector.broadcast %45 : vector<8x1xf32> to vector<8x256xf32>
    %47 = arith.addf %44, %46 : vector<8x256xf32>
    %cst_16 = arith.constant 0.000000e+00 : f32
    %48 = vector.broadcast %cst_16 : f32 to vector<8x256xf32>
    %49 = arith.maximumf %47, %48 : vector<8x256xf32>
    %cst_17 = arith.constant 0.000000e+00 : f32
    %50 = vector.broadcast %cst_17 : f32 to vector<8x17xf32>
    %cst_18 = arith.constant 0.000000e+00 : f32
    %51 = vector.shape_cast %6 : vector<1x256xi1> to vector<1x256xi1>
    %52 = vector.broadcast %51 : vector<1x256xi1> to vector<8x256xi1>
    %53 = vector.broadcast %cst_18 : f32 to vector<8x256xf32>
    %54 = arith.select %52, %49, %53 : vector<8x256xi1>, vector<8x256xf32>
    %55 = tpu.concatenate %50, %54, %50 in 1 : vector<8x17xf32>, vector<8x256xf32>, vector<8x17xf32> -> vector<8x290xf32>
    %56 = tpu.concatenate %50, %49, %50 in 1 : vector<8x17xf32>, vector<8x256xf32>, vector<8x17xf32> -> vector<8x290xf32>
    %cst_19 = arith.constant 0.000000e+00 : f32
    %57 = vector.shape_cast %8 : vector<1x256xi1> to vector<1x256xi1>
    %58 = vector.broadcast %57 : vector<1x256xi1> to vector<8x256xi1>
    %59 = vector.broadcast %cst_19 : f32 to vector<8x256xf32>
    %60 = arith.select %58, %49, %59 : vector<8x256xi1>, vector<8x256xf32>
    %61 = tpu.concatenate %50, %60, %50 in 1 : vector<8x17xf32>, vector<8x256xf32>, vector<8x17xf32> -> vector<8x290xf32>
    %62 = vector.extract_strided_slice %55 {offsets = [0, 0], sizes = [8, 256], strides = [1, 1]} : vector<8x290xf32> to vector<8x256xf32>
    %63 = vector.extract_strided_slice %56 {offsets = [0, 1], sizes = [8, 256], strides = [1, 1]} : vector<8x290xf32> to vector<8x256xf32>
    %64 = vector.extract_strided_slice %61 {offsets = [0, 2], sizes = [8, 256], strides = [1, 1]} : vector<8x290xf32> to vector<8x256xf32>
    %65 = vector.extract_strided_slice %55 {offsets = [0, 16], sizes = [8, 256], strides = [1, 1]} : vector<8x290xf32> to vector<8x256xf32>
    %66 = vector.extract_strided_slice %56 {offsets = [0, 17], sizes = [8, 256], strides = [1, 1]} : vector<8x290xf32> to vector<8x256xf32>
    %67 = vector.extract_strided_slice %61 {offsets = [0, 18], sizes = [8, 256], strides = [1, 1]} : vector<8x290xf32> to vector<8x256xf32>
    %68 = vector.extract_strided_slice %55 {offsets = [0, 32], sizes = [8, 256], strides = [1, 1]} : vector<8x290xf32> to vector<8x256xf32>
    %69 = vector.extract_strided_slice %56 {offsets = [0, 33], sizes = [8, 256], strides = [1, 1]} : vector<8x290xf32> to vector<8x256xf32>
    %70 = vector.extract_strided_slice %61 {offsets = [0, 34], sizes = [8, 256], strides = [1, 1]} : vector<8x290xf32> to vector<8x256xf32>
    %71 = tpu.concatenate %62, %63, %64, %65, %66, %67, %68, %69, %70 in 0 : vector<8x256xf32>, vector<8x256xf32>, vector<8x256xf32>, vector<8x256xf32>, vector<8x256xf32>, vector<8x256xf32>, vector<8x256xf32>, vector<8x256xf32>, vector<8x256xf32> -> vector<72x256xf32>
    %72 = arith.truncf %71 : vector<72x256xf32> to vector<72x256xbf16>
    %c0_20 = arith.constant 0 : index
    %c0_21 = arith.constant 0 : index
    %73 = vector.load %arg5[%c0_20, %c0_21] : memref<4x72xbf16, #tpu.memory_space<vmem>>, vector<4x72xbf16>
    %cst_22 = arith.constant dense<0.000000e+00> : vector<4x256xf32>
    %74 = tpu.matmul %73, %72, %cst_22 {dimension_numbers = #tpu.dot_dimension_numbers<[1], [0], [0], [1], [0, 0, 1, 1], [], []>} : vector<4x72xbf16>, vector<72x256xbf16>, vector<4x256xf32> -> vector<4x256xf32>
    %c0_23 = arith.constant 0 : index
    %c0_24 = arith.constant 0 : index
    %75 = vector.load %arg9[%c0_23, %c0_24] : memref<4x1xf32, #tpu.memory_space<vmem>>, vector<4x1xf32>
    %76 = vector.broadcast %75 : vector<4x1xf32> to vector<4x256xf32>
    %77 = arith.mulf %74, %76 : vector<4x256xf32>
    %c0_25 = arith.constant 0 : index
    %c0_26 = arith.constant 0 : index
    %78 = vector.load %arg10[%c0_25, %c0_26] : memref<4x1xf32, #tpu.memory_space<vmem>>, vector<4x1xf32>
    %79 = vector.broadcast %78 : vector<4x1xf32> to vector<4x256xf32>
    %80 = arith.addf %77, %79 : vector<4x256xf32>
    %cst_27 = arith.constant 0.000000e+00 : f32
    %81 = vector.broadcast %cst_27 : f32 to vector<4x256xf32>
    %82 = arith.maximumf %80, %81 : vector<4x256xf32>
    %cst_28 = arith.constant 0.000000e+00 : f32
    %83 = vector.broadcast %cst_28 : f32 to vector<4x17xf32>
    %cst_29 = arith.constant 0.000000e+00 : f32
    %84 = vector.shape_cast %6 : vector<1x256xi1> to vector<1x256xi1>
    %85 = vector.broadcast %84 : vector<1x256xi1> to vector<4x256xi1>
    %86 = vector.broadcast %cst_29 : f32 to vector<4x256xf32>
    %87 = arith.select %85, %82, %86 : vector<4x256xi1>, vector<4x256xf32>
    %88 = tpu.concatenate %83, %87, %83 in 1 : vector<4x17xf32>, vector<4x256xf32>, vector<4x17xf32> -> vector<4x290xf32>
    %89 = tpu.concatenate %83, %82, %83 in 1 : vector<4x17xf32>, vector<4x256xf32>, vector<4x17xf32> -> vector<4x290xf32>
    %cst_30 = arith.constant 0.000000e+00 : f32
    %90 = vector.shape_cast %8 : vector<1x256xi1> to vector<1x256xi1>
    %91 = vector.broadcast %90 : vector<1x256xi1> to vector<4x256xi1>
    %92 = vector.broadcast %cst_30 : f32 to vector<4x256xf32>
    %93 = arith.select %91, %82, %92 : vector<4x256xi1>, vector<4x256xf32>
    %94 = tpu.concatenate %83, %93, %83 in 1 : vector<4x17xf32>, vector<4x256xf32>, vector<4x17xf32> -> vector<4x290xf32>
    %95 = vector.extract_strided_slice %88 {offsets = [0, 0], sizes = [4, 256], strides = [1, 1]} : vector<4x290xf32> to vector<4x256xf32>
    %96 = vector.extract_strided_slice %89 {offsets = [0, 1], sizes = [4, 256], strides = [1, 1]} : vector<4x290xf32> to vector<4x256xf32>
    %97 = vector.extract_strided_slice %94 {offsets = [0, 2], sizes = [4, 256], strides = [1, 1]} : vector<4x290xf32> to vector<4x256xf32>
    %98 = vector.extract_strided_slice %88 {offsets = [0, 16], sizes = [4, 256], strides = [1, 1]} : vector<4x290xf32> to vector<4x256xf32>
    %99 = vector.extract_strided_slice %89 {offsets = [0, 17], sizes = [4, 256], strides = [1, 1]} : vector<4x290xf32> to vector<4x256xf32>
    %100 = vector.extract_strided_slice %94 {offsets = [0, 18], sizes = [4, 256], strides = [1, 1]} : vector<4x290xf32> to vector<4x256xf32>
    %101 = vector.extract_strided_slice %88 {offsets = [0, 32], sizes = [4, 256], strides = [1, 1]} : vector<4x290xf32> to vector<4x256xf32>
    %102 = vector.extract_strided_slice %89 {offsets = [0, 33], sizes = [4, 256], strides = [1, 1]} : vector<4x290xf32> to vector<4x256xf32>
    %103 = vector.extract_strided_slice %94 {offsets = [0, 34], sizes = [4, 256], strides = [1, 1]} : vector<4x290xf32> to vector<4x256xf32>
    %104 = tpu.concatenate %95, %96, %97, %98, %99, %100, %101, %102, %103 in 0 : vector<4x256xf32>, vector<4x256xf32>, vector<4x256xf32>, vector<4x256xf32>, vector<4x256xf32>, vector<4x256xf32>, vector<4x256xf32>, vector<4x256xf32>, vector<4x256xf32> -> vector<36x256xf32>
    %105 = arith.truncf %104 : vector<36x256xf32> to vector<36x256xbf16>
    %c0_31 = arith.constant 0 : index
    %c0_32 = arith.constant 0 : index
    %106 = vector.load %arg8[%c0_31, %c0_32] : memref<4x36xbf16, #tpu.memory_space<vmem>>, vector<4x36xbf16>
    %cst_33 = arith.constant dense<0.000000e+00> : vector<4x256xf32>
    %107 = tpu.matmul %106, %105, %cst_33 {dimension_numbers = #tpu.dot_dimension_numbers<[1], [0], [0], [1], [0, 0, 1, 1], [], []>} : vector<4x36xbf16>, vector<36x256xbf16>, vector<4x256xf32> -> vector<4x256xf32>
    %108 = tpu.concatenate %41, %74, %107 in 0 : vector<8x256xf32>, vector<4x256xf32>, vector<4x256xf32> -> vector<16x256xf32>
    %109 = arith.addf %108, %1 : vector<16x256xf32>
    %c0_34 = arith.constant 0 : index
    %c0_35 = arith.constant 0 : index
    %c0_36 = arith.constant 0 : index
    %110 = vector.load %arg11[%c0_34, %c0_35, %c0_36] : memref<1x16x256xf32, #tpu.memory_space<vmem>>, vector<1x16x256xf32>
    %111 = vector.shape_cast %110 : vector<1x16x256xf32> to vector<16x256xf32>
    %112 = vector.shape_cast %109 : vector<16x256xf32> to vector<1x16x256xf32>
    tpu.vector_store %arg11[%c0_34, %c0_35, %c0_36], %112 {strides = array<i32>} : memref<1x16x256xf32, #tpu.memory_space<vmem>>, vector<1x16x256xf32>,
    return
  }
  func.func @transform_0(%arg0: i32) -> (i32, i32, i32) {
    %c0_i32 = arith.constant 0 : i32
    %c0_i32_0 = arith.constant 0 : i32
    %c0_i32_1 = arith.constant 0 : i32
    return %arg0, %c0_i32, %c0_i32_0 : i32, i32, i32
  }
  func.func @transform_1(%arg0: i32) -> (i32, i32) {
    %c0_i32 = arith.constant 0 : i32
    %c0_i32_0 = arith.constant 0 : i32
    %c0_i32_1 = arith.constant 0 : i32
    return %c0_i32, %c0_i32_0 : i32, i32
  }
  func.func @transform_2(%arg0: i32) -> (i32, i32) {
    %c0_i32 = arith.constant 0 : i32
    %c0_i32_0 = arith.constant 0 : i32
    %c0_i32_1 = arith.constant 0 : i32
    return %c0_i32, %c0_i32_0 : i32, i32
  }
  func.func @transform_3(%arg0: i32) -> (i32, i32) {
    %c0_i32 = arith.constant 0 : i32
    %c0_i32_0 = arith.constant 0 : i32
    %c0_i32_1 = arith.constant 0 : i32
    return %c0_i32, %c0_i32_0 : i32, i32
  }
  func.func @transform_4(%arg0: i32) -> (i32, i32) {
    %c0_i32 = arith.constant 0 : i32
    %c0_i32_0 = arith.constant 0 : i32
    %c0_i32_1 = arith.constant 0 : i32
    return %c0_i32, %c0_i32_0 : i32, i32
  }
  func.func @transform_5(%arg0: i32) -> (i32, i32) {
    %c0_i32 = arith.constant 0 : i32
    %c0_i32_0 = arith.constant 0 : i32
    %c0_i32_1 = arith.constant 0 : i32
    return %c0_i32, %c0_i32_0 : i32, i32
  }
  func.func @transform_6(%arg0: i32) -> (i32, i32) {
    %c0_i32 = arith.constant 0 : i32
    %c0_i32_0 = arith.constant 0 : i32
    %c0_i32_1 = arith.constant 0 : i32
    return %c0_i32, %c0_i32_0 : i32, i32
  }
  func.func @transform_7(%arg0: i32) -> (i32, i32) {
    %c0_i32 = arith.constant 0 : i32
    %c0_i32_0 = arith.constant 0 : i32
    %c0_i32_1 = arith.constant 0 : i32
    return %c0_i32, %c0_i32_0 : i32, i32
  }
  func.func @transform_8(%arg0: i32) -> (i32, i32) {
    %c0_i32 = arith.constant 0 : i32
    %c0_i32_0 = arith.constant 0 : i32
    %c0_i32_1 = arith.constant 0 : i32
    return %c0_i32, %c0_i32_0 : i32, i32
  }
  func.func @transform_9(%arg0: i32) -> (i32, i32) {
    %c0_i32 = arith.constant 0 : i32
    %c0_i32_0 = arith.constant 0 : i32
    %c0_i32_1 = arith.constant 0 : i32
    return %c0_i32, %c0_i32_0 : i32, i32
  }
  func.func @transform_10(%arg0: i32) -> (i32, i32, i32) {
    %c0_i32 = arith.constant 0 : i32
    %c0_i32_0 = arith.constant 0 : i32
    %c0_i32_1 = arith.constant 0 : i32
    return %arg0, %c0_i32, %c0_i32_0 : i32, i32, i32
  }
}

module attributes {stable_mosaic.version = 11 : i64} {
  func.func @_hg_block_kernel(%arg0: i32, %arg1: memref<1x16x64xf32, #tpu.memory_space<vmem>>, %arg2: memref<8x144xbf16, #tpu.memory_space<vmem>>, %arg3: memref<16x1xf32, #tpu.memory_space<vmem>>, %arg4: memref<16x1xf32, #tpu.memory_space<vmem>>, %arg5: memref<4x72xbf16, #tpu.memory_space<vmem>>, %arg6: memref<8x1xf32, #tpu.memory_space<vmem>>, %arg7: memref<8x1xf32, #tpu.memory_space<vmem>>, %arg8: memref<4x36xbf16, #tpu.memory_space<vmem>>, %arg9: memref<4x1xf32, #tpu.memory_space<vmem>>, %arg10: memref<4x1xf32, #tpu.memory_space<vmem>>, %arg11: memref<1x16x64xf32, #tpu.memory_space<vmem>>) attributes {dimension_semantics = [#tpu.dimension_semantics<parallel>], iteration_bounds = array<i64: 2>, scalar_prefetch = 0 : i64, scratch_operands = 0 : i64, tpu.core_type = #tpu.core_type<tc>, window_params = [{transform_indices = @transform_0, window_bounds = array<i64: 1, 16, 64>}, {pipeline_mode = #tpu.pipeline_mode<synchronous>, transform_indices = @transform_1, window_bounds = array<i64: 8, 144>}, {pipeline_mode = #tpu.pipeline_mode<synchronous>, transform_indices = @transform_2, window_bounds = array<i64: 16, 1>}, {pipeline_mode = #tpu.pipeline_mode<synchronous>, transform_indices = @transform_3, window_bounds = array<i64: 16, 1>}, {pipeline_mode = #tpu.pipeline_mode<synchronous>, transform_indices = @transform_4, window_bounds = array<i64: 4, 72>}, {pipeline_mode = #tpu.pipeline_mode<synchronous>, transform_indices = @transform_5, window_bounds = array<i64: 8, 1>}, {pipeline_mode = #tpu.pipeline_mode<synchronous>, transform_indices = @transform_6, window_bounds = array<i64: 8, 1>}, {pipeline_mode = #tpu.pipeline_mode<synchronous>, transform_indices = @transform_7, window_bounds = array<i64: 4, 36>}, {pipeline_mode = #tpu.pipeline_mode<synchronous>, transform_indices = @transform_8, window_bounds = array<i64: 4, 1>}, {pipeline_mode = #tpu.pipeline_mode<synchronous>, transform_indices = @transform_9, window_bounds = array<i64: 4, 1>}, {transform_indices = @transform_10, window_bounds = array<i64: 1, 16, 64>}]} {
    %c0 = arith.constant 0 : index
    %c0_0 = arith.constant 0 : index
    %c0_1 = arith.constant 0 : index
    %0 = vector.load %arg1[%c0, %c0_0, %c0_1] : memref<1x16x64xf32, #tpu.memory_space<vmem>>, vector<1x16x64xf32>
    %1 = vector.shape_cast %0 : vector<1x16x64xf32> to vector<16x64xf32>
    %2 = tpu.iota {dimensions = array<i32: 1>} : vector<1x64xi32>
    %c7_i32 = arith.constant 7 : i32
    %3 = vector.broadcast %c7_i32 : i32 to vector<1x64xi32>
    %4 = arith.andi %2, %3 : vector<1x64xi32>
    %c6_i32 = arith.constant 6 : i32
    %5 = vector.broadcast %c6_i32 : i32 to vector<1x64xi32>
    %6 = arith.cmpi sle, %4, %5 : vector<1x64xi32>
    %c1_i32 = arith.constant 1 : i32
    %7 = vector.broadcast %c1_i32 : i32 to vector<1x64xi32>
    %8 = arith.cmpi sge, %4, %7 : vector<1x64xi32>
    %c0_2 = arith.constant 0 : index
    %c0_3 = arith.constant 0 : index
    %9 = vector.load %arg3[%c0_2, %c0_3] : memref<16x1xf32, #tpu.memory_space<vmem>>, vector<16x1xf32>
    %10 = vector.broadcast %9 : vector<16x1xf32> to vector<16x64xf32>
    %11 = arith.mulf %1, %10 : vector<16x64xf32>
    %c0_4 = arith.constant 0 : index
    %c0_5 = arith.constant 0 : index
    %12 = vector.load %arg4[%c0_4, %c0_5] : memref<16x1xf32, #tpu.memory_space<vmem>>, vector<16x1xf32>
    %13 = vector.broadcast %12 : vector<16x1xf32> to vector<16x64xf32>
    %14 = arith.addf %11, %13 : vector<16x64xf32>
    %cst = arith.constant 0.000000e+00 : f32
    %15 = vector.broadcast %cst : f32 to vector<16x64xf32>
    %16 = arith.maximumf %14, %15 : vector<16x64xf32>
    %cst_6 = arith.constant 0.000000e+00 : f32
    %17 = vector.broadcast %cst_6 : f32 to vector<16x9xf32>
    %cst_7 = arith.constant 0.000000e+00 : f32
    %18 = vector.shape_cast %6 : vector<1x64xi1> to vector<1x64xi1>
    %19 = vector.broadcast %18 : vector<1x64xi1> to vector<16x64xi1>
    %20 = vector.broadcast %cst_7 : f32 to vector<16x64xf32>
    %21 = arith.select %19, %16, %20 : vector<16x64xi1>, vector<16x64xf32>
    %22 = tpu.concatenate %17, %21, %17 in 1 : vector<16x9xf32>, vector<16x64xf32>, vector<16x9xf32> -> vector<16x82xf32>
    %23 = tpu.concatenate %17, %16, %17 in 1 : vector<16x9xf32>, vector<16x64xf32>, vector<16x9xf32> -> vector<16x82xf32>
    %cst_8 = arith.constant 0.000000e+00 : f32
    %24 = vector.shape_cast %8 : vector<1x64xi1> to vector<1x64xi1>
    %25 = vector.broadcast %24 : vector<1x64xi1> to vector<16x64xi1>
    %26 = vector.broadcast %cst_8 : f32 to vector<16x64xf32>
    %27 = arith.select %25, %16, %26 : vector<16x64xi1>, vector<16x64xf32>
    %28 = tpu.concatenate %17, %27, %17 in 1 : vector<16x9xf32>, vector<16x64xf32>, vector<16x9xf32> -> vector<16x82xf32>
    %29 = vector.extract_strided_slice %22 {offsets = [0, 0], sizes = [16, 64], strides = [1, 1]} : vector<16x82xf32> to vector<16x64xf32>
    %30 = vector.extract_strided_slice %23 {offsets = [0, 1], sizes = [16, 64], strides = [1, 1]} : vector<16x82xf32> to vector<16x64xf32>
    %31 = vector.extract_strided_slice %28 {offsets = [0, 2], sizes = [16, 64], strides = [1, 1]} : vector<16x82xf32> to vector<16x64xf32>
    %32 = vector.extract_strided_slice %22 {offsets = [0, 8], sizes = [16, 64], strides = [1, 1]} : vector<16x82xf32> to vector<16x64xf32>
    %33 = vector.extract_strided_slice %23 {offsets = [0, 9], sizes = [16, 64], strides = [1, 1]} : vector<16x82xf32> to vector<16x64xf32>
    %34 = vector.extract_strided_slice %28 {offsets = [0, 10], sizes = [16, 64], strides = [1, 1]} : vector<16x82xf32> to vector<16x64xf32>
    %35 = vector.extract_strided_slice %22 {offsets = [0, 16], sizes = [16, 64], strides = [1, 1]} : vector<16x82xf32> to vector<16x64xf32>
    %36 = vector.extract_strided_slice %23 {offsets = [0, 17], sizes = [16, 64], strides = [1, 1]} : vector<16x82xf32> to vector<16x64xf32>
    %37 = vector.extract_strided_slice %28 {offsets = [0, 18], sizes = [16, 64], strides = [1, 1]} : vector<16x82xf32> to vector<16x64xf32>
    %38 = tpu.concatenate %29, %30, %31, %32, %33, %34, %35, %36, %37 in 0 : vector<16x64xf32>, vector<16x64xf32>, vector<16x64xf32>, vector<16x64xf32>, vector<16x64xf32>, vector<16x64xf32>, vector<16x64xf32>, vector<16x64xf32>, vector<16x64xf32> -> vector<144x64xf32>
    %39 = arith.truncf %38 : vector<144x64xf32> to vector<144x64xbf16>
    %c0_9 = arith.constant 0 : index
    %c0_10 = arith.constant 0 : index
    %40 = vector.load %arg2[%c0_9, %c0_10] : memref<8x144xbf16, #tpu.memory_space<vmem>>, vector<8x144xbf16>
    %cst_11 = arith.constant dense<0.000000e+00> : vector<8x64xf32>
    %41 = tpu.matmul %40, %39, %cst_11 {dimension_numbers = #tpu.dot_dimension_numbers<[1], [0], [0], [1], [0, 0, 1, 1], [], []>} : vector<8x144xbf16>, vector<144x64xbf16>, vector<8x64xf32> -> vector<8x64xf32>
    %c0_12 = arith.constant 0 : index
    %c0_13 = arith.constant 0 : index
    %42 = vector.load %arg6[%c0_12, %c0_13] : memref<8x1xf32, #tpu.memory_space<vmem>>, vector<8x1xf32>
    %43 = vector.broadcast %42 : vector<8x1xf32> to vector<8x64xf32>
    %44 = arith.mulf %41, %43 : vector<8x64xf32>
    %c0_14 = arith.constant 0 : index
    %c0_15 = arith.constant 0 : index
    %45 = vector.load %arg7[%c0_14, %c0_15] : memref<8x1xf32, #tpu.memory_space<vmem>>, vector<8x1xf32>
    %46 = vector.broadcast %45 : vector<8x1xf32> to vector<8x64xf32>
    %47 = arith.addf %44, %46 : vector<8x64xf32>
    %cst_16 = arith.constant 0.000000e+00 : f32
    %48 = vector.broadcast %cst_16 : f32 to vector<8x64xf32>
    %49 = arith.maximumf %47, %48 : vector<8x64xf32>
    %cst_17 = arith.constant 0.000000e+00 : f32
    %50 = vector.broadcast %cst_17 : f32 to vector<8x9xf32>
    %cst_18 = arith.constant 0.000000e+00 : f32
    %51 = vector.shape_cast %6 : vector<1x64xi1> to vector<1x64xi1>
    %52 = vector.broadcast %51 : vector<1x64xi1> to vector<8x64xi1>
    %53 = vector.broadcast %cst_18 : f32 to vector<8x64xf32>
    %54 = arith.select %52, %49, %53 : vector<8x64xi1>, vector<8x64xf32>
    %55 = tpu.concatenate %50, %54, %50 in 1 : vector<8x9xf32>, vector<8x64xf32>, vector<8x9xf32> -> vector<8x82xf32>
    %56 = tpu.concatenate %50, %49, %50 in 1 : vector<8x9xf32>, vector<8x64xf32>, vector<8x9xf32> -> vector<8x82xf32>
    %cst_19 = arith.constant 0.000000e+00 : f32
    %57 = vector.shape_cast %8 : vector<1x64xi1> to vector<1x64xi1>
    %58 = vector.broadcast %57 : vector<1x64xi1> to vector<8x64xi1>
    %59 = vector.broadcast %cst_19 : f32 to vector<8x64xf32>
    %60 = arith.select %58, %49, %59 : vector<8x64xi1>, vector<8x64xf32>
    %61 = tpu.concatenate %50, %60, %50 in 1 : vector<8x9xf32>, vector<8x64xf32>, vector<8x9xf32> -> vector<8x82xf32>
    %62 = vector.extract_strided_slice %55 {offsets = [0, 0], sizes = [8, 64], strides = [1, 1]} : vector<8x82xf32> to vector<8x64xf32>
    %63 = vector.extract_strided_slice %56 {offsets = [0, 1], sizes = [8, 64], strides = [1, 1]} : vector<8x82xf32> to vector<8x64xf32>
    %64 = vector.extract_strided_slice %61 {offsets = [0, 2], sizes = [8, 64], strides = [1, 1]} : vector<8x82xf32> to vector<8x64xf32>
    %65 = vector.extract_strided_slice %55 {offsets = [0, 8], sizes = [8, 64], strides = [1, 1]} : vector<8x82xf32> to vector<8x64xf32>
    %66 = vector.extract_strided_slice %56 {offsets = [0, 9], sizes = [8, 64], strides = [1, 1]} : vector<8x82xf32> to vector<8x64xf32>
    %67 = vector.extract_strided_slice %61 {offsets = [0, 10], sizes = [8, 64], strides = [1, 1]} : vector<8x82xf32> to vector<8x64xf32>
    %68 = vector.extract_strided_slice %55 {offsets = [0, 16], sizes = [8, 64], strides = [1, 1]} : vector<8x82xf32> to vector<8x64xf32>
    %69 = vector.extract_strided_slice %56 {offsets = [0, 17], sizes = [8, 64], strides = [1, 1]} : vector<8x82xf32> to vector<8x64xf32>
    %70 = vector.extract_strided_slice %61 {offsets = [0, 18], sizes = [8, 64], strides = [1, 1]} : vector<8x82xf32> to vector<8x64xf32>
    %71 = tpu.concatenate %62, %63, %64, %65, %66, %67, %68, %69, %70 in 0 : vector<8x64xf32>, vector<8x64xf32>, vector<8x64xf32>, vector<8x64xf32>, vector<8x64xf32>, vector<8x64xf32>, vector<8x64xf32>, vector<8x64xf32>, vector<8x64xf32> -> vector<72x64xf32>
    %72 = arith.truncf %71 : vector<72x64xf32> to vector<72x64xbf16>
    %c0_20 = arith.constant 0 : index
    %c0_21 = arith.constant 0 : index
    %73 = vector.load %arg5[%c0_20, %c0_21] : memref<4x72xbf16, #tpu.memory_space<vmem>>, vector<4x72xbf16>
    %cst_22 = arith.constant dense<0.000000e+00> : vector<4x64xf32>
    %74 = tpu.matmul %73, %72, %cst_22 {dimension_numbers = #tpu.dot_dimension_numbers<[1], [0], [0], [1], [0, 0, 1, 1], [], []>} : vector<4x72xbf16>, vector<72x64xbf16>, vector<4x64xf32> -> vector<4x64xf32>
    %c0_23 = arith.constant 0 : index
    %c0_24 = arith.constant 0 : index
    %75 = vector.load %arg9[%c0_23, %c0_24] : memref<4x1xf32, #tpu.memory_space<vmem>>, vector<4x1xf32>
    %76 = vector.broadcast %75 : vector<4x1xf32> to vector<4x64xf32>
    %77 = arith.mulf %74, %76 : vector<4x64xf32>
    %c0_25 = arith.constant 0 : index
    %c0_26 = arith.constant 0 : index
    %78 = vector.load %arg10[%c0_25, %c0_26] : memref<4x1xf32, #tpu.memory_space<vmem>>, vector<4x1xf32>
    %79 = vector.broadcast %78 : vector<4x1xf32> to vector<4x64xf32>
    %80 = arith.addf %77, %79 : vector<4x64xf32>
    %cst_27 = arith.constant 0.000000e+00 : f32
    %81 = vector.broadcast %cst_27 : f32 to vector<4x64xf32>
    %82 = arith.maximumf %80, %81 : vector<4x64xf32>
    %cst_28 = arith.constant 0.000000e+00 : f32
    %83 = vector.broadcast %cst_28 : f32 to vector<4x9xf32>
    %cst_29 = arith.constant 0.000000e+00 : f32
    %84 = vector.shape_cast %6 : vector<1x64xi1> to vector<1x64xi1>
    %85 = vector.broadcast %84 : vector<1x64xi1> to vector<4x64xi1>
    %86 = vector.broadcast %cst_29 : f32 to vector<4x64xf32>
    %87 = arith.select %85, %82, %86 : vector<4x64xi1>, vector<4x64xf32>
    %88 = tpu.concatenate %83, %87, %83 in 1 : vector<4x9xf32>, vector<4x64xf32>, vector<4x9xf32> -> vector<4x82xf32>
    %89 = tpu.concatenate %83, %82, %83 in 1 : vector<4x9xf32>, vector<4x64xf32>, vector<4x9xf32> -> vector<4x82xf32>
    %cst_30 = arith.constant 0.000000e+00 : f32
    %90 = vector.shape_cast %8 : vector<1x64xi1> to vector<1x64xi1>
    %91 = vector.broadcast %90 : vector<1x64xi1> to vector<4x64xi1>
    %92 = vector.broadcast %cst_30 : f32 to vector<4x64xf32>
    %93 = arith.select %91, %82, %92 : vector<4x64xi1>, vector<4x64xf32>
    %94 = tpu.concatenate %83, %93, %83 in 1 : vector<4x9xf32>, vector<4x64xf32>, vector<4x9xf32> -> vector<4x82xf32>
    %95 = vector.extract_strided_slice %88 {offsets = [0, 0], sizes = [4, 64], strides = [1, 1]} : vector<4x82xf32> to vector<4x64xf32>
    %96 = vector.extract_strided_slice %89 {offsets = [0, 1], sizes = [4, 64], strides = [1, 1]} : vector<4x82xf32> to vector<4x64xf32>
    %97 = vector.extract_strided_slice %94 {offsets = [0, 2], sizes = [4, 64], strides = [1, 1]} : vector<4x82xf32> to vector<4x64xf32>
    %98 = vector.extract_strided_slice %88 {offsets = [0, 8], sizes = [4, 64], strides = [1, 1]} : vector<4x82xf32> to vector<4x64xf32>
    %99 = vector.extract_strided_slice %89 {offsets = [0, 9], sizes = [4, 64], strides = [1, 1]} : vector<4x82xf32> to vector<4x64xf32>
    %100 = vector.extract_strided_slice %94 {offsets = [0, 10], sizes = [4, 64], strides = [1, 1]} : vector<4x82xf32> to vector<4x64xf32>
    %101 = vector.extract_strided_slice %88 {offsets = [0, 16], sizes = [4, 64], strides = [1, 1]} : vector<4x82xf32> to vector<4x64xf32>
    %102 = vector.extract_strided_slice %89 {offsets = [0, 17], sizes = [4, 64], strides = [1, 1]} : vector<4x82xf32> to vector<4x64xf32>
    %103 = vector.extract_strided_slice %94 {offsets = [0, 18], sizes = [4, 64], strides = [1, 1]} : vector<4x82xf32> to vector<4x64xf32>
    %104 = tpu.concatenate %95, %96, %97, %98, %99, %100, %101, %102, %103 in 0 : vector<4x64xf32>, vector<4x64xf32>, vector<4x64xf32>, vector<4x64xf32>, vector<4x64xf32>, vector<4x64xf32>, vector<4x64xf32>, vector<4x64xf32>, vector<4x64xf32> -> vector<36x64xf32>
    %105 = arith.truncf %104 : vector<36x64xf32> to vector<36x64xbf16>
    %c0_31 = arith.constant 0 : index
    %c0_32 = arith.constant 0 : index
    %106 = vector.load %arg8[%c0_31, %c0_32] : memref<4x36xbf16, #tpu.memory_space<vmem>>, vector<4x36xbf16>
    %cst_33 = arith.constant dense<0.000000e+00> : vector<4x64xf32>
    %107 = tpu.matmul %106, %105, %cst_33 {dimension_numbers = #tpu.dot_dimension_numbers<[1], [0], [0], [1], [0, 0, 1, 1], [], []>} : vector<4x36xbf16>, vector<36x64xbf16>, vector<4x64xf32> -> vector<4x64xf32>
    %108 = tpu.concatenate %41, %74, %107 in 0 : vector<8x64xf32>, vector<4x64xf32>, vector<4x64xf32> -> vector<16x64xf32>
    %109 = arith.addf %108, %1 : vector<16x64xf32>
    %c0_34 = arith.constant 0 : index
    %c0_35 = arith.constant 0 : index
    %c0_36 = arith.constant 0 : index
    %110 = vector.load %arg11[%c0_34, %c0_35, %c0_36] : memref<1x16x64xf32, #tpu.memory_space<vmem>>, vector<1x16x64xf32>
    %111 = vector.shape_cast %110 : vector<1x16x64xf32> to vector<16x64xf32>
    %112 = vector.shape_cast %109 : vector<16x64xf32> to vector<1x16x64xf32>
    tpu.vector_store %arg11[%c0_34, %c0_35, %c0_36], %112 {strides = array<i32>} : memref<1x16x64xf32, #tpu.memory_space<vmem>>, vector<1x16x64xf32>,
    return
  }
  func.func @transform_0(%arg0: i32) -> (i32, i32, i32) {
    %c0_i32 = arith.constant 0 : i32
    %c0_i32_0 = arith.constant 0 : i32
    %c0_i32_1 = arith.constant 0 : i32
    return %arg0, %c0_i32, %c0_i32_0 : i32, i32, i32
  }
  func.func @transform_1(%arg0: i32) -> (i32, i32) {
    %c0_i32 = arith.constant 0 : i32
    %c0_i32_0 = arith.constant 0 : i32
    %c0_i32_1 = arith.constant 0 : i32
    return %c0_i32, %c0_i32_0 : i32, i32
  }
  func.func @transform_2(%arg0: i32) -> (i32, i32) {
    %c0_i32 = arith.constant 0 : i32
    %c0_i32_0 = arith.constant 0 : i32
    %c0_i32_1 = arith.constant 0 : i32
    return %c0_i32, %c0_i32_0 : i32, i32
  }
  func.func @transform_3(%arg0: i32) -> (i32, i32) {
    %c0_i32 = arith.constant 0 : i32
    %c0_i32_0 = arith.constant 0 : i32
    %c0_i32_1 = arith.constant 0 : i32
    return %c0_i32, %c0_i32_0 : i32, i32
  }
  func.func @transform_4(%arg0: i32) -> (i32, i32) {
    %c0_i32 = arith.constant 0 : i32
    %c0_i32_0 = arith.constant 0 : i32
    %c0_i32_1 = arith.constant 0 : i32
    return %c0_i32, %c0_i32_0 : i32, i32
  }
  func.func @transform_5(%arg0: i32) -> (i32, i32) {
    %c0_i32 = arith.constant 0 : i32
    %c0_i32_0 = arith.constant 0 : i32
    %c0_i32_1 = arith.constant 0 : i32
    return %c0_i32, %c0_i32_0 : i32, i32
  }
  func.func @transform_6(%arg0: i32) -> (i32, i32) {
    %c0_i32 = arith.constant 0 : i32
    %c0_i32_0 = arith.constant 0 : i32
    %c0_i32_1 = arith.constant 0 : i32
    return %c0_i32, %c0_i32_0 : i32, i32
  }
  func.func @transform_7(%arg0: i32) -> (i32, i32) {
    %c0_i32 = arith.constant 0 : i32
    %c0_i32_0 = arith.constant 0 : i32
    %c0_i32_1 = arith.constant 0 : i32
    return %c0_i32, %c0_i32_0 : i32, i32
  }
  func.func @transform_8(%arg0: i32) -> (i32, i32) {
    %c0_i32 = arith.constant 0 : i32
    %c0_i32_0 = arith.constant 0 : i32
    %c0_i32_1 = arith.constant 0 : i32
    return %c0_i32, %c0_i32_0 : i32, i32
  }
  func.func @transform_9(%arg0: i32) -> (i32, i32) {
    %c0_i32 = arith.constant 0 : i32
    %c0_i32_0 = arith.constant 0 : i32
    %c0_i32_1 = arith.constant 0 : i32
    return %c0_i32, %c0_i32_0 : i32, i32
  }
  func.func @transform_10(%arg0: i32) -> (i32, i32, i32) {
    %c0_i32 = arith.constant 0 : i32
    %c0_i32_0 = arith.constant 0 : i32
    %c0_i32_1 = arith.constant 0 : i32
    return %arg0, %c0_i32, %c0_i32_0 : i32, i32, i32
  }
}

module attributes {stable_mosaic.version = 11 : i64} {
  func.func @_hg_block_kernel(%arg0: i32, %arg1: memref<1x16x256xf32, #tpu.memory_space<vmem>>, %arg2: memref<16x8xbf16, #tpu.memory_space<vmem>>, %arg3: memref<8x144xbf16, #tpu.memory_space<vmem>>, %arg4: memref<16x1xf32, #tpu.memory_space<vmem>>, %arg5: memref<16x1xf32, #tpu.memory_space<vmem>>, %arg6: memref<4x72xbf16, #tpu.memory_space<vmem>>, %arg7: memref<8x1xf32, #tpu.memory_space<vmem>>, %arg8: memref<8x1xf32, #tpu.memory_space<vmem>>, %arg9: memref<4x36xbf16, #tpu.memory_space<vmem>>, %arg10: memref<4x1xf32, #tpu.memory_space<vmem>>, %arg11: memref<4x1xf32, #tpu.memory_space<vmem>>, %arg12: memref<1x16x64xf32, #tpu.memory_space<vmem>>) attributes {dimension_semantics = [#tpu.dimension_semantics<parallel>], iteration_bounds = array<i64: 2>, scalar_prefetch = 0 : i64, scratch_operands = 0 : i64, tpu.core_type = #tpu.core_type<tc>, window_params = [{transform_indices = @transform_0, window_bounds = array<i64: 1, 16, 256>}, {pipeline_mode = #tpu.pipeline_mode<synchronous>, transform_indices = @transform_1, window_bounds = array<i64: 16, 8>}, {pipeline_mode = #tpu.pipeline_mode<synchronous>, transform_indices = @transform_2, window_bounds = array<i64: 8, 144>}, {pipeline_mode = #tpu.pipeline_mode<synchronous>, transform_indices = @transform_3, window_bounds = array<i64: 16, 1>}, {pipeline_mode = #tpu.pipeline_mode<synchronous>, transform_indices = @transform_4, window_bounds = array<i64: 16, 1>}, {pipeline_mode = #tpu.pipeline_mode<synchronous>, transform_indices = @transform_5, window_bounds = array<i64: 4, 72>}, {pipeline_mode = #tpu.pipeline_mode<synchronous>, transform_indices = @transform_6, window_bounds = array<i64: 8, 1>}, {pipeline_mode = #tpu.pipeline_mode<synchronous>, transform_indices = @transform_7, window_bounds = array<i64: 8, 1>}, {pipeline_mode = #tpu.pipeline_mode<synchronous>, transform_indices = @transform_8, window_bounds = array<i64: 4, 36>}, {pipeline_mode = #tpu.pipeline_mode<synchronous>, transform_indices = @transform_9, window_bounds = array<i64: 4, 1>}, {pipeline_mode = #tpu.pipeline_mode<synchronous>, transform_indices = @transform_10, window_bounds = array<i64: 4, 1>}, {transform_indices = @transform_11, window_bounds = array<i64: 1, 16, 64>}]} {
    %c0 = arith.constant 0 : index
    %c0_0 = arith.constant 0 : index
    %c0_1 = arith.constant 0 : index
    %0 = vector.load %arg1[%c0, %c0_0, %c0_1] : memref<1x16x256xf32, #tpu.memory_space<vmem>>, vector<1x16x256xf32>
    %1 = vector.shape_cast %0 : vector<1x16x256xf32> to vector<16x256xf32>
    %c0_2 = arith.constant 0 : index
    %c0_3 = arith.constant 0 : index
    %2 = vector.load %arg2[%c0_2, %c0_3] : memref<16x8xbf16, #tpu.memory_space<vmem>>, vector<16x8xbf16>
    %3 = vector.extract_strided_slice %1 {offsets = [0, 0], sizes = [16, 16], strides = [1, 1]} : vector<16x256xf32> to vector<16x16xf32>
    %4 = vector.extract_strided_slice %1 {offsets = [0, 16], sizes = [16, 16], strides = [1, 1]} : vector<16x256xf32> to vector<16x16xf32>
    %5 = vector.extract_strided_slice %1 {offsets = [0, 32], sizes = [16, 16], strides = [1, 1]} : vector<16x256xf32> to vector<16x16xf32>
    %6 = vector.extract_strided_slice %1 {offsets = [0, 48], sizes = [16, 16], strides = [1, 1]} : vector<16x256xf32> to vector<16x16xf32>
    %7 = vector.extract_strided_slice %1 {offsets = [0, 64], sizes = [16, 16], strides = [1, 1]} : vector<16x256xf32> to vector<16x16xf32>
    %8 = vector.extract_strided_slice %1 {offsets = [0, 80], sizes = [16, 16], strides = [1, 1]} : vector<16x256xf32> to vector<16x16xf32>
    %9 = vector.extract_strided_slice %1 {offsets = [0, 96], sizes = [16, 16], strides = [1, 1]} : vector<16x256xf32> to vector<16x16xf32>
    %10 = vector.extract_strided_slice %1 {offsets = [0, 112], sizes = [16, 16], strides = [1, 1]} : vector<16x256xf32> to vector<16x16xf32>
    %11 = vector.extract_strided_slice %1 {offsets = [0, 128], sizes = [16, 16], strides = [1, 1]} : vector<16x256xf32> to vector<16x16xf32>
    %12 = vector.extract_strided_slice %1 {offsets = [0, 144], sizes = [16, 16], strides = [1, 1]} : vector<16x256xf32> to vector<16x16xf32>
    %13 = vector.extract_strided_slice %1 {offsets = [0, 160], sizes = [16, 16], strides = [1, 1]} : vector<16x256xf32> to vector<16x16xf32>
    %14 = vector.extract_strided_slice %1 {offsets = [0, 176], sizes = [16, 16], strides = [1, 1]} : vector<16x256xf32> to vector<16x16xf32>
    %15 = vector.extract_strided_slice %1 {offsets = [0, 192], sizes = [16, 16], strides = [1, 1]} : vector<16x256xf32> to vector<16x16xf32>
    %16 = vector.extract_strided_slice %1 {offsets = [0, 208], sizes = [16, 16], strides = [1, 1]} : vector<16x256xf32> to vector<16x16xf32>
    %17 = vector.extract_strided_slice %1 {offsets = [0, 224], sizes = [16, 16], strides = [1, 1]} : vector<16x256xf32> to vector<16x16xf32>
    %18 = vector.extract_strided_slice %1 {offsets = [0, 240], sizes = [16, 16], strides = [1, 1]} : vector<16x256xf32> to vector<16x16xf32>
    %19 = tpu.concatenate %3, %4, %5, %6, %7, %8, %9, %10, %11, %12, %13, %14, %15, %16, %17, %18 in 0 : vector<16x16xf32>, vector<16x16xf32>, vector<16x16xf32>, vector<16x16xf32>, vector<16x16xf32>, vector<16x16xf32>, vector<16x16xf32>, vector<16x16xf32>, vector<16x16xf32>, vector<16x16xf32>, vector<16x16xf32>, vector<16x16xf32>, vector<16x16xf32>, vector<16x16xf32>, vector<16x16xf32>, vector<16x16xf32> -> vector<256x16xf32>
    %20 = arith.truncf %19 : vector<256x16xf32> to vector<256x16xbf16>
    %cst = arith.constant dense<0.000000e+00> : vector<256x8xf32>
    %21 = tpu.matmul %20, %2, %cst {dimension_numbers = #tpu.dot_dimension_numbers<[1], [0], [0], [1], [0, 0, 1, 1], [], []>} : vector<256x16xbf16>, vector<16x8xbf16>, vector<256x8xf32> -> vector<256x8xf32>
    %22 = vector.extract_strided_slice %21 {offsets = [0, 0], sizes = [16, 8], strides = [1, 1]} : vector<256x8xf32> to vector<16x8xf32>
    %cst_4 = arith.constant 5.000000e-01 : f32
    %23 = vector.broadcast %cst_4 : f32 to vector<16x8xf32>
    %24 = arith.mulf %23, %22 : vector<16x8xf32>
    %25 = vector.extract_strided_slice %21 {offsets = [16, 0], sizes = [16, 8], strides = [1, 1]} : vector<256x8xf32> to vector<16x8xf32>
    %cst_5 = arith.constant 5.000000e-01 : f32
    %26 = vector.broadcast %cst_5 : f32 to vector<16x8xf32>
    %27 = arith.mulf %26, %25 : vector<16x8xf32>
    %28 = arith.addf %24, %27 : vector<16x8xf32>
    %29 = vector.extract_strided_slice %21 {offsets = [32, 0], sizes = [16, 8], strides = [1, 1]} : vector<256x8xf32> to vector<16x8xf32>
    %cst_6 = arith.constant 5.000000e-01 : f32
    %30 = vector.broadcast %cst_6 : f32 to vector<16x8xf32>
    %31 = arith.mulf %30, %29 : vector<16x8xf32>
    %32 = vector.extract_strided_slice %21 {offsets = [48, 0], sizes = [16, 8], strides = [1, 1]} : vector<256x8xf32> to vector<16x8xf32>
    %cst_7 = arith.constant 5.000000e-01 : f32
    %33 = vector.broadcast %cst_7 : f32 to vector<16x8xf32>
    %34 = arith.mulf %33, %32 : vector<16x8xf32>
    %35 = arith.addf %31, %34 : vector<16x8xf32>
    %36 = vector.extract_strided_slice %21 {offsets = [64, 0], sizes = [16, 8], strides = [1, 1]} : vector<256x8xf32> to vector<16x8xf32>
    %cst_8 = arith.constant 5.000000e-01 : f32
    %37 = vector.broadcast %cst_8 : f32 to vector<16x8xf32>
    %38 = arith.mulf %37, %36 : vector<16x8xf32>
    %39 = vector.extract_strided_slice %21 {offsets = [80, 0], sizes = [16, 8], strides = [1, 1]} : vector<256x8xf32> to vector<16x8xf32>
    %cst_9 = arith.constant 5.000000e-01 : f32
    %40 = vector.broadcast %cst_9 : f32 to vector<16x8xf32>
    %41 = arith.mulf %40, %39 : vector<16x8xf32>
    %42 = arith.addf %38, %41 : vector<16x8xf32>
    %43 = vector.extract_strided_slice %21 {offsets = [96, 0], sizes = [16, 8], strides = [1, 1]} : vector<256x8xf32> to vector<16x8xf32>
    %cst_10 = arith.constant 5.000000e-01 : f32
    %44 = vector.broadcast %cst_10 : f32 to vector<16x8xf32>
    %45 = arith.mulf %44, %43 : vector<16x8xf32>
    %46 = vector.extract_strided_slice %21 {offsets = [112, 0], sizes = [16, 8], strides = [1, 1]} : vector<256x8xf32> to vector<16x8xf32>
    %cst_11 = arith.constant 5.000000e-01 : f32
    %47 = vector.broadcast %cst_11 : f32 to vector<16x8xf32>
    %48 = arith.mulf %47, %46 : vector<16x8xf32>
    %49 = arith.addf %45, %48 : vector<16x8xf32>
    %50 = vector.extract_strided_slice %21 {offsets = [128, 0], sizes = [16, 8], strides = [1, 1]} : vector<256x8xf32> to vector<16x8xf32>
    %cst_12 = arith.constant 5.000000e-01 : f32
    %51 = vector.broadcast %cst_12 : f32 to vector<16x8xf32>
    %52 = arith.mulf %51, %50 : vector<16x8xf32>
    %53 = vector.extract_strided_slice %21 {offsets = [144, 0], sizes = [16, 8], strides = [1, 1]} : vector<256x8xf32> to vector<16x8xf32>
    %cst_13 = arith.constant 5.000000e-01 : f32
    %54 = vector.broadcast %cst_13 : f32 to vector<16x8xf32>
    %55 = arith.mulf %54, %53 : vector<16x8xf32>
    %56 = arith.addf %52, %55 : vector<16x8xf32>
    %57 = vector.extract_strided_slice %21 {offsets = [160, 0], sizes = [16, 8], strides = [1, 1]} : vector<256x8xf32> to vector<16x8xf32>
    %cst_14 = arith.constant 5.000000e-01 : f32
    %58 = vector.broadcast %cst_14 : f32 to vector<16x8xf32>
    %59 = arith.mulf %58, %57 : vector<16x8xf32>
    %60 = vector.extract_strided_slice %21 {offsets = [176, 0], sizes = [16, 8], strides = [1, 1]} : vector<256x8xf32> to vector<16x8xf32>
    %cst_15 = arith.constant 5.000000e-01 : f32
    %61 = vector.broadcast %cst_15 : f32 to vector<16x8xf32>
    %62 = arith.mulf %61, %60 : vector<16x8xf32>
    %63 = arith.addf %59, %62 : vector<16x8xf32>
    %64 = vector.extract_strided_slice %21 {offsets = [192, 0], sizes = [16, 8], strides = [1, 1]} : vector<256x8xf32> to vector<16x8xf32>
    %cst_16 = arith.constant 5.000000e-01 : f32
    %65 = vector.broadcast %cst_16 : f32 to vector<16x8xf32>
    %66 = arith.mulf %65, %64 : vector<16x8xf32>
    %67 = vector.extract_strided_slice %21 {offsets = [208, 0], sizes = [16, 8], strides = [1, 1]} : vector<256x8xf32> to vector<16x8xf32>
    %cst_17 = arith.constant 5.000000e-01 : f32
    %68 = vector.broadcast %cst_17 : f32 to vector<16x8xf32>
    %69 = arith.mulf %68, %67 : vector<16x8xf32>
    %70 = arith.addf %66, %69 : vector<16x8xf32>
    %71 = vector.extract_strided_slice %21 {offsets = [224, 0], sizes = [16, 8], strides = [1, 1]} : vector<256x8xf32> to vector<16x8xf32>
    %cst_18 = arith.constant 5.000000e-01 : f32
    %72 = vector.broadcast %cst_18 : f32 to vector<16x8xf32>
    %73 = arith.mulf %72, %71 : vector<16x8xf32>
    %74 = vector.extract_strided_slice %21 {offsets = [240, 0], sizes = [16, 8], strides = [1, 1]} : vector<256x8xf32> to vector<16x8xf32>
    %cst_19 = arith.constant 5.000000e-01 : f32
    %75 = vector.broadcast %cst_19 : f32 to vector<16x8xf32>
    %76 = arith.mulf %75, %74 : vector<16x8xf32>
    %77 = arith.addf %73, %76 : vector<16x8xf32>
    %78 = tpu.concatenate %28, %35, %42, %49, %56, %63, %70, %77 in 1 : vector<16x8xf32>, vector<16x8xf32>, vector<16x8xf32>, vector<16x8xf32>, vector<16x8xf32>, vector<16x8xf32>, vector<16x8xf32>, vector<16x8xf32> -> vector<16x64xf32>
    %79 = tpu.iota {dimensions = array<i32: 1>} : vector<1x64xi32>
    %c7_i32 = arith.constant 7 : i32
    %80 = vector.broadcast %c7_i32 : i32 to vector<1x64xi32>
    %81 = arith.andi %79, %80 : vector<1x64xi32>
    %c6_i32 = arith.constant 6 : i32
    %82 = vector.broadcast %c6_i32 : i32 to vector<1x64xi32>
    %83 = arith.cmpi sle, %81, %82 : vector<1x64xi32>
    %c1_i32 = arith.constant 1 : i32
    %84 = vector.broadcast %c1_i32 : i32 to vector<1x64xi32>
    %85 = arith.cmpi sge, %81, %84 : vector<1x64xi32>
    %c0_20 = arith.constant 0 : index
    %c0_21 = arith.constant 0 : index
    %86 = vector.load %arg4[%c0_20, %c0_21] : memref<16x1xf32, #tpu.memory_space<vmem>>, vector<16x1xf32>
    %87 = vector.broadcast %86 : vector<16x1xf32> to vector<16x64xf32>
    %88 = arith.mulf %78, %87 : vector<16x64xf32>
    %c0_22 = arith.constant 0 : index
    %c0_23 = arith.constant 0 : index
    %89 = vector.load %arg5[%c0_22, %c0_23] : memref<16x1xf32, #tpu.memory_space<vmem>>, vector<16x1xf32>
    %90 = vector.broadcast %89 : vector<16x1xf32> to vector<16x64xf32>
    %91 = arith.addf %88, %90 : vector<16x64xf32>
    %cst_24 = arith.constant 0.000000e+00 : f32
    %92 = vector.broadcast %cst_24 : f32 to vector<16x64xf32>
    %93 = arith.maximumf %91, %92 : vector<16x64xf32>
    %cst_25 = arith.constant 0.000000e+00 : f32
    %94 = vector.broadcast %cst_25 : f32 to vector<16x9xf32>
    %cst_26 = arith.constant 0.000000e+00 : f32
    %95 = vector.shape_cast %83 : vector<1x64xi1> to vector<1x64xi1>
    %96 = vector.broadcast %95 : vector<1x64xi1> to vector<16x64xi1>
    %97 = vector.broadcast %cst_26 : f32 to vector<16x64xf32>
    %98 = arith.select %96, %93, %97 : vector<16x64xi1>, vector<16x64xf32>
    %99 = tpu.concatenate %94, %98, %94 in 1 : vector<16x9xf32>, vector<16x64xf32>, vector<16x9xf32> -> vector<16x82xf32>
    %100 = tpu.concatenate %94, %93, %94 in 1 : vector<16x9xf32>, vector<16x64xf32>, vector<16x9xf32> -> vector<16x82xf32>
    %cst_27 = arith.constant 0.000000e+00 : f32
    %101 = vector.shape_cast %85 : vector<1x64xi1> to vector<1x64xi1>
    %102 = vector.broadcast %101 : vector<1x64xi1> to vector<16x64xi1>
    %103 = vector.broadcast %cst_27 : f32 to vector<16x64xf32>
    %104 = arith.select %102, %93, %103 : vector<16x64xi1>, vector<16x64xf32>
    %105 = tpu.concatenate %94, %104, %94 in 1 : vector<16x9xf32>, vector<16x64xf32>, vector<16x9xf32> -> vector<16x82xf32>
    %106 = vector.extract_strided_slice %99 {offsets = [0, 0], sizes = [16, 64], strides = [1, 1]} : vector<16x82xf32> to vector<16x64xf32>
    %107 = vector.extract_strided_slice %100 {offsets = [0, 1], sizes = [16, 64], strides = [1, 1]} : vector<16x82xf32> to vector<16x64xf32>
    %108 = vector.extract_strided_slice %105 {offsets = [0, 2], sizes = [16, 64], strides = [1, 1]} : vector<16x82xf32> to vector<16x64xf32>
    %109 = vector.extract_strided_slice %99 {offsets = [0, 8], sizes = [16, 64], strides = [1, 1]} : vector<16x82xf32> to vector<16x64xf32>
    %110 = vector.extract_strided_slice %100 {offsets = [0, 9], sizes = [16, 64], strides = [1, 1]} : vector<16x82xf32> to vector<16x64xf32>
    %111 = vector.extract_strided_slice %105 {offsets = [0, 10], sizes = [16, 64], strides = [1, 1]} : vector<16x82xf32> to vector<16x64xf32>
    %112 = vector.extract_strided_slice %99 {offsets = [0, 16], sizes = [16, 64], strides = [1, 1]} : vector<16x82xf32> to vector<16x64xf32>
    %113 = vector.extract_strided_slice %100 {offsets = [0, 17], sizes = [16, 64], strides = [1, 1]} : vector<16x82xf32> to vector<16x64xf32>
    %114 = vector.extract_strided_slice %105 {offsets = [0, 18], sizes = [16, 64], strides = [1, 1]} : vector<16x82xf32> to vector<16x64xf32>
    %115 = tpu.concatenate %106, %107, %108, %109, %110, %111, %112, %113, %114 in 0 : vector<16x64xf32>, vector<16x64xf32>, vector<16x64xf32>, vector<16x64xf32>, vector<16x64xf32>, vector<16x64xf32>, vector<16x64xf32>, vector<16x64xf32>, vector<16x64xf32> -> vector<144x64xf32>
    %116 = arith.truncf %115 : vector<144x64xf32> to vector<144x64xbf16>
    %c0_28 = arith.constant 0 : index
    %c0_29 = arith.constant 0 : index
    %117 = vector.load %arg3[%c0_28, %c0_29] : memref<8x144xbf16, #tpu.memory_space<vmem>>, vector<8x144xbf16>
    %cst_30 = arith.constant dense<0.000000e+00> : vector<8x64xf32>
    %118 = tpu.matmul %117, %116, %cst_30 {dimension_numbers = #tpu.dot_dimension_numbers<[1], [0], [0], [1], [0, 0, 1, 1], [], []>} : vector<8x144xbf16>, vector<144x64xbf16>, vector<8x64xf32> -> vector<8x64xf32>
    %c0_31 = arith.constant 0 : index
    %c0_32 = arith.constant 0 : index
    %119 = vector.load %arg7[%c0_31, %c0_32] : memref<8x1xf32, #tpu.memory_space<vmem>>, vector<8x1xf32>
    %120 = vector.broadcast %119 : vector<8x1xf32> to vector<8x64xf32>
    %121 = arith.mulf %118, %120 : vector<8x64xf32>
    %c0_33 = arith.constant 0 : index
    %c0_34 = arith.constant 0 : index
    %122 = vector.load %arg8[%c0_33, %c0_34] : memref<8x1xf32, #tpu.memory_space<vmem>>, vector<8x1xf32>
    %123 = vector.broadcast %122 : vector<8x1xf32> to vector<8x64xf32>
    %124 = arith.addf %121, %123 : vector<8x64xf32>
    %cst_35 = arith.constant 0.000000e+00 : f32
    %125 = vector.broadcast %cst_35 : f32 to vector<8x64xf32>
    %126 = arith.maximumf %124, %125 : vector<8x64xf32>
    %cst_36 = arith.constant 0.000000e+00 : f32
    %127 = vector.broadcast %cst_36 : f32 to vector<8x9xf32>
    %cst_37 = arith.constant 0.000000e+00 : f32
    %128 = vector.shape_cast %83 : vector<1x64xi1> to vector<1x64xi1>
    %129 = vector.broadcast %128 : vector<1x64xi1> to vector<8x64xi1>
    %130 = vector.broadcast %cst_37 : f32 to vector<8x64xf32>
    %131 = arith.select %129, %126, %130 : vector<8x64xi1>, vector<8x64xf32>
    %132 = tpu.concatenate %127, %131, %127 in 1 : vector<8x9xf32>, vector<8x64xf32>, vector<8x9xf32> -> vector<8x82xf32>
    %133 = tpu.concatenate %127, %126, %127 in 1 : vector<8x9xf32>, vector<8x64xf32>, vector<8x9xf32> -> vector<8x82xf32>
    %cst_38 = arith.constant 0.000000e+00 : f32
    %134 = vector.shape_cast %85 : vector<1x64xi1> to vector<1x64xi1>
    %135 = vector.broadcast %134 : vector<1x64xi1> to vector<8x64xi1>
    %136 = vector.broadcast %cst_38 : f32 to vector<8x64xf32>
    %137 = arith.select %135, %126, %136 : vector<8x64xi1>, vector<8x64xf32>
    %138 = tpu.concatenate %127, %137, %127 in 1 : vector<8x9xf32>, vector<8x64xf32>, vector<8x9xf32> -> vector<8x82xf32>
    %139 = vector.extract_strided_slice %132 {offsets = [0, 0], sizes = [8, 64], strides = [1, 1]} : vector<8x82xf32> to vector<8x64xf32>
    %140 = vector.extract_strided_slice %133 {offsets = [0, 1], sizes = [8, 64], strides = [1, 1]} : vector<8x82xf32> to vector<8x64xf32>
    %141 = vector.extract_strided_slice %138 {offsets = [0, 2], sizes = [8, 64], strides = [1, 1]} : vector<8x82xf32> to vector<8x64xf32>
    %142 = vector.extract_strided_slice %132 {offsets = [0, 8], sizes = [8, 64], strides = [1, 1]} : vector<8x82xf32> to vector<8x64xf32>
    %143 = vector.extract_strided_slice %133 {offsets = [0, 9], sizes = [8, 64], strides = [1, 1]} : vector<8x82xf32> to vector<8x64xf32>
    %144 = vector.extract_strided_slice %138 {offsets = [0, 10], sizes = [8, 64], strides = [1, 1]} : vector<8x82xf32> to vector<8x64xf32>
    %145 = vector.extract_strided_slice %132 {offsets = [0, 16], sizes = [8, 64], strides = [1, 1]} : vector<8x82xf32> to vector<8x64xf32>
    %146 = vector.extract_strided_slice %133 {offsets = [0, 17], sizes = [8, 64], strides = [1, 1]} : vector<8x82xf32> to vector<8x64xf32>
    %147 = vector.extract_strided_slice %138 {offsets = [0, 18], sizes = [8, 64], strides = [1, 1]} : vector<8x82xf32> to vector<8x64xf32>
    %148 = tpu.concatenate %139, %140, %141, %142, %143, %144, %145, %146, %147 in 0 : vector<8x64xf32>, vector<8x64xf32>, vector<8x64xf32>, vector<8x64xf32>, vector<8x64xf32>, vector<8x64xf32>, vector<8x64xf32>, vector<8x64xf32>, vector<8x64xf32> -> vector<72x64xf32>
    %149 = arith.truncf %148 : vector<72x64xf32> to vector<72x64xbf16>
    %c0_39 = arith.constant 0 : index
    %c0_40 = arith.constant 0 : index
    %150 = vector.load %arg6[%c0_39, %c0_40] : memref<4x72xbf16, #tpu.memory_space<vmem>>, vector<4x72xbf16>
    %cst_41 = arith.constant dense<0.000000e+00> : vector<4x64xf32>
    %151 = tpu.matmul %150, %149, %cst_41 {dimension_numbers = #tpu.dot_dimension_numbers<[1], [0], [0], [1], [0, 0, 1, 1], [], []>} : vector<4x72xbf16>, vector<72x64xbf16>, vector<4x64xf32> -> vector<4x64xf32>
    %c0_42 = arith.constant 0 : index
    %c0_43 = arith.constant 0 : index
    %152 = vector.load %arg10[%c0_42, %c0_43] : memref<4x1xf32, #tpu.memory_space<vmem>>, vector<4x1xf32>
    %153 = vector.broadcast %152 : vector<4x1xf32> to vector<4x64xf32>
    %154 = arith.mulf %151, %153 : vector<4x64xf32>
    %c0_44 = arith.constant 0 : index
    %c0_45 = arith.constant 0 : index
    %155 = vector.load %arg11[%c0_44, %c0_45] : memref<4x1xf32, #tpu.memory_space<vmem>>, vector<4x1xf32>
    %156 = vector.broadcast %155 : vector<4x1xf32> to vector<4x64xf32>
    %157 = arith.addf %154, %156 : vector<4x64xf32>
    %cst_46 = arith.constant 0.000000e+00 : f32
    %158 = vector.broadcast %cst_46 : f32 to vector<4x64xf32>
    %159 = arith.maximumf %157, %158 : vector<4x64xf32>
    %cst_47 = arith.constant 0.000000e+00 : f32
    %160 = vector.broadcast %cst_47 : f32 to vector<4x9xf32>
    %cst_48 = arith.constant 0.000000e+00 : f32
    %161 = vector.shape_cast %83 : vector<1x64xi1> to vector<1x64xi1>
    %162 = vector.broadcast %161 : vector<1x64xi1> to vector<4x64xi1>
    %163 = vector.broadcast %cst_48 : f32 to vector<4x64xf32>
    %164 = arith.select %162, %159, %163 : vector<4x64xi1>, vector<4x64xf32>
    %165 = tpu.concatenate %160, %164, %160 in 1 : vector<4x9xf32>, vector<4x64xf32>, vector<4x9xf32> -> vector<4x82xf32>
    %166 = tpu.concatenate %160, %159, %160 in 1 : vector<4x9xf32>, vector<4x64xf32>, vector<4x9xf32> -> vector<4x82xf32>
    %cst_49 = arith.constant 0.000000e+00 : f32
    %167 = vector.shape_cast %85 : vector<1x64xi1> to vector<1x64xi1>
    %168 = vector.broadcast %167 : vector<1x64xi1> to vector<4x64xi1>
    %169 = vector.broadcast %cst_49 : f32 to vector<4x64xf32>
    %170 = arith.select %168, %159, %169 : vector<4x64xi1>, vector<4x64xf32>
    %171 = tpu.concatenate %160, %170, %160 in 1 : vector<4x9xf32>, vector<4x64xf32>, vector<4x9xf32> -> vector<4x82xf32>
    %172 = vector.extract_strided_slice %165 {offsets = [0, 0], sizes = [4, 64], strides = [1, 1]} : vector<4x82xf32> to vector<4x64xf32>
    %173 = vector.extract_strided_slice %166 {offsets = [0, 1], sizes = [4, 64], strides = [1, 1]} : vector<4x82xf32> to vector<4x64xf32>
    %174 = vector.extract_strided_slice %171 {offsets = [0, 2], sizes = [4, 64], strides = [1, 1]} : vector<4x82xf32> to vector<4x64xf32>
    %175 = vector.extract_strided_slice %165 {offsets = [0, 8], sizes = [4, 64], strides = [1, 1]} : vector<4x82xf32> to vector<4x64xf32>
    %176 = vector.extract_strided_slice %166 {offsets = [0, 9], sizes = [4, 64], strides = [1, 1]} : vector<4x82xf32> to vector<4x64xf32>
    %177 = vector.extract_strided_slice %171 {offsets = [0, 10], sizes = [4, 64], strides = [1, 1]} : vector<4x82xf32> to vector<4x64xf32>
    %178 = vector.extract_strided_slice %165 {offsets = [0, 16], sizes = [4, 64], strides = [1, 1]} : vector<4x82xf32> to vector<4x64xf32>
    %179 = vector.extract_strided_slice %166 {offsets = [0, 17], sizes = [4, 64], strides = [1, 1]} : vector<4x82xf32> to vector<4x64xf32>
    %180 = vector.extract_strided_slice %171 {offsets = [0, 18], sizes = [4, 64], strides = [1, 1]} : vector<4x82xf32> to vector<4x64xf32>
    %181 = tpu.concatenate %172, %173, %174, %175, %176, %177, %178, %179, %180 in 0 : vector<4x64xf32>, vector<4x64xf32>, vector<4x64xf32>, vector<4x64xf32>, vector<4x64xf32>, vector<4x64xf32>, vector<4x64xf32>, vector<4x64xf32>, vector<4x64xf32> -> vector<36x64xf32>
    %182 = arith.truncf %181 : vector<36x64xf32> to vector<36x64xbf16>
    %c0_50 = arith.constant 0 : index
    %c0_51 = arith.constant 0 : index
    %183 = vector.load %arg9[%c0_50, %c0_51] : memref<4x36xbf16, #tpu.memory_space<vmem>>, vector<4x36xbf16>
    %cst_52 = arith.constant dense<0.000000e+00> : vector<4x64xf32>
    %184 = tpu.matmul %183, %182, %cst_52 {dimension_numbers = #tpu.dot_dimension_numbers<[1], [0], [0], [1], [0, 0, 1, 1], [], []>} : vector<4x36xbf16>, vector<36x64xbf16>, vector<4x64xf32> -> vector<4x64xf32>
    %185 = tpu.concatenate %118, %151, %184 in 0 : vector<8x64xf32>, vector<4x64xf32>, vector<4x64xf32> -> vector<16x64xf32>
    %186 = arith.addf %185, %78 : vector<16x64xf32>
    %c0_53 = arith.constant 0 : index
    %c0_54 = arith.constant 0 : index
    %c0_55 = arith.constant 0 : index
    %187 = vector.load %arg12[%c0_53, %c0_54, %c0_55] : memref<1x16x64xf32, #tpu.memory_space<vmem>>, vector<1x16x64xf32>
    %188 = vector.shape_cast %187 : vector<1x16x64xf32> to vector<16x64xf32>
    %189 = vector.shape_cast %186 : vector<16x64xf32> to vector<1x16x64xf32>
    tpu.vector_store %arg12[%c0_53, %c0_54, %c0_55], %189 {strides = array<i32>} : memref<1x16x64xf32, #tpu.memory_space<vmem>>, vector<1x16x64xf32>,
    return
  }
  func.func @transform_0(%arg0: i32) -> (i32, i32, i32) {
    %c0_i32 = arith.constant 0 : i32
    %c0_i32_0 = arith.constant 0 : i32
    %c0_i32_1 = arith.constant 0 : i32
    return %arg0, %c0_i32, %c0_i32_0 : i32, i32, i32
  }
  func.func @transform_1(%arg0: i32) -> (i32, i32) {
    %c0_i32 = arith.constant 0 : i32
    %c0_i32_0 = arith.constant 0 : i32
    %c0_i32_1 = arith.constant 0 : i32
    return %c0_i32, %c0_i32_0 : i32, i32
  }
  func.func @transform_2(%arg0: i32) -> (i32, i32) {
    %c0_i32 = arith.constant 0 : i32
    %c0_i32_0 = arith.constant 0 : i32
    %c0_i32_1 = arith.constant 0 : i32
    return %c0_i32, %c0_i32_0 : i32, i32
  }
  func.func @transform_3(%arg0: i32) -> (i32, i32) {
    %c0_i32 = arith.constant 0 : i32
    %c0_i32_0 = arith.constant 0 : i32
    %c0_i32_1 = arith.constant 0 : i32
    return %c0_i32, %c0_i32_0 : i32, i32
  }
  func.func @transform_4(%arg0: i32) -> (i32, i32) {
    %c0_i32 = arith.constant 0 : i32
    %c0_i32_0 = arith.constant 0 : i32
    %c0_i32_1 = arith.constant 0 : i32
    return %c0_i32, %c0_i32_0 : i32, i32
  }
  func.func @transform_5(%arg0: i32) -> (i32, i32) {
    %c0_i32 = arith.constant 0 : i32
    %c0_i32_0 = arith.constant 0 : i32
    %c0_i32_1 = arith.constant 0 : i32
    return %c0_i32, %c0_i32_0 : i32, i32
  }
  func.func @transform_6(%arg0: i32) -> (i32, i32) {
    %c0_i32 = arith.constant 0 : i32
    %c0_i32_0 = arith.constant 0 : i32
    %c0_i32_1 = arith.constant 0 : i32
    return %c0_i32, %c0_i32_0 : i32, i32
  }
  func.func @transform_7(%arg0: i32) -> (i32, i32) {
    %c0_i32 = arith.constant 0 : i32
    %c0_i32_0 = arith.constant 0 : i32
    %c0_i32_1 = arith.constant 0 : i32
    return %c0_i32, %c0_i32_0 : i32, i32
  }
  func.func @transform_8(%arg0: i32) -> (i32, i32) {
    %c0_i32 = arith.constant 0 : i32
    %c0_i32_0 = arith.constant 0 : i32
    %c0_i32_1 = arith.constant 0 : i32
    return %c0_i32, %c0_i32_0 : i32, i32
  }
  func.func @transform_9(%arg0: i32) -> (i32, i32) {
    %c0_i32 = arith.constant 0 : i32
    %c0_i32_0 = arith.constant 0 : i32
    %c0_i32_1 = arith.constant 0 : i32
    return %c0_i32, %c0_i32_0 : i32, i32
  }
  func.func @transform_10(%arg0: i32) -> (i32, i32) {
    %c0_i32 = arith.constant 0 : i32
    %c0_i32_0 = arith.constant 0 : i32
    %c0_i32_1 = arith.constant 0 : i32
    return %c0_i32, %c0_i32_0 : i32, i32
  }
  func.func @transform_11(%arg0: i32) -> (i32, i32, i32) {
    %c0_i32 = arith.constant 0 : i32
    %c0_i32_0 = arith.constant 0 : i32
    %c0_i32_1 = arith.constant 0 : i32
    return %arg0, %c0_i32, %c0_i32_0 : i32, i32, i32
  }
}

module attributes {stable_mosaic.version = 11 : i64} {
  func.func @_hg_block_kernel(%arg0: i32, %arg1: memref<1x16x16xf32, #tpu.memory_space<vmem>>, %arg2: memref<8x144xbf16, #tpu.memory_space<vmem>>, %arg3: memref<16x1xf32, #tpu.memory_space<vmem>>, %arg4: memref<16x1xf32, #tpu.memory_space<vmem>>, %arg5: memref<4x72xbf16, #tpu.memory_space<vmem>>, %arg6: memref<8x1xf32, #tpu.memory_space<vmem>>, %arg7: memref<8x1xf32, #tpu.memory_space<vmem>>, %arg8: memref<4x36xbf16, #tpu.memory_space<vmem>>, %arg9: memref<4x1xf32, #tpu.memory_space<vmem>>, %arg10: memref<4x1xf32, #tpu.memory_space<vmem>>, %arg11: memref<1x16x16xf32, #tpu.memory_space<vmem>>) attributes {dimension_semantics = [#tpu.dimension_semantics<parallel>], iteration_bounds = array<i64: 2>, scalar_prefetch = 0 : i64, scratch_operands = 0 : i64, tpu.core_type = #tpu.core_type<tc>, window_params = [{transform_indices = @transform_0, window_bounds = array<i64: 1, 16, 16>}, {pipeline_mode = #tpu.pipeline_mode<synchronous>, transform_indices = @transform_1, window_bounds = array<i64: 8, 144>}, {pipeline_mode = #tpu.pipeline_mode<synchronous>, transform_indices = @transform_2, window_bounds = array<i64: 16, 1>}, {pipeline_mode = #tpu.pipeline_mode<synchronous>, transform_indices = @transform_3, window_bounds = array<i64: 16, 1>}, {pipeline_mode = #tpu.pipeline_mode<synchronous>, transform_indices = @transform_4, window_bounds = array<i64: 4, 72>}, {pipeline_mode = #tpu.pipeline_mode<synchronous>, transform_indices = @transform_5, window_bounds = array<i64: 8, 1>}, {pipeline_mode = #tpu.pipeline_mode<synchronous>, transform_indices = @transform_6, window_bounds = array<i64: 8, 1>}, {pipeline_mode = #tpu.pipeline_mode<synchronous>, transform_indices = @transform_7, window_bounds = array<i64: 4, 36>}, {pipeline_mode = #tpu.pipeline_mode<synchronous>, transform_indices = @transform_8, window_bounds = array<i64: 4, 1>}, {pipeline_mode = #tpu.pipeline_mode<synchronous>, transform_indices = @transform_9, window_bounds = array<i64: 4, 1>}, {transform_indices = @transform_10, window_bounds = array<i64: 1, 16, 16>}]} {
    %c0 = arith.constant 0 : index
    %c0_0 = arith.constant 0 : index
    %c0_1 = arith.constant 0 : index
    %0 = vector.load %arg1[%c0, %c0_0, %c0_1] : memref<1x16x16xf32, #tpu.memory_space<vmem>>, vector<1x16x16xf32>
    %1 = vector.shape_cast %0 : vector<1x16x16xf32> to vector<16x16xf32>
    %2 = tpu.iota {dimensions = array<i32: 1>} : vector<1x16xi32>
    %c3_i32 = arith.constant 3 : i32
    %3 = vector.broadcast %c3_i32 : i32 to vector<1x16xi32>
    %4 = arith.andi %2, %3 : vector<1x16xi32>
    %c2_i32 = arith.constant 2 : i32
    %5 = vector.broadcast %c2_i32 : i32 to vector<1x16xi32>
    %6 = arith.cmpi sle, %4, %5 : vector<1x16xi32>
    %c1_i32 = arith.constant 1 : i32
    %7 = vector.broadcast %c1_i32 : i32 to vector<1x16xi32>
    %8 = arith.cmpi sge, %4, %7 : vector<1x16xi32>
    %c0_2 = arith.constant 0 : index
    %c0_3 = arith.constant 0 : index
    %9 = vector.load %arg3[%c0_2, %c0_3] : memref<16x1xf32, #tpu.memory_space<vmem>>, vector<16x1xf32>
    %10 = vector.broadcast %9 : vector<16x1xf32> to vector<16x16xf32>
    %11 = arith.mulf %1, %10 : vector<16x16xf32>
    %c0_4 = arith.constant 0 : index
    %c0_5 = arith.constant 0 : index
    %12 = vector.load %arg4[%c0_4, %c0_5] : memref<16x1xf32, #tpu.memory_space<vmem>>, vector<16x1xf32>
    %13 = vector.broadcast %12 : vector<16x1xf32> to vector<16x16xf32>
    %14 = arith.addf %11, %13 : vector<16x16xf32>
    %cst = arith.constant 0.000000e+00 : f32
    %15 = vector.broadcast %cst : f32 to vector<16x16xf32>
    %16 = arith.maximumf %14, %15 : vector<16x16xf32>
    %cst_6 = arith.constant 0.000000e+00 : f32
    %17 = vector.broadcast %cst_6 : f32 to vector<16x5xf32>
    %cst_7 = arith.constant 0.000000e+00 : f32
    %18 = vector.shape_cast %6 : vector<1x16xi1> to vector<1x16xi1>
    %19 = vector.broadcast %18 : vector<1x16xi1> to vector<16x16xi1>
    %20 = vector.broadcast %cst_7 : f32 to vector<16x16xf32>
    %21 = arith.select %19, %16, %20 : vector<16x16xi1>, vector<16x16xf32>
    %22 = tpu.concatenate %17, %21, %17 in 1 : vector<16x5xf32>, vector<16x16xf32>, vector<16x5xf32> -> vector<16x26xf32>
    %23 = tpu.concatenate %17, %16, %17 in 1 : vector<16x5xf32>, vector<16x16xf32>, vector<16x5xf32> -> vector<16x26xf32>
    %cst_8 = arith.constant 0.000000e+00 : f32
    %24 = vector.shape_cast %8 : vector<1x16xi1> to vector<1x16xi1>
    %25 = vector.broadcast %24 : vector<1x16xi1> to vector<16x16xi1>
    %26 = vector.broadcast %cst_8 : f32 to vector<16x16xf32>
    %27 = arith.select %25, %16, %26 : vector<16x16xi1>, vector<16x16xf32>
    %28 = tpu.concatenate %17, %27, %17 in 1 : vector<16x5xf32>, vector<16x16xf32>, vector<16x5xf32> -> vector<16x26xf32>
    %29 = vector.extract_strided_slice %22 {offsets = [0, 0], sizes = [16, 16], strides = [1, 1]} : vector<16x26xf32> to vector<16x16xf32>
    %30 = vector.extract_strided_slice %23 {offsets = [0, 1], sizes = [16, 16], strides = [1, 1]} : vector<16x26xf32> to vector<16x16xf32>
    %31 = vector.extract_strided_slice %28 {offsets = [0, 2], sizes = [16, 16], strides = [1, 1]} : vector<16x26xf32> to vector<16x16xf32>
    %32 = vector.extract_strided_slice %22 {offsets = [0, 4], sizes = [16, 16], strides = [1, 1]} : vector<16x26xf32> to vector<16x16xf32>
    %33 = vector.extract_strided_slice %23 {offsets = [0, 5], sizes = [16, 16], strides = [1, 1]} : vector<16x26xf32> to vector<16x16xf32>
    %34 = vector.extract_strided_slice %28 {offsets = [0, 6], sizes = [16, 16], strides = [1, 1]} : vector<16x26xf32> to vector<16x16xf32>
    %35 = vector.extract_strided_slice %22 {offsets = [0, 8], sizes = [16, 16], strides = [1, 1]} : vector<16x26xf32> to vector<16x16xf32>
    %36 = vector.extract_strided_slice %23 {offsets = [0, 9], sizes = [16, 16], strides = [1, 1]} : vector<16x26xf32> to vector<16x16xf32>
    %37 = vector.extract_strided_slice %28 {offsets = [0, 10], sizes = [16, 16], strides = [1, 1]} : vector<16x26xf32> to vector<16x16xf32>
    %38 = tpu.concatenate %29, %30, %31, %32, %33, %34, %35, %36, %37 in 0 : vector<16x16xf32>, vector<16x16xf32>, vector<16x16xf32>, vector<16x16xf32>, vector<16x16xf32>, vector<16x16xf32>, vector<16x16xf32>, vector<16x16xf32>, vector<16x16xf32> -> vector<144x16xf32>
    %39 = arith.truncf %38 : vector<144x16xf32> to vector<144x16xbf16>
    %c0_9 = arith.constant 0 : index
    %c0_10 = arith.constant 0 : index
    %40 = vector.load %arg2[%c0_9, %c0_10] : memref<8x144xbf16, #tpu.memory_space<vmem>>, vector<8x144xbf16>
    %cst_11 = arith.constant dense<0.000000e+00> : vector<8x16xf32>
    %41 = tpu.matmul %40, %39, %cst_11 {dimension_numbers = #tpu.dot_dimension_numbers<[1], [0], [0], [1], [0, 0, 1, 1], [], []>} : vector<8x144xbf16>, vector<144x16xbf16>, vector<8x16xf32> -> vector<8x16xf32>
    %c0_12 = arith.constant 0 : index
    %c0_13 = arith.constant 0 : index
    %42 = vector.load %arg6[%c0_12, %c0_13] : memref<8x1xf32, #tpu.memory_space<vmem>>, vector<8x1xf32>
    %43 = vector.broadcast %42 : vector<8x1xf32> to vector<8x16xf32>
    %44 = arith.mulf %41, %43 : vector<8x16xf32>
    %c0_14 = arith.constant 0 : index
    %c0_15 = arith.constant 0 : index
    %45 = vector.load %arg7[%c0_14, %c0_15] : memref<8x1xf32, #tpu.memory_space<vmem>>, vector<8x1xf32>
    %46 = vector.broadcast %45 : vector<8x1xf32> to vector<8x16xf32>
    %47 = arith.addf %44, %46 : vector<8x16xf32>
    %cst_16 = arith.constant 0.000000e+00 : f32
    %48 = vector.broadcast %cst_16 : f32 to vector<8x16xf32>
    %49 = arith.maximumf %47, %48 : vector<8x16xf32>
    %cst_17 = arith.constant 0.000000e+00 : f32
    %50 = vector.broadcast %cst_17 : f32 to vector<8x5xf32>
    %cst_18 = arith.constant 0.000000e+00 : f32
    %51 = vector.shape_cast %6 : vector<1x16xi1> to vector<1x16xi1>
    %52 = vector.broadcast %51 : vector<1x16xi1> to vector<8x16xi1>
    %53 = vector.broadcast %cst_18 : f32 to vector<8x16xf32>
    %54 = arith.select %52, %49, %53 : vector<8x16xi1>, vector<8x16xf32>
    %55 = tpu.concatenate %50, %54, %50 in 1 : vector<8x5xf32>, vector<8x16xf32>, vector<8x5xf32> -> vector<8x26xf32>
    %56 = tpu.concatenate %50, %49, %50 in 1 : vector<8x5xf32>, vector<8x16xf32>, vector<8x5xf32> -> vector<8x26xf32>
    %cst_19 = arith.constant 0.000000e+00 : f32
    %57 = vector.shape_cast %8 : vector<1x16xi1> to vector<1x16xi1>
    %58 = vector.broadcast %57 : vector<1x16xi1> to vector<8x16xi1>
    %59 = vector.broadcast %cst_19 : f32 to vector<8x16xf32>
    %60 = arith.select %58, %49, %59 : vector<8x16xi1>, vector<8x16xf32>
    %61 = tpu.concatenate %50, %60, %50 in 1 : vector<8x5xf32>, vector<8x16xf32>, vector<8x5xf32> -> vector<8x26xf32>
    %62 = vector.extract_strided_slice %55 {offsets = [0, 0], sizes = [8, 16], strides = [1, 1]} : vector<8x26xf32> to vector<8x16xf32>
    %63 = vector.extract_strided_slice %56 {offsets = [0, 1], sizes = [8, 16], strides = [1, 1]} : vector<8x26xf32> to vector<8x16xf32>
    %64 = vector.extract_strided_slice %61 {offsets = [0, 2], sizes = [8, 16], strides = [1, 1]} : vector<8x26xf32> to vector<8x16xf32>
    %65 = vector.extract_strided_slice %55 {offsets = [0, 4], sizes = [8, 16], strides = [1, 1]} : vector<8x26xf32> to vector<8x16xf32>
    %66 = vector.extract_strided_slice %56 {offsets = [0, 5], sizes = [8, 16], strides = [1, 1]} : vector<8x26xf32> to vector<8x16xf32>
    %67 = vector.extract_strided_slice %61 {offsets = [0, 6], sizes = [8, 16], strides = [1, 1]} : vector<8x26xf32> to vector<8x16xf32>
    %68 = vector.extract_strided_slice %55 {offsets = [0, 8], sizes = [8, 16], strides = [1, 1]} : vector<8x26xf32> to vector<8x16xf32>
    %69 = vector.extract_strided_slice %56 {offsets = [0, 9], sizes = [8, 16], strides = [1, 1]} : vector<8x26xf32> to vector<8x16xf32>
    %70 = vector.extract_strided_slice %61 {offsets = [0, 10], sizes = [8, 16], strides = [1, 1]} : vector<8x26xf32> to vector<8x16xf32>
    %71 = tpu.concatenate %62, %63, %64, %65, %66, %67, %68, %69, %70 in 0 : vector<8x16xf32>, vector<8x16xf32>, vector<8x16xf32>, vector<8x16xf32>, vector<8x16xf32>, vector<8x16xf32>, vector<8x16xf32>, vector<8x16xf32>, vector<8x16xf32> -> vector<72x16xf32>
    %72 = arith.truncf %71 : vector<72x16xf32> to vector<72x16xbf16>
    %c0_20 = arith.constant 0 : index
    %c0_21 = arith.constant 0 : index
    %73 = vector.load %arg5[%c0_20, %c0_21] : memref<4x72xbf16, #tpu.memory_space<vmem>>, vector<4x72xbf16>
    %cst_22 = arith.constant dense<0.000000e+00> : vector<4x16xf32>
    %74 = tpu.matmul %73, %72, %cst_22 {dimension_numbers = #tpu.dot_dimension_numbers<[1], [0], [0], [1], [0, 0, 1, 1], [], []>} : vector<4x72xbf16>, vector<72x16xbf16>, vector<4x16xf32> -> vector<4x16xf32>
    %c0_23 = arith.constant 0 : index
    %c0_24 = arith.constant 0 : index
    %75 = vector.load %arg9[%c0_23, %c0_24] : memref<4x1xf32, #tpu.memory_space<vmem>>, vector<4x1xf32>
    %76 = vector.broadcast %75 : vector<4x1xf32> to vector<4x16xf32>
    %77 = arith.mulf %74, %76 : vector<4x16xf32>
    %c0_25 = arith.constant 0 : index
    %c0_26 = arith.constant 0 : index
    %78 = vector.load %arg10[%c0_25, %c0_26] : memref<4x1xf32, #tpu.memory_space<vmem>>, vector<4x1xf32>
    %79 = vector.broadcast %78 : vector<4x1xf32> to vector<4x16xf32>
    %80 = arith.addf %77, %79 : vector<4x16xf32>
    %cst_27 = arith.constant 0.000000e+00 : f32
    %81 = vector.broadcast %cst_27 : f32 to vector<4x16xf32>
    %82 = arith.maximumf %80, %81 : vector<4x16xf32>
    %cst_28 = arith.constant 0.000000e+00 : f32
    %83 = vector.broadcast %cst_28 : f32 to vector<4x5xf32>
    %cst_29 = arith.constant 0.000000e+00 : f32
    %84 = vector.shape_cast %6 : vector<1x16xi1> to vector<1x16xi1>
    %85 = vector.broadcast %84 : vector<1x16xi1> to vector<4x16xi1>
    %86 = vector.broadcast %cst_29 : f32 to vector<4x16xf32>
    %87 = arith.select %85, %82, %86 : vector<4x16xi1>, vector<4x16xf32>
    %88 = tpu.concatenate %83, %87, %83 in 1 : vector<4x5xf32>, vector<4x16xf32>, vector<4x5xf32> -> vector<4x26xf32>
    %89 = tpu.concatenate %83, %82, %83 in 1 : vector<4x5xf32>, vector<4x16xf32>, vector<4x5xf32> -> vector<4x26xf32>
    %cst_30 = arith.constant 0.000000e+00 : f32
    %90 = vector.shape_cast %8 : vector<1x16xi1> to vector<1x16xi1>
    %91 = vector.broadcast %90 : vector<1x16xi1> to vector<4x16xi1>
    %92 = vector.broadcast %cst_30 : f32 to vector<4x16xf32>
    %93 = arith.select %91, %82, %92 : vector<4x16xi1>, vector<4x16xf32>
    %94 = tpu.concatenate %83, %93, %83 in 1 : vector<4x5xf32>, vector<4x16xf32>, vector<4x5xf32> -> vector<4x26xf32>
    %95 = vector.extract_strided_slice %88 {offsets = [0, 0], sizes = [4, 16], strides = [1, 1]} : vector<4x26xf32> to vector<4x16xf32>
    %96 = vector.extract_strided_slice %89 {offsets = [0, 1], sizes = [4, 16], strides = [1, 1]} : vector<4x26xf32> to vector<4x16xf32>
    %97 = vector.extract_strided_slice %94 {offsets = [0, 2], sizes = [4, 16], strides = [1, 1]} : vector<4x26xf32> to vector<4x16xf32>
    %98 = vector.extract_strided_slice %88 {offsets = [0, 4], sizes = [4, 16], strides = [1, 1]} : vector<4x26xf32> to vector<4x16xf32>
    %99 = vector.extract_strided_slice %89 {offsets = [0, 5], sizes = [4, 16], strides = [1, 1]} : vector<4x26xf32> to vector<4x16xf32>
    %100 = vector.extract_strided_slice %94 {offsets = [0, 6], sizes = [4, 16], strides = [1, 1]} : vector<4x26xf32> to vector<4x16xf32>
    %101 = vector.extract_strided_slice %88 {offsets = [0, 8], sizes = [4, 16], strides = [1, 1]} : vector<4x26xf32> to vector<4x16xf32>
    %102 = vector.extract_strided_slice %89 {offsets = [0, 9], sizes = [4, 16], strides = [1, 1]} : vector<4x26xf32> to vector<4x16xf32>
    %103 = vector.extract_strided_slice %94 {offsets = [0, 10], sizes = [4, 16], strides = [1, 1]} : vector<4x26xf32> to vector<4x16xf32>
    %104 = tpu.concatenate %95, %96, %97, %98, %99, %100, %101, %102, %103 in 0 : vector<4x16xf32>, vector<4x16xf32>, vector<4x16xf32>, vector<4x16xf32>, vector<4x16xf32>, vector<4x16xf32>, vector<4x16xf32>, vector<4x16xf32>, vector<4x16xf32> -> vector<36x16xf32>
    %105 = arith.truncf %104 : vector<36x16xf32> to vector<36x16xbf16>
    %c0_31 = arith.constant 0 : index
    %c0_32 = arith.constant 0 : index
    %106 = vector.load %arg8[%c0_31, %c0_32] : memref<4x36xbf16, #tpu.memory_space<vmem>>, vector<4x36xbf16>
    %cst_33 = arith.constant dense<0.000000e+00> : vector<4x16xf32>
    %107 = tpu.matmul %106, %105, %cst_33 {dimension_numbers = #tpu.dot_dimension_numbers<[1], [0], [0], [1], [0, 0, 1, 1], [], []>} : vector<4x36xbf16>, vector<36x16xbf16>, vector<4x16xf32> -> vector<4x16xf32>
    %108 = tpu.concatenate %41, %74, %107 in 0 : vector<8x16xf32>, vector<4x16xf32>, vector<4x16xf32> -> vector<16x16xf32>
    %109 = arith.addf %108, %1 : vector<16x16xf32>
    %c0_34 = arith.constant 0 : index
    %c0_35 = arith.constant 0 : index
    %c0_36 = arith.constant 0 : index
    %110 = vector.load %arg11[%c0_34, %c0_35, %c0_36] : memref<1x16x16xf32, #tpu.memory_space<vmem>>, vector<1x16x16xf32>
    %111 = vector.shape_cast %110 : vector<1x16x16xf32> to vector<16x16xf32>
    %112 = vector.shape_cast %109 : vector<16x16xf32> to vector<1x16x16xf32>
    tpu.vector_store %arg11[%c0_34, %c0_35, %c0_36], %112 {strides = array<i32>} : memref<1x16x16xf32, #tpu.memory_space<vmem>>, vector<1x16x16xf32>,
    return
  }
  func.func @transform_0(%arg0: i32) -> (i32, i32, i32) {
    %c0_i32 = arith.constant 0 : i32
    %c0_i32_0 = arith.constant 0 : i32
    %c0_i32_1 = arith.constant 0 : i32
    return %arg0, %c0_i32, %c0_i32_0 : i32, i32, i32
  }
  func.func @transform_1(%arg0: i32) -> (i32, i32) {
    %c0_i32 = arith.constant 0 : i32
    %c0_i32_0 = arith.constant 0 : i32
    %c0_i32_1 = arith.constant 0 : i32
    return %c0_i32, %c0_i32_0 : i32, i32
  }
  func.func @transform_2(%arg0: i32) -> (i32, i32) {
    %c0_i32 = arith.constant 0 : i32
    %c0_i32_0 = arith.constant 0 : i32
    %c0_i32_1 = arith.constant 0 : i32
    return %c0_i32, %c0_i32_0 : i32, i32
  }
  func.func @transform_3(%arg0: i32) -> (i32, i32) {
    %c0_i32 = arith.constant 0 : i32
    %c0_i32_0 = arith.constant 0 : i32
    %c0_i32_1 = arith.constant 0 : i32
    return %c0_i32, %c0_i32_0 : i32, i32
  }
  func.func @transform_4(%arg0: i32) -> (i32, i32) {
    %c0_i32 = arith.constant 0 : i32
    %c0_i32_0 = arith.constant 0 : i32
    %c0_i32_1 = arith.constant 0 : i32
    return %c0_i32, %c0_i32_0 : i32, i32
  }
  func.func @transform_5(%arg0: i32) -> (i32, i32) {
    %c0_i32 = arith.constant 0 : i32
    %c0_i32_0 = arith.constant 0 : i32
    %c0_i32_1 = arith.constant 0 : i32
    return %c0_i32, %c0_i32_0 : i32, i32
  }
  func.func @transform_6(%arg0: i32) -> (i32, i32) {
    %c0_i32 = arith.constant 0 : i32
    %c0_i32_0 = arith.constant 0 : i32
    %c0_i32_1 = arith.constant 0 : i32
    return %c0_i32, %c0_i32_0 : i32, i32
  }
  func.func @transform_7(%arg0: i32) -> (i32, i32) {
    %c0_i32 = arith.constant 0 : i32
    %c0_i32_0 = arith.constant 0 : i32
    %c0_i32_1 = arith.constant 0 : i32
    return %c0_i32, %c0_i32_0 : i32, i32
  }
  func.func @transform_8(%arg0: i32) -> (i32, i32) {
    %c0_i32 = arith.constant 0 : i32
    %c0_i32_0 = arith.constant 0 : i32
    %c0_i32_1 = arith.constant 0 : i32
    return %c0_i32, %c0_i32_0 : i32, i32
  }
  func.func @transform_9(%arg0: i32) -> (i32, i32) {
    %c0_i32 = arith.constant 0 : i32
    %c0_i32_0 = arith.constant 0 : i32
    %c0_i32_1 = arith.constant 0 : i32
    return %c0_i32, %c0_i32_0 : i32, i32
  }
  func.func @transform_10(%arg0: i32) -> (i32, i32, i32) {
    %c0_i32 = arith.constant 0 : i32
    %c0_i32_0 = arith.constant 0 : i32
    %c0_i32_1 = arith.constant 0 : i32
    return %arg0, %c0_i32, %c0_i32_0 : i32, i32, i32
  }
}

module attributes {stable_mosaic.version = 11 : i64} {
  func.func @_hg_block_kernel(%arg0: i32, %arg1: memref<1x16x16xf32, #tpu.memory_space<vmem>>, %arg2: memref<8x144xbf16, #tpu.memory_space<vmem>>, %arg3: memref<16x1xf32, #tpu.memory_space<vmem>>, %arg4: memref<16x1xf32, #tpu.memory_space<vmem>>, %arg5: memref<4x72xbf16, #tpu.memory_space<vmem>>, %arg6: memref<8x1xf32, #tpu.memory_space<vmem>>, %arg7: memref<8x1xf32, #tpu.memory_space<vmem>>, %arg8: memref<4x36xbf16, #tpu.memory_space<vmem>>, %arg9: memref<4x1xf32, #tpu.memory_space<vmem>>, %arg10: memref<4x1xf32, #tpu.memory_space<vmem>>, %arg11: memref<4x8xbf16, #tpu.memory_space<vmem>>, %arg12: memref<1x16x64xf32, #tpu.memory_space<vmem>>, %arg13: memref<1x16x64xf32, #tpu.memory_space<vmem>>) attributes {dimension_semantics = [#tpu.dimension_semantics<parallel>], iteration_bounds = array<i64: 2>, scalar_prefetch = 0 : i64, scratch_operands = 0 : i64, tpu.core_type = #tpu.core_type<tc>, window_params = [{transform_indices = @transform_0, window_bounds = array<i64: 1, 16, 16>}, {pipeline_mode = #tpu.pipeline_mode<synchronous>, transform_indices = @transform_1, window_bounds = array<i64: 8, 144>}, {pipeline_mode = #tpu.pipeline_mode<synchronous>, transform_indices = @transform_2, window_bounds = array<i64: 16, 1>}, {pipeline_mode = #tpu.pipeline_mode<synchronous>, transform_indices = @transform_3, window_bounds = array<i64: 16, 1>}, {pipeline_mode = #tpu.pipeline_mode<synchronous>, transform_indices = @transform_4, window_bounds = array<i64: 4, 72>}, {pipeline_mode = #tpu.pipeline_mode<synchronous>, transform_indices = @transform_5, window_bounds = array<i64: 8, 1>}, {pipeline_mode = #tpu.pipeline_mode<synchronous>, transform_indices = @transform_6, window_bounds = array<i64: 8, 1>}, {pipeline_mode = #tpu.pipeline_mode<synchronous>, transform_indices = @transform_7, window_bounds = array<i64: 4, 36>}, {pipeline_mode = #tpu.pipeline_mode<synchronous>, transform_indices = @transform_8, window_bounds = array<i64: 4, 1>}, {pipeline_mode = #tpu.pipeline_mode<synchronous>, transform_indices = @transform_9, window_bounds = array<i64: 4, 1>}, {pipeline_mode = #tpu.pipeline_mode<synchronous>, transform_indices = @transform_10, window_bounds = array<i64: 4, 8>}, {transform_indices = @transform_11, window_bounds = array<i64: 1, 16, 64>}, {transform_indices = @transform_12, window_bounds = array<i64: 1, 16, 64>}]} {
    %c0 = arith.constant 0 : index
    %c0_0 = arith.constant 0 : index
    %c0_1 = arith.constant 0 : index
    %0 = vector.load %arg1[%c0, %c0_0, %c0_1] : memref<1x16x16xf32, #tpu.memory_space<vmem>>, vector<1x16x16xf32>
    %1 = vector.shape_cast %0 : vector<1x16x16xf32> to vector<16x16xf32>
    %2 = tpu.iota {dimensions = array<i32: 1>} : vector<1x16xi32>
    %c3_i32 = arith.constant 3 : i32
    %3 = vector.broadcast %c3_i32 : i32 to vector<1x16xi32>
    %4 = arith.andi %2, %3 : vector<1x16xi32>
    %c2_i32 = arith.constant 2 : i32
    %5 = vector.broadcast %c2_i32 : i32 to vector<1x16xi32>
    %6 = arith.cmpi sle, %4, %5 : vector<1x16xi32>
    %c1_i32 = arith.constant 1 : i32
    %7 = vector.broadcast %c1_i32 : i32 to vector<1x16xi32>
    %8 = arith.cmpi sge, %4, %7 : vector<1x16xi32>
    %c0_2 = arith.constant 0 : index
    %c0_3 = arith.constant 0 : index
    %9 = vector.load %arg3[%c0_2, %c0_3] : memref<16x1xf32, #tpu.memory_space<vmem>>, vector<16x1xf32>
    %10 = vector.broadcast %9 : vector<16x1xf32> to vector<16x16xf32>
    %11 = arith.mulf %1, %10 : vector<16x16xf32>
    %c0_4 = arith.constant 0 : index
    %c0_5 = arith.constant 0 : index
    %12 = vector.load %arg4[%c0_4, %c0_5] : memref<16x1xf32, #tpu.memory_space<vmem>>, vector<16x1xf32>
    %13 = vector.broadcast %12 : vector<16x1xf32> to vector<16x16xf32>
    %14 = arith.addf %11, %13 : vector<16x16xf32>
    %cst = arith.constant 0.000000e+00 : f32
    %15 = vector.broadcast %cst : f32 to vector<16x16xf32>
    %16 = arith.maximumf %14, %15 : vector<16x16xf32>
    %cst_6 = arith.constant 0.000000e+00 : f32
    %17 = vector.broadcast %cst_6 : f32 to vector<16x5xf32>
    %cst_7 = arith.constant 0.000000e+00 : f32
    %18 = vector.shape_cast %6 : vector<1x16xi1> to vector<1x16xi1>
    %19 = vector.broadcast %18 : vector<1x16xi1> to vector<16x16xi1>
    %20 = vector.broadcast %cst_7 : f32 to vector<16x16xf32>
    %21 = arith.select %19, %16, %20 : vector<16x16xi1>, vector<16x16xf32>
    %22 = tpu.concatenate %17, %21, %17 in 1 : vector<16x5xf32>, vector<16x16xf32>, vector<16x5xf32> -> vector<16x26xf32>
    %23 = tpu.concatenate %17, %16, %17 in 1 : vector<16x5xf32>, vector<16x16xf32>, vector<16x5xf32> -> vector<16x26xf32>
    %cst_8 = arith.constant 0.000000e+00 : f32
    %24 = vector.shape_cast %8 : vector<1x16xi1> to vector<1x16xi1>
    %25 = vector.broadcast %24 : vector<1x16xi1> to vector<16x16xi1>
    %26 = vector.broadcast %cst_8 : f32 to vector<16x16xf32>
    %27 = arith.select %25, %16, %26 : vector<16x16xi1>, vector<16x16xf32>
    %28 = tpu.concatenate %17, %27, %17 in 1 : vector<16x5xf32>, vector<16x16xf32>, vector<16x5xf32> -> vector<16x26xf32>
    %29 = vector.extract_strided_slice %22 {offsets = [0, 0], sizes = [16, 16], strides = [1, 1]} : vector<16x26xf32> to vector<16x16xf32>
    %30 = vector.extract_strided_slice %23 {offsets = [0, 1], sizes = [16, 16], strides = [1, 1]} : vector<16x26xf32> to vector<16x16xf32>
    %31 = vector.extract_strided_slice %28 {offsets = [0, 2], sizes = [16, 16], strides = [1, 1]} : vector<16x26xf32> to vector<16x16xf32>
    %32 = vector.extract_strided_slice %22 {offsets = [0, 4], sizes = [16, 16], strides = [1, 1]} : vector<16x26xf32> to vector<16x16xf32>
    %33 = vector.extract_strided_slice %23 {offsets = [0, 5], sizes = [16, 16], strides = [1, 1]} : vector<16x26xf32> to vector<16x16xf32>
    %34 = vector.extract_strided_slice %28 {offsets = [0, 6], sizes = [16, 16], strides = [1, 1]} : vector<16x26xf32> to vector<16x16xf32>
    %35 = vector.extract_strided_slice %22 {offsets = [0, 8], sizes = [16, 16], strides = [1, 1]} : vector<16x26xf32> to vector<16x16xf32>
    %36 = vector.extract_strided_slice %23 {offsets = [0, 9], sizes = [16, 16], strides = [1, 1]} : vector<16x26xf32> to vector<16x16xf32>
    %37 = vector.extract_strided_slice %28 {offsets = [0, 10], sizes = [16, 16], strides = [1, 1]} : vector<16x26xf32> to vector<16x16xf32>
    %38 = tpu.concatenate %29, %30, %31, %32, %33, %34, %35, %36, %37 in 0 : vector<16x16xf32>, vector<16x16xf32>, vector<16x16xf32>, vector<16x16xf32>, vector<16x16xf32>, vector<16x16xf32>, vector<16x16xf32>, vector<16x16xf32>, vector<16x16xf32> -> vector<144x16xf32>
    %39 = arith.truncf %38 : vector<144x16xf32> to vector<144x16xbf16>
    %c0_9 = arith.constant 0 : index
    %c0_10 = arith.constant 0 : index
    %40 = vector.load %arg2[%c0_9, %c0_10] : memref<8x144xbf16, #tpu.memory_space<vmem>>, vector<8x144xbf16>
    %cst_11 = arith.constant dense<0.000000e+00> : vector<8x16xf32>
    %41 = tpu.matmul %40, %39, %cst_11 {dimension_numbers = #tpu.dot_dimension_numbers<[1], [0], [0], [1], [0, 0, 1, 1], [], []>} : vector<8x144xbf16>, vector<144x16xbf16>, vector<8x16xf32> -> vector<8x16xf32>
    %c0_12 = arith.constant 0 : index
    %c0_13 = arith.constant 0 : index
    %42 = vector.load %arg6[%c0_12, %c0_13] : memref<8x1xf32, #tpu.memory_space<vmem>>, vector<8x1xf32>
    %43 = vector.broadcast %42 : vector<8x1xf32> to vector<8x16xf32>
    %44 = arith.mulf %41, %43 : vector<8x16xf32>
    %c0_14 = arith.constant 0 : index
    %c0_15 = arith.constant 0 : index
    %45 = vector.load %arg7[%c0_14, %c0_15] : memref<8x1xf32, #tpu.memory_space<vmem>>, vector<8x1xf32>
    %46 = vector.broadcast %45 : vector<8x1xf32> to vector<8x16xf32>
    %47 = arith.addf %44, %46 : vector<8x16xf32>
    %cst_16 = arith.constant 0.000000e+00 : f32
    %48 = vector.broadcast %cst_16 : f32 to vector<8x16xf32>
    %49 = arith.maximumf %47, %48 : vector<8x16xf32>
    %cst_17 = arith.constant 0.000000e+00 : f32
    %50 = vector.broadcast %cst_17 : f32 to vector<8x5xf32>
    %cst_18 = arith.constant 0.000000e+00 : f32
    %51 = vector.shape_cast %6 : vector<1x16xi1> to vector<1x16xi1>
    %52 = vector.broadcast %51 : vector<1x16xi1> to vector<8x16xi1>
    %53 = vector.broadcast %cst_18 : f32 to vector<8x16xf32>
    %54 = arith.select %52, %49, %53 : vector<8x16xi1>, vector<8x16xf32>
    %55 = tpu.concatenate %50, %54, %50 in 1 : vector<8x5xf32>, vector<8x16xf32>, vector<8x5xf32> -> vector<8x26xf32>
    %56 = tpu.concatenate %50, %49, %50 in 1 : vector<8x5xf32>, vector<8x16xf32>, vector<8x5xf32> -> vector<8x26xf32>
    %cst_19 = arith.constant 0.000000e+00 : f32
    %57 = vector.shape_cast %8 : vector<1x16xi1> to vector<1x16xi1>
    %58 = vector.broadcast %57 : vector<1x16xi1> to vector<8x16xi1>
    %59 = vector.broadcast %cst_19 : f32 to vector<8x16xf32>
    %60 = arith.select %58, %49, %59 : vector<8x16xi1>, vector<8x16xf32>
    %61 = tpu.concatenate %50, %60, %50 in 1 : vector<8x5xf32>, vector<8x16xf32>, vector<8x5xf32> -> vector<8x26xf32>
    %62 = vector.extract_strided_slice %55 {offsets = [0, 0], sizes = [8, 16], strides = [1, 1]} : vector<8x26xf32> to vector<8x16xf32>
    %63 = vector.extract_strided_slice %56 {offsets = [0, 1], sizes = [8, 16], strides = [1, 1]} : vector<8x26xf32> to vector<8x16xf32>
    %64 = vector.extract_strided_slice %61 {offsets = [0, 2], sizes = [8, 16], strides = [1, 1]} : vector<8x26xf32> to vector<8x16xf32>
    %65 = vector.extract_strided_slice %55 {offsets = [0, 4], sizes = [8, 16], strides = [1, 1]} : vector<8x26xf32> to vector<8x16xf32>
    %66 = vector.extract_strided_slice %56 {offsets = [0, 5], sizes = [8, 16], strides = [1, 1]} : vector<8x26xf32> to vector<8x16xf32>
    %67 = vector.extract_strided_slice %61 {offsets = [0, 6], sizes = [8, 16], strides = [1, 1]} : vector<8x26xf32> to vector<8x16xf32>
    %68 = vector.extract_strided_slice %55 {offsets = [0, 8], sizes = [8, 16], strides = [1, 1]} : vector<8x26xf32> to vector<8x16xf32>
    %69 = vector.extract_strided_slice %56 {offsets = [0, 9], sizes = [8, 16], strides = [1, 1]} : vector<8x26xf32> to vector<8x16xf32>
    %70 = vector.extract_strided_slice %61 {offsets = [0, 10], sizes = [8, 16], strides = [1, 1]} : vector<8x26xf32> to vector<8x16xf32>
    %71 = tpu.concatenate %62, %63, %64, %65, %66, %67, %68, %69, %70 in 0 : vector<8x16xf32>, vector<8x16xf32>, vector<8x16xf32>, vector<8x16xf32>, vector<8x16xf32>, vector<8x16xf32>, vector<8x16xf32>, vector<8x16xf32>, vector<8x16xf32> -> vector<72x16xf32>
    %72 = arith.truncf %71 : vector<72x16xf32> to vector<72x16xbf16>
    %c0_20 = arith.constant 0 : index
    %c0_21 = arith.constant 0 : index
    %73 = vector.load %arg5[%c0_20, %c0_21] : memref<4x72xbf16, #tpu.memory_space<vmem>>, vector<4x72xbf16>
    %cst_22 = arith.constant dense<0.000000e+00> : vector<4x16xf32>
    %74 = tpu.matmul %73, %72, %cst_22 {dimension_numbers = #tpu.dot_dimension_numbers<[1], [0], [0], [1], [0, 0, 1, 1], [], []>} : vector<4x72xbf16>, vector<72x16xbf16>, vector<4x16xf32> -> vector<4x16xf32>
    %c0_23 = arith.constant 0 : index
    %c0_24 = arith.constant 0 : index
    %75 = vector.load %arg9[%c0_23, %c0_24] : memref<4x1xf32, #tpu.memory_space<vmem>>, vector<4x1xf32>
    %76 = vector.broadcast %75 : vector<4x1xf32> to vector<4x16xf32>
    %77 = arith.mulf %74, %76 : vector<4x16xf32>
    %c0_25 = arith.constant 0 : index
    %c0_26 = arith.constant 0 : index
    %78 = vector.load %arg10[%c0_25, %c0_26] : memref<4x1xf32, #tpu.memory_space<vmem>>, vector<4x1xf32>
    %79 = vector.broadcast %78 : vector<4x1xf32> to vector<4x16xf32>
    %80 = arith.addf %77, %79 : vector<4x16xf32>
    %cst_27 = arith.constant 0.000000e+00 : f32
    %81 = vector.broadcast %cst_27 : f32 to vector<4x16xf32>
    %82 = arith.maximumf %80, %81 : vector<4x16xf32>
    %cst_28 = arith.constant 0.000000e+00 : f32
    %83 = vector.broadcast %cst_28 : f32 to vector<4x5xf32>
    %cst_29 = arith.constant 0.000000e+00 : f32
    %84 = vector.shape_cast %6 : vector<1x16xi1> to vector<1x16xi1>
    %85 = vector.broadcast %84 : vector<1x16xi1> to vector<4x16xi1>
    %86 = vector.broadcast %cst_29 : f32 to vector<4x16xf32>
    %87 = arith.select %85, %82, %86 : vector<4x16xi1>, vector<4x16xf32>
    %88 = tpu.concatenate %83, %87, %83 in 1 : vector<4x5xf32>, vector<4x16xf32>, vector<4x5xf32> -> vector<4x26xf32>
    %89 = tpu.concatenate %83, %82, %83 in 1 : vector<4x5xf32>, vector<4x16xf32>, vector<4x5xf32> -> vector<4x26xf32>
    %cst_30 = arith.constant 0.000000e+00 : f32
    %90 = vector.shape_cast %8 : vector<1x16xi1> to vector<1x16xi1>
    %91 = vector.broadcast %90 : vector<1x16xi1> to vector<4x16xi1>
    %92 = vector.broadcast %cst_30 : f32 to vector<4x16xf32>
    %93 = arith.select %91, %82, %92 : vector<4x16xi1>, vector<4x16xf32>
    %94 = tpu.concatenate %83, %93, %83 in 1 : vector<4x5xf32>, vector<4x16xf32>, vector<4x5xf32> -> vector<4x26xf32>
    %95 = vector.extract_strided_slice %88 {offsets = [0, 0], sizes = [4, 16], strides = [1, 1]} : vector<4x26xf32> to vector<4x16xf32>
    %96 = vector.extract_strided_slice %89 {offsets = [0, 1], sizes = [4, 16], strides = [1, 1]} : vector<4x26xf32> to vector<4x16xf32>
    %97 = vector.extract_strided_slice %94 {offsets = [0, 2], sizes = [4, 16], strides = [1, 1]} : vector<4x26xf32> to vector<4x16xf32>
    %98 = vector.extract_strided_slice %88 {offsets = [0, 4], sizes = [4, 16], strides = [1, 1]} : vector<4x26xf32> to vector<4x16xf32>
    %99 = vector.extract_strided_slice %89 {offsets = [0, 5], sizes = [4, 16], strides = [1, 1]} : vector<4x26xf32> to vector<4x16xf32>
    %100 = vector.extract_strided_slice %94 {offsets = [0, 6], sizes = [4, 16], strides = [1, 1]} : vector<4x26xf32> to vector<4x16xf32>
    %101 = vector.extract_strided_slice %88 {offsets = [0, 8], sizes = [4, 16], strides = [1, 1]} : vector<4x26xf32> to vector<4x16xf32>
    %102 = vector.extract_strided_slice %89 {offsets = [0, 9], sizes = [4, 16], strides = [1, 1]} : vector<4x26xf32> to vector<4x16xf32>
    %103 = vector.extract_strided_slice %94 {offsets = [0, 10], sizes = [4, 16], strides = [1, 1]} : vector<4x26xf32> to vector<4x16xf32>
    %104 = tpu.concatenate %95, %96, %97, %98, %99, %100, %101, %102, %103 in 0 : vector<4x16xf32>, vector<4x16xf32>, vector<4x16xf32>, vector<4x16xf32>, vector<4x16xf32>, vector<4x16xf32>, vector<4x16xf32>, vector<4x16xf32>, vector<4x16xf32> -> vector<36x16xf32>
    %105 = arith.truncf %104 : vector<36x16xf32> to vector<36x16xbf16>
    %c0_31 = arith.constant 0 : index
    %c0_32 = arith.constant 0 : index
    %106 = vector.load %arg8[%c0_31, %c0_32] : memref<4x36xbf16, #tpu.memory_space<vmem>>, vector<4x36xbf16>
    %cst_33 = arith.constant dense<0.000000e+00> : vector<4x16xf32>
    %107 = tpu.matmul %106, %105, %cst_33 {dimension_numbers = #tpu.dot_dimension_numbers<[1], [0], [0], [1], [0, 0, 1, 1], [], []>} : vector<4x36xbf16>, vector<36x16xbf16>, vector<4x16xf32> -> vector<4x16xf32>
    %108 = tpu.concatenate %41, %74, %107 in 0 : vector<8x16xf32>, vector<4x16xf32>, vector<4x16xf32> -> vector<16x16xf32>
    %109 = arith.addf %108, %1 : vector<16x16xf32>
    %c0_34 = arith.constant 0 : index
    %c0_35 = arith.constant 0 : index
    %110 = vector.load %arg11[%c0_34, %c0_35] : memref<4x8xbf16, #tpu.memory_space<vmem>>, vector<4x8xbf16>
    %111 = vector.extract_strided_slice %109 {offsets = [0, 0], sizes = [16, 4], strides = [1, 1]} : vector<16x16xf32> to vector<16x4xf32>
    %112 = vector.extract_strided_slice %109 {offsets = [0, 4], sizes = [16, 4], strides = [1, 1]} : vector<16x16xf32> to vector<16x4xf32>
    %113 = vector.extract_strided_slice %109 {offsets = [0, 8], sizes = [16, 4], strides = [1, 1]} : vector<16x16xf32> to vector<16x4xf32>
    %114 = vector.extract_strided_slice %109 {offsets = [0, 12], sizes = [16, 4], strides = [1, 1]} : vector<16x16xf32> to vector<16x4xf32>
    %115 = tpu.concatenate %111, %112, %113, %114 in 0 : vector<16x4xf32>, vector<16x4xf32>, vector<16x4xf32>, vector<16x4xf32> -> vector<64x4xf32>
    %116 = arith.truncf %115 : vector<64x4xf32> to vector<64x4xbf16>
    %cst_36 = arith.constant dense<0.000000e+00> : vector<64x8xf32>
    %117 = tpu.matmul %116, %110, %cst_36 {dimension_numbers = #tpu.dot_dimension_numbers<[1], [0], [0], [1], [0, 0, 1, 1], [], []>} : vector<64x4xbf16>, vector<4x8xbf16>, vector<64x8xf32> -> vector<64x8xf32>
    %118 = vector.extract_strided_slice %117 {offsets = [0, 0], sizes = [16, 8], strides = [1, 1]} : vector<64x8xf32> to vector<16x8xf32>
    %cst_37 = arith.constant 1.000000e+00 : f32
    %119 = vector.broadcast %cst_37 : f32 to vector<16x8xf32>
    %120 = arith.mulf %119, %118 : vector<16x8xf32>
    %121 = vector.extract_strided_slice %117 {offsets = [0, 0], sizes = [16, 8], strides = [1, 1]} : vector<64x8xf32> to vector<16x8xf32>
    %cst_38 = arith.constant 0.580174923 : f32
    %122 = vector.broadcast %cst_38 : f32 to vector<16x8xf32>
    %123 = arith.mulf %122, %121 : vector<16x8xf32>
    %124 = vector.extract_strided_slice %117 {offsets = [16, 0], sizes = [16, 8], strides = [1, 1]} : vector<64x8xf32> to vector<16x8xf32>
    %cst_39 = arith.constant 0.498542279 : f32
    %125 = vector.broadcast %cst_39 : f32 to vector<16x8xf32>
    %126 = arith.mulf %125, %124 : vector<16x8xf32>
    %127 = arith.addf %123, %126 : vector<16x8xf32>
    %128 = vector.extract_strided_slice %117 {offsets = [32, 0], sizes = [16, 8], strides = [1, 1]} : vector<64x8xf32> to vector<16x8xf32>
    %cst_40 = arith.constant -7.871720e-02 : f32
    %129 = vector.broadcast %cst_40 : f32 to vector<16x8xf32>
    %130 = arith.mulf %129, %128 : vector<16x8xf32>
    %131 = arith.addf %127, %130 : vector<16x8xf32>
    %132 = vector.extract_strided_slice %117 {offsets = [0, 0], sizes = [16, 8], strides = [1, 1]} : vector<64x8xf32> to vector<16x8xf32>
    %cst_41 = arith.constant 0.120991252 : f32
    %133 = vector.broadcast %cst_41 : f32 to vector<16x8xf32>
    %134 = arith.mulf %133, %132 : vector<16x8xf32>
    %135 = vector.extract_strided_slice %117 {offsets = [16, 0], sizes = [16, 8], strides = [1, 1]} : vector<64x8xf32> to vector<16x8xf32>
    %cst_42 = arith.constant 0.957725942 : f32
    %136 = vector.broadcast %cst_42 : f32 to vector<16x8xf32>
    %137 = arith.mulf %136, %135 : vector<16x8xf32>
    %138 = arith.addf %134, %137 : vector<16x8xf32>
    %139 = vector.extract_strided_slice %117 {offsets = [32, 0], sizes = [16, 8], strides = [1, 1]} : vector<64x8xf32> to vector<16x8xf32>
    %cst_43 = arith.constant -7.871720e-02 : f32
    %140 = vector.broadcast %cst_43 : f32 to vector<16x8xf32>
    %141 = arith.mulf %140, %139 : vector<16x8xf32>
    %142 = arith.addf %138, %141 : vector<16x8xf32>
    %143 = vector.extract_strided_slice %117 {offsets = [0, 0], sizes = [16, 8], strides = [1, 1]} : vector<64x8xf32> to vector<16x8xf32>
    %cst_44 = arith.constant -0.109329447 : f32
    %144 = vector.broadcast %cst_44 : f32 to vector<16x8xf32>
    %145 = arith.mulf %144, %143 : vector<16x8xf32>
    %146 = vector.extract_strided_slice %117 {offsets = [16, 0], sizes = [16, 8], strides = [1, 1]} : vector<64x8xf32> to vector<16x8xf32>
    %cst_45 = arith.constant 0.845481038 : f32
    %147 = vector.broadcast %cst_45 : f32 to vector<16x8xf32>
    %148 = arith.mulf %147, %146 : vector<16x8xf32>
    %149 = arith.addf %145, %148 : vector<16x8xf32>
    %150 = vector.extract_strided_slice %117 {offsets = [32, 0], sizes = [16, 8], strides = [1, 1]} : vector<64x8xf32> to vector<16x8xf32>
    %cst_46 = arith.constant 0.307580173 : f32
    %151 = vector.broadcast %cst_46 : f32 to vector<16x8xf32>
    %152 = arith.mulf %151, %150 : vector<16x8xf32>
    %153 = arith.addf %149, %152 : vector<16x8xf32>
    %154 = vector.extract_strided_slice %117 {offsets = [48, 0], sizes = [16, 8], strides = [1, 1]} : vector<64x8xf32> to vector<16x8xf32>
    %cst_47 = arith.constant -0.0437317789 : f32
    %155 = vector.broadcast %cst_47 : f32 to vector<16x8xf32>
    %156 = arith.mulf %155, %154 : vector<16x8xf32>
    %157 = arith.addf %153, %156 : vector<16x8xf32>
    %158 = vector.extract_strided_slice %117 {offsets = [0, 0], sizes = [16, 8], strides = [1, 1]} : vector<64x8xf32> to vector<16x8xf32>
    %cst_48 = arith.constant -0.0437317789 : f32
    %159 = vector.broadcast %cst_48 : f32 to vector<16x8xf32>
    %160 = arith.mulf %159, %158 : vector<16x8xf32>
    %161 = vector.extract_strided_slice %117 {offsets = [16, 0], sizes = [16, 8], strides = [1, 1]} : vector<64x8xf32> to vector<16x8xf32>
    %cst_49 = arith.constant 0.307580173 : f32
    %162 = vector.broadcast %cst_49 : f32 to vector<16x8xf32>
    %163 = arith.mulf %162, %161 : vector<16x8xf32>
    %164 = arith.addf %160, %163 : vector<16x8xf32>
    %165 = vector.extract_strided_slice %117 {offsets = [32, 0], sizes = [16, 8], strides = [1, 1]} : vector<64x8xf32> to vector<16x8xf32>
    %cst_50 = arith.constant 0.845481038 : f32
    %166 = vector.broadcast %cst_50 : f32 to vector<16x8xf32>
    %167 = arith.mulf %166, %165 : vector<16x8xf32>
    %168 = arith.addf %164, %167 : vector<16x8xf32>
    %169 = vector.extract_strided_slice %117 {offsets = [48, 0], sizes = [16, 8], strides = [1, 1]} : vector<64x8xf32> to vector<16x8xf32>
    %cst_51 = arith.constant -0.109329447 : f32
    %170 = vector.broadcast %cst_51 : f32 to vector<16x8xf32>
    %171 = arith.mulf %170, %169 : vector<16x8xf32>
    %172 = arith.addf %168, %171 : vector<16x8xf32>
    %173 = vector.extract_strided_slice %117 {offsets = [16, 0], sizes = [16, 8], strides = [1, 1]} : vector<64x8xf32> to vector<16x8xf32>
    %cst_52 = arith.constant -7.871720e-02 : f32
    %174 = vector.broadcast %cst_52 : f32 to vector<16x8xf32>
    %175 = arith.mulf %174, %173 : vector<16x8xf32>
    %176 = vector.extract_strided_slice %117 {offsets = [32, 0], sizes = [16, 8], strides = [1, 1]} : vector<64x8xf32> to vector<16x8xf32>
    %cst_53 = arith.constant 0.957725942 : f32
    %177 = vector.broadcast %cst_53 : f32 to vector<16x8xf32>
    %178 = arith.mulf %177, %176 : vector<16x8xf32>
    %179 = arith.addf %175, %178 : vector<16x8xf32>
    %180 = vector.extract_strided_slice %117 {offsets = [48, 0], sizes = [16, 8], strides = [1, 1]} : vector<64x8xf32> to vector<16x8xf32>
    %cst_54 = arith.constant 0.120991252 : f32
    %181 = vector.broadcast %cst_54 : f32 to vector<16x8xf32>
    %182 = arith.mulf %181, %180 : vector<16x8xf32>
    %183 = arith.addf %179, %182 : vector<16x8xf32>
    %184 = vector.extract_strided_slice %117 {offsets = [16, 0], sizes = [16, 8], strides = [1, 1]} : vector<64x8xf32> to vector<16x8xf32>
    %cst_55 = arith.constant -7.871720e-02 : f32
    %185 = vector.broadcast %cst_55 : f32 to vector<16x8xf32>
    %186 = arith.mulf %185, %184 : vector<16x8xf32>
    %187 = vector.extract_strided_slice %117 {offsets = [32, 0], sizes = [16, 8], strides = [1, 1]} : vector<64x8xf32> to vector<16x8xf32>
    %cst_56 = arith.constant 0.498542279 : f32
    %188 = vector.broadcast %cst_56 : f32 to vector<16x8xf32>
    %189 = arith.mulf %188, %187 : vector<16x8xf32>
    %190 = arith.addf %186, %189 : vector<16x8xf32>
    %191 = vector.extract_strided_slice %117 {offsets = [48, 0], sizes = [16, 8], strides = [1, 1]} : vector<64x8xf32> to vector<16x8xf32>
    %cst_57 = arith.constant 0.580174923 : f32
    %192 = vector.broadcast %cst_57 : f32 to vector<16x8xf32>
    %193 = arith.mulf %192, %191 : vector<16x8xf32>
    %194 = arith.addf %190, %193 : vector<16x8xf32>
    %195 = vector.extract_strided_slice %117 {offsets = [48, 0], sizes = [16, 8], strides = [1, 1]} : vector<64x8xf32> to vector<16x8xf32>
    %cst_58 = arith.constant 1.000000e+00 : f32
    %196 = vector.broadcast %cst_58 : f32 to vector<16x8xf32>
    %197 = arith.mulf %196, %195 : vector<16x8xf32>
    %198 = tpu.concatenate %120, %131, %142, %157, %172, %183, %194, %197 in 1 : vector<16x8xf32>, vector<16x8xf32>, vector<16x8xf32>, vector<16x8xf32>, vector<16x8xf32>, vector<16x8xf32>, vector<16x8xf32>, vector<16x8xf32> -> vector<16x64xf32>
    %c0_59 = arith.constant 0 : index
    %c0_60 = arith.constant 0 : index
    %c0_61 = arith.constant 0 : index
    %199 = vector.load %arg12[%c0_59, %c0_60, %c0_61] : memref<1x16x64xf32, #tpu.memory_space<vmem>>, vector<1x16x64xf32>
    %200 = vector.shape_cast %199 : vector<1x16x64xf32> to vector<16x64xf32>
    %201 = arith.addf %198, %200 : vector<16x64xf32>
    %c0_62 = arith.constant 0 : index
    %c0_63 = arith.constant 0 : index
    %c0_64 = arith.constant 0 : index
    %202 = vector.load %arg13[%c0_62, %c0_63, %c0_64] : memref<1x16x64xf32, #tpu.memory_space<vmem>>, vector<1x16x64xf32>
    %203 = vector.shape_cast %202 : vector<1x16x64xf32> to vector<16x64xf32>
    %204 = vector.shape_cast %201 : vector<16x64xf32> to vector<1x16x64xf32>
    tpu.vector_store %arg13[%c0_62, %c0_63, %c0_64], %204 {strides = array<i32>} : memref<1x16x64xf32, #tpu.memory_space<vmem>>, vector<1x16x64xf32>,
    return
  }
  func.func @transform_0(%arg0: i32) -> (i32, i32, i32) {
    %c0_i32 = arith.constant 0 : i32
    %c0_i32_0 = arith.constant 0 : i32
    %c0_i32_1 = arith.constant 0 : i32
    return %arg0, %c0_i32, %c0_i32_0 : i32, i32, i32
  }
  func.func @transform_1(%arg0: i32) -> (i32, i32) {
    %c0_i32 = arith.constant 0 : i32
    %c0_i32_0 = arith.constant 0 : i32
    %c0_i32_1 = arith.constant 0 : i32
    return %c0_i32, %c0_i32_0 : i32, i32
  }
  func.func @transform_2(%arg0: i32) -> (i32, i32) {
    %c0_i32 = arith.constant 0 : i32
    %c0_i32_0 = arith.constant 0 : i32
    %c0_i32_1 = arith.constant 0 : i32
    return %c0_i32, %c0_i32_0 : i32, i32
  }
  func.func @transform_3(%arg0: i32) -> (i32, i32) {
    %c0_i32 = arith.constant 0 : i32
    %c0_i32_0 = arith.constant 0 : i32
    %c0_i32_1 = arith.constant 0 : i32
    return %c0_i32, %c0_i32_0 : i32, i32
  }
  func.func @transform_4(%arg0: i32) -> (i32, i32) {
    %c0_i32 = arith.constant 0 : i32
    %c0_i32_0 = arith.constant 0 : i32
    %c0_i32_1 = arith.constant 0 : i32
    return %c0_i32, %c0_i32_0 : i32, i32
  }
  func.func @transform_5(%arg0: i32) -> (i32, i32) {
    %c0_i32 = arith.constant 0 : i32
    %c0_i32_0 = arith.constant 0 : i32
    %c0_i32_1 = arith.constant 0 : i32
    return %c0_i32, %c0_i32_0 : i32, i32
  }
  func.func @transform_6(%arg0: i32) -> (i32, i32) {
    %c0_i32 = arith.constant 0 : i32
    %c0_i32_0 = arith.constant 0 : i32
    %c0_i32_1 = arith.constant 0 : i32
    return %c0_i32, %c0_i32_0 : i32, i32
  }
  func.func @transform_7(%arg0: i32) -> (i32, i32) {
    %c0_i32 = arith.constant 0 : i32
    %c0_i32_0 = arith.constant 0 : i32
    %c0_i32_1 = arith.constant 0 : i32
    return %c0_i32, %c0_i32_0 : i32, i32
  }
  func.func @transform_8(%arg0: i32) -> (i32, i32) {
    %c0_i32 = arith.constant 0 : i32
    %c0_i32_0 = arith.constant 0 : i32
    %c0_i32_1 = arith.constant 0 : i32
    return %c0_i32, %c0_i32_0 : i32, i32
  }
  func.func @transform_9(%arg0: i32) -> (i32, i32) {
    %c0_i32 = arith.constant 0 : i32
    %c0_i32_0 = arith.constant 0 : i32
    %c0_i32_1 = arith.constant 0 : i32
    return %c0_i32, %c0_i32_0 : i32, i32
  }
  func.func @transform_10(%arg0: i32) -> (i32, i32) {
    %c0_i32 = arith.constant 0 : i32
    %c0_i32_0 = arith.constant 0 : i32
    %c0_i32_1 = arith.constant 0 : i32
    return %c0_i32, %c0_i32_0 : i32, i32
  }
  func.func @transform_11(%arg0: i32) -> (i32, i32, i32) {
    %c0_i32 = arith.constant 0 : i32
    %c0_i32_0 = arith.constant 0 : i32
    %c0_i32_1 = arith.constant 0 : i32
    return %arg0, %c0_i32, %c0_i32_0 : i32, i32, i32
  }
  func.func @transform_12(%arg0: i32) -> (i32, i32, i32) {
    %c0_i32 = arith.constant 0 : i32
    %c0_i32_0 = arith.constant 0 : i32
    %c0_i32_1 = arith.constant 0 : i32
    return %arg0, %c0_i32, %c0_i32_0 : i32, i32, i32
  }
}

module attributes {stable_mosaic.version = 11 : i64} {
  func.func @_hg_block_kernel(%arg0: i32, %arg1: memref<1x16x64xf32, #tpu.memory_space<vmem>>, %arg2: memref<8x144xbf16, #tpu.memory_space<vmem>>, %arg3: memref<16x1xf32, #tpu.memory_space<vmem>>, %arg4: memref<16x1xf32, #tpu.memory_space<vmem>>, %arg5: memref<4x72xbf16, #tpu.memory_space<vmem>>, %arg6: memref<8x1xf32, #tpu.memory_space<vmem>>, %arg7: memref<8x1xf32, #tpu.memory_space<vmem>>, %arg8: memref<4x36xbf16, #tpu.memory_space<vmem>>, %arg9: memref<4x1xf32, #tpu.memory_space<vmem>>, %arg10: memref<4x1xf32, #tpu.memory_space<vmem>>, %arg11: memref<8x16xbf16, #tpu.memory_space<vmem>>, %arg12: memref<1x16x256xf32, #tpu.memory_space<vmem>>, %arg13: memref<1x16x256xf32, #tpu.memory_space<vmem>>) attributes {dimension_semantics = [#tpu.dimension_semantics<parallel>], iteration_bounds = array<i64: 2>, scalar_prefetch = 0 : i64, scratch_operands = 0 : i64, tpu.core_type = #tpu.core_type<tc>, window_params = [{transform_indices = @transform_0, window_bounds = array<i64: 1, 16, 64>}, {pipeline_mode = #tpu.pipeline_mode<synchronous>, transform_indices = @transform_1, window_bounds = array<i64: 8, 144>}, {pipeline_mode = #tpu.pipeline_mode<synchronous>, transform_indices = @transform_2, window_bounds = array<i64: 16, 1>}, {pipeline_mode = #tpu.pipeline_mode<synchronous>, transform_indices = @transform_3, window_bounds = array<i64: 16, 1>}, {pipeline_mode = #tpu.pipeline_mode<synchronous>, transform_indices = @transform_4, window_bounds = array<i64: 4, 72>}, {pipeline_mode = #tpu.pipeline_mode<synchronous>, transform_indices = @transform_5, window_bounds = array<i64: 8, 1>}, {pipeline_mode = #tpu.pipeline_mode<synchronous>, transform_indices = @transform_6, window_bounds = array<i64: 8, 1>}, {pipeline_mode = #tpu.pipeline_mode<synchronous>, transform_indices = @transform_7, window_bounds = array<i64: 4, 36>}, {pipeline_mode = #tpu.pipeline_mode<synchronous>, transform_indices = @transform_8, window_bounds = array<i64: 4, 1>}, {pipeline_mode = #tpu.pipeline_mode<synchronous>, transform_indices = @transform_9, window_bounds = array<i64: 4, 1>}, {pipeline_mode = #tpu.pipeline_mode<synchronous>, transform_indices = @transform_10, window_bounds = array<i64: 8, 16>}, {transform_indices = @transform_11, window_bounds = array<i64: 1, 16, 256>}, {transform_indices = @transform_12, window_bounds = array<i64: 1, 16, 256>}]} {
    %c0 = arith.constant 0 : index
    %c0_0 = arith.constant 0 : index
    %c0_1 = arith.constant 0 : index
    %0 = vector.load %arg1[%c0, %c0_0, %c0_1] : memref<1x16x64xf32, #tpu.memory_space<vmem>>, vector<1x16x64xf32>
    %1 = vector.shape_cast %0 : vector<1x16x64xf32> to vector<16x64xf32>
    %2 = tpu.iota {dimensions = array<i32: 1>} : vector<1x64xi32>
    %c7_i32 = arith.constant 7 : i32
    %3 = vector.broadcast %c7_i32 : i32 to vector<1x64xi32>
    %4 = arith.andi %2, %3 : vector<1x64xi32>
    %c6_i32 = arith.constant 6 : i32
    %5 = vector.broadcast %c6_i32 : i32 to vector<1x64xi32>
    %6 = arith.cmpi sle, %4, %5 : vector<1x64xi32>
    %c1_i32 = arith.constant 1 : i32
    %7 = vector.broadcast %c1_i32 : i32 to vector<1x64xi32>
    %8 = arith.cmpi sge, %4, %7 : vector<1x64xi32>
    %c0_2 = arith.constant 0 : index
    %c0_3 = arith.constant 0 : index
    %9 = vector.load %arg3[%c0_2, %c0_3] : memref<16x1xf32, #tpu.memory_space<vmem>>, vector<16x1xf32>
    %10 = vector.broadcast %9 : vector<16x1xf32> to vector<16x64xf32>
    %11 = arith.mulf %1, %10 : vector<16x64xf32>
    %c0_4 = arith.constant 0 : index
    %c0_5 = arith.constant 0 : index
    %12 = vector.load %arg4[%c0_4, %c0_5] : memref<16x1xf32, #tpu.memory_space<vmem>>, vector<16x1xf32>
    %13 = vector.broadcast %12 : vector<16x1xf32> to vector<16x64xf32>
    %14 = arith.addf %11, %13 : vector<16x64xf32>
    %cst = arith.constant 0.000000e+00 : f32
    %15 = vector.broadcast %cst : f32 to vector<16x64xf32>
    %16 = arith.maximumf %14, %15 : vector<16x64xf32>
    %cst_6 = arith.constant 0.000000e+00 : f32
    %17 = vector.broadcast %cst_6 : f32 to vector<16x9xf32>
    %cst_7 = arith.constant 0.000000e+00 : f32
    %18 = vector.shape_cast %6 : vector<1x64xi1> to vector<1x64xi1>
    %19 = vector.broadcast %18 : vector<1x64xi1> to vector<16x64xi1>
    %20 = vector.broadcast %cst_7 : f32 to vector<16x64xf32>
    %21 = arith.select %19, %16, %20 : vector<16x64xi1>, vector<16x64xf32>
    %22 = tpu.concatenate %17, %21, %17 in 1 : vector<16x9xf32>, vector<16x64xf32>, vector<16x9xf32> -> vector<16x82xf32>
    %23 = tpu.concatenate %17, %16, %17 in 1 : vector<16x9xf32>, vector<16x64xf32>, vector<16x9xf32> -> vector<16x82xf32>
    %cst_8 = arith.constant 0.000000e+00 : f32
    %24 = vector.shape_cast %8 : vector<1x64xi1> to vector<1x64xi1>
    %25 = vector.broadcast %24 : vector<1x64xi1> to vector<16x64xi1>
    %26 = vector.broadcast %cst_8 : f32 to vector<16x64xf32>
    %27 = arith.select %25, %16, %26 : vector<16x64xi1>, vector<16x64xf32>
    %28 = tpu.concatenate %17, %27, %17 in 1 : vector<16x9xf32>, vector<16x64xf32>, vector<16x9xf32> -> vector<16x82xf32>
    %29 = vector.extract_strided_slice %22 {offsets = [0, 0], sizes = [16, 64], strides = [1, 1]} : vector<16x82xf32> to vector<16x64xf32>
    %30 = vector.extract_strided_slice %23 {offsets = [0, 1], sizes = [16, 64], strides = [1, 1]} : vector<16x82xf32> to vector<16x64xf32>
    %31 = vector.extract_strided_slice %28 {offsets = [0, 2], sizes = [16, 64], strides = [1, 1]} : vector<16x82xf32> to vector<16x64xf32>
    %32 = vector.extract_strided_slice %22 {offsets = [0, 8], sizes = [16, 64], strides = [1, 1]} : vector<16x82xf32> to vector<16x64xf32>
    %33 = vector.extract_strided_slice %23 {offsets = [0, 9], sizes = [16, 64], strides = [1, 1]} : vector<16x82xf32> to vector<16x64xf32>
    %34 = vector.extract_strided_slice %28 {offsets = [0, 10], sizes = [16, 64], strides = [1, 1]} : vector<16x82xf32> to vector<16x64xf32>
    %35 = vector.extract_strided_slice %22 {offsets = [0, 16], sizes = [16, 64], strides = [1, 1]} : vector<16x82xf32> to vector<16x64xf32>
    %36 = vector.extract_strided_slice %23 {offsets = [0, 17], sizes = [16, 64], strides = [1, 1]} : vector<16x82xf32> to vector<16x64xf32>
    %37 = vector.extract_strided_slice %28 {offsets = [0, 18], sizes = [16, 64], strides = [1, 1]} : vector<16x82xf32> to vector<16x64xf32>
    %38 = tpu.concatenate %29, %30, %31, %32, %33, %34, %35, %36, %37 in 0 : vector<16x64xf32>, vector<16x64xf32>, vector<16x64xf32>, vector<16x64xf32>, vector<16x64xf32>, vector<16x64xf32>, vector<16x64xf32>, vector<16x64xf32>, vector<16x64xf32> -> vector<144x64xf32>
    %39 = arith.truncf %38 : vector<144x64xf32> to vector<144x64xbf16>
    %c0_9 = arith.constant 0 : index
    %c0_10 = arith.constant 0 : index
    %40 = vector.load %arg2[%c0_9, %c0_10] : memref<8x144xbf16, #tpu.memory_space<vmem>>, vector<8x144xbf16>
    %cst_11 = arith.constant dense<0.000000e+00> : vector<8x64xf32>
    %41 = tpu.matmul %40, %39, %cst_11 {dimension_numbers = #tpu.dot_dimension_numbers<[1], [0], [0], [1], [0, 0, 1, 1], [], []>} : vector<8x144xbf16>, vector<144x64xbf16>, vector<8x64xf32> -> vector<8x64xf32>
    %c0_12 = arith.constant 0 : index
    %c0_13 = arith.constant 0 : index
    %42 = vector.load %arg6[%c0_12, %c0_13] : memref<8x1xf32, #tpu.memory_space<vmem>>, vector<8x1xf32>
    %43 = vector.broadcast %42 : vector<8x1xf32> to vector<8x64xf32>
    %44 = arith.mulf %41, %43 : vector<8x64xf32>
    %c0_14 = arith.constant 0 : index
    %c0_15 = arith.constant 0 : index
    %45 = vector.load %arg7[%c0_14, %c0_15] : memref<8x1xf32, #tpu.memory_space<vmem>>, vector<8x1xf32>
    %46 = vector.broadcast %45 : vector<8x1xf32> to vector<8x64xf32>
    %47 = arith.addf %44, %46 : vector<8x64xf32>
    %cst_16 = arith.constant 0.000000e+00 : f32
    %48 = vector.broadcast %cst_16 : f32 to vector<8x64xf32>
    %49 = arith.maximumf %47, %48 : vector<8x64xf32>
    %cst_17 = arith.constant 0.000000e+00 : f32
    %50 = vector.broadcast %cst_17 : f32 to vector<8x9xf32>
    %cst_18 = arith.constant 0.000000e+00 : f32
    %51 = vector.shape_cast %6 : vector<1x64xi1> to vector<1x64xi1>
    %52 = vector.broadcast %51 : vector<1x64xi1> to vector<8x64xi1>
    %53 = vector.broadcast %cst_18 : f32 to vector<8x64xf32>
    %54 = arith.select %52, %49, %53 : vector<8x64xi1>, vector<8x64xf32>
    %55 = tpu.concatenate %50, %54, %50 in 1 : vector<8x9xf32>, vector<8x64xf32>, vector<8x9xf32> -> vector<8x82xf32>
    %56 = tpu.concatenate %50, %49, %50 in 1 : vector<8x9xf32>, vector<8x64xf32>, vector<8x9xf32> -> vector<8x82xf32>
    %cst_19 = arith.constant 0.000000e+00 : f32
    %57 = vector.shape_cast %8 : vector<1x64xi1> to vector<1x64xi1>
    %58 = vector.broadcast %57 : vector<1x64xi1> to vector<8x64xi1>
    %59 = vector.broadcast %cst_19 : f32 to vector<8x64xf32>
    %60 = arith.select %58, %49, %59 : vector<8x64xi1>, vector<8x64xf32>
    %61 = tpu.concatenate %50, %60, %50 in 1 : vector<8x9xf32>, vector<8x64xf32>, vector<8x9xf32> -> vector<8x82xf32>
    %62 = vector.extract_strided_slice %55 {offsets = [0, 0], sizes = [8, 64], strides = [1, 1]} : vector<8x82xf32> to vector<8x64xf32>
    %63 = vector.extract_strided_slice %56 {offsets = [0, 1], sizes = [8, 64], strides = [1, 1]} : vector<8x82xf32> to vector<8x64xf32>
    %64 = vector.extract_strided_slice %61 {offsets = [0, 2], sizes = [8, 64], strides = [1, 1]} : vector<8x82xf32> to vector<8x64xf32>
    %65 = vector.extract_strided_slice %55 {offsets = [0, 8], sizes = [8, 64], strides = [1, 1]} : vector<8x82xf32> to vector<8x64xf32>
    %66 = vector.extract_strided_slice %56 {offsets = [0, 9], sizes = [8, 64], strides = [1, 1]} : vector<8x82xf32> to vector<8x64xf32>
    %67 = vector.extract_strided_slice %61 {offsets = [0, 10], sizes = [8, 64], strides = [1, 1]} : vector<8x82xf32> to vector<8x64xf32>
    %68 = vector.extract_strided_slice %55 {offsets = [0, 16], sizes = [8, 64], strides = [1, 1]} : vector<8x82xf32> to vector<8x64xf32>
    %69 = vector.extract_strided_slice %56 {offsets = [0, 17], sizes = [8, 64], strides = [1, 1]} : vector<8x82xf32> to vector<8x64xf32>
    %70 = vector.extract_strided_slice %61 {offsets = [0, 18], sizes = [8, 64], strides = [1, 1]} : vector<8x82xf32> to vector<8x64xf32>
    %71 = tpu.concatenate %62, %63, %64, %65, %66, %67, %68, %69, %70 in 0 : vector<8x64xf32>, vector<8x64xf32>, vector<8x64xf32>, vector<8x64xf32>, vector<8x64xf32>, vector<8x64xf32>, vector<8x64xf32>, vector<8x64xf32>, vector<8x64xf32> -> vector<72x64xf32>
    %72 = arith.truncf %71 : vector<72x64xf32> to vector<72x64xbf16>
    %c0_20 = arith.constant 0 : index
    %c0_21 = arith.constant 0 : index
    %73 = vector.load %arg5[%c0_20, %c0_21] : memref<4x72xbf16, #tpu.memory_space<vmem>>, vector<4x72xbf16>
    %cst_22 = arith.constant dense<0.000000e+00> : vector<4x64xf32>
    %74 = tpu.matmul %73, %72, %cst_22 {dimension_numbers = #tpu.dot_dimension_numbers<[1], [0], [0], [1], [0, 0, 1, 1], [], []>} : vector<4x72xbf16>, vector<72x64xbf16>, vector<4x64xf32> -> vector<4x64xf32>
    %c0_23 = arith.constant 0 : index
    %c0_24 = arith.constant 0 : index
    %75 = vector.load %arg9[%c0_23, %c0_24] : memref<4x1xf32, #tpu.memory_space<vmem>>, vector<4x1xf32>
    %76 = vector.broadcast %75 : vector<4x1xf32> to vector<4x64xf32>
    %77 = arith.mulf %74, %76 : vector<4x64xf32>
    %c0_25 = arith.constant 0 : index
    %c0_26 = arith.constant 0 : index
    %78 = vector.load %arg10[%c0_25, %c0_26] : memref<4x1xf32, #tpu.memory_space<vmem>>, vector<4x1xf32>
    %79 = vector.broadcast %78 : vector<4x1xf32> to vector<4x64xf32>
    %80 = arith.addf %77, %79 : vector<4x64xf32>
    %cst_27 = arith.constant 0.000000e+00 : f32
    %81 = vector.broadcast %cst_27 : f32 to vector<4x64xf32>
    %82 = arith.maximumf %80, %81 : vector<4x64xf32>
    %cst_28 = arith.constant 0.000000e+00 : f32
    %83 = vector.broadcast %cst_28 : f32 to vector<4x9xf32>
    %cst_29 = arith.constant 0.000000e+00 : f32
    %84 = vector.shape_cast %6 : vector<1x64xi1> to vector<1x64xi1>
    %85 = vector.broadcast %84 : vector<1x64xi1> to vector<4x64xi1>
    %86 = vector.broadcast %cst_29 : f32 to vector<4x64xf32>
    %87 = arith.select %85, %82, %86 : vector<4x64xi1>, vector<4x64xf32>
    %88 = tpu.concatenate %83, %87, %83 in 1 : vector<4x9xf32>, vector<4x64xf32>, vector<4x9xf32> -> vector<4x82xf32>
    %89 = tpu.concatenate %83, %82, %83 in 1 : vector<4x9xf32>, vector<4x64xf32>, vector<4x9xf32> -> vector<4x82xf32>
    %cst_30 = arith.constant 0.000000e+00 : f32
    %90 = vector.shape_cast %8 : vector<1x64xi1> to vector<1x64xi1>
    %91 = vector.broadcast %90 : vector<1x64xi1> to vector<4x64xi1>
    %92 = vector.broadcast %cst_30 : f32 to vector<4x64xf32>
    %93 = arith.select %91, %82, %92 : vector<4x64xi1>, vector<4x64xf32>
    %94 = tpu.concatenate %83, %93, %83 in 1 : vector<4x9xf32>, vector<4x64xf32>, vector<4x9xf32> -> vector<4x82xf32>
    %95 = vector.extract_strided_slice %88 {offsets = [0, 0], sizes = [4, 64], strides = [1, 1]} : vector<4x82xf32> to vector<4x64xf32>
    %96 = vector.extract_strided_slice %89 {offsets = [0, 1], sizes = [4, 64], strides = [1, 1]} : vector<4x82xf32> to vector<4x64xf32>
    %97 = vector.extract_strided_slice %94 {offsets = [0, 2], sizes = [4, 64], strides = [1, 1]} : vector<4x82xf32> to vector<4x64xf32>
    %98 = vector.extract_strided_slice %88 {offsets = [0, 8], sizes = [4, 64], strides = [1, 1]} : vector<4x82xf32> to vector<4x64xf32>
    %99 = vector.extract_strided_slice %89 {offsets = [0, 9], sizes = [4, 64], strides = [1, 1]} : vector<4x82xf32> to vector<4x64xf32>
    %100 = vector.extract_strided_slice %94 {offsets = [0, 10], sizes = [4, 64], strides = [1, 1]} : vector<4x82xf32> to vector<4x64xf32>
    %101 = vector.extract_strided_slice %88 {offsets = [0, 16], sizes = [4, 64], strides = [1, 1]} : vector<4x82xf32> to vector<4x64xf32>
    %102 = vector.extract_strided_slice %89 {offsets = [0, 17], sizes = [4, 64], strides = [1, 1]} : vector<4x82xf32> to vector<4x64xf32>
    %103 = vector.extract_strided_slice %94 {offsets = [0, 18], sizes = [4, 64], strides = [1, 1]} : vector<4x82xf32> to vector<4x64xf32>
    %104 = tpu.concatenate %95, %96, %97, %98, %99, %100, %101, %102, %103 in 0 : vector<4x64xf32>, vector<4x64xf32>, vector<4x64xf32>, vector<4x64xf32>, vector<4x64xf32>, vector<4x64xf32>, vector<4x64xf32>, vector<4x64xf32>, vector<4x64xf32> -> vector<36x64xf32>
    %105 = arith.truncf %104 : vector<36x64xf32> to vector<36x64xbf16>
    %c0_31 = arith.constant 0 : index
    %c0_32 = arith.constant 0 : index
    %106 = vector.load %arg8[%c0_31, %c0_32] : memref<4x36xbf16, #tpu.memory_space<vmem>>, vector<4x36xbf16>
    %cst_33 = arith.constant dense<0.000000e+00> : vector<4x64xf32>
    %107 = tpu.matmul %106, %105, %cst_33 {dimension_numbers = #tpu.dot_dimension_numbers<[1], [0], [0], [1], [0, 0, 1, 1], [], []>} : vector<4x36xbf16>, vector<36x64xbf16>, vector<4x64xf32> -> vector<4x64xf32>
    %108 = tpu.concatenate %41, %74, %107 in 0 : vector<8x64xf32>, vector<4x64xf32>, vector<4x64xf32> -> vector<16x64xf32>
    %109 = arith.addf %108, %1 : vector<16x64xf32>
    %c0_34 = arith.constant 0 : index
    %c0_35 = arith.constant 0 : index
    %110 = vector.load %arg11[%c0_34, %c0_35] : memref<8x16xbf16, #tpu.memory_space<vmem>>, vector<8x16xbf16>
    %111 = vector.extract_strided_slice %109 {offsets = [0, 0], sizes = [16, 8], strides = [1, 1]} : vector<16x64xf32> to vector<16x8xf32>
    %112 = vector.extract_strided_slice %109 {offsets = [0, 8], sizes = [16, 8], strides = [1, 1]} : vector<16x64xf32> to vector<16x8xf32>
    %113 = vector.extract_strided_slice %109 {offsets = [0, 16], sizes = [16, 8], strides = [1, 1]} : vector<16x64xf32> to vector<16x8xf32>
    %114 = vector.extract_strided_slice %109 {offsets = [0, 24], sizes = [16, 8], strides = [1, 1]} : vector<16x64xf32> to vector<16x8xf32>
    %115 = vector.extract_strided_slice %109 {offsets = [0, 32], sizes = [16, 8], strides = [1, 1]} : vector<16x64xf32> to vector<16x8xf32>
    %116 = vector.extract_strided_slice %109 {offsets = [0, 40], sizes = [16, 8], strides = [1, 1]} : vector<16x64xf32> to vector<16x8xf32>
    %117 = vector.extract_strided_slice %109 {offsets = [0, 48], sizes = [16, 8], strides = [1, 1]} : vector<16x64xf32> to vector<16x8xf32>
    %118 = vector.extract_strided_slice %109 {offsets = [0, 56], sizes = [16, 8], strides = [1, 1]} : vector<16x64xf32> to vector<16x8xf32>
    %119 = tpu.concatenate %111, %112, %113, %114, %115, %116, %117, %118 in 0 : vector<16x8xf32>, vector<16x8xf32>, vector<16x8xf32>, vector<16x8xf32>, vector<16x8xf32>, vector<16x8xf32>, vector<16x8xf32>, vector<16x8xf32> -> vector<128x8xf32>
    %120 = arith.truncf %119 : vector<128x8xf32> to vector<128x8xbf16>
    %cst_36 = arith.constant dense<0.000000e+00> : vector<128x16xf32>
    %121 = tpu.matmul %120, %110, %cst_36 {dimension_numbers = #tpu.dot_dimension_numbers<[1], [0], [0], [1], [0, 0, 1, 1], [], []>} : vector<128x8xbf16>, vector<8x16xbf16>, vector<128x16xf32> -> vector<128x16xf32>
    %122 = vector.extract_strided_slice %121 {offsets = [0, 0], sizes = [16, 16], strides = [1, 1]} : vector<128x16xf32> to vector<16x16xf32>
    %cst_37 = arith.constant 1.000000e+00 : f32
    %123 = vector.broadcast %cst_37 : f32 to vector<16x16xf32>
    %124 = arith.mulf %123, %122 : vector<16x16xf32>
    %125 = vector.extract_strided_slice %121 {offsets = [0, 0], sizes = [16, 16], strides = [1, 1]} : vector<128x16xf32> to vector<16x16xf32>
    %cst_38 = arith.constant 0.537481487 : f32
    %126 = vector.broadcast %cst_38 : f32 to vector<16x16xf32>
    %127 = arith.mulf %126, %125 : vector<16x16xf32>
    %128 = vector.extract_strided_slice %121 {offsets = [16, 0], sizes = [16, 16], strides = [1, 1]} : vector<128x16xf32> to vector<16x16xf32>
    %cst_39 = arith.constant 0.549629629 : f32
    %129 = vector.broadcast %cst_39 : f32 to vector<16x16xf32>
    %130 = arith.mulf %129, %128 : vector<16x16xf32>
    %131 = arith.addf %127, %130 : vector<16x16xf32>
    %132 = vector.extract_strided_slice %121 {offsets = [32, 0], sizes = [16, 16], strides = [1, 1]} : vector<128x16xf32> to vector<16x16xf32>
    %cst_40 = arith.constant -0.087111108 : f32
    %133 = vector.broadcast %cst_40 : f32 to vector<16x16xf32>
    %134 = arith.mulf %133, %132 : vector<16x16xf32>
    %135 = arith.addf %131, %134 : vector<16x16xf32>
    %136 = vector.extract_strided_slice %121 {offsets = [0, 0], sizes = [16, 16], strides = [1, 1]} : vector<128x16xf32> to vector<16x16xf32>
    %cst_41 = arith.constant 0.0531851836 : f32
    %137 = vector.broadcast %cst_41 : f32 to vector<16x16xf32>
    %138 = arith.mulf %137, %136 : vector<16x16xf32>
    %139 = vector.extract_strided_slice %121 {offsets = [16, 0], sizes = [16, 16], strides = [1, 1]} : vector<128x16xf32> to vector<16x16xf32>
    %cst_42 = arith.constant 0.990370392 : f32
    %140 = vector.broadcast %cst_42 : f32 to vector<16x16xf32>
    %141 = arith.mulf %140, %139 : vector<16x16xf32>
    %142 = arith.addf %138, %141 : vector<16x16xf32>
    %143 = vector.extract_strided_slice %121 {offsets = [32, 0], sizes = [16, 16], strides = [1, 1]} : vector<128x16xf32> to vector<16x16xf32>
    %cst_43 = arith.constant -0.043555554 : f32
    %144 = vector.broadcast %cst_43 : f32 to vector<16x16xf32>
    %145 = arith.mulf %144, %143 : vector<16x16xf32>
    %146 = arith.addf %142, %145 : vector<16x16xf32>
    %147 = vector.extract_strided_slice %121 {offsets = [0, 0], sizes = [16, 16], strides = [1, 1]} : vector<128x16xf32> to vector<16x16xf32>
    %cst_44 = arith.constant -1.080000e-01 : f32
    %148 = vector.broadcast %cst_44 : f32 to vector<16x16xf32>
    %149 = arith.mulf %148, %147 : vector<16x16xf32>
    %150 = vector.extract_strided_slice %121 {offsets = [16, 0], sizes = [16, 16], strides = [1, 1]} : vector<128x16xf32> to vector<16x16xf32>
    %cst_45 = arith.constant 7.200000e-01 : f32
    %151 = vector.broadcast %cst_45 : f32 to vector<16x16xf32>
    %152 = arith.mulf %151, %150 : vector<16x16xf32>
    %153 = arith.addf %149, %152 : vector<16x16xf32>
    %154 = vector.extract_strided_slice %121 {offsets = [32, 0], sizes = [16, 16], strides = [1, 1]} : vector<128x16xf32> to vector<16x16xf32>
    %cst_46 = arith.constant 4.600000e-01 : f32
    %155 = vector.broadcast %cst_46 : f32 to vector<16x16xf32>
    %156 = arith.mulf %155, %154 : vector<16x16xf32>
    %157 = arith.addf %153, %156 : vector<16x16xf32>
    %158 = vector.extract_strided_slice %121 {offsets = [48, 0], sizes = [16, 16], strides = [1, 1]} : vector<128x16xf32> to vector<16x16xf32>
    %cst_47 = arith.constant -0.0719999969 : f32
    %159 = vector.broadcast %cst_47 : f32 to vector<16x16xf32>
    %160 = arith.mulf %159, %158 : vector<16x16xf32>
    %161 = arith.addf %157, %160 : vector<16x16xf32>
    %162 = vector.extract_strided_slice %121 {offsets = [0, 0], sizes = [16, 16], strides = [1, 1]} : vector<128x16xf32> to vector<16x16xf32>
    %cst_48 = arith.constant -0.0115555553 : f32
    %163 = vector.broadcast %cst_48 : f32 to vector<16x16xf32>
    %164 = arith.mulf %163, %162 : vector<16x16xf32>
    %165 = vector.extract_strided_slice %121 {offsets = [16, 0], sizes = [16, 16], strides = [1, 1]} : vector<128x16xf32> to vector<16x16xf32>
    %cst_49 = arith.constant 0.123703703 : f32
    %166 = vector.broadcast %cst_49 : f32 to vector<16x16xf32>
    %167 = arith.mulf %166, %165 : vector<16x16xf32>
    %168 = arith.addf %164, %167 : vector<16x16xf32>
    %169 = vector.extract_strided_slice %121 {offsets = [32, 0], sizes = [16, 16], strides = [1, 1]} : vector<128x16xf32> to vector<16x16xf32>
    %cst_50 = arith.constant 0.962962985 : f32
    %170 = vector.broadcast %cst_50 : f32 to vector<16x16xf32>
    %171 = arith.mulf %170, %169 : vector<16x16xf32>
    %172 = arith.addf %168, %171 : vector<16x16xf32>
    %173 = vector.extract_strided_slice %121 {offsets = [48, 0], sizes = [16, 16], strides = [1, 1]} : vector<128x16xf32> to vector<16x16xf32>
    %cst_51 = arith.constant -0.0751111135 : f32
    %174 = vector.broadcast %cst_51 : f32 to vector<16x16xf32>
    %175 = arith.mulf %174, %173 : vector<16x16xf32>
    %176 = arith.addf %172, %175 : vector<16x16xf32>
    %177 = vector.extract_strided_slice %121 {offsets = [16, 0], sizes = [16, 16], strides = [1, 1]} : vector<128x16xf32> to vector<16x16xf32>
    %cst_52 = arith.constant -0.111111112 : f32
    %178 = vector.broadcast %cst_52 : f32 to vector<16x16xf32>
    %179 = arith.mulf %178, %177 : vector<16x16xf32>
    %180 = vector.extract_strided_slice %121 {offsets = [32, 0], sizes = [16, 16], strides = [1, 1]} : vector<128x16xf32> to vector<16x16xf32>
    %cst_53 = arith.constant 0.796296298 : f32
    %181 = vector.broadcast %cst_53 : f32 to vector<16x16xf32>
    %182 = arith.mulf %181, %180 : vector<16x16xf32>
    %183 = arith.addf %179, %182 : vector<16x16xf32>
    %184 = vector.extract_strided_slice %121 {offsets = [48, 0], sizes = [16, 16], strides = [1, 1]} : vector<128x16xf32> to vector<16x16xf32>
    %cst_54 = arith.constant 0.370370358 : f32
    %185 = vector.broadcast %cst_54 : f32 to vector<16x16xf32>
    %186 = arith.mulf %185, %184 : vector<16x16xf32>
    %187 = arith.addf %183, %186 : vector<16x16xf32>
    %188 = vector.extract_strided_slice %121 {offsets = [64, 0], sizes = [16, 16], strides = [1, 1]} : vector<128x16xf32> to vector<16x16xf32>
    %cst_55 = arith.constant -0.055555556 : f32
    %189 = vector.broadcast %cst_55 : f32 to vector<16x16xf32>
    %190 = arith.mulf %189, %188 : vector<16x16xf32>
    %191 = arith.addf %187, %190 : vector<16x16xf32>
    %192 = vector.extract_strided_slice %121 {offsets = [16, 0], sizes = [16, 16], strides = [1, 1]} : vector<128x16xf32> to vector<16x16xf32>
    %cst_56 = arith.constant -2.400000e-02 : f32
    %193 = vector.broadcast %cst_56 : f32 to vector<16x16xf32>
    %194 = arith.mulf %193, %192 : vector<16x16xf32>
    %195 = vector.extract_strided_slice %121 {offsets = [32, 0], sizes = [16, 16], strides = [1, 1]} : vector<128x16xf32> to vector<16x16xf32>
    %cst_57 = arith.constant 2.000000e-01 : f32
    %196 = vector.broadcast %cst_57 : f32 to vector<16x16xf32>
    %197 = arith.mulf %196, %195 : vector<16x16xf32>
    %198 = arith.addf %194, %197 : vector<16x16xf32>
    %199 = vector.extract_strided_slice %121 {offsets = [48, 0], sizes = [16, 16], strides = [1, 1]} : vector<128x16xf32> to vector<16x16xf32>
    %cst_58 = arith.constant 9.200000e-01 : f32
    %200 = vector.broadcast %cst_58 : f32 to vector<16x16xf32>
    %201 = arith.mulf %200, %199 : vector<16x16xf32>
    %202 = arith.addf %198, %201 : vector<16x16xf32>
    %203 = vector.extract_strided_slice %121 {offsets = [64, 0], sizes = [16, 16], strides = [1, 1]} : vector<128x16xf32> to vector<16x16xf32>
    %cst_59 = arith.constant -9.600000e-02 : f32
    %204 = vector.broadcast %cst_59 : f32 to vector<16x16xf32>
    %205 = arith.mulf %204, %203 : vector<16x16xf32>
    %206 = arith.addf %202, %205 : vector<16x16xf32>
    %207 = vector.extract_strided_slice %121 {offsets = [32, 0], sizes = [16, 16], strides = [1, 1]} : vector<128x16xf32> to vector<16x16xf32>
    %cst_60 = arith.constant -0.107555553 : f32
    %208 = vector.broadcast %cst_60 : f32 to vector<16x16xf32>
    %209 = arith.mulf %208, %207 : vector<16x16xf32>
    %210 = vector.extract_strided_slice %121 {offsets = [48, 0], sizes = [16, 16], strides = [1, 1]} : vector<128x16xf32> to vector<16x16xf32>
    %cst_61 = arith.constant 0.863703727 : f32
    %211 = vector.broadcast %cst_61 : f32 to vector<16x16xf32>
    %212 = arith.mulf %211, %210 : vector<16x16xf32>
    %213 = arith.addf %209, %212 : vector<16x16xf32>
    %214 = vector.extract_strided_slice %121 {offsets = [64, 0], sizes = [16, 16], strides = [1, 1]} : vector<128x16xf32> to vector<16x16xf32>
    %cst_62 = arith.constant 0.282962948 : f32
    %215 = vector.broadcast %cst_62 : f32 to vector<16x16xf32>
    %216 = arith.mulf %215, %214 : vector<16x16xf32>
    %217 = arith.addf %213, %216 : vector<16x16xf32>
    %218 = vector.extract_strided_slice %121 {offsets = [80, 0], sizes = [16, 16], strides = [1, 1]} : vector<128x16xf32> to vector<16x16xf32>
    %cst_63 = arith.constant -0.0391111113 : f32
    %219 = vector.broadcast %cst_63 : f32 to vector<16x16xf32>
    %220 = arith.mulf %219, %218 : vector<16x16xf32>
    %221 = arith.addf %217, %220 : vector<16x16xf32>
    %222 = vector.extract_strided_slice %121 {offsets = [32, 0], sizes = [16, 16], strides = [1, 1]} : vector<128x16xf32> to vector<16x16xf32>
    %cst_64 = arith.constant -0.0391111113 : f32
    %223 = vector.broadcast %cst_64 : f32 to vector<16x16xf32>
    %224 = arith.mulf %223, %222 : vector<16x16xf32>
    %225 = vector.extract_strided_slice %121 {offsets = [48, 0], sizes = [16, 16], strides = [1, 1]} : vector<128x16xf32> to vector<16x16xf32>
    %cst_65 = arith.constant 0.282962948 : f32
    %226 = vector.broadcast %cst_65 : f32 to vector<16x16xf32>
    %227 = arith.mulf %226, %225 : vector<16x16xf32>
    %228 = arith.addf %224, %227 : vector<16x16xf32>
    %229 = vector.extract_strided_slice %121 {offsets = [64, 0], sizes = [16, 16], strides = [1, 1]} : vector<128x16xf32> to vector<16x16xf32>
    %cst_66 = arith.constant 0.863703727 : f32
    %230 = vector.broadcast %cst_66 : f32 to vector<16x16xf32>
    %231 = arith.mulf %230, %229 : vector<16x16xf32>
    %232 = arith.addf %228, %231 : vector<16x16xf32>
    %233 = vector.extract_strided_slice %121 {offsets = [80, 0], sizes = [16, 16], strides = [1, 1]} : vector<128x16xf32> to vector<16x16xf32>
    %cst_67 = arith.constant -0.107555553 : f32
    %234 = vector.broadcast %cst_67 : f32 to vector<16x16xf32>
    %235 = arith.mulf %234, %233 : vector<16x16xf32>
    %236 = arith.addf %232, %235 : vector<16x16xf32>
    %237 = vector.extract_strided_slice %121 {offsets = [48, 0], sizes = [16, 16], strides = [1, 1]} : vector<128x16xf32> to vector<16x16xf32>
    %cst_68 = arith.constant -9.600000e-02 : f32
    %238 = vector.broadcast %cst_68 : f32 to vector<16x16xf32>
    %239 = arith.mulf %238, %237 : vector<16x16xf32>
    %240 = vector.extract_strided_slice %121 {offsets = [64, 0], sizes = [16, 16], strides = [1, 1]} : vector<128x16xf32> to vector<16x16xf32>
    %cst_69 = arith.constant 9.200000e-01 : f32
    %241 = vector.broadcast %cst_69 : f32 to vector<16x16xf32>
    %242 = arith.mulf %241, %240 : vector<16x16xf32>
    %243 = arith.addf %239, %242 : vector<16x16xf32>
    %244 = vector.extract_strided_slice %121 {offsets = [80, 0], sizes = [16, 16], strides = [1, 1]} : vector<128x16xf32> to vector<16x16xf32>
    %cst_70 = arith.constant 2.000000e-01 : f32
    %245 = vector.broadcast %cst_70 : f32 to vector<16x16xf32>
    %246 = arith.mulf %245, %244 : vector<16x16xf32>
    %247 = arith.addf %243, %246 : vector<16x16xf32>
    %248 = vector.extract_strided_slice %121 {offsets = [96, 0], sizes = [16, 16], strides = [1, 1]} : vector<128x16xf32> to vector<16x16xf32>
    %cst_71 = arith.constant -2.400000e-02 : f32
    %249 = vector.broadcast %cst_71 : f32 to vector<16x16xf32>
    %250 = arith.mulf %249, %248 : vector<16x16xf32>
    %251 = arith.addf %247, %250 : vector<16x16xf32>
    %252 = vector.extract_strided_slice %121 {offsets = [48, 0], sizes = [16, 16], strides = [1, 1]} : vector<128x16xf32> to vector<16x16xf32>
    %cst_72 = arith.constant -0.055555556 : f32
    %253 = vector.broadcast %cst_72 : f32 to vector<16x16xf32>
    %254 = arith.mulf %253, %252 : vector<16x16xf32>
    %255 = vector.extract_strided_slice %121 {offsets = [64, 0], sizes = [16, 16], strides = [1, 1]} : vector<128x16xf32> to vector<16x16xf32>
    %cst_73 = arith.constant 0.370370358 : f32
    %256 = vector.broadcast %cst_73 : f32 to vector<16x16xf32>
    %257 = arith.mulf %256, %255 : vector<16x16xf32>
    %258 = arith.addf %254, %257 : vector<16x16xf32>
    %259 = vector.extract_strided_slice %121 {offsets = [80, 0], sizes = [16, 16], strides = [1, 1]} : vector<128x16xf32> to vector<16x16xf32>
    %cst_74 = arith.constant 0.796296298 : f32
    %260 = vector.broadcast %cst_74 : f32 to vector<16x16xf32>
    %261 = arith.mulf %260, %259 : vector<16x16xf32>
    %262 = arith.addf %258, %261 : vector<16x16xf32>
    %263 = vector.extract_strided_slice %121 {offsets = [96, 0], sizes = [16, 16], strides = [1, 1]} : vector<128x16xf32> to vector<16x16xf32>
    %cst_75 = arith.constant -0.111111112 : f32
    %264 = vector.broadcast %cst_75 : f32 to vector<16x16xf32>
    %265 = arith.mulf %264, %263 : vector<16x16xf32>
    %266 = arith.addf %262, %265 : vector<16x16xf32>
    %267 = vector.extract_strided_slice %121 {offsets = [64, 0], sizes = [16, 16], strides = [1, 1]} : vector<128x16xf32> to vector<16x16xf32>
    %cst_76 = arith.constant -0.0751111135 : f32
    %268 = vector.broadcast %cst_76 : f32 to vector<16x16xf32>
    %269 = arith.mulf %268, %267 : vector<16x16xf32>
    %270 = vector.extract_strided_slice %121 {offsets = [80, 0], sizes = [16, 16], strides = [1, 1]} : vector<128x16xf32> to vector<16x16xf32>
    %cst_77 = arith.constant 0.962962985 : f32
    %271 = vector.broadcast %cst_77 : f32 to vector<16x16xf32>
    %272 = arith.mulf %271, %270 : vector<16x16xf32>
    %273 = arith.addf %269, %272 : vector<16x16xf32>
    %274 = vector.extract_strided_slice %121 {offsets = [96, 0], sizes = [16, 16], strides = [1, 1]} : vector<128x16xf32> to vector<16x16xf32>
    %cst_78 = arith.constant 0.123703703 : f32
    %275 = vector.broadcast %cst_78 : f32 to vector<16x16xf32>
    %276 = arith.mulf %275, %274 : vector<16x16xf32>
    %277 = arith.addf %273, %276 : vector<16x16xf32>
    %278 = vector.extract_strided_slice %121 {offsets = [112, 0], sizes = [16, 16], strides = [1, 1]} : vector<128x16xf32> to vector<16x16xf32>
    %cst_79 = arith.constant -0.0115555553 : f32
    %279 = vector.broadcast %cst_79 : f32 to vector<16x16xf32>
    %280 = arith.mulf %279, %278 : vector<16x16xf32>
    %281 = arith.addf %277, %280 : vector<16x16xf32>
    %282 = vector.extract_strided_slice %121 {offsets = [64, 0], sizes = [16, 16], strides = [1, 1]} : vector<128x16xf32> to vector<16x16xf32>
    %cst_80 = arith.constant -0.0719999969 : f32
    %283 = vector.broadcast %cst_80 : f32 to vector<16x16xf32>
    %284 = arith.mulf %283, %282 : vector<16x16xf32>
    %285 = vector.extract_strided_slice %121 {offsets = [80, 0], sizes = [16, 16], strides = [1, 1]} : vector<128x16xf32> to vector<16x16xf32>
    %cst_81 = arith.constant 4.600000e-01 : f32
    %286 = vector.broadcast %cst_81 : f32 to vector<16x16xf32>
    %287 = arith.mulf %286, %285 : vector<16x16xf32>
    %288 = arith.addf %284, %287 : vector<16x16xf32>
    %289 = vector.extract_strided_slice %121 {offsets = [96, 0], sizes = [16, 16], strides = [1, 1]} : vector<128x16xf32> to vector<16x16xf32>
    %cst_82 = arith.constant 7.200000e-01 : f32
    %290 = vector.broadcast %cst_82 : f32 to vector<16x16xf32>
    %291 = arith.mulf %290, %289 : vector<16x16xf32>
    %292 = arith.addf %288, %291 : vector<16x16xf32>
    %293 = vector.extract_strided_slice %121 {offsets = [112, 0], sizes = [16, 16], strides = [1, 1]} : vector<128x16xf32> to vector<16x16xf32>
    %cst_83 = arith.constant -1.080000e-01 : f32
    %294 = vector.broadcast %cst_83 : f32 to vector<16x16xf32>
    %295 = arith.mulf %294, %293 : vector<16x16xf32>
    %296 = arith.addf %292, %295 : vector<16x16xf32>
    %297 = vector.extract_strided_slice %121 {offsets = [80, 0], sizes = [16, 16], strides = [1, 1]} : vector<128x16xf32> to vector<16x16xf32>
    %cst_84 = arith.constant -0.043555554 : f32
    %298 = vector.broadcast %cst_84 : f32 to vector<16x16xf32>
    %299 = arith.mulf %298, %297 : vector<16x16xf32>
    %300 = vector.extract_strided_slice %121 {offsets = [96, 0], sizes = [16, 16], strides = [1, 1]} : vector<128x16xf32> to vector<16x16xf32>
    %cst_85 = arith.constant 0.990370392 : f32
    %301 = vector.broadcast %cst_85 : f32 to vector<16x16xf32>
    %302 = arith.mulf %301, %300 : vector<16x16xf32>
    %303 = arith.addf %299, %302 : vector<16x16xf32>
    %304 = vector.extract_strided_slice %121 {offsets = [112, 0], sizes = [16, 16], strides = [1, 1]} : vector<128x16xf32> to vector<16x16xf32>
    %cst_86 = arith.constant 0.0531851836 : f32
    %305 = vector.broadcast %cst_86 : f32 to vector<16x16xf32>
    %306 = arith.mulf %305, %304 : vector<16x16xf32>
    %307 = arith.addf %303, %306 : vector<16x16xf32>
    %308 = vector.extract_strided_slice %121 {offsets = [80, 0], sizes = [16, 16], strides = [1, 1]} : vector<128x16xf32> to vector<16x16xf32>
    %cst_87 = arith.constant -0.087111108 : f32
    %309 = vector.broadcast %cst_87 : f32 to vector<16x16xf32>
    %310 = arith.mulf %309, %308 : vector<16x16xf32>
    %311 = vector.extract_strided_slice %121 {offsets = [96, 0], sizes = [16, 16], strides = [1, 1]} : vector<128x16xf32> to vector<16x16xf32>
    %cst_88 = arith.constant 0.549629629 : f32
    %312 = vector.broadcast %cst_88 : f32 to vector<16x16xf32>
    %313 = arith.mulf %312, %311 : vector<16x16xf32>
    %314 = arith.addf %310, %313 : vector<16x16xf32>
    %315 = vector.extract_strided_slice %121 {offsets = [112, 0], sizes = [16, 16], strides = [1, 1]} : vector<128x16xf32> to vector<16x16xf32>
    %cst_89 = arith.constant 0.537481487 : f32
    %316 = vector.broadcast %cst_89 : f32 to vector<16x16xf32>
    %317 = arith.mulf %316, %315 : vector<16x16xf32>
    %318 = arith.addf %314, %317 : vector<16x16xf32>
    %319 = vector.extract_strided_slice %121 {offsets = [112, 0], sizes = [16, 16], strides = [1, 1]} : vector<128x16xf32> to vector<16x16xf32>
    %cst_90 = arith.constant 1.000000e+00 : f32
    %320 = vector.broadcast %cst_90 : f32 to vector<16x16xf32>
    %321 = arith.mulf %320, %319 : vector<16x16xf32>
    %322 = tpu.concatenate %124, %135, %146, %161, %176, %191, %206, %221, %236, %251, %266, %281, %296, %307, %318, %321 in 1 : vector<16x16xf32>, vector<16x16xf32>, vector<16x16xf32>, vector<16x16xf32>, vector<16x16xf32>, vector<16x16xf32>, vector<16x16xf32>, vector<16x16xf32>, vector<16x16xf32>, vector<16x16xf32>, vector<16x16xf32>, vector<16x16xf32>, vector<16x16xf32>, vector<16x16xf32>, vector<16x16xf32>, vector<16x16xf32> -> vector<16x256xf32>
    %c0_91 = arith.constant 0 : index
    %c0_92 = arith.constant 0 : index
    %c0_93 = arith.constant 0 : index
    %323 = vector.load %arg12[%c0_91, %c0_92, %c0_93] : memref<1x16x256xf32, #tpu.memory_space<vmem>>, vector<1x16x256xf32>
    %324 = vector.shape_cast %323 : vector<1x16x256xf32> to vector<16x256xf32>
    %325 = arith.addf %322, %324 : vector<16x256xf32>
    %c0_94 = arith.constant 0 : index
    %c0_95 = arith.constant 0 : index
    %c0_96 = arith.constant 0 : index
    %326 = vector.load %arg13[%c0_94, %c0_95, %c0_96] : memref<1x16x256xf32, #tpu.memory_space<vmem>>, vector<1x16x256xf32>
    %327 = vector.shape_cast %326 : vector<1x16x256xf32> to vector<16x256xf32>
    %328 = vector.shape_cast %325 : vector<16x256xf32> to vector<1x16x256xf32>
    tpu.vector_store %arg13[%c0_94, %c0_95, %c0_96], %328 {strides = array<i32>} : memref<1x16x256xf32, #tpu.memory_space<vmem>>, vector<1x16x256xf32>,
    return
  }
  func.func @transform_0(%arg0: i32) -> (i32, i32, i32) {
    %c0_i32 = arith.constant 0 : i32
    %c0_i32_0 = arith.constant 0 : i32
    %c0_i32_1 = arith.constant 0 : i32
    return %arg0, %c0_i32, %c0_i32_0 : i32, i32, i32
  }
  func.func @transform_1(%arg0: i32) -> (i32, i32) {
    %c0_i32 = arith.constant 0 : i32
    %c0_i32_0 = arith.constant 0 : i32
    %c0_i32_1 = arith.constant 0 : i32
    return %c0_i32, %c0_i32_0 : i32, i32
  }
  func.func @transform_2(%arg0: i32) -> (i32, i32) {
    %c0_i32 = arith.constant 0 : i32
    %c0_i32_0 = arith.constant 0 : i32
    %c0_i32_1 = arith.constant 0 : i32
    return %c0_i32, %c0_i32_0 : i32, i32
  }
  func.func @transform_3(%arg0: i32) -> (i32, i32) {
    %c0_i32 = arith.constant 0 : i32
    %c0_i32_0 = arith.constant 0 : i32
    %c0_i32_1 = arith.constant 0 : i32
    return %c0_i32, %c0_i32_0 : i32, i32
  }
  func.func @transform_4(%arg0: i32) -> (i32, i32) {
    %c0_i32 = arith.constant 0 : i32
    %c0_i32_0 = arith.constant 0 : i32
    %c0_i32_1 = arith.constant 0 : i32
    return %c0_i32, %c0_i32_0 : i32, i32
  }
  func.func @transform_5(%arg0: i32) -> (i32, i32) {
    %c0_i32 = arith.constant 0 : i32
    %c0_i32_0 = arith.constant 0 : i32
    %c0_i32_1 = arith.constant 0 : i32
    return %c0_i32, %c0_i32_0 : i32, i32
  }
  func.func @transform_6(%arg0: i32) -> (i32, i32) {
    %c0_i32 = arith.constant 0 : i32
    %c0_i32_0 = arith.constant 0 : i32
    %c0_i32_1 = arith.constant 0 : i32
    return %c0_i32, %c0_i32_0 : i32, i32
  }
  func.func @transform_7(%arg0: i32) -> (i32, i32) {
    %c0_i32 = arith.constant 0 : i32
    %c0_i32_0 = arith.constant 0 : i32
    %c0_i32_1 = arith.constant 0 : i32
    return %c0_i32, %c0_i32_0 : i32, i32
  }
  func.func @transform_8(%arg0: i32) -> (i32, i32) {
    %c0_i32 = arith.constant 0 : i32
    %c0_i32_0 = arith.constant 0 : i32
    %c0_i32_1 = arith.constant 0 : i32
    return %c0_i32, %c0_i32_0 : i32, i32
  }
  func.func @transform_9(%arg0: i32) -> (i32, i32) {
    %c0_i32 = arith.constant 0 : i32
    %c0_i32_0 = arith.constant 0 : i32
    %c0_i32_1 = arith.constant 0 : i32
    return %c0_i32, %c0_i32_0 : i32, i32
  }
  func.func @transform_10(%arg0: i32) -> (i32, i32) {
    %c0_i32 = arith.constant 0 : i32
    %c0_i32_0 = arith.constant 0 : i32
    %c0_i32_1 = arith.constant 0 : i32
    return %c0_i32, %c0_i32_0 : i32, i32
  }
  func.func @transform_11(%arg0: i32) -> (i32, i32, i32) {
    %c0_i32 = arith.constant 0 : i32
    %c0_i32_0 = arith.constant 0 : i32
    %c0_i32_1 = arith.constant 0 : i32
    return %arg0, %c0_i32, %c0_i32_0 : i32, i32, i32
  }
  func.func @transform_12(%arg0: i32) -> (i32, i32, i32) {
    %c0_i32 = arith.constant 0 : i32
    %c0_i32_0 = arith.constant 0 : i32
    %c0_i32_1 = arith.constant 0 : i32
    return %arg0, %c0_i32, %c0_i32_0 : i32, i32, i32
  }
}

</mosaic_0001>

<bundles_post_ra>
// kernel: hourglass_forward.9
= control target key start
LH: loop header
LB: loop body
LE: loop exit
PB: predicated region body
PF: predicated region fallthrough
CT: control target
= control target key end

     0   :  { %s1078_s13 = smov 0   ;;  %s1272_s0 = inlined_call_operand.vmem [shape: f32[2,16,64], index: 0, kind: input, shape index: {}]   ;;  %s1273_s1 = inlined_call_operand.vmem [shape: bf16[8,144], index: 1, kind: input, shape index: {}]   ;;  %s1274_s2 = inlined_call_operand.vmem [shape: f32[16,1], index: 2, kind: input, shape index: {}]   ;;  %s1275_s3 = inlined_call_operand.vmem [shape: f32[16,1], index: 3, kind: input, shape index: {}]   ;;  %s1276_s4 = inlined_call_operand.vmem [shape: bf16[4,72], index: 4, kind: input, shape index: {}]   ;;  %s1277_s5 = inlined_call_operand.vmem [shape: f32[8,1], index: 5, kind: input, shape index: {}]   ;;  %s1278_s6 = inlined_call_operand.vmem [shape: f32[8,1], index: 6, kind: input, shape index: {}]   ;;  %s1279_s7 = inlined_call_operand.vmem [shape: bf16[4,36], index: 7, kind: input, shape index: {}]   ;;  %s1280_s8 = inlined_call_operand.vmem [shape: f32[4,1], index: 8, kind: input, shape index: {}]   ;;  %s1281_s9 = inlined_call_operand.vmem [shape: f32[4,1], index: 9, kind: input, shape index: {}]   ;;  %s1282_s10 = inlined_call_operand.vmem [shape: f32[2,16,64], index: 10, kind: output, shape index: {}]  }
   0x1 LB: > { %s859_s14 = sadd.s32 4294967295, %s1008_s13   ;;  %p863_p0 = scmp.ge.s32.totalorder %s1008_s13, 1  ;;  %s1008_s13 = sphi %s1078_s13, %s20_s13  }
   0x2   : > { %p312_p1 = scmp.lt.s32.totalorder %s1008_s13, 3 }
   0x4   : > { %p313_p2 = pnand %p863_p0, %p312_p1 }
   0x5   : > { %p350_p3 = scmp.lt.s32.totalorder (!%p313_p2), %s859_s14, 1  ;;  %s1011_s27 = smov (!%p313_p2), 9  }
   0x6   : > { %316 = sbr.rel (%p313_p2) target bundleno = 1528 (0x5f8), region = 60  ;;  %s1012_s28 = smov (!%p313_p2), 111  }
   0x7   : > { %s1013_s29 = smov (!%p313_p2), 112   ;;  %s1014_s30 = smov (!%p313_p2), 118  }
   0x8   : > { %s1015_s11 = smov (!%p313_p2), 119   ;;  %s1016_s12 = smov (!%p313_p2), 120  }
   0x9   : > { %s1017_s15 = smov (!%p313_p2), 126   ;;  %s1018_s16 = smov (!%p313_p2), 127  }
   0xa   : > { %s1019_s17 = smov (!%p313_p2), 110  }
   0xb   : > { %v382_v0 = vld [vmem:[%s1275_s3] sm:$0xff]  ;;  %v1010_v2 = vmov 0   ;;  %v383_v3 = vld [vmem:[%s1275_s3 + $0x8] sm:$0xff]  ;;  %s1288_s14 = smov (!%p350_p3, %s859_s14), 1  ;;  %v363_v5 = vlaneseq  ;;  %vm410_vm2 = vcmask 72704   ;;  %vm413_vm3 = vcmask 596992  }
   0xc   : > { %v368_v1 = vld [vmem:[%s1274_s2] sm:$0xff]  ;;  %939 = vset.pattern.permute.xlu1 %v1010_v2  ;;  %938 = vset.pattern.permute.xlu0 %v1010_v2  ;;  %v369_v4 = vld [vmem:[%s1274_s2 + $0x8] sm:$0xff]  ;;  %s881_s23 = sshll.u32 %s1288_s14, 4  ;;  %vm514_vm4 = vcmask 130048   ;;  %vm870_vm5 = vmpackc.low %vm413_vm3, %vm413_vm3  ;;  %vm801_vm6 = vcmask 523264   ;;  %vm1021_vm7 = vmmov 0  }
   0xd   : > { %386 = vperm.xlu1 %939, %v382_v0   ;;  %372 = vperm.xlu0 %938, %v368_v1   ;;  %s354_s26 = scalar_lea.vmem %s1272_s0, %s881_s23  ;;  %v364_v9 = vand.u32 127, %v363_v5  ;;  %v558_v54 = vld [vmem:[%s1277_s5] sm:$0xff]  ;;  %s1189_s18 = scalar_lea.vmem %s1282_s10, %s881_s23  ;;  %vm630_vm8 = vcmask 1043456   ;;  %vm1022_vm9 = vmmov 1   ;;  %vm626_vm11 = vcmask 588800  }
   0xe   : > { %518 = vmatprep.subr.bf16.mxu0 %v1010_v2  ;;  %v1109_v6 = vld [vmem:[%s354_s26] sm:$0xff]  ;;  %v1112_v11 = vld [vmem:[%s354_s26 + $0x8] sm:$0xff]  ;;  %vm874_vm10 = vmpackc.low %vm1022_vm9, %vm413_vm3  ;;  %vm751_vm12 = vcmask 1041408   ;;  %vm747_vm13 = vcmask 293888  }
   0xf   : > { %v365_v14 = vand.u32 7, %v364_v9  ;;  %v565_v55 = vld [vmem:[%s1278_s6] sm:$0xff] }
  0x10   : > { %v507_v56 = vld [vmem:[%s1273_s1] sm:$0xff] }
  0x11   : > { %391 = vperm.xlu1 %939, %v383_v3   ;;  %377 = vperm.xlu0 %938, %v369_v4   ;;  %vm1115_vm0 = vcmp.le.s32.totalorder %v365_v14, 6  ;;  %vm1123_vm1 = vcmp.ge.s32.totalorder %v365_v14, 1  ;;  %v869_v57 = vcombine.high %v507_v56, %v507_v56 }
  0x13   : > { %873 = vmatprep.mubr.msk.bf16.mxu0 %vm514_vm4, %v869_v57 }
  0x88   : > { %v387_v7 = vpop.permute.xlu1 %386  ;;  %v373_v8 = vpop.permute.xlu0 %372 }
  0x89   : > { %v380_v10 = vmul.f32 %v373_v8, %v1109_v6 }
  0x8b   : > { %v394_v12 = vadd.f32 %v387_v7, %v380_v10 }
  0x8c   : > { %v378_v13 = vpop.permute.xlu0 %377  ;;  %v392_v16 = vpop.permute.xlu1 %391 }
  0x8d   : > { %v381_v15 = vmul.f32 %v378_v13, %v1112_v11  ;;  %v396_v17 = vmax.f32 %v394_v12, 0.0 }
  0x8f   : > { %v395_v18 = vadd.f32 %v392_v16, %v381_v15  ;;  %v400_v22 = vsel %vm1115_vm0, %v396_v17, 0.0  ;;  %v430_v27 = vsel %vm1123_vm1, %v396_v17, 0.0 }
  0x91   : > { %v397_v20 = vmax.f32 %v395_v18, 0.0 }
  0x93   : > { %v940_v21 = vpack.i.bf16 %v397_v20, %v396_v17  ;;  %v401_v23 = vsel %vm1115_vm0, %v397_v20, 0.0  ;;  %v431_v26 = vsel %vm1123_vm1, %v397_v20, 0.0 }
  0x94   : > { %v945_v25 = vpack.i.bf16 %v401_v23, %v400_v22  ;;  %v950_v28 = vpack.i.bf16 %v431_v26, %v430_v27 }
  0x95   : > { %941 = vrot.lane.b32.xlu0 %v940_v21, %s1011_s27 }
  0x96   : > { %946 = vrot.lane.b32.xlu1 %v945_v25, %s1011_s27 }
  0x99   : > { %951 = vrot.lane.b32.xlu0 %v950_v28, %s1011_s27 }
 0x107   : > { %v942_v29 = vpop.permute.xlu0 %941 }
 0x108   : > { %v944_v30 = vunpack.i.h.bf16 %v942_v29  ;;  %v943_v31 = vunpack.i.l.bf16 %v942_v29  ;;  %v947_v32 = vpop.permute.xlu1 %946 }
 0x109   : > { %v949_v33 = vunpack.i.h.bf16 %v947_v32  ;;  %v948_v34 = vunpack.i.l.bf16 %v947_v32 }
 0x10a   : > { %v425_v35 = vsel %vm410_vm2, 0.0, %v944_v30  ;;  %v424_v36 = vsel %vm410_vm2, 0.0, %v943_v31  ;;  %v868_v31 = vcombine.low %v507_v56, %v507_v56 }
 0x10b   : > { %v427_v37 = vsel %vm413_vm3, %v425_v35, 0.0  ;;  %v426_v38 = vsel %vm413_vm3, %v424_v36, 0.0  ;;  %v1139_v39 = vsel %vm410_vm2, 0.0, %v949_v33  ;;  %v1142_v40 = vsel %vm410_vm2, 0.0, %v948_v34  ;;  %v952_v41 = vpop.permute.xlu0 %951 }
 0x10c   : > { %v415_v42 = vsel %vm413_vm3, %v1139_v39, 0.0  ;;  %v414_v43 = vsel %vm413_vm3, %v1142_v40, 0.0  ;;  %v871_v44 = vpack.c.bf16 %v1139_v39, %v1142_v40  ;;  %v954_v45 = vunpack.i.h.bf16 %v952_v41 }
 0x10d   : > { %v953_v46 = vunpack.i.l.bf16 %v952_v41  ;;  %v955_v47 = vpack.i.bf16 %v427_v37, %v426_v38  ;;  %v960_v48 = vpack.i.bf16 %v415_v42, %v414_v43 }
 0x10e   : > { %v441_v49 = vsel %vm410_vm2, 0.0, %v954_v45 }
 0x10f   : > { %v443_v50 = vsel %vm413_vm3, %v441_v49, 0.0  ;;  %v440_v51 = vsel %vm410_vm2, 0.0, %v953_v46  ;;  %956 = vrot.lane.b32.xlu1 %v955_v47, %s1012_s28  ;;  %961 = vrot.lane.b32.xlu0 %v960_v48, %s1013_s29 }
 0x110   : > { %v442_v52 = vsel %vm413_vm3, %v440_v51, 0.0 }
 0x111   : > { %v965_v53 = vpack.i.bf16 %v443_v50, %v442_v52 }
 0x113   : > { %966 = vrot.lane.b32.xlu1 %v965_v53, %s1014_s30  ;;  %971 = vrot.lane.b32.xlu0 %v955_v47, %s1015_s11 }
 0x117   : > { %976 = vrot.lane.b32.xlu1 %v960_v48, %s1016_s12  ;;  %981 = vrot.lane.b32.xlu0 %v965_v53, %s1017_s15 }
 0x11b   : > { %986 = vrot.lane.b32.xlu1 %v955_v47, %s1018_s16  ;;  %991 = vrot.lane.b32.xlu0 %v965_v53, %s1019_s17 }
 0x11f   : > { %561 = vperm.xlu1 %939, %v558_v54   ;;  %568 = vperm.xlu0 %938, %v565_v55   ;;  %v674_v54 = vld [vmem:[%s1280_s8] sm:$0xf] }
 0x120   : > { %v681_v55 = vld [vmem:[%s1281_s9] sm:$0xf] }
 0x181   : > { %v957_v58 = vpop.permute.xlu1 %956  ;;  %v962_v59 = vpop.permute.xlu0 %961 }
 0x182   : > { %v959_v60 = vunpack.i.h.bf16 %v957_v58  ;;  %v958_v61 = vunpack.i.l.bf16 %v957_v58  ;;  %v964_v62 = vunpack.i.h.bf16 %v962_v59  ;;  %v963_v63 = vunpack.i.l.bf16 %v962_v59 }
 0x184   : > { %v505_v0 = vpack.c.bf16 %v959_v60, %v958_v61  ;;  %v504_v3 = vpack.c.bf16 %v964_v62, %v963_v63 }
 0x185   : > { %v967_v1 = vpop.permute.xlu1 %966  ;;  %v972_v7 = vpop.permute.xlu0 %971 }
 0x186   : > { %519 = vmatpush1.bf16.msra.mxu0 %v505_v0  ;;  %v969_v4 = vunpack.i.h.bf16 %v967_v1  ;;  %v968_v5 = vunpack.i.l.bf16 %v967_v1  ;;  %v974_v9 = vunpack.i.h.bf16 %v972_v7  ;;  %v973_v10 = vunpack.i.l.bf16 %v972_v7 }
 0x187   : > { %520 = vmatprep.subr.bf16.mxu0 %v1010_v2 }
 0x188   : > { %v503_v8 = vpack.c.bf16 %v969_v4, %v968_v5  ;;  %v502_v13 = vpack.c.bf16 %v974_v9, %v973_v10 }
 0x189   : > { %v977_v12 = vpop.permute.xlu1 %976  ;;  %v982_v16 = vpop.permute.xlu0 %981 }
 0x18a   : > { %521 = vmatpush1.bf16.msra.mxu0 %v504_v3  ;;  %v979_v14 = vunpack.i.h.bf16 %v977_v12  ;;  %v978_v15 = vunpack.i.l.bf16 %v977_v12  ;;  %v984_v18 = vunpack.i.h.bf16 %v982_v16  ;;  %v983_v20 = vunpack.i.l.bf16 %v982_v16 }
 0x18b   : > { %522 = vmatprep.subr.bf16.mxu0 %v1010_v2 }
 0x18c   : > { %v501_v17 = vpack.c.bf16 %v979_v14, %v978_v15  ;;  %v500_v22 = vpack.c.bf16 %v984_v18, %v983_v20 }
 0x18d   : > { %v987_v21 = vpop.permute.xlu1 %986  ;;  %v992_v27 = vpop.permute.xlu0 %991 }
 0x18e   : > { %523 = vmatpush1.bf16.msra.mxu0 %v503_v8  ;;  %v989_v23 = vunpack.i.h.bf16 %v987_v21  ;;  %v988_v25 = vunpack.i.l.bf16 %v987_v21  ;;  %v994_v28 = vunpack.i.h.bf16 %v992_v27  ;;  %v993_v29 = vunpack.i.l.bf16 %v992_v27  ;;  %v625_v8 = vld [vmem:[%s1276_s4] sm:$0x3] }
 0x18f   : > { %524 = vmatprep.subr.bf16.mxu0 %v1010_v2 }
 0x190   : > { %v499_v26 = vpack.c.bf16 %v989_v23, %v988_v25  ;;  %v506_v30 = vpack.c.bf16 %v994_v28, %v993_v29 }
 0x192   : > { %525 = vmatpush1.bf16.msra.mxu0 %v502_v13 }
 0x193   : > { %526 = vmatprep.subr.bf16.mxu0 %v1010_v2 }
 0x196   : > { %527 = vmatpush1.bf16.msra.mxu0 %v501_v17 }
 0x197   : > { %528 = vmatprep.subr.bf16.mxu0 %v1010_v2 }
 0x19a   : > { %529 = vmatpush1.bf16.msra.mxu0 %v500_v22  ;;  %v562_v32 = vpop.permute.xlu1 %561  ;;  %v569_v36 = vpop.permute.xlu0 %568 }
 0x19b   : > { %530 = vmatprep.subr.bf16.mxu0 %v1010_v2 }
 0x19e   : > { %531 = vmatpush1.bf16.msra.mxu0 %v499_v26 }
 0x19f   : > { %532 = vmatprep.subr.bf16.mxu0 %v1010_v2 }
 0x1a2   : > { %872 = vmatpush1.bf16.msk.msra.mxu0 %vm870_vm5, %v871_v44 }
 0x1a3   : > { %548 = vmatprep.subr.bf16.mxu0 %v1010_v2 }
 0x1a6   : > { %549 = vmatpush2.bf16.msra.mxu0 %v506_v30 }
 0x1a9   : > { %551 = vmatmul.mubr.bf16.vlgmr.msra.gmra.mxu0 %v868_v31 }
 0x269   : > { %v552_v33 = vpop.f32.mrf.mxu0 }
 0x26a   : > { %v564_v34 = vmul.f32 %v562_v32, %v552_v33  ;;  %v799_v35 = vadd.f32 %v552_v33, %v1109_v6  ;;  %v1020_v6 = vmov 0.0  }
 0x26b   : > { %v554_v37 = vpop.f32.mrf.mxu0  ;;  %893 = vmatprep.subr.bf16.mxu1 %v1020_v6  ;;  %903 = vmatprep.mubr.msk.bf16.mxu1 %vm1021_vm7, %v1020_v6 }
 0x26c   : > { %v571_v2 = vadd.f32 %v569_v36, %v564_v34  ;;  %802 = vst.msk [vmem:[%s1189_s18] sm:$0xff] %vm801_vm6, %v799_v35 }
 0x26d   : > { %v555_v38 = vpop.f32.mrf.mxu0 }
 0x26e   : > { %v572_v39 = vmax.f32 %v571_v2, 0.0 }
 0x26f   : > { %v556_v40 = vpop.f32.mrf.mxu0 }
 0x270   : > { %v586_v41 = vsel %vm1123_vm1, %v572_v39, 0.0  ;;  %v573_v42 = vsel %vm1115_vm0, %v572_v39, 0.0 }
 0x271   : > { %588 = vrot.lane.b32.xlu1 %v586_v41, %s1011_s27  ;;  %v995_v43 = vpack.i.bf16 %v572_v39, %v573_v42 }
 0x273   : > { %996 = vrot.lane.b32.xlu0 %v995_v43, %s1011_s27 }
 0x2e3   : > { %v589_v44 = vpop.permute.xlu1 %588 }
 0x2e4   : > { %v591_v45 = vsel %vm410_vm2, 0.0, %v589_v44 }
 0x2e5   : > { %v592_v46 = vsel %vm413_vm3, %v591_v45, 0.0  ;;  %v997_v47 = vpop.permute.xlu0 %996 }
 0x2e6   : > { %v999_v48 = vunpack.i.h.bf16 %v997_v47  ;;  %v998_v49 = vunpack.i.l.bf16 %v997_v47  ;;  %617 = vrot.lane.b32.xlu1 %v592_v46, %s1019_s17 }
 0x2e8   : > { %v584_v50 = vsel %vm410_vm2, 0.0, %v999_v48  ;;  %v578_v51 = vsel %vm410_vm2, 0.0, %v998_v49  ;;  %v746_v48 = vld [vmem:[%s1279_s7] sm:$0x3] }
 0x2e9   : > { %v585_v52 = vsel %vm413_vm3, %v584_v50, 0.0  ;;  %v579_v53 = vsel %vm413_vm3, %v578_v51, 0.0 }
 0x2ea   : > { %614 = vrot.lane.b32.xlu1 %v585_v52, %s1012_s28  ;;  %611 = vrot.lane.b32.xlu0 %v579_v53, %s1013_s29 }
 0x2ee   : > { %608 = vrot.lane.b32.xlu1 %v592_v46, %s1014_s30  ;;  %605 = vrot.lane.b32.xlu0 %v585_v52, %s1015_s11 }
 0x2f2   : > { %602 = vrot.lane.b32.xlu1 %v579_v53, %s1016_s12  ;;  %598 = vrot.lane.b32.xlu0 %v592_v46, %s1017_s15 }
 0x2f6   : > { %677 = vperm.xlu1 %939, %v674_v54   ;;  %594 = vrot.lane.b32.xlu0 %v585_v52, %s1018_s16 }
 0x2fa   : > { %684 = vperm.xlu0 %938, %v681_v55  }
 0x358   : > { %v618_v56 = vpop.permute.xlu1 %617 }
 0x359   : > { %v624_v57 = vpack.c.bf16 %v618_v56, %v618_v56 }
 0x35b   : > { %v632_v58 = vsel %vm630_vm8, %v624_v57, 0 }
 0x35c   : > { %894 = vmatpush3.bf16.msra.mxu1 %v632_v58  ;;  %v615_v59 = vpop.permute.xlu1 %614  ;;  %v612_v60 = vpop.permute.xlu0 %611 }
 0x35d   : > { %v623_v61 = vpack.c.bf16 %v615_v59, %v612_v60  ;;  %895 = vmatprep.subr.bf16.mxu1 %v1020_v6 }
 0x360   : > { %v609_v62 = vpop.permute.xlu1 %608  ;;  %896 = vmatpush3.bf16.msra.mxu1 %v623_v61  ;;  %v606_v63 = vpop.permute.xlu0 %605 }
 0x361   : > { %v622_v0 = vpack.c.bf16 %v609_v62, %v606_v63  ;;  %897 = vmatprep.subr.bf16.mxu1 %v1020_v6 }
 0x364   : > { %v603_v1 = vpop.permute.xlu1 %602  ;;  %898 = vmatpush3.bf16.msra.mxu1 %v622_v0  ;;  %v599_v3 = vpop.permute.xlu0 %598 }
 0x365   : > { %v621_v4 = vpack.c.bf16 %v603_v1, %v599_v3  ;;  %899 = vmatprep.subr.bf16.mxu1 %v1020_v6 }
 0x368   : > { %900 = vmatpush3.bf16.msra.mxu1 %v621_v4  ;;  %v595_v5 = vpop.permute.xlu0 %594 }
 0x369   : > { %v875_v7 = vpack.c.bf16 %v595_v5, %v578_v51  ;;  %901 = vmatprep.subr.bf16.mxu1 %v1020_v6 }
 0x36c   : > { %902 = vmatpush3.bf16.msk.msra.mxu1 %vm874_vm10, %v875_v7 }
 0x36d   : > { %907 = vmatprep.subr.bf16.mxu1 %v1020_v6 }
 0x36f   : > { %904 = vmatmul.mubr.msk.bf16.vlgmr.msra.gmra.mxu1 %vm626_vm11, %v625_v8 }
 0x370   : > { %913 = vmatprep.mubr.msk.bf16.mxu1 %vm1021_vm7, %v1020_v6 }
 0x371   : > { %v678_v9 = vpop.permute.xlu1 %677 }
 0x375   : > { %v685_v13 = vpop.permute.xlu0 %684 }
 0x42f   : > { %v668_v10 = vpop.f32.mrf.mxu1 }
 0x430   : > { %v680_v12 = vmul.f32 %v678_v9, %v668_v10 }
 0x431   : > { %v905_v14 = vpop.f32.mrf.mxu1 }
 0x432   : > { %v687_v15 = vadd.f32 %v685_v13, %v680_v12 }
 0x433   : > { %v671_v16 = vpop.f32.mrf.mxu1 }
 0x434   : > { %v688_v17 = vmax.f32 %v687_v15, 0.0 }
 0x435   : > { %v906_v18 = vpop.f32.mrf.mxu1 }
 0x436   : > { %697 = vrot.lane.b32.xlu0 %v688_v17, %s1011_s27  ;;  %v702_v20 = vsel %vm1123_vm1, %v688_v17, 0.0  ;;  %v689_v21 = vsel %vm1115_vm0, %v688_v17, 0.0 }
 0x437   : > { %704 = vrot.lane.b32.xlu1 %v702_v20, %s1011_s27 }
 0x43b   : > { %691 = vrot.lane.b32.xlu1 %v689_v21, %s1011_s27 }
 0x4a8   : > { %v698_v22 = vpop.permute.xlu0 %697 }
 0x4a9   : > { %v700_v23 = vsel %vm410_vm2, 0.0, %v698_v22  ;;  %v705_v25 = vpop.permute.xlu1 %704 }
 0x4aa   : > { %v701_v26 = vsel %vm413_vm3, %v700_v23, 0.0  ;;  %v707_v27 = vsel %vm410_vm2, 0.0, %v705_v25 }
 0x4ab   : > { %v708_v28 = vsel %vm413_vm3, %v707_v27, 0.0  ;;  %723 = vrot.lane.b32.xlu1 %v701_v26, %s1015_s11  ;;  %v710_v29 = vrot.slane %v701_v26, 4 }
 0x4ac   : > { %736 = vrot.lane.b32.xlu0 %v708_v28, %s1019_s17  ;;  %v726_v31 = vrot.slane %v708_v28, 4 }
 0x4ad   : > { %v692_v24 = vpop.permute.xlu1 %691 }
 0x4ae   : > { %v694_v19 = vsel %vm410_vm2, 0.0, %v692_v24 }
 0x4af   : > { %v695_v30 = vsel %vm413_vm3, %v694_v19, 0.0 }
 0x4b0   : > { %733 = vrot.lane.b32.xlu0 %v710_v29, %s1012_s28  ;;  %730 = vrot.lane.b32.xlu1 %v695_v30, %s1013_s29  ;;  %v719_v32 = vrot.slane %v695_v30, 4 }
 0x4b4   : > { %727 = vrot.lane.b32.xlu0 %v726_v31, %s1014_s30  ;;  %711 = vrot.lane.b32.xlu1 %v710_v29, %s1018_s16 }
 0x4b8   : > { %715 = vrot.lane.b32.xlu0 %v708_v28, %s1017_s15  ;;  %720 = vrot.lane.b32.xlu1 %v719_v32, %s1016_s12 }
 0x51d   : > { %v724_v33 = vpop.permute.xlu1 %723 }
 0x51e   : > { %v737_v34 = vpop.permute.xlu0 %736 }
 0x51f   : > { %v745_v35 = vpack.c.bf16 %v737_v34, %v737_v34 }
 0x521   : > { %v753_v36 = vsel %vm751_vm12, %v745_v35, 0 }
 0x522   : > { %908 = vmatpush3.bf16.msra.mxu1 %v753_v36  ;;  %v734_v37 = vpop.permute.xlu0 %733  ;;  %v731_v2 = vpop.permute.xlu1 %730 }
 0x523   : > { %909 = vmatprep.subr.bf16.mxu1 %v1020_v6  ;;  %v742_v40 = vsel %vm630_vm8, %v731_v2, %v734_v37 }
 0x526   : > { %v728_v38 = vpop.permute.xlu0 %727  ;;  %v712_v39 = vpop.permute.xlu1 %711 }
 0x527   : > { %v741_v41 = vsel %vm630_vm8, %v724_v33, %v728_v38  ;;  %v739_v45 = vsel %vm630_vm8, %v695_v30, %v712_v39 }
 0x528   : > { %v744_v42 = vpack.c.bf16 %v742_v40, %v741_v41 }
 0x52a   : > { %v716_v43 = vpop.permute.xlu0 %715  ;;  %910 = vmatpush3.bf16.msra.mxu1 %v744_v42  ;;  %v721_v44 = vpop.permute.xlu1 %720 }
 0x52b   : > { %v740_v46 = vsel %vm630_vm8, %v716_v43, %v721_v44  ;;  %911 = vmatprep.subr.bf16.mxu1 %v1020_v6 }
 0x52c   : > { %v743_v47 = vpack.c.bf16 %v740_v46, %v739_v45 }
 0x52e   : > { %912 = vmatpush3.bf16.msra.mxu1 %v743_v47 }
 0x531   : > { %914 = vmatmul.mubr.msk.bf16.vlgmr.msra.gmra.mxu1 %vm747_vm13, %v746_v48 }
 0x5f1   : > { %v789_v49 = vpop.f32.mrf.mxu1 }
 0x5f2   : > { %v796_v50 = vrot.slane %v789_v49, 4 }
 0x5f3   : > { %v915_v51 = vpop.f32.mrf.mxu1 }
 0x5f4   : > { %v798_v52 = vsel %vm630_vm8, %v668_v10, %v796_v50 }
 0x5f5   : > { %v800_v53 = vadd.f32 %v798_v52, %v1112_v11  ;;  %v792_v54 = vpop.f32.mrf.mxu1 }
 0x5f7   : > { %803 = vst.msk [vmem:[%s1189_s18 + $0x8] sm:$0xff] %vm801_vm6, %v800_v53  ;;  %v916_v55 = vpop.f32.mrf.mxu1 }
 0x5f8 PF: > { %s20_s13 = sadd.s32 1, %s1008_s13  }
 0x5f9   : > { %p17_p4 = scmp.ge.s32.totalorder %s20_s13, 4  }
 0x5fb   :  { %19 = sbr.rel (!%p17_p4) target bundleno = 1 (0x1), region = 90 }

// kernel: hourglass_forward.7
= control target key start
LH: loop header
LB: loop body
LE: loop exit
PB: predicated region body
PF: predicated region fallthrough
CT: control target
= control target key end

     0   :  { %s1627_s13 = smov 0   ;;  %s2010_s0 = inlined_call_operand.vmem [shape: f32[2,16,256], index: 0, kind: input, shape index: {}]   ;;  %s2011_s1 = inlined_call_operand.vmem [shape: bf16[8,144], index: 1, kind: input, shape index: {}]   ;;  %s2012_s2 = inlined_call_operand.vmem [shape: f32[16,1], index: 2, kind: input, shape index: {}]   ;;  %s2013_s3 = inlined_call_operand.vmem [shape: f32[16,1], index: 3, kind: input, shape index: {}]   ;;  %s2014_s4 = inlined_call_operand.vmem [shape: bf16[4,72], index: 4, kind: input, shape index: {}]   ;;  %s2015_s5 = inlined_call_operand.vmem [shape: f32[8,1], index: 5, kind: input, shape index: {}]   ;;  %s2016_s6 = inlined_call_operand.vmem [shape: f32[8,1], index: 6, kind: input, shape index: {}]   ;;  %s2017_s7 = inlined_call_operand.vmem [shape: bf16[4,36], index: 7, kind: input, shape index: {}]   ;;  %s2018_s8 = inlined_call_operand.vmem [shape: f32[4,1], index: 8, kind: input, shape index: {}]   ;;  %s2019_s9 = inlined_call_operand.vmem [shape: f32[4,1], index: 9, kind: input, shape index: {}]   ;;  %s2020_s10 = inlined_call_operand.vmem [shape: f32[2,16,256], index: 10, kind: output, shape index: {}]  }
   0x1 LB: > { %s1239_s14 = sadd.s32 4294967295, %s1559_s13   ;;  %p1243_p0 = scmp.ge.s32.totalorder %s1559_s13, 1  ;;  %s1559_s13 = sphi %s1627_s13, %s20_s13  }
   0x2   : > { %p312_p1 = scmp.lt.s32.totalorder %s1559_s13, 3 }
   0x4   : > { %p313_p2 = pnand %p1243_p0, %p312_p1 }
   0x5   : > { %p350_p3 = scmp.lt.s32.totalorder (!%p313_p2), %s1239_s14, 1  ;;  %s1562_s27 = smov (!%p313_p2), 17  }
   0x6   : > { %316 = sbr.rel (%p313_p2) target bundleno = 1589 (0x635), region = 60  ;;  %s1563_s28 = smov (!%p313_p2), 95  }
   0x7   : > { %s1564_s29 = smov (!%p313_p2), 111   ;;  %s1565_s30 = smov (!%p313_p2), 96  }
   0x8   : > { %s1566_s11 = smov (!%p313_p2), 110   ;;  %s1567_s12 = smov (!%p313_p2), 112  }
   0x9   : > { %s1568_s15 = smov (!%p313_p2), 126   ;;  %s1569_s16 = smov (!%p313_p2), 127  }
   0xa   : > { %s1570_s19 = smov (!%p313_p2), 94  }
   0xb   : > { %v390_v0 = vld [vmem:[%s2013_s3] sm:$0xff]  ;;  %v1561_v2 = vmov 0   ;;  %v391_v3 = vld [vmem:[%s2013_s3 + $0x8] sm:$0xff]  ;;  %s2038_s14 = smov (!%p350_p3, %s1239_s14), 1  ;;  %v365_v5 = vlaneseq  ;;  %vm430_vm4 = vcmask 138240   ;;  %vm700_vm5 = vcmask 130048  }
   0xc   : > { %v374_v1 = vld [vmem:[%s2012_s2] sm:$0xff]  ;;  %1288 = vset.pattern.permute.xlu1 %v1561_v2  ;;  %1287 = vset.pattern.permute.xlu0 %v1561_v2  ;;  %v375_v4 = vld [vmem:[%s2012_s2 + $0x8] sm:$0xff]  ;;  %s1266_s23 = sshll.u32 %s2038_s14, 5  ;;  %vm645_vm6 = vcmask 777216   ;;  %vm624_vm7 = vcmask 785408   ;;  %vm582_vm8 = vcmask 908288   ;;  %vm1815_vm14 = vmneg %vm430_vm4 }
   0xd   : > { %394 = vperm.xlu1 %1288, %v390_v0   ;;  %378 = vperm.xlu0 %1287, %v374_v1   ;;  %v366_v6 = vand.u32 127, %v365_v5  ;;  %s1658_s26 = scalar_lea.vmem %s2010_s0, %s1266_s23  ;;  %vm603_vm9 = vcmask 900096   ;;  %vm2021_vm10 = vcmask 916480   ;;  %vm2022_vm11 = vcmask 1031168   ;;  %vm1252_vm15 = vmpackc.low %vm1815_vm14, %vm1815_vm14  ;;  %s1839_s18 = scalar_lea.vmem %s2020_s10, %s1266_s23 }
   0xe   : > { %941 = vmatprep.mubr.bf16.mxu1 %v1561_v2  ;;  %v1661_v8 = vld [vmem:[%s1658_s26] sm:$0xff]  ;;  %v1664_v9 = vld [vmem:[%s1658_s26 + $0x8] sm:$0xff]  ;;  %v363_v16 = vld [vmem:[%s1658_s26 + $0x10] sm:$0xff]  ;;  %vm511_vm12 = vcmask 1039360   ;;  %vm666_vm13 = vcmask 769024  }
   0xf   : > { %v367_v7 = vadd.s32 128, %v366_v6  ;;  %v368_v12 = vand.u32 15, %v366_v6  ;;  %v364_v17 = vld [vmem:[%s1658_s26 + $0x18] sm:$0xff] }
  0x11   : > { %399 = vperm.xlu1 %1288, %v391_v3   ;;  %383 = vperm.xlu0 %1287, %v375_v4   ;;  %v369_v13 = vand.u32 15, %v367_v7  ;;  %vm1670_vm0 = vcmp.le.s32.totalorder %v368_v12, 14  ;;  %vm1683_vm2 = vcmp.ge.s32.totalorder %v368_v12, 1 }
  0x13   : > { %vm1674_vm1 = vcmp.le.s32.totalorder %v369_v13, 14  ;;  %vm1687_vm3 = vcmp.ge.s32.totalorder %v369_v13, 1 }
  0x88   : > { %v395_v10 = vpop.permute.xlu1 %394  ;;  %v379_v11 = vpop.permute.xlu0 %378 }
  0x89   : > { %v386_v14 = vmul.f32 %v379_v11, %v1661_v8  ;;  %v387_v15 = vmul.f32 %v379_v11, %v1664_v9 }
  0x8b   : > { %v402_v18 = vadd.f32 %v395_v10, %v386_v14  ;;  %v403_v19 = vadd.f32 %v395_v10, %v387_v15 }
  0x8c   : > { %v384_v20 = vpop.permute.xlu0 %383  ;;  %v400_v27 = vpop.permute.xlu1 %399 }
  0x8d   : > { %v406_v23 = vmax.f32 %v402_v18, 0.0  ;;  %v407_v24 = vmax.f32 %v403_v19, 0.0  ;;  %v388_v25 = vmul.f32 %v384_v20, %v363_v16  ;;  %v389_v26 = vmul.f32 %v384_v20, %v364_v17 }
  0x8f   : > { %v404_v28 = vadd.f32 %v400_v27, %v388_v25  ;;  %v405_v29 = vadd.f32 %v400_v27, %v389_v26  ;;  %v1289_v30 = vpack.i.bf16 %v407_v24, %v406_v23  ;;  %v414_v31 = vsel %vm1670_vm0, %v406_v23, 0.0 }
  0x90   : > { %v415_v32 = vsel %vm1674_vm1, %v407_v24, 0.0  ;;  %v469_v41 = vsel %vm1683_vm2, %v406_v23, 0.0  ;;  %v470_v42 = vsel %vm1687_vm3, %v407_v24, 0.0 }
  0x91   : > { %v408_v33 = vmax.f32 %v404_v28, 0.0  ;;  %v409_v34 = vmax.f32 %v405_v29, 0.0  ;;  %1290 = vrot.lane.b32.xlu0 %v1289_v30, %s1562_s27  ;;  %v1299_v38 = vpack.i.bf16 %v415_v32, %v414_v31  ;;  %v1309_v44 = vpack.i.bf16 %v470_v42, %v469_v41  ;;  %v753_v41 = vld [vmem:[%s2016_s6] sm:$0xff] }
  0x93   : > { %v1294_v37 = vpack.i.bf16 %v409_v34, %v408_v33  ;;  %v416_v39 = vsel %vm1670_vm0, %v408_v33, 0.0  ;;  %v417_v40 = vsel %vm1674_vm1, %v409_v34, 0.0  ;;  %v471_v45 = vsel %vm1683_vm2, %v408_v33, 0.0 }
  0x94   : > { %v1304_v43 = vpack.i.bf16 %v417_v40, %v416_v39  ;;  %v472_v46 = vsel %vm1687_vm3, %v409_v34, 0.0  ;;  %v745_v40 = vld [vmem:[%s2015_s5] sm:$0xff] }
  0x95   : > { %1295 = vrot.lane.b32.xlu1 %v1294_v37, %s1562_s27  ;;  %1300 = vrot.lane.b32.xlu0 %v1299_v38, %s1562_s27  ;;  %v1314_v47 = vpack.i.bf16 %v472_v46, %v471_v45  ;;  %v1773_v38 = vld [vmem:[%s2011_s1] sm:$0xff] }
  0x96   : > { %v1249_v39 = vcombine.high %v1773_v38, %v1773_v38 }
  0x98   : > { %1255 = vmatprep.mubr.msk.bf16.mxu0 %vm700_vm5, %v1249_v39  ;;  %vm902_vm5 = vcmask 1043456  }
  0x99   : > { %1305 = vrot.lane.b32.xlu1 %v1304_v43, %s1562_s27  ;;  %1310 = vrot.lane.b32.xlu0 %v1309_v44, %s1562_s27 }
  0x9d   : > { %1315 = vrot.lane.b32.xlu1 %v1314_v47, %s1562_s27 }
 0x103   : > { %v1291_v48 = vpop.permute.xlu0 %1290 }
 0x104   : > { %v1293_v49 = vunpack.i.h.bf16 %v1291_v48  ;;  %v1292_v50 = vunpack.i.l.bf16 %v1291_v48 }
 0x106   : > { %v463_v51 = vsel %vm430_vm4, %v1293_v49, 0.0  ;;  %v455_v52 = vsel %vm430_vm4, %v1292_v50, %v1293_v49  ;;  %v461_v58 = vsel %vm430_vm4, 0.0, %v1292_v50 }
 0x107   : > { %v1296_v53 = vpop.permute.xlu1 %1295  ;;  %v1301_v54 = vpop.permute.xlu0 %1300  ;;  %v1710_v55 = vpack.i.bf16 %v463_v51, %v455_v52 }
 0x108   : > { %v1298_v56 = vunpack.i.h.bf16 %v1296_v53  ;;  %v1297_v57 = vunpack.i.l.bf16 %v1296_v53  ;;  %v1718_v1 = vunpack.i.l.bf16 %v1301_v54  ;;  %v1303_v7 = vunpack.i.h.bf16 %v1301_v54 }
 0x109   : > { %1320 = vrot.lane.b32.xlu0 %v1710_v55, %s1563_s28 }
 0x10a   : > { %v464_v59 = vsel %vm430_vm4, %v1298_v56, 0.0  ;;  %v462_v60 = vsel %vm430_vm4, 0.0, %v1297_v57  ;;  %v456_v61 = vsel %vm430_vm4, %v1297_v57, %v1298_v56  ;;  %v441_v15 = vsel %vm430_vm4, %v1303_v7, 0.0 }
 0x10b   : > { %v1306_v62 = vpop.permute.xlu1 %1305  ;;  %v1324_v63 = vpack.i.bf16 %v464_v59, %v456_v61  ;;  %v1329_v0 = vpack.i.bf16 %v462_v60, %v461_v58  ;;  %v1311_v5 = vpop.permute.xlu0 %1310  ;;  %v1740_v20 = vsel %vm430_vm4, %v1718_v1, %v1303_v7  ;;  %v439_v30 = vsel %vm430_vm4, 0.0, %v1718_v1 }
 0x10c   : > { %v1308_v3 = vunpack.i.h.bf16 %v1306_v62  ;;  %v1720_v4 = vunpack.i.l.bf16 %v1306_v62  ;;  %v1313_v11 = vunpack.i.h.bf16 %v1311_v5  ;;  %v1312_v12 = vunpack.i.l.bf16 %v1311_v5 }
 0x10d   : > { %1325 = vrot.lane.b32.xlu1 %v1324_v63, %s1563_s28  ;;  %1330 = vrot.lane.b32.xlu0 %v1329_v0, %s1563_s28  ;;  %v1349_v25 = vpack.i.bf16 %v441_v15, %v1740_v20 }
 0x10e   : > { %v1253_v6 = vpack.c.bf16 %v1720_v4, %v1718_v1  ;;  %v442_v10 = vsel %vm430_vm4, %v1308_v3, 0.0  ;;  %v1729_v13 = vsel %vm430_vm4, %v1720_v4, %v1308_v3  ;;  %v493_v17 = vsel %vm430_vm4, %v1313_v11, 0.0 }
 0x10f   : > { %v1316_v14 = vpop.permute.xlu1 %1315  ;;  %v1354_v16 = vpack.i.bf16 %v442_v10, %v1729_v13  ;;  %v485_v19 = vsel %vm430_vm4, %v1312_v12, %v1313_v11  ;;  %v676_v23 = vpack.c.bf16 %v1729_v13, %v1740_v20  ;;  %v440_v28 = vsel %vm430_vm4, 0.0, %v1720_v4 }
 0x110   : > { %v1317_v18 = vunpack.i.l.bf16 %v1316_v14  ;;  %v1364_v24 = vpack.i.bf16 %v493_v17, %v485_v19  ;;  %v1318_v26 = vunpack.i.h.bf16 %v1316_v14  ;;  %v491_v29 = vsel %vm430_vm4, 0.0, %v1312_v12 }
 0x111   : > { %1335 = vrot.lane.b32.xlu1 %v1710_v55, %s1564_s29  ;;  %1340 = vrot.lane.b32.xlu0 %v1324_v63, %s1564_s29  ;;  %v1359_v32 = vpack.i.bf16 %v440_v28, %v439_v30  ;;  %v1248_v13 = vcombine.low %v1773_v38, %v1773_v38 }
 0x112   : > { %v492_v27 = vsel %vm430_vm4, 0.0, %v1317_v18  ;;  %v494_v33 = vsel %vm430_vm4, %v1318_v26, 0.0  ;;  %v486_v34 = vsel %vm430_vm4, %v1317_v18, %v1318_v26 }
 0x113   : > { %v1374_v31 = vpack.i.bf16 %v492_v27, %v491_v29  ;;  %v1369_v37 = vpack.i.bf16 %v494_v33, %v486_v34 }
 0x115   : > { %1345 = vrot.lane.b32.xlu1 %v1329_v0, %s1564_s29  ;;  %1355 = vrot.lane.b32.xlu0 %v1354_v16, %s1565_s30 }
 0x119   : > { %1365 = vrot.lane.b32.xlu0 %v1364_v24, %s1566_s11  ;;  %1350 = vrot.lane.b32.xlu1 %v1349_v25, %s1565_s30 }
 0x11d   : > { %1375 = vrot.lane.b32.xlu0 %v1374_v31, %s1566_s11  ;;  %1360 = vrot.lane.b32.xlu1 %v1359_v32, %s1565_s30 }
 0x121   : > { %1380 = vrot.lane.b32.xlu0 %v1349_v25, %s1567_s12  ;;  %1370 = vrot.lane.b32.xlu1 %v1369_v37, %s1566_s11 }
 0x125   : > { %1390 = vrot.lane.b32.xlu0 %v1359_v32, %s1567_s12  ;;  %1385 = vrot.lane.b32.xlu1 %v1354_v16, %s1567_s12 }
 0x129   : > { %1400 = vrot.lane.b32.xlu0 %v1369_v37, %s1568_s15  ;;  %1395 = vrot.lane.b32.xlu1 %v1364_v24, %s1568_s15 }
 0x12d   : > { %1405 = vrot.lane.b32.xlu0 %v1710_v55, %s1569_s16  ;;  %1410 = vrot.lane.b32.xlu1 %v1374_v31, %s1568_s15 }
 0x131   : > { %1420 = vrot.lane.b32.xlu0 %v1329_v0, %s1569_s16  ;;  %1415 = vrot.lane.b32.xlu1 %v1324_v63, %s1569_s16 }
 0x135   : > { %1430 = vrot.lane.b32.xlu0 %v1369_v37, %s1570_s19  ;;  %1425 = vrot.lane.b32.xlu1 %v1364_v24, %s1570_s19 }
 0x139   : > { %748 = vperm.xlu0 %1287, %v745_v40   ;;  %1435 = vrot.lane.b32.xlu1 %v1374_v31, %s1570_s19 }
 0x13d   : > { %756 = vperm.xlu1 %1288, %v753_v41  }
 0x17b   : > { %v1321_v42 = vpop.permute.xlu0 %1320 }
 0x17c   : > { %v1323_v43 = vunpack.i.h.bf16 %v1321_v42  ;;  %v1322_v44 = vunpack.i.l.bf16 %v1321_v42 }
 0x17e   : > { %v647_v51 = vsel %vm645_vm6, %v1322_v44, %v1323_v43 }
 0x17f   : > { %v1326_v45 = vpop.permute.xlu1 %1325  ;;  %v1331_v46 = vpop.permute.xlu0 %1330 }
 0x180   : > { %v1328_v47 = vunpack.i.h.bf16 %v1326_v45  ;;  %v1327_v48 = vunpack.i.l.bf16 %v1326_v45  ;;  %v1333_v49 = vunpack.i.h.bf16 %v1331_v46  ;;  %v1332_v50 = vunpack.i.l.bf16 %v1331_v46 }
 0x182   : > { %v649_v52 = vsel %vm645_vm6, %v1327_v48, %v1328_v47  ;;  %v646_v53 = vsel %vm645_vm6, %v1332_v50, %v1322_v44  ;;  %v648_v54 = vsel %vm645_vm6, %v1333_v49, %v1327_v48 }
 0x183   : > { %v1336_v55 = vpop.permute.xlu1 %1335  ;;  %v1341_v56 = vpop.permute.xlu0 %1340  ;;  %v690_v57 = vpack.c.bf16 %v649_v52, %v647_v51  ;;  %v689_v58 = vpack.c.bf16 %v648_v54, %v646_v53 }
 0x184   : > { %v1338_v15 = vunpack.i.h.bf16 %v1336_v55  ;;  %v1337_v18 = vunpack.i.l.bf16 %v1336_v55  ;;  %v1343_v19 = vunpack.i.h.bf16 %v1341_v56  ;;  %v1342_v24 = vunpack.i.l.bf16 %v1341_v56 }
 0x185   : > { %704 = vmatprep.subr.bf16.mxu0 %v690_v57 }
 0x186   : > { %705 = vmatpush1.bf16.msra.mxu0 %v689_v58  ;;  %v584_v41 = vsel %vm582_vm8, %v1337_v18, %v1338_v15  ;;  %v586_v42 = vsel %vm582_vm8, %v1342_v24, %v1343_v19 }
 0x187   : > { %v1346_v59 = vpop.permute.xlu1 %1345  ;;  %v1356_v60 = vpop.permute.xlu0 %1355 }
 0x188   : > { %v1358_v61 = vunpack.i.h.bf16 %v1356_v60  ;;  %v1357_v62 = vunpack.i.l.bf16 %v1356_v60  ;;  %v1348_v30 = vunpack.i.h.bf16 %v1346_v59  ;;  %v1347_v34 = vunpack.i.l.bf16 %v1346_v59 }
 0x189   : > { %v684_v59 = vpack.c.bf16 %v586_v42, %v584_v41 }
 0x18a   : > { %v628_v10 = vsel %vm624_vm7, %v1357_v62, %v1358_v61  ;;  %v583_v55 = vsel %vm582_vm8, %v1347_v34, %v1337_v18  ;;  %v585_v56 = vsel %vm582_vm8, %v1348_v30, %v1342_v24 }
 0x18b   : > { %v1366_v63 = vpop.permute.xlu0 %1365  ;;  %v1351_v0 = vpop.permute.xlu1 %1350 }
 0x18c   : > { %v1353_v3 = vunpack.i.h.bf16 %v1351_v0  ;;  %v1352_v5 = vunpack.i.l.bf16 %v1351_v0  ;;  %v1368_v25 = vunpack.i.h.bf16 %v1366_v63  ;;  %v1367_v26 = vunpack.i.l.bf16 %v1366_v63 }
 0x18d   : > { %v683_v63 = vpack.c.bf16 %v585_v56, %v583_v55 }
 0x18e   : > { %v626_v7 = vsel %vm624_vm7, %v1352_v5, %v1353_v3  ;;  %v605_v43 = vsel %vm603_vm9, %v1367_v26, %v1368_v25 }
 0x18f   : > { %v1376_v11 = vpop.permute.xlu0 %1375  ;;  %v1361_v12 = vpop.permute.xlu1 %1360  ;;  %v688_v14 = vpack.c.bf16 %v628_v10, %v626_v7 }
 0x190   : > { %v1363_v16 = vunpack.i.h.bf16 %v1361_v12  ;;  %v1362_v17 = vunpack.i.l.bf16 %v1361_v12  ;;  %v1377_v27 = vunpack.i.l.bf16 %v1376_v11  ;;  %v1378_v37 = vunpack.i.h.bf16 %v1376_v11 }
 0x191   : > { %706 = vmatprep.subr.bf16.mxu0 %v688_v14 }
 0x192   : > { %v625_v28 = vsel %vm624_vm7, %v1362_v17, %v1352_v5  ;;  %v627_v29 = vsel %vm624_vm7, %v1363_v16, %v1357_v62  ;;  %v604_v45 = vsel %vm603_vm9, %v1377_v27, %v1367_v26 }
 0x193   : > { %v1381_v31 = vpop.permute.xlu0 %1380  ;;  %v1371_v32 = vpop.permute.xlu1 %1370  ;;  %v687_v33 = vpack.c.bf16 %v627_v29, %v625_v28 }
 0x194   : > { %v1373_v39 = vunpack.i.h.bf16 %v1371_v32  ;;  %v1372_v40 = vunpack.i.l.bf16 %v1371_v32  ;;  %v1383_v47 = vunpack.i.h.bf16 %v1381_v31  ;;  %v1382_v48 = vunpack.i.l.bf16 %v1381_v31 }
 0x195   : > { %707 = vmatpush1.bf16.msra.mxu0 %v687_v33 }
 0x196   : > { %v607_v44 = vsel %vm603_vm9, %v1372_v40, %v1373_v39  ;;  %v606_v46 = vsel %vm603_vm9, %v1378_v37, %v1372_v40  ;;  %v563_v0 = vsel %vm2021_vm10, %v1382_v48, %v1383_v47 }
 0x197   : > { %v1391_v49 = vpop.permute.xlu0 %1390  ;;  %v1386_v50 = vpop.permute.xlu1 %1385  ;;  %v686_v51 = vpack.c.bf16 %v607_v44, %v605_v43  ;;  %v685_v52 = vpack.c.bf16 %v606_v46, %v604_v45 }
 0x198   : > { %v1388_v53 = vunpack.i.h.bf16 %v1386_v50  ;;  %v1387_v54 = vunpack.i.l.bf16 %v1386_v50  ;;  %v1393_v57 = vunpack.i.h.bf16 %v1391_v49  ;;  %v1392_v58 = vunpack.i.l.bf16 %v1391_v49 }
 0x199   : > { %708 = vmatprep.subr.bf16.mxu0 %v686_v51 }
 0x19a   : > { %709 = vmatpush1.bf16.msra.mxu0 %v685_v52  ;;  %v565_v60 = vsel %vm2021_vm10, %v1387_v54, %v1388_v53  ;;  %v562_v12 = vsel %vm2021_vm10, %v1392_v58, %v1382_v48  ;;  %v564_v14 = vsel %vm2021_vm10, %v1393_v57, %v1387_v54 }
 0x19b   : > { %v1401_v61 = vpop.permute.xlu0 %1400  ;;  %v1396_v62 = vpop.permute.xlu1 %1395  ;;  %710 = vmatprep.subr.bf16.mxu0 %v684_v59  ;;  %v682_v11 = vpack.c.bf16 %v565_v60, %v563_v0  ;;  %v681_v25 = vpack.c.bf16 %v564_v14, %v562_v12 }
 0x19c   : > { %v1403_v3 = vunpack.i.h.bf16 %v1401_v61  ;;  %v1402_v5 = vunpack.i.l.bf16 %v1401_v61  ;;  %v1398_v7 = vunpack.i.h.bf16 %v1396_v62  ;;  %v1397_v10 = vunpack.i.l.bf16 %v1396_v62 }
 0x19e   : > { %711 = vmatpush1.bf16.msra.mxu0 %v683_v63  ;;  %v538_v15 = vsel %vm2022_vm11, %v1397_v10, %v1398_v7  ;;  %v540_v16 = vsel %vm2022_vm11, %v1402_v5, %v1403_v3 }
 0x19f   : > { %v1406_v17 = vpop.permute.xlu0 %1405  ;;  %v1411_v18 = vpop.permute.xlu1 %1410  ;;  %712 = vmatprep.subr.bf16.mxu0 %v682_v11  ;;  %v680_v26 = vpack.c.bf16 %v540_v16, %v538_v15 }
 0x1a0   : > { %v1413_v19 = vunpack.i.h.bf16 %v1411_v18  ;;  %v1412_v24 = vunpack.i.l.bf16 %v1411_v18  ;;  %v1408_v27 = vunpack.i.h.bf16 %v1406_v17  ;;  %v1407_v28 = vunpack.i.l.bf16 %v1406_v17 }
 0x1a2   : > { %713 = vmatpush1.bf16.msra.mxu0 %v681_v25  ;;  %v537_v29 = vsel %vm2022_vm11, %v1412_v24, %v1397_v10  ;;  %v539_v30 = vsel %vm2022_vm11, %v1413_v19, %v1402_v5  ;;  %v513_v41 = vsel %vm511_vm12, %v1407_v28, %v1408_v27 }
 0x1a3   : > { %v1421_v31 = vpop.permute.xlu0 %1420  ;;  %v1416_v32 = vpop.permute.xlu1 %1415  ;;  %714 = vmatprep.subr.bf16.mxu0 %v680_v26  ;;  %v679_v33 = vpack.c.bf16 %v539_v30, %v537_v29 }
 0x1a4   : > { %v1423_v34 = vunpack.i.h.bf16 %v1421_v31  ;;  %v1422_v37 = vunpack.i.l.bf16 %v1421_v31  ;;  %v1418_v39 = vunpack.i.h.bf16 %v1416_v32  ;;  %v1417_v40 = vunpack.i.l.bf16 %v1416_v32 }
 0x1a6   : > { %715 = vmatpush1.bf16.msra.mxu0 %v679_v33  ;;  %v515_v42 = vsel %vm511_vm12, %v1417_v40, %v1418_v39  ;;  %v512_v43 = vsel %vm511_vm12, %v1422_v37, %v1407_v28  ;;  %v514_v44 = vsel %vm511_vm12, %v1423_v34, %v1417_v40 }
 0x1a7   : > { %v1431_v45 = vpop.permute.xlu0 %1430  ;;  %v1426_v46 = vpop.permute.xlu1 %1425  ;;  %v678_v47 = vpack.c.bf16 %v515_v42, %v513_v41  ;;  %v677_v48 = vpack.c.bf16 %v514_v44, %v512_v43 }
 0x1a8   : > { %v1433_v49 = vunpack.i.h.bf16 %v1431_v45  ;;  %v1432_v50 = vunpack.i.l.bf16 %v1431_v45  ;;  %v1428_v51 = vunpack.i.h.bf16 %v1426_v46  ;;  %v1427_v52 = vunpack.i.l.bf16 %v1426_v46 }
 0x1a9   : > { %716 = vmatprep.subr.bf16.mxu0 %v678_v47 }
 0x1aa   : > { %717 = vmatpush1.bf16.msra.mxu0 %v677_v48  ;;  %v668_v54 = vsel %vm666_vm13, %v1427_v52, %v1428_v51  ;;  %v670_v55 = vsel %vm666_vm13, %v1432_v50, %v1433_v49  ;;  %v958_v48 = vld [vmem:[%s2019_s9] sm:$0xf] }
 0x1ab   : > { %v1436_v56 = vpop.permute.xlu1 %1435  ;;  %718 = vmatprep.subr.bf16.mxu0 %v676_v23  ;;  %v692_v59 = vpack.c.bf16 %v670_v55, %v668_v54  ;;  %v950_v49 = vld [vmem:[%s2018_s8] sm:$0xf] }
 0x1ac   : > { %v1438_v57 = vunpack.i.h.bf16 %v1436_v56  ;;  %v1437_v58 = vunpack.i.l.bf16 %v1436_v56 }
 0x1ae   : > { %1254 = vmatpush1.bf16.msk.msra.mxu0 %vm1252_vm15, %v1253_v6  ;;  %v667_v60 = vsel %vm666_vm13, %v1437_v58, %v1427_v52  ;;  %v669_v61 = vsel %vm666_vm13, %v1438_v57, %v1432_v50  ;;  %vm1571_vm15 = vmmov 1  }
 0x1af   : > { %734 = vmatprep.subr.bf16.mxu0 %v692_v59  ;;  %v691_v62 = vpack.c.bf16 %v669_v61, %v667_v60 }
 0x1b2   : > { %735 = vmatpush2.bf16.msra.mxu0 %v691_v62 }
 0x1b4   : > { %v749_v20 = vpop.permute.xlu0 %748 }
 0x1b5   : > { %737 = vmatmul.mubr.bf16.vlgmr.msra.gmra.mxu0 %v1248_v13 }
 0x1b8   : > { %v757_v23 = vpop.permute.xlu1 %756 }
 0x275   : > { %v738_v1 = vpop.f32.mrf.mxu0 }
 0x276   : > { %v751_v4 = vmul.f32 %v749_v20, %v738_v1  ;;  %v1176_v6 = vadd.f32 %v738_v1, %v1661_v8 }
 0x277   : > { %v740_v63 = vpop.f32.mrf.mxu0 }
 0x278   : > { %v759_v0 = vadd.f32 %v757_v23, %v751_v4  ;;  %1180 = vst [vmem:[%s1839_s18] sm:$0xff] %v1176_v6  ;;  %v752_v38 = vmul.f32 %v749_v20, %v740_v63  ;;  %v1177_v3 = vadd.f32 %v740_v63, %v1664_v9 }
 0x279   : > { %v742_v5 = vpop.f32.mrf.mxu0 }
 0x27a   : > { %v761_v7 = vmax.f32 %v759_v0, 0.0  ;;  %v760_v10 = vadd.f32 %v757_v23, %v752_v38  ;;  %1181 = vst [vmem:[%s1839_s18 + $0x8] sm:$0xff] %v1177_v3 }
 0x27b   : > { %v743_v11 = vpop.f32.mrf.mxu0 }
 0x27c   : > { %v762_v12 = vmax.f32 %v760_v10, 0.0  ;;  %v788_v14 = vsel %vm1683_vm2, %v761_v7, 0.0  ;;  %v763_v8 = vsel %vm1670_vm0, %v761_v7, 0.0 }
 0x27e   : > { %v789_v15 = vsel %vm1687_vm3, %v762_v12, 0.0  ;;  %v764_v16 = vsel %vm1674_vm1, %v762_v12, 0.0  ;;  %v1449_v18 = vpack.i.bf16 %v762_v12, %v761_v7 }
 0x27f   : > { %v1439_v17 = vpack.i.bf16 %v789_v15, %v788_v14  ;;  %v1444_v9 = vpack.i.bf16 %v764_v16, %v763_v8 }
 0x281   : > { %1440 = vrot.lane.b32.xlu0 %v1439_v17, %s1562_s27  ;;  %1445 = vrot.lane.b32.xlu1 %v1444_v9, %s1562_s27 }
 0x285   : > { %1450 = vrot.lane.b32.xlu0 %v1449_v18, %s1562_s27 }
 0x2f3   : > { %v1441_v19 = vpop.permute.xlu0 %1440  ;;  %v1446_v24 = vpop.permute.xlu1 %1445 }
 0x2f4   : > { %v1856_v28 = vunpack.i.l.bf16 %v1446_v24  ;;  %v1443_v33 = vunpack.i.h.bf16 %v1441_v19  ;;  %v1442_v34 = vunpack.i.l.bf16 %v1441_v19  ;;  %v1448_v39 = vunpack.i.h.bf16 %v1446_v24 }
 0x2f6   : > { %v775_v37 = vsel %vm430_vm4, 0.0, %v1856_v28  ;;  %v800_v40 = vsel %vm430_vm4, %v1443_v33, 0.0  ;;  %v799_v41 = vsel %vm430_vm4, 0.0, %v1442_v34  ;;  %v796_v42 = vsel %vm430_vm4, %v1442_v34, %v1443_v33 }
 0x2f7   : > { %v1451_v25 = vpop.permute.xlu0 %1450  ;;  %v1464_v43 = vpack.i.bf16 %v796_v42, %v799_v41  ;;  %v776_v44 = vsel %vm430_vm4, %v1448_v39, 0.0  ;;  %v1875_v45 = vsel %vm430_vm4, %v1856_v28, %v1448_v39  ;;  %v1474_v46 = vpack.i.bf16 %v800_v40, %v796_v42 }
 0x2f8   : > { %v1453_v26 = vunpack.i.h.bf16 %v1451_v25  ;;  %v1452_v27 = vunpack.i.l.bf16 %v1451_v25  ;;  %v1469_v47 = vpack.i.bf16 %v776_v44, %v1875_v45 }
 0x2fa   : > { %v787_v29 = vsel %vm430_vm4, %v1453_v26, 0.0  ;;  %v786_v30 = vsel %vm430_vm4, 0.0, %v1452_v27  ;;  %v783_v31 = vsel %vm430_vm4, %v1452_v27, %v1453_v26 }
 0x2fb   : > { %867 = vrot.lane.b32.xlu0 %v786_v30, %s1563_s28  ;;  %837 = vrot.lane.b32.xlu1 %v786_v30, %s1564_s29  ;;  %v1454_v32 = vpack.i.bf16 %v787_v29, %v783_v31 }
 0x2ff   : > { %1455 = vrot.lane.b32.xlu0 %v1454_v32, %s1563_s28  ;;  %857 = vrot.lane.b32.xlu1 %v775_v37, %s1565_s30 }
 0x303   : > { %881 = vrot.lane.b32.xlu0 %v800_v40, %s1570_s19  ;;  %1460 = vrot.lane.b32.xlu1 %v1454_v32, %s1564_s29 }
 0x307   : > { %847 = vrot.lane.b32.xlu0 %v799_v41, %s1566_s11  ;;  %1465 = vrot.lane.b32.xlu1 %v1464_v43, %s1570_s19 }
 0x30b   : > { %1475 = vrot.lane.b32.xlu0 %v1474_v46, %s1566_s11  ;;  %1470 = vrot.lane.b32.xlu1 %v1469_v47, %s1565_s30 }
 0x30f   : > { %1485 = vrot.lane.b32.xlu0 %v1469_v47, %s1567_s12  ;;  %815 = vrot.lane.b32.xlu1 %v799_v41, %s1568_s15 }
 0x313   : > { %827 = vrot.lane.b32.xlu0 %v775_v37, %s1567_s12  ;;  %1480 = vrot.lane.b32.xlu1 %v1474_v46, %s1568_s15 }
 0x317   : > { %803 = vrot.lane.b32.xlu0 %v786_v30, %s1569_s16  ;;  %1490 = vrot.lane.b32.xlu1 %v1454_v32, %s1569_s16 }
 0x31b   : > { %961 = vperm.xlu0 %1287, %v958_v48   ;;  %953 = vperm.xlu1 %1288, %v950_v49  }
 0x36d   : > { %v868_v50 = vpop.permute.xlu0 %867  ;;  %v838_v51 = vpop.permute.xlu1 %837 }
 0x371   : > { %v1456_v52 = vpop.permute.xlu0 %1455  ;;  %v858_v54 = vpop.permute.xlu1 %857 }
 0x372   : > { %v1458_v61 = vunpack.i.h.bf16 %v1456_v52  ;;  %v1457_v62 = vunpack.i.l.bf16 %v1456_v52 }
 0x374   : > { %v874_v11 = vsel %vm645_vm6, %v1457_v62, %v1458_v61  ;;  %v873_v15 = vsel %vm645_vm6, %v868_v50, %v1457_v62 }
 0x375   : > { %v882_v55 = vpop.permute.xlu0 %881  ;;  %v1461_v56 = vpop.permute.xlu1 %1460 }
 0x376   : > { %v1463_v1 = vunpack.i.h.bf16 %v1461_v56  ;;  %v1462_v4 = vunpack.i.l.bf16 %v1461_v56 }
 0x378   : > { %v844_v19 = vsel %vm582_vm8, %v1462_v4, %v1463_v1  ;;  %v843_v31 = vsel %vm582_vm8, %v838_v51, %v1462_v4 }
 0x379   : > { %v848_v57 = vpop.permute.xlu0 %847  ;;  %v1466_v58 = vpop.permute.xlu1 %1465 }
 0x37a   : > { %v1468_v59 = vunpack.i.h.bf16 %v1466_v58  ;;  %v1467_v60 = vunpack.i.l.bf16 %v1466_v58 }
 0x37c   : > { %v884_v13 = vsel %vm666_vm13, %v1468_v59, %v882_v55  ;;  %v883_v20 = vsel %vm666_vm13, %v1467_v60, %v1468_v59 }
 0x37d   : > { %v1476_v6 = vpop.permute.xlu0 %1475  ;;  %v1471_v23 = vpop.permute.xlu1 %1470  ;;  %v896_v63 = vpack.c.bf16 %v884_v13, %v884_v13  ;;  %v895_v0 = vpack.c.bf16 %v883_v20, %v883_v20 }
 0x37e   : > { %v1478_v38 = vunpack.i.h.bf16 %v1476_v6  ;;  %v1477_v3 = vunpack.i.l.bf16 %v1476_v6  ;;  %v1473_v5 = vunpack.i.h.bf16 %v1471_v23  ;;  %v1472_v7 = vunpack.i.l.bf16 %v1471_v23 }
 0x37f   : > { %1256 = vmatprep.subr.msk.bf16.mxu1 %vm902_vm5, %v896_v63  ;;  %v904_v10 = vsel %vm902_vm5, %v895_v0, 0 }
 0x380   : > { %916 = vmatpush1.bf16.msra.mxu1 %v904_v10  ;;  %v864_v12 = vsel %vm624_vm7, %v1472_v7, %v1473_v5  ;;  %v863_v14 = vsel %vm624_vm7, %v858_v54, %v1472_v7  ;;  %v854_v8 = vsel %vm603_vm9, %v1477_v3, %v1478_v38  ;;  %v853_v25 = vsel %vm603_vm9, %v848_v57, %v1477_v3  ;;  %v897_v54 = vld [vmem:[%s2014_s4] sm:$0x3] }
 0x381   : > { %v1486_v16 = vpop.permute.xlu0 %1485  ;;  %v816_v17 = vpop.permute.xlu1 %815  ;;  %v894_v9 = vpack.c.bf16 %v874_v11, %v864_v12  ;;  %v893_v18 = vpack.c.bf16 %v873_v15, %v863_v14  ;;  %v892_v24 = vpack.c.bf16 %v854_v8, %v844_v19  ;;  %v891_v34 = vpack.c.bf16 %v853_v25, %v843_v31 }
 0x382   : > { %v1488_v26 = vunpack.i.h.bf16 %v1486_v16  ;;  %v1487_v27 = vunpack.i.l.bf16 %v1486_v16 }
 0x383   : > { %917 = vmatprep.subr.bf16.mxu1 %v894_v9 }
 0x384   : > { %918 = vmatpush1.bf16.msra.mxu1 %v893_v18  ;;  %v834_v40 = vsel %vm2021_vm10, %v1487_v27, %v1488_v26 }
 0x385   : > { %v828_v29 = vpop.permute.xlu0 %827  ;;  %v1481_v30 = vpop.permute.xlu1 %1480  ;;  %919 = vmatprep.subr.bf16.mxu1 %v892_v24 }
 0x386   : > { %v1483_v32 = vunpack.i.h.bf16 %v1481_v30  ;;  %v1482_v33 = vunpack.i.l.bf16 %v1481_v30  ;;  %v833_v37 = vsel %vm2021_vm10, %v828_v29, %v1487_v27  ;;  %vm1258_vm10 = vmpackc.low %vm1571_vm15, %vm1815_vm14 }
 0x388   : > { %920 = vmatpush1.bf16.msra.mxu1 %v891_v34  ;;  %v822_v39 = vsel %vm2022_vm11, %v1482_v33, %v1483_v32  ;;  %v821_v41 = vsel %vm2022_vm11, %v816_v17, %v1482_v33  ;;  %vm898_vm11 = vcmask 588800  }
 0x389   : > { %v1491_v42 = vpop.permute.xlu1 %1490  ;;  %v890_v43 = vpack.c.bf16 %v834_v40, %v822_v39  ;;  %v889_v44 = vpack.c.bf16 %v833_v37, %v821_v41  ;;  %v804_v48 = vpop.permute.xlu0 %803 }
 0x38a   : > { %v1493_v46 = vunpack.i.h.bf16 %v1491_v42  ;;  %v1492_v47 = vunpack.i.l.bf16 %v1491_v42 }
 0x38b   : > { %921 = vmatprep.subr.bf16.mxu1 %v890_v43 }
 0x38c   : > { %v809_v49 = vsel %vm511_vm12, %v804_v48, %v1492_v47  ;;  %922 = vmatpush1.bf16.msra.mxu1 %v889_v44  ;;  %v810_v50 = vsel %vm511_vm12, %v1492_v47, %v1493_v46 }
 0x38d   : > { %v1259_v51 = vpack.c.bf16 %v809_v49, %v1856_v28  ;;  %v888_v52 = vpack.c.bf16 %v810_v50, %v1875_v45 }
 0x38f   : > { %923 = vmatprep.subr.bf16.mxu1 %v888_v52 }
 0x390   : > { %1260 = vmatpush1.bf16.msk.msra.mxu1 %vm1258_vm10, %v1259_v51 }
 0x393   : > { %1261 = vmatmul.mubr.msk.bf16.vlgmr.msra.gmra.mxu1 %vm898_vm11, %v897_v54 }
 0x394   : > { %1159 = vmatprep.mubr.bf16.mxu1 %v1561_v2 }
 0x396   : > { %v954_v55 = vpop.permute.xlu1 %953  ;;  %v962_v45 = vpop.permute.xlu0 %961 }
 0x453   : > { %v1920_v56 = vpop.f32.mrf.mxu1 }
 0x454   : > { %v956_v28 = vmul.f32 %v954_v55, %v1920_v56 }
 0x455   : > { %v1923_v57 = vpop.f32.mrf.mxu1 }
 0x456   : > { %v964_v53 = vadd.f32 %v962_v45, %v956_v28  ;;  %v957_v58 = vmul.f32 %v954_v55, %v1923_v57 }
 0x457   : > { %v947_v59 = vpop.f32.mrf.mxu1 }
 0x458   : > { %v966_v60 = vmax.f32 %v964_v53, 0.0  ;;  %v965_v61 = vadd.f32 %v962_v45, %v957_v58 }
 0x459   : > { %v948_v62 = vpop.f32.mrf.mxu1 }
 0x45a   : > { %v967_v13 = vmax.f32 %v965_v61, 0.0  ;;  %v993_v2 = vsel %vm1683_vm2, %v966_v60, 0.0  ;;  %v968_v23 = vsel %vm1670_vm0, %v966_v60, 0.0  ;;  %vm1120_vm0 = vcmask 1041408  }
 0x45b   : > { %vm2034_vm2 = vcmask 916480  }
 0x45c   : > { %v1494_v20 = vpack.i.bf16 %v967_v13, %v966_v60  ;;  %v994_v1 = vsel %vm1687_vm3, %v967_v13, 0.0  ;;  %v969_v6 = vsel %vm1674_vm1, %v967_v13, 0.0  ;;  %vm2033_vm1 = vcmask 1031168  }
 0x45d   : > { %v1499_v4 = vpack.i.bf16 %v994_v1, %v993_v2  ;;  %v1504_v63 = vpack.i.bf16 %v969_v6, %v968_v23  ;;  %vm2035_vm3 = vmmov %vm2033_vm1 }
 0x45e   : > { %1495 = vrot.lane.b32.xlu0 %v1494_v20, %s1562_s27 }
 0x45f   : > { %1500 = vrot.lane.b32.xlu1 %v1499_v4, %s1562_s27 }
 0x463   : > { %1505 = vrot.lane.b32.xlu1 %v1504_v63, %s1562_s27 }
 0x4d0   : > { %v1496_v0 = vpop.permute.xlu0 %1495 }
 0x4d1   : > { %v1497_v35 = vunpack.i.l.bf16 %v1496_v0  ;;  %v1501_v38 = vpop.permute.xlu1 %1500  ;;  %v1498_v3 = vunpack.i.h.bf16 %v1496_v0 }
 0x4d2   : > { %v1503_v7 = vunpack.i.h.bf16 %v1501_v38  ;;  %v1502_v22 = vunpack.i.l.bf16 %v1501_v38 }
 0x4d3   : > { %v991_v36 = vsel %vm430_vm4, 0.0, %v1497_v35  ;;  %v992_v21 = vsel %vm430_vm4, %v1498_v3, 0.0  ;;  %v988_v14 = vsel %vm430_vm4, %v1497_v35, %v1498_v3 }
 0x4d4   : > { %1048 = vrot.lane.b32.xlu0 %v991_v36, %s1564_s29  ;;  %v1008_v5 = vrot.slane %v991_v36, 4  ;;  %v1004_v15 = vsel %vm430_vm4, 0.0, %v1502_v22  ;;  %v1005_v8 = vsel %vm430_vm4, %v1503_v7, 0.0  ;;  %v1509_v16 = vpack.i.bf16 %v992_v21, %v988_v14 }
 0x4d5   : > { %v1506_v10 = vpop.permute.xlu1 %1505  ;;  %v1058_v9 = vrot.slane %v1004_v15, 4  ;;  %v1001_v18 = vsel %vm430_vm4, %v1502_v22, %v1503_v7  ;;  %v1010_v19 = vrot.slane %v992_v21, 4  ;;  %v1009_v29 = vrot.slane %v988_v14, 4 }
 0x4d6   : > { %v1507_v11 = vunpack.i.l.bf16 %v1506_v10  ;;  %1081 = vrot.lane.b32.xlu1 %v1008_v5, %s1563_s28  ;;  %v1508_v17 = vunpack.i.h.bf16 %v1506_v10  ;;  %v1514_v24 = vpack.i.bf16 %v1001_v18, %v1004_v15  ;;  %v1524_v26 = vpack.i.bf16 %v1005_v8, %v1001_v18 }
 0x4d7   : > { %v1060_v31 = vrot.slane %v1005_v8, 4  ;;  %v1529_v32 = vpack.i.bf16 %v1010_v19, %v1009_v29  ;;  %v1059_v33 = vrot.slane %v1001_v18, 4 }
 0x4d8   : > { %v1942_v12 = vsel %vm430_vm4, 0.0, %v1507_v11  ;;  %v981_v25 = vsel %vm430_vm4, %v1508_v17, 0.0  ;;  %v1955_v27 = vsel %vm430_vm4, %v1507_v11, %v1508_v17  ;;  %vm2036_vm4 = vmmov %vm2034_vm2 }
 0x4d9   : > { %1071 = vrot.lane.b32.xlu0 %v1942_v12, %s1565_s30  ;;  %v1519_v30 = vpack.i.bf16 %v981_v25, %v1955_v27  ;;  %v1037_v34 = vrot.slane %v981_v25, 4  ;;  %v1036_v37 = vrot.slane %v1955_v27, 4  ;;  %v1539_v39 = vpack.i.bf16 %v1060_v31, %v1059_v33 }
 0x4da   : > { %1095 = vrot.lane.b32.xlu1 %v1005_v8, %s1570_s19  ;;  %v1035_v41 = vrot.slane %v1942_v12, 4 }
 0x4db   : > { %v1544_v40 = vpack.i.bf16 %v1037_v34, %v1036_v37 }
 0x4dd   : > { %1510 = vrot.lane.b32.xlu0 %v1509_v16, %s1564_s29 }
 0x4de   : > { %1061 = vrot.lane.b32.xlu1 %v1058_v9, %s1566_s11 }
 0x4e1   : > { %1515 = vrot.lane.b32.xlu0 %v1514_v24, %s1570_s19 }
 0x4e2   : > { %1525 = vrot.lane.b32.xlu1 %v1524_v26, %s1568_s15 }
 0x4e5   : > { %1520 = vrot.lane.b32.xlu0 %v1519_v30, %s1565_s30 }
 0x4e6   : > { %1530 = vrot.lane.b32.xlu1 %v1529_v32, %s1563_s28 }
 0x4e9   : > { %1535 = vrot.lane.b32.xlu0 %v1529_v32, %s1569_s16 }
 0x4ea   : > { %1540 = vrot.lane.b32.xlu1 %v1539_v39, %s1566_s11 }
 0x4ed   : > { %1545 = vrot.lane.b32.xlu0 %v1544_v40, %s1567_s12 }
 0x4ee   : > { %1011 = vrot.lane.b32.xlu1 %v1008_v5, %s1569_s16 }
 0x4f1   : > { %1023 = vrot.lane.b32.xlu0 %v1004_v15, %s1568_s15 }
 0x4f2   : > { %1038 = vrot.lane.b32.xlu1 %v1035_v41, %s1567_s12 }
 0x546   : > { %v1049_v42 = vpop.permute.xlu0 %1048 }
 0x548   : > { %v1082_v43 = vpop.permute.xlu1 %1081 }
 0x54b   : > { %v1072_v44 = vpop.permute.xlu0 %1071 }
 0x54c   : > { %v1096_v46 = vpop.permute.xlu1 %1095 }
 0x54f   : > { %v1511_v47 = vpop.permute.xlu0 %1510 }
 0x550   : > { %v1062_v48 = vpop.permute.xlu1 %1061  ;;  %v1512_v61 = vunpack.i.l.bf16 %v1511_v47  ;;  %v1513_v2 = vunpack.i.h.bf16 %v1511_v47 }
 0x552   : > { %v1054_v36 = vsel %vm582_vm8, %v1049_v42, %v1512_v61  ;;  %v1055_v7 = vsel %vm582_vm8, %v1512_v61, %v1513_v2 }
 0x553   : > { %v1516_v49 = vpop.permute.xlu0 %1515 }
 0x554   : > { %v1518_v50 = vunpack.i.h.bf16 %v1516_v49  ;;  %v1517_v51 = vunpack.i.l.bf16 %v1516_v49  ;;  %v1526_v52 = vpop.permute.xlu1 %1525 }
 0x555   : > { %v1528_v22 = vunpack.i.h.bf16 %v1526_v52  ;;  %v1527_v10 = vunpack.i.l.bf16 %v1526_v52 }
 0x556   : > { %v1098_v54 = vsel %vm666_vm13, %v1518_v50, %v1096_v46  ;;  %v1097_v55 = vsel %vm666_vm13, %v1517_v51, %v1518_v50  ;;  %v1551_v50 = vld [vmem:[%s1658_s26 + $0x10] sm:$0xff] }
 0x557   : > { %v1114_v28 = vpack.c.bf16 %v1098_v54, %v1098_v54  ;;  %v1521_v45 = vpop.permute.xlu0 %1520  ;;  %v1113_v53 = vpack.c.bf16 %v1097_v55, %v1097_v55  ;;  %v1030_v29 = vsel %vm2033_vm1, %v1527_v10, %v1528_v22  ;;  %v1552_v55 = vld [vmem:[%s1658_s26 + $0x18] sm:$0xff] }
 0x558   : > { %v1523_v58 = vunpack.i.h.bf16 %v1521_v45  ;;  %v1522_v59 = vunpack.i.l.bf16 %v1521_v45  ;;  %v1531_v60 = vpop.permute.xlu1 %1530 }
 0x559   : > { %v1533_v62 = vunpack.i.h.bf16 %v1531_v60  ;;  %v1532_v13 = vunpack.i.l.bf16 %v1531_v60  ;;  %1262 = vmatprep.subr.msk.bf16.mxu1 %vm1120_vm0, %v1114_v28  ;;  %v1122_v20 = vsel %vm1120_vm0, %v1113_v53, 0 }
 0x55a   : > { %1138 = vmatpush1.bf16.msra.mxu1 %v1122_v20  ;;  %v1078_v1 = vsel %vm624_vm7, %v1522_v59, %v1523_v58  ;;  %v1077_v23 = vsel %vm624_vm7, %v1072_v44, %v1522_v59 }
 0x55b   : > { %v1088_v4 = vsel %vm645_vm6, %v1532_v13, %v1533_v62  ;;  %v1536_v6 = vpop.permute.xlu0 %1535  ;;  %v1087_v63 = vsel %vm645_vm6, %v1082_v43, %v1532_v13  ;;  %vm1116_vm6 = vcmask 293888  }
 0x55c   : > { %v1538_v0 = vunpack.i.h.bf16 %v1536_v6  ;;  %v1537_v35 = vunpack.i.l.bf16 %v1536_v6  ;;  %v1541_v38 = vpop.permute.xlu1 %1540  ;;  %v1108_v11 = vsel %vm902_vm5, %v1078_v1, %v1088_v4  ;;  %v1107_v16 = vsel %vm902_vm5, %v1077_v23, %v1087_v63 }
 0x55d   : > { %v1543_v3 = vunpack.i.h.bf16 %v1541_v38  ;;  %v1542_v5 = vunpack.i.l.bf16 %v1541_v38 }
 0x55e   : > { %v1018_v21 = vsel %vm511_vm12, %v1537_v35, %v1538_v0 }
 0x55f   : > { %v1067_v14 = vsel %vm603_vm9, %v1062_v48, %v1542_v5  ;;  %v1068_v15 = vsel %vm603_vm9, %v1542_v5, %v1543_v3  ;;  %v1546_v8 = vpop.permute.xlu0 %1545  ;;  %v1102_v33 = vsel %vm902_vm5, %v1955_v27, %v1018_v21  ;;  %v1115_v27 = vld [vmem:[%s2017_s7] sm:$0x3] }
 0x560   : > { %v1548_v17 = vunpack.i.h.bf16 %v1546_v8  ;;  %v1547_v9 = vunpack.i.l.bf16 %v1546_v8  ;;  %v1012_v18 = vpop.permute.xlu1 %1011  ;;  %v1106_v19 = vsel %vm902_vm5, %v1055_v7, %v1068_v15  ;;  %v1105_v24 = vsel %vm902_vm5, %v1054_v36, %v1067_v14 }
 0x561   : > { %v1112_v25 = vpack.c.bf16 %v1108_v11, %v1106_v19  ;;  %v1111_v26 = vpack.c.bf16 %v1107_v16, %v1105_v24  ;;  %v1017_v31 = vsel %vm511_vm12, %v1012_v18, %v1537_v35 }
 0x562   : > { %v1045_v30 = vsel %vm2034_vm2, %v1547_v9, %v1548_v17  ;;  %v1101_v42 = vsel %vm902_vm5, %v1942_v12, %v1017_v31 }
 0x563   : > { %1139 = vmatprep.subr.bf16.mxu1 %v1112_v25  ;;  %v1024_v32 = vpop.permute.xlu0 %1023  ;;  %v1104_v34 = vsel %vm902_vm5, %v1030_v29, %v1045_v30 }
 0x564   : > { %v1029_v37 = vsel %vm2035_vm3, %v1024_v32, %v1527_v10  ;;  %v1039_v39 = vpop.permute.xlu1 %1038  ;;  %1140 = vmatpush1.bf16.msra.mxu1 %v1111_v26  ;;  %v1110_v40 = vpack.c.bf16 %v1104_v34, %v1102_v33 }
 0x565   : > { %v1044_v41 = vsel %vm2036_vm4, %v1039_v39, %v1547_v9 }
 0x566   : > { %v1103_v43 = vsel %vm902_vm5, %v1029_v37, %v1044_v41  ;;  %1141 = vmatprep.subr.bf16.mxu1 %v1110_v40 }
 0x567   : > { %v1109_v44 = vpack.c.bf16 %v1103_v43, %v1101_v42 }
 0x569   : > { %1142 = vmatpush1.bf16.msra.mxu1 %v1109_v44 }
 0x56c   : > { %1263 = vmatmul.mubr.msk.bf16.vlgmr.msra.gmra.mxu1 %vm1116_vm6, %v1115_v27 }
 0x62c   : > { %v1161_v46 = vpop.f32.mrf.mxu1 }
 0x62d   : > { %v1170_v47 = vrot.slane %v1161_v46, 4 }
 0x62e   : > { %v1163_v48 = vpop.f32.mrf.mxu1 }
 0x62f   : > { %v1174_v12 = vsel %vm902_vm5, %v1920_v56, %v1170_v47  ;;  %v1171_v49 = vrot.slane %v1163_v48, 4 }
 0x630   : > { %v1178_v51 = vadd.f32 %v1551_v50, %v1174_v12  ;;  %v1165_v52 = vpop.f32.mrf.mxu1 }
 0x631   : > { %v1175_v54 = vsel %vm902_vm5, %v1923_v57, %v1171_v49 }
 0x632   : > { %1182 = vst [vmem:[%s1839_s18 + $0x10] sm:$0xff] %v1178_v51  ;;  %v1179_v28 = vadd.f32 %v1552_v55, %v1175_v54  ;;  %v1166_v45 = vpop.f32.mrf.mxu1 }
 0x634   : > { %1183 = vst [vmem:[%s1839_s18 + $0x18] sm:$0xff] %v1179_v28 }
 0x635 PF: > { %s20_s13 = sadd.s32 1, %s1559_s13  }
 0x636   : > { %p17_p4 = scmp.ge.s32.totalorder %s20_s13, 4  }
 0x638   :  { %19 = sbr.rel (!%p17_p4) target bundleno = 1 (0x1), region = 90 }

// kernel: hourglass_forward.10
= control target key start
LH: loop header
LB: loop body
LE: loop exit
PB: predicated region body
PF: predicated region fallthrough
CT: control target
= control target key end

     0   :  { %s1432_s17 = smov 0   ;;  %s1643_s0 = inlined_call_operand.vmem [shape: f32[2,16,64], index: 0, kind: input, shape index: {}]   ;;  %s1644_s1 = inlined_call_operand.vmem [shape: bf16[8,4], index: 1, kind: input, shape index: {}]   ;;  %s1645_s2 = inlined_call_operand.vmem [shape: bf16[8,144], index: 2, kind: input, shape index: {}]   ;;  %s1646_s3 = inlined_call_operand.vmem [shape: f32[16,1], index: 3, kind: input, shape index: {}]   ;;  %s1647_s4 = inlined_call_operand.vmem [shape: f32[16,1], index: 4, kind: input, shape index: {}]   ;;  %s1648_s5 = inlined_call_operand.vmem [shape: bf16[4,72], index: 5, kind: input, shape index: {}]   ;;  %s1649_s6 = inlined_call_operand.vmem [shape: f32[8,1], index: 6, kind: input, shape index: {}]   ;;  %s1650_s7 = inlined_call_operand.vmem [shape: f32[8,1], index: 7, kind: input, shape index: {}]   ;;  %s1651_s8 = inlined_call_operand.vmem [shape: bf16[4,36], index: 8, kind: input, shape index: {}]   ;;  %s1652_s9 = inlined_call_operand.vmem [shape: f32[4,1], index: 9, kind: input, shape index: {}]   ;;  %s1653_s10 = inlined_call_operand.vmem [shape: f32[4,1], index: 10, kind: input, shape index: {}]   ;;  %s1654_s11 = inlined_call_operand.vmem [shape: f32[2,16,16], index: 11, kind: output, shape index: {}]  }
   0x1 LB: > { %s1119_s18 = sadd.s32 4294967295, %s1348_s17   ;;  %p1123_p0 = scmp.ge.s32.totalorder %s1348_s17, 1  ;;  %s1348_s17 = sphi %s1432_s17, %s21_s17  }
   0x2   : > { %p337_p1 = scmp.lt.s32.totalorder %s1348_s17, 3 }
   0x4   : > { %p338_p2 = pnand %p1123_p0, %p337_p1 }
   0x5   : > { %p377_p3 = scmp.lt.s32.totalorder (!%p338_p2), %s1119_s18, 1  ;;  %s1350_s25 = smov (!%p338_p2), 120  }
   0x6   : > { %341 = sbr.rel (%p338_p2) target bundleno = 1866 (0x74a), region = 64  ;;  %s1351_s26 = smov (!%p338_p2), 104  }
   0x7   : > { %s1352_s27 = smov (!%p338_p2), 112   ;;  %s1353_s28 = smov (!%p338_p2), 96  }
   0x8   : > { %s1354_s29 = smov (!%p338_p2), 88   ;;  %s1355_s30 = smov (!%p338_p2), 80  }
   0x9   : > { %s1356_s12 = smov (!%p338_p2), 72   ;;  %s1365_s13 = smov (!%p338_p2), 124  }
   0xa   : > { %s1366_s14 = smov (!%p338_p2), 126   ;;  %s1367_s15 = smov (!%p338_p2), 127  }
   0xb   : > { %v390_v0 = vld [vmem:[%s1644_s1] sm:$0xf]  ;;  %vm468_vm0 = vcmask 1043456   ;;  %s1660_s18 = smov (!%p377_p3, %s1119_s18), 1  ;;  %vm443_vm1 = vcmask 64512   ;;  %v1357_v7 = vmov 0  }
   0xc   : > { %1212 = vmatprep.subr.msk.bf16.mxu1 %vm468_vm0, %v390_v0  ;;  %v470_v1 = vsel %vm468_vm0, %v390_v0, 0  ;;  %s1149_s21 = sshll.u32 %s1660_s18, 4  ;;  %v630_v6 = vld [vmem:[%s1646_s3] sm:$0xff]  ;;  %1278 = vset.pattern.permute.xlu1 %v1357_v7  ;;  %v645_v36 = vld [vmem:[%s1647_s4 + $0x8] sm:$0xff]  ;;  %vm617_vm2 = vcmask 31744   ;;  %vm622_vm3 = vcmask 97280  }
   0xd   : > { %1171 = vmatpush3.bf16.msra.mxu1 %v470_v1  ;;  %s381_s24 = scalar_lea.vmem %s1643_s0, %s1149_s21  ;;  %1279 = vset.pattern.permute.xlu0 %v1357_v7  ;;  %v631_v37 = vld [vmem:[%s1646_s3 + $0x8] sm:$0xff]  ;;  %v644_v38 = vld [vmem:[%s1647_s4] sm:$0xff]  ;;  %vm672_vm6 = vcmask 39936   ;;  %vm675_vm7 = vcmask 171008   ;;  %s1368_s16 = smov 118   ;;  %vm776_vm8 = vcmask 130048  }
   0xe   : > { %v388_v2 = vld [vmem:[%s381_s24] sm:$0xff]  ;;  %v389_v3 = vld [vmem:[%s381_s24 + $0x8] sm:$0xff]  ;;  %780 = vmatprep.subr.bf16.mxu1 %v1357_v7  ;;  %s1358_s24 = smov 4   ;;  %vm1138_vm9 = vmpackc.low %vm675_vm7, %vm675_vm7  ;;  %s1560_s20 = scalar_lea.vmem %s1654_s11, %s1149_s21  ;;  %vm1370_vm10 = vmmov 0   ;;  %vm1371_vm11 = vmmov 1   ;;  %vm888_vm13 = vcmask 588800  }
   0xf   : > { %v1243_v4 = vpack.i.bf16 %v389_v3, %v388_v2  ;;  %v435_v5 = vpack.c.bf16 %v389_v3, %v388_v2  ;;  %vm1142_vm12 = vmpackc.low %vm1371_vm11, %vm675_vm7  ;;  %vm1012_vm14 = vcmask 1041408   ;;  %vm1008_vm15 = vcmask 293888  }
  0x11   : > { %1244 = vrot.lane.b32.xlu0 %v1243_v4, %s1350_s25  ;;  %1254 = vrot.lane.b32.xlu1 %v1243_v4, %s1351_s26  ;;  %s1359_s26 = smov 8  }
  0x12   : > { %1172 = vmatprep.mubr.msk.bf16.mxu1 %vm443_vm1, %v435_v5 }
  0x15   : > { %1249 = vrot.lane.b32.xlu0 %v1243_v4, %s1352_s27  ;;  %1259 = vrot.lane.b32.xlu1 %v1243_v4, %s1353_s28  ;;  %s1360_s27 = smov 12   ;;  %s1361_s28 = smov 5  }
  0x19   : > { %1264 = vrot.lane.b32.xlu0 %v1243_v4, %s1354_s29  ;;  %1269 = vrot.lane.b32.xlu1 %v1243_v4, %s1355_s30  ;;  %s1362_s29 = smov 119   ;;  %s1363_s30 = smov 122  }
  0x1d   : > { %1274 = vrot.lane.b32.xlu0 %v1243_v4, %s1356_s12  ;;  %634 = vperm.xlu1 %1278, %v630_v6   ;;  %s1364_s12 = smov 123  }
  0x21   : > { %653 = vperm.xlu1 %1278, %v645_v36   ;;  %639 = vperm.xlu0 %1279, %v631_v37  }
  0x25   : > { %648 = vperm.xlu0 %1279, %v644_v38  }
  0x83   : > { %v1245_v8 = vpop.permute.xlu0 %1244  ;;  %v1255_v9 = vpop.permute.xlu1 %1254 }
  0x84   : > { %v1247_v10 = vunpack.i.h.bf16 %v1245_v8  ;;  %v1246_v11 = vunpack.i.l.bf16 %v1245_v8  ;;  %v1257_v17 = vunpack.i.h.bf16 %v1255_v9  ;;  %v1256_v18 = vunpack.i.l.bf16 %v1255_v9 }
  0x86   : > { %v436_v12 = vpack.c.bf16 %v1247_v10, %v1246_v11  ;;  %v438_v22 = vpack.c.bf16 %v1257_v17, %v1256_v18 }
  0x87   : > { %v1250_v13 = vpop.permute.xlu0 %1249  ;;  %v1260_v14 = vpop.permute.xlu1 %1259 }
  0x88   : > { %1173 = vmatmul.mubr.msk.bf16.vlgmr.msra.gmra.mxu1 %vm443_vm1, %v436_v12  ;;  %v1252_v15 = vunpack.i.h.bf16 %v1250_v13  ;;  %v1251_v16 = vunpack.i.l.bf16 %v1250_v13  ;;  %v1262_v19 = vunpack.i.h.bf16 %v1260_v14  ;;  %v1261_v20 = vunpack.i.l.bf16 %v1260_v14 }
  0x8a   : > { %v437_v21 = vpack.c.bf16 %v1252_v15, %v1251_v16  ;;  %v439_v23 = vpack.c.bf16 %v1262_v19, %v1261_v20 }
  0x8b   : > { %v1265_v24 = vpop.permute.xlu0 %1264  ;;  %v1270_v25 = vpop.permute.xlu1 %1269 }
  0x8c   : > { %1176 = vmatprep.mubr.msk.bf16.mxu1 %vm443_vm1, %v437_v21  ;;  %v1267_v26 = vunpack.i.h.bf16 %v1265_v24  ;;  %v1266_v27 = vunpack.i.l.bf16 %v1265_v24  ;;  %v1272_v28 = vunpack.i.h.bf16 %v1270_v25  ;;  %v1271_v29 = vunpack.i.l.bf16 %v1270_v25 }
  0x8e   : > { %v440_v30 = vpack.c.bf16 %v1267_v26, %v1266_v27  ;;  %v441_v31 = vpack.c.bf16 %v1272_v28, %v1271_v29 }
  0x8f   : > { %v1275_v32 = vpop.permute.xlu0 %1274 }
  0x90   : > { %1177 = vmatmul.mubr.msk.bf16.gmra.mxu1 %vm443_vm1, %v438_v22  ;;  %v1277_v33 = vunpack.i.h.bf16 %v1275_v32  ;;  %v1276_v34 = vunpack.i.l.bf16 %v1275_v32 }
  0x91   : > { %1180 = vmatprep.mubr.msk.bf16.mxu1 %vm443_vm1, %v439_v23  ;;  %v625_v23 = vlaneseq }
  0x92   : > { %v442_v35 = vpack.c.bf16 %v1277_v33, %v1276_v34 }
  0x93   : > { %v626_v29 = vand.u32 127, %v625_v23 }
  0x95   : > { %v627_v36 = vand.u32 3, %v626_v29 }
  0x97   : > { %vm1485_vm4 = vcmp.le.s32.totalorder %v627_v36, 2  ;;  %vm1493_vm5 = vcmp.ge.s32.totalorder %v627_v36, 1 }
  0x98   : > { %1181 = vmatmul.mubr.msk.bf16.gmra.mxu1 %vm443_vm1, %v440_v30  ;;  %v635_v16 = vpop.permute.xlu1 %634 }
  0x99   : > { %1184 = vmatprep.mubr.msk.bf16.mxu1 %vm443_vm1, %v441_v31 }
  0x9c   : > { %v654_v17 = vpop.permute.xlu1 %653  ;;  %v640_v18 = vpop.permute.xlu0 %639 }
  0xa0   : > { %1185 = vmatmul.mubr.msk.bf16.gmra.mxu1 %vm443_vm1, %v442_v35  ;;  %v649_v20 = vpop.permute.xlu0 %648 }
 0x148   : > { %v1174_v39 = vpop.f32.mrf.mxu1 }
 0x149   : > { %v571_v41 = vmul.f32 0.5, %v1174_v39 }
 0x14a   : > { %v506_v40 = vpop.f32.mrf.mxu1 }
 0x14b   : > { %v569_v42 = vmul.f32 0.5, %v506_v40 }
 0x14c   : > { %v1175_v43 = vpop.f32.mrf.mxu1 }
 0x14d   : > { %v573_v44 = vadd.f32 %v571_v41, %v569_v42  ;;  %v572_v46 = vmul.f32 0.5, %v1175_v43 }
 0x14e   : > { %v509_v45 = vpop.f32.mrf.mxu1 }
 0x14f   : > { %v570_v47 = vmul.f32 0.5, %v509_v45 }
 0x150   : > { %v1178_v48 = vpop.f32.mrf.mxu1 }
 0x151   : > { %v574_v49 = vadd.f32 %v572_v46, %v570_v47  ;;  %v577_v51 = vmul.f32 0.5, %v1178_v48 }
 0x152   : > { %v522_v50 = vpop.f32.mrf.mxu1 }
 0x153   : > { %v575_v52 = vmul.f32 0.5, %v522_v50 }
 0x154   : > { %v1179_v53 = vpop.f32.mrf.mxu1 }
 0x155   : > { %v579_v54 = vadd.f32 %v577_v51, %v575_v52  ;;  %v578_v56 = vmul.f32 0.5, %v1179_v53 }
 0x156   : > { %v525_v55 = vpop.f32.mrf.mxu1 }
 0x157   : > { %v576_v57 = vmul.f32 0.5, %v525_v55  ;;  %595 = vrot.lane.b32.xlu1 %v579_v54, %s1358_s24 }
 0x158   : > { %v1182_v58 = vpop.f32.mrf.mxu1 }
 0x159   : > { %v580_v59 = vadd.f32 %v578_v56, %v576_v57  ;;  %v583_v61 = vmul.f32 0.5, %v1182_v58 }
 0x15a   : > { %v538_v60 = vpop.f32.mrf.mxu1 }
 0x15b   : > { %v581_v62 = vmul.f32 0.5, %v538_v60  ;;  %597 = vrot.lane.b32.xlu1 %v580_v59, %s1358_s24 }
 0x15c   : > { %v1183_v63 = vpop.f32.mrf.mxu1 }
 0x15d   : > { %v585_v0 = vadd.f32 %v583_v61, %v581_v62  ;;  %v584_v2 = vmul.f32 0.5, %v1183_v63 }
 0x15e   : > { %v541_v1 = vpop.f32.mrf.mxu1 }
 0x15f   : > { %v582_v3 = vmul.f32 0.5, %v541_v1  ;;  %603 = vrot.lane.b32.xlu0 %v585_v0, %s1359_s26 }
 0x160   : > { %v1186_v4 = vpop.f32.mrf.mxu1 }
 0x161   : > { %v586_v5 = vadd.f32 %v584_v2, %v582_v3  ;;  %v589_v8 = vmul.f32 0.5, %v1186_v4 }
 0x162   : > { %v554_v6 = vpop.f32.mrf.mxu1 }
 0x163   : > { %v587_v9 = vmul.f32 0.5, %v554_v6  ;;  %605 = vrot.lane.b32.xlu1 %v586_v5, %s1359_s26 }
 0x164   : > { %v1187_v10 = vpop.f32.mrf.mxu1 }
 0x165   : > { %v591_v11 = vadd.f32 %v589_v8, %v587_v9  ;;  %v590_v13 = vmul.f32 0.5, %v1187_v10 }
 0x166   : > { %v557_v12 = vpop.f32.mrf.mxu1 }
 0x167   : > { %v588_v14 = vmul.f32 0.5, %v557_v12  ;;  %611 = vrot.lane.b32.xlu0 %v591_v11, %s1360_s27  ;;  %v820_v12 = vld [vmem:[%s1649_s6] sm:$0xff] }
 0x169   : > { %v592_v15 = vadd.f32 %v590_v13, %v588_v14  ;;  %v827_v13 = vld [vmem:[%s1650_s7] sm:$0xff] }
 0x16a   : > { %v769_v14 = vld [vmem:[%s1645_s2] sm:$0xff] }
 0x16b   : > { %613 = vrot.lane.b32.xlu1 %v592_v15, %s1360_s27  ;;  %v1137_v15 = vcombine.high %v769_v14, %v769_v14 }
 0x16d   : > { %1141 = vmatprep.mubr.msk.bf16.mxu1 %vm776_vm8, %v1137_v15 }
 0x1c9   : > { %v596_v19 = vpop.permute.xlu1 %595 }
 0x1ca   : > { %v618_v24 = vsel %vm617_vm2, %v573_v44, %v596_v19 }
 0x1cd   : > { %v598_v21 = vpop.permute.xlu1 %597 }
 0x1ce   : > { %v619_v31 = vsel %vm617_vm2, %v574_v49, %v598_v21 }
 0x1d1   : > { %v604_v22 = vpop.permute.xlu0 %603 }
 0x1d2   : > { %v620_v25 = vsel %vm443_vm1, %v618_v24, %v604_v22 }
 0x1d5   : > { %v606_v26 = vpop.permute.xlu1 %605 }
 0x1d6   : > { %v621_v32 = vsel %vm443_vm1, %v619_v31, %v606_v26 }
 0x1d9   : > { %v612_v27 = vpop.permute.xlu0 %611 }
 0x1da   : > { %v1478_v28 = vsel %vm622_vm3, %v620_v25, %v612_v27 }
 0x1db   : > { %v642_v30 = vmul.f32 %v635_v16, %v1478_v28 }
 0x1dd   : > { %v656_v33 = vadd.f32 %v649_v20, %v642_v30  ;;  %v614_v34 = vpop.permute.xlu1 %613 }
 0x1de   : > { %v1482_v35 = vsel %vm622_vm3, %v621_v32, %v614_v34 }
 0x1df   : > { %v643_v37 = vmul.f32 %v640_v18, %v1482_v35  ;;  %v658_v38 = vmax.f32 %v656_v33, 0.0 }
 0x1e1   : > { %v657_v39 = vadd.f32 %v654_v17, %v643_v37  ;;  %v662_v43 = vsel %vm1485_vm4, %v658_v38, 0.0  ;;  %v692_v48 = vsel %vm1493_vm5, %v658_v38, 0.0 }
 0x1e3   : > { %v659_v41 = vmax.f32 %v657_v39, 0.0 }
 0x1e5   : > { %v1280_v42 = vpack.i.bf16 %v659_v41, %v658_v38  ;;  %v663_v44 = vsel %vm1485_vm4, %v659_v41, 0.0  ;;  %v693_v47 = vsel %vm1493_vm5, %v659_v41, 0.0 }
 0x1e6   : > { %v1285_v46 = vpack.i.bf16 %v663_v44, %v662_v43  ;;  %v1290_v49 = vpack.i.bf16 %v693_v47, %v692_v48 }
 0x1e7   : > { %1281 = vrot.lane.b32.xlu0 %v1280_v42, %s1361_s28 }
 0x1e8   : > { %1286 = vrot.lane.b32.xlu1 %v1285_v46, %s1361_s28 }
 0x1eb   : > { %1291 = vrot.lane.b32.xlu0 %v1290_v49, %s1361_s28 }
 0x259   : > { %v1282_v50 = vpop.permute.xlu0 %1281 }
 0x25a   : > { %v1284_v51 = vunpack.i.h.bf16 %v1282_v50  ;;  %v1283_v52 = vunpack.i.l.bf16 %v1282_v50  ;;  %v1287_v53 = vpop.permute.xlu1 %1286 }
 0x25b   : > { %v1289_v54 = vunpack.i.h.bf16 %v1287_v53  ;;  %v1288_v55 = vunpack.i.l.bf16 %v1287_v53 }
 0x25c   : > { %v687_v56 = vsel %vm672_vm6, 0.0, %v1284_v51  ;;  %v686_v57 = vsel %vm672_vm6, 0.0, %v1283_v52  ;;  %v1136_v52 = vcombine.low %v769_v14, %v769_v14 }
 0x25d   : > { %v689_v58 = vsel %vm675_vm7, %v687_v56, 0.0  ;;  %v688_v59 = vsel %vm675_vm7, %v686_v57, 0.0  ;;  %v1509_v60 = vsel %vm672_vm6, 0.0, %v1289_v54  ;;  %v1512_v61 = vsel %vm672_vm6, 0.0, %v1288_v55  ;;  %v1292_v62 = vpop.permute.xlu0 %1291 }
 0x25e   : > { %v677_v63 = vsel %vm675_vm7, %v1509_v60, 0.0  ;;  %v676_v0 = vsel %vm675_vm7, %v1512_v61, 0.0  ;;  %v1139_v1 = vpack.c.bf16 %v1509_v60, %v1512_v61  ;;  %v1294_v2 = vunpack.i.h.bf16 %v1292_v62 }
 0x25f   : > { %v1293_v3 = vunpack.i.l.bf16 %v1292_v62  ;;  %v1295_v4 = vpack.i.bf16 %v689_v58, %v688_v59  ;;  %v1300_v5 = vpack.i.bf16 %v677_v63, %v676_v0 }
 0x260   : > { %v703_v6 = vsel %vm672_vm6, 0.0, %v1294_v2 }
 0x261   : > { %v705_v8 = vsel %vm675_vm7, %v703_v6, 0.0  ;;  %v702_v9 = vsel %vm672_vm6, 0.0, %v1293_v3  ;;  %1296 = vrot.lane.b32.xlu1 %v1295_v4, %s1362_s29  ;;  %1301 = vrot.lane.b32.xlu0 %v1300_v5, %s1350_s25 }
 0x262   : > { %v704_v10 = vsel %vm675_vm7, %v702_v9, 0.0 }
 0x263   : > { %v1305_v11 = vpack.i.bf16 %v705_v8, %v704_v10 }
 0x265   : > { %1306 = vrot.lane.b32.xlu1 %v1305_v11, %s1363_s30  ;;  %1311 = vrot.lane.b32.xlu0 %v1295_v4, %s1364_s12 }
 0x269   : > { %1316 = vrot.lane.b32.xlu1 %v1300_v5, %s1365_s13  ;;  %1321 = vrot.lane.b32.xlu0 %v1305_v11, %s1366_s14 }
 0x26d   : > { %1326 = vrot.lane.b32.xlu1 %v1295_v4, %s1367_s15  ;;  %1331 = vrot.lane.b32.xlu0 %v1305_v11, %s1368_s16 }
 0x271   : > { %823 = vperm.xlu1 %1278, %v820_v12   ;;  %830 = vperm.xlu0 %1279, %v827_v13   ;;  %v935_v12 = vld [vmem:[%s1652_s9] sm:$0xf] }
 0x272   : > { %v942_v13 = vld [vmem:[%s1653_s10] sm:$0xf] }
 0x2d3   : > { %v1297_v16 = vpop.permute.xlu1 %1296  ;;  %v1302_v17 = vpop.permute.xlu0 %1301 }
 0x2d4   : > { %v1299_v18 = vunpack.i.h.bf16 %v1297_v16  ;;  %v1298_v19 = vunpack.i.l.bf16 %v1297_v16  ;;  %v1304_v21 = vunpack.i.h.bf16 %v1302_v17  ;;  %v1303_v22 = vunpack.i.l.bf16 %v1302_v17 }
 0x2d6   : > { %v767_v20 = vpack.c.bf16 %v1299_v18, %v1298_v19  ;;  %v766_v24 = vpack.c.bf16 %v1304_v21, %v1303_v22 }
 0x2d7   : > { %v1307_v23 = vpop.permute.xlu1 %1306  ;;  %v1312_v27 = vpop.permute.xlu0 %1311 }
 0x2d8   : > { %781 = vmatpush1.bf16.msra.mxu1 %v767_v20  ;;  %v1309_v25 = vunpack.i.h.bf16 %v1307_v23  ;;  %v1308_v26 = vunpack.i.l.bf16 %v1307_v23  ;;  %v1314_v30 = vunpack.i.h.bf16 %v1312_v27  ;;  %v1313_v31 = vunpack.i.l.bf16 %v1312_v27 }
 0x2d9   : > { %782 = vmatprep.subr.bf16.mxu1 %v1357_v7 }
 0x2da   : > { %v765_v29 = vpack.c.bf16 %v1309_v25, %v1308_v26  ;;  %v764_v33 = vpack.c.bf16 %v1314_v30, %v1313_v31 }
 0x2db   : > { %v1317_v32 = vpop.permute.xlu1 %1316  ;;  %v1322_v37 = vpop.permute.xlu0 %1321 }
 0x2dc   : > { %783 = vmatpush1.bf16.msra.mxu1 %v766_v24  ;;  %v1319_v34 = vunpack.i.h.bf16 %v1317_v32  ;;  %v1318_v36 = vunpack.i.l.bf16 %v1317_v32  ;;  %v1324_v39 = vunpack.i.h.bf16 %v1322_v37  ;;  %v1323_v41 = vunpack.i.l.bf16 %v1322_v37 }
 0x2dd   : > { %784 = vmatprep.subr.bf16.mxu1 %v1357_v7 }
 0x2de   : > { %v763_v38 = vpack.c.bf16 %v1319_v34, %v1318_v36  ;;  %v762_v43 = vpack.c.bf16 %v1324_v39, %v1323_v41 }
 0x2df   : > { %v1327_v42 = vpop.permute.xlu1 %1326  ;;  %v1332_v48 = vpop.permute.xlu0 %1331 }
 0x2e0   : > { %785 = vmatpush1.bf16.msra.mxu1 %v765_v29  ;;  %v1329_v44 = vunpack.i.h.bf16 %v1327_v42  ;;  %v1328_v46 = vunpack.i.l.bf16 %v1327_v42  ;;  %v1334_v49 = vunpack.i.h.bf16 %v1332_v48  ;;  %v1333_v50 = vunpack.i.l.bf16 %v1332_v48  ;;  %v887_v29 = vld [vmem:[%s1648_s5] sm:$0x3] }
 0x2e1   : > { %786 = vmatprep.subr.bf16.mxu1 %v1357_v7 }
 0x2e2   : > { %v761_v47 = vpack.c.bf16 %v1329_v44, %v1328_v46  ;;  %v768_v51 = vpack.c.bf16 %v1334_v49, %v1333_v50 }
 0x2e4   : > { %787 = vmatpush1.bf16.msra.mxu1 %v764_v33 }
 0x2e5   : > { %788 = vmatprep.subr.bf16.mxu1 %v1357_v7 }
 0x2e8   : > { %789 = vmatpush1.bf16.msra.mxu1 %v763_v38 }
 0x2e9   : > { %790 = vmatprep.subr.bf16.mxu1 %v1357_v7 }
 0x2ec   : > { %791 = vmatpush1.bf16.msra.mxu1 %v762_v43  ;;  %v824_v53 = vpop.permute.xlu1 %823  ;;  %v831_v57 = vpop.permute.xlu0 %830 }
 0x2ed   : > { %792 = vmatprep.subr.bf16.mxu1 %v1357_v7 }
 0x2f0   : > { %793 = vmatpush1.bf16.msra.mxu1 %v761_v47 }
 0x2f1   : > { %794 = vmatprep.subr.bf16.mxu1 %v1357_v7 }
 0x2f4   : > { %1140 = vmatpush1.bf16.msk.msra.mxu1 %vm1138_vm9, %v1139_v1 }
 0x2f5   : > { %810 = vmatprep.subr.bf16.mxu1 %v1357_v7 }
 0x2f8   : > { %811 = vmatpush2.bf16.msra.mxu1 %v768_v51 }
 0x2fb   : > { %813 = vmatmul.mubr.bf16.vlgmr.msra.gmra.mxu1 %v1136_v52 }
 0x3bb   : > { %v814_v54 = vpop.f32.mrf.mxu1 }
 0x3bc   : > { %v826_v55 = vmul.f32 %v824_v53, %v814_v54  ;;  %v1060_v56 = vadd.f32 %v814_v54, %v1478_v28  ;;  %v1369_v28 = vmov 0.0  }
 0x3bd   : > { %v816_v58 = vpop.f32.mrf.mxu1  ;;  %1188 = vmatprep.subr.bf16.mxu0 %v1369_v28  ;;  %1198 = vmatprep.mubr.msk.bf16.mxu0 %vm1370_vm10, %v1369_v28 }
 0x3be   : > { %v833_v59 = vadd.f32 %v831_v57, %v826_v55  ;;  %1062 = vst.msk [vmem:[%s1560_s20] sm:$0xff] %vm776_vm8, %v1060_v56 }
 0x3bf   : > { %v817_v7 = vpop.f32.mrf.mxu1 }
 0x3c0   : > { %v834_v60 = vmax.f32 %v833_v59, 0.0 }
 0x3c1   : > { %v818_v61 = vpop.f32.mrf.mxu1 }
 0x3c2   : > { %v848_v62 = vsel %vm1493_vm5, %v834_v60, 0.0  ;;  %v835_v63 = vsel %vm1485_vm4, %v834_v60, 0.0 }
 0x3c3   : > { %850 = vrot.lane.b32.xlu1 %v848_v62, %s1361_s28  ;;  %v1335_v0 = vpack.i.bf16 %v834_v60, %v835_v63 }
 0x3c5   : > { %1336 = vrot.lane.b32.xlu0 %v1335_v0, %s1361_s28 }
 0x435   : > { %v851_v1 = vpop.permute.xlu1 %850 }
 0x436   : > { %v853_v2 = vsel %vm672_vm6, 0.0, %v851_v1 }
 0x437   : > { %v854_v3 = vsel %vm675_vm7, %v853_v2, 0.0  ;;  %v1337_v4 = vpop.permute.xlu0 %1336 }
 0x438   : > { %v1339_v5 = vunpack.i.h.bf16 %v1337_v4  ;;  %v1338_v6 = vunpack.i.l.bf16 %v1337_v4  ;;  %879 = vrot.lane.b32.xlu1 %v854_v3, %s1368_s16 }
 0x43a   : > { %v846_v8 = vsel %vm672_vm6, 0.0, %v1339_v5  ;;  %v840_v9 = vsel %vm672_vm6, 0.0, %v1338_v6  ;;  %v1007_v5 = vld [vmem:[%s1651_s8] sm:$0x3] }
 0x43b   : > { %v847_v10 = vsel %vm675_vm7, %v846_v8, 0.0  ;;  %v841_v11 = vsel %vm675_vm7, %v840_v9, 0.0 }
 0x43c   : > { %876 = vrot.lane.b32.xlu1 %v847_v10, %s1362_s29  ;;  %873 = vrot.lane.b32.xlu0 %v841_v11, %s1350_s25 }
 0x440   : > { %870 = vrot.lane.b32.xlu1 %v854_v3, %s1363_s30  ;;  %867 = vrot.lane.b32.xlu0 %v847_v10, %s1364_s12 }
 0x444   : > { %864 = vrot.lane.b32.xlu1 %v841_v11, %s1365_s13  ;;  %860 = vrot.lane.b32.xlu0 %v854_v3, %s1366_s14 }
 0x448   : > { %938 = vperm.xlu1 %1278, %v935_v12   ;;  %856 = vrot.lane.b32.xlu0 %v847_v10, %s1367_s15 }
 0x44c   : > { %945 = vperm.xlu0 %1279, %v942_v13  }
 0x4aa   : > { %v880_v14 = vpop.permute.xlu1 %879 }
 0x4ab   : > { %v886_v15 = vpack.c.bf16 %v880_v14, %v880_v14 }
 0x4ad   : > { %v893_v16 = vsel %vm468_vm0, %v886_v15, 0 }
 0x4ae   : > { %1189 = vmatpush3.bf16.msra.mxu0 %v893_v16  ;;  %v877_v17 = vpop.permute.xlu1 %876  ;;  %v874_v18 = vpop.permute.xlu0 %873 }
 0x4af   : > { %v885_v19 = vpack.c.bf16 %v877_v17, %v874_v18  ;;  %1190 = vmatprep.subr.bf16.mxu0 %v1369_v28 }
 0x4b2   : > { %v871_v20 = vpop.permute.xlu1 %870  ;;  %1191 = vmatpush3.bf16.msra.mxu0 %v885_v19  ;;  %v868_v21 = vpop.permute.xlu0 %867 }
 0x4b3   : > { %v884_v22 = vpack.c.bf16 %v871_v20, %v868_v21  ;;  %1192 = vmatprep.subr.bf16.mxu0 %v1369_v28 }
 0x4b6   : > { %v865_v23 = vpop.permute.xlu1 %864  ;;  %1193 = vmatpush3.bf16.msra.mxu0 %v884_v22  ;;  %v861_v24 = vpop.permute.xlu0 %860 }
 0x4b7   : > { %v883_v25 = vpack.c.bf16 %v865_v23, %v861_v24  ;;  %1194 = vmatprep.subr.bf16.mxu0 %v1369_v28 }
 0x4ba   : > { %1195 = vmatpush3.bf16.msra.mxu0 %v883_v25  ;;  %v857_v26 = vpop.permute.xlu0 %856 }
 0x4bb   : > { %v1143_v27 = vpack.c.bf16 %v857_v26, %v840_v9  ;;  %1196 = vmatprep.subr.bf16.mxu0 %v1369_v28 }
 0x4be   : > { %1197 = vmatpush3.bf16.msk.msra.mxu0 %vm1142_vm12, %v1143_v27 }
 0x4bf   : > { %1202 = vmatprep.subr.bf16.mxu0 %v1369_v28 }
 0x4c1   : > { %1199 = vmatmul.mubr.msk.bf16.vlgmr.msra.gmra.mxu0 %vm888_vm13, %v887_v29 }
 0x4c2   : > { %1208 = vmatprep.mubr.msk.bf16.mxu0 %vm1370_vm10, %v1369_v28 }
 0x4c3   : > { %v939_v30 = vpop.permute.xlu1 %938 }
 0x4c7   : > { %v946_v33 = vpop.permute.xlu0 %945 }
 0x581   : > { %v929_v31 = vpop.f32.mrf.mxu0 }
 0x582   : > { %v941_v32 = vmul.f32 %v939_v30, %v929_v31 }
 0x583   : > { %v1200_v34 = vpop.f32.mrf.mxu0 }
 0x584   : > { %v948_v36 = vadd.f32 %v946_v33, %v941_v32 }
 0x585   : > { %v932_v37 = vpop.f32.mrf.mxu0 }
 0x586   : > { %v949_v38 = vmax.f32 %v948_v36, 0.0 }
 0x587   : > { %v1201_v39 = vpop.f32.mrf.mxu0 }
 0x588   : > { %958 = vrot.lane.b32.xlu0 %v949_v38, %s1361_s28  ;;  %v963_v41 = vsel %vm1493_vm5, %v949_v38, 0.0  ;;  %v950_v42 = vsel %vm1485_vm4, %v949_v38, 0.0 }
 0x589   : > { %965 = vrot.lane.b32.xlu1 %v963_v41, %s1361_s28 }
 0x58d   : > { %952 = vrot.lane.b32.xlu1 %v950_v42, %s1361_s28 }
 0x5fa   : > { %v959_v43 = vpop.permute.xlu0 %958 }
 0x5fb   : > { %v961_v44 = vsel %vm672_vm6, 0.0, %v959_v43  ;;  %v966_v46 = vpop.permute.xlu1 %965 }
 0x5fc   : > { %v962_v47 = vsel %vm675_vm7, %v961_v44, 0.0  ;;  %v968_v48 = vsel %vm672_vm6, 0.0, %v966_v46 }
 0x5fd   : > { %v969_v49 = vsel %vm675_vm7, %v968_v48, 0.0  ;;  %984 = vrot.lane.b32.xlu1 %v962_v47, %s1364_s12  ;;  %v971_v50 = vrot.slane %v962_v47, 4 }
 0x5fe   : > { %997 = vrot.lane.b32.xlu0 %v969_v49, %s1368_s16  ;;  %v987_v52 = vrot.slane %v969_v49, 4 }
 0x5ff   : > { %v953_v45 = vpop.permute.xlu1 %952 }
 0x600   : > { %v955_v40 = vsel %vm672_vm6, 0.0, %v953_v45 }
 0x601   : > { %v956_v51 = vsel %vm675_vm7, %v955_v40, 0.0 }
 0x602   : > { %994 = vrot.lane.b32.xlu0 %v971_v50, %s1362_s29  ;;  %991 = vrot.lane.b32.xlu1 %v956_v51, %s1350_s25  ;;  %v980_v53 = vrot.slane %v956_v51, 4 }
 0x606   : > { %988 = vrot.lane.b32.xlu0 %v987_v52, %s1363_s30  ;;  %972 = vrot.lane.b32.xlu1 %v971_v50, %s1367_s15 }
 0x60a   : > { %976 = vrot.lane.b32.xlu0 %v969_v49, %s1366_s14  ;;  %981 = vrot.lane.b32.xlu1 %v980_v53, %s1365_s13 }
 0x66f   : > { %v985_v54 = vpop.permute.xlu1 %984 }
 0x670   : > { %v998_v55 = vpop.permute.xlu0 %997 }
 0x671   : > { %v1006_v56 = vpack.c.bf16 %v998_v55, %v998_v55 }
 0x673   : > { %v1014_v57 = vsel %vm1012_vm14, %v1006_v56, 0 }
 0x674   : > { %1203 = vmatpush3.bf16.msra.mxu0 %v1014_v57  ;;  %v995_v58 = vpop.permute.xlu0 %994  ;;  %v992_v59 = vpop.permute.xlu1 %991 }
 0x675   : > { %1204 = vmatprep.subr.bf16.mxu0 %v1369_v28  ;;  %v1003_v61 = vsel %vm468_vm0, %v992_v59, %v995_v58 }
 0x678   : > { %v989_v7 = vpop.permute.xlu0 %988  ;;  %v973_v60 = vpop.permute.xlu1 %972 }
 0x679   : > { %v1002_v62 = vsel %vm468_vm0, %v985_v54, %v989_v7  ;;  %v1000_v2 = vsel %vm468_vm0, %v956_v51, %v973_v60 }
 0x67a   : > { %v1005_v63 = vpack.c.bf16 %v1003_v61, %v1002_v62 }
 0x67c   : > { %v977_v0 = vpop.permute.xlu0 %976  ;;  %1205 = vmatpush3.bf16.msra.mxu0 %v1005_v63  ;;  %v982_v1 = vpop.permute.xlu1 %981 }
 0x67d   : > { %v1001_v3 = vsel %vm468_vm0, %v977_v0, %v982_v1  ;;  %1206 = vmatprep.subr.bf16.mxu0 %v1369_v28 }
 0x67e   : > { %v1004_v4 = vpack.c.bf16 %v1001_v3, %v1000_v2 }
 0x680   : > { %1207 = vmatpush3.bf16.msra.mxu0 %v1004_v4 }
 0x683   : > { %1209 = vmatmul.mubr.msk.bf16.vlgmr.msra.gmra.mxu0 %vm1008_vm15, %v1007_v5 }
 0x743   : > { %v1050_v6 = vpop.f32.mrf.mxu0 }
 0x744   : > { %v1057_v8 = vrot.slane %v1050_v6, 4 }
 0x745   : > { %v1210_v9 = vpop.f32.mrf.mxu0 }
 0x746   : > { %v1059_v10 = vsel %vm468_vm0, %v929_v31, %v1057_v8 }
 0x747   : > { %v1061_v11 = vadd.f32 %v1059_v10, %v1482_v35  ;;  %v1053_v12 = vpop.f32.mrf.mxu0 }
 0x749   : > { %1063 = vst.msk [vmem:[%s1560_s20 + $0x8] sm:$0xff] %vm776_vm8, %v1061_v11  ;;  %v1211_v13 = vpop.f32.mrf.mxu0 }
 0x74a PF: > { %s21_s17 = sadd.s32 1, %s1348_s17  }
 0x74b   : > { %p18_p4 = scmp.ge.s32.totalorder %s21_s17, 4  }
 0x74d   :  { %20 = sbr.rel (!%p18_p4) target bundleno = 1 (0x1), region = 94 }

// kernel: hourglass_forward.8
= control target key start
LH: loop header
LB: loop body
LE: loop exit
PB: predicated region body
PF: predicated region fallthrough
CT: control target
= control target key end

     0   :  { %s1716_s17 = smov 0   ;;  %s1961_s0 = inlined_call_operand.vmem [shape: f32[2,16,256], index: 0, kind: input, shape index: {}]   ;;  %s1962_s1 = inlined_call_operand.vmem [shape: bf16[16,8], index: 1, kind: input, shape index: {}]   ;;  %s1963_s2 = inlined_call_operand.vmem [shape: bf16[8,144], index: 2, kind: input, shape index: {}]   ;;  %s1964_s3 = inlined_call_operand.vmem [shape: f32[16,1], index: 3, kind: input, shape index: {}]   ;;  %s1965_s4 = inlined_call_operand.vmem [shape: f32[16,1], index: 4, kind: input, shape index: {}]   ;;  %s1966_s5 = inlined_call_operand.vmem [shape: bf16[4,72], index: 5, kind: input, shape index: {}]   ;;  %s1967_s6 = inlined_call_operand.vmem [shape: f32[8,1], index: 6, kind: input, shape index: {}]   ;;  %s1968_s7 = inlined_call_operand.vmem [shape: f32[8,1], index: 7, kind: input, shape index: {}]   ;;  %s1969_s8 = inlined_call_operand.vmem [shape: bf16[4,36], index: 8, kind: input, shape index: {}]   ;;  %s1970_s9 = inlined_call_operand.vmem [shape: f32[4,1], index: 9, kind: input, shape index: {}]   ;;  %s1971_s10 = inlined_call_operand.vmem [shape: f32[4,1], index: 10, kind: input, shape index: {}]   ;;  %s1972_s11 = inlined_call_operand.vmem [shape: f32[2,16,64], index: 11, kind: output, shape index: {}]  }
   0x1 LB: > { %s1333_s18 = sadd.s32 4294967295, %s1631_s17   ;;  %p1337_p0 = scmp.ge.s32.totalorder %s1631_s17, 1  ;;  %s1631_s17 = sphi %s1716_s17, %s21_s17  }
   0x2   : > { %p337_p1 = scmp.lt.s32.totalorder %s1631_s17, 3 }
   0x4   : > { %p338_p2 = pnand %p1337_p0, %p337_p1 }
   0x5   : > { %p377_p3 = scmp.lt.s32.totalorder (!%p338_p2), %s1333_s18, 1  ;;  %s1633_s25 = smov (!%p338_p2), 112  }
   0x6   : > { %341 = sbr.rel (%p338_p2) target bundleno = 1898 (0x76a), region = 64  ;;  %s1634_s26 = smov (!%p338_p2), 80  }
   0x7   : > { %s1635_s27 = smov (!%p338_p2), 96   ;;  %s1636_s28 = smov (!%p338_p2), 64  }
   0x8   : > { %s1637_s29 = smov (!%p338_p2), 48   ;;  %s1638_s30 = smov (!%p338_p2), 32  }
   0x9   : > { %s1639_s12 = smov (!%p338_p2), 16   ;;  %s1641_s23 = smov (!%p338_p2), 8  }
   0xa   : > { %s1649_s13 = smov (!%p338_p2), 120   ;;  %s1650_s14 = smov (!%p338_p2), 126  }
   0xb   : > { %v1622_v0 = vld [vmem:[%s1962_s1] sm:$0xff]   ;;  %s1978_s18 = smov (!%p377_p3, %s1333_s18), 1  ;;  %vm504_vm0 = vcmask 130048   ;;  %v1640_v10 = vmov 0   ;;  %vm818_vm1 = vcmask 64512   ;;  %vm823_vm2 = vcmask 195584  }
   0xc   : > { %1401 = vmatprep.subr.bf16.mxu0 %v1622_v0  ;;  %s1372_s21 = sshll.u32 %s1978_s18, 5  ;;  %v843_v9 = vld [vmem:[%s1964_s3] sm:$0xff]  ;;  %1560 = vset.pattern.permute.xlu0 %v1640_v10  ;;  %vm826_vm3 = vcmask 261120   ;;  %vm829_vm4 = vcmask 326656   ;;  %vm832_vm5 = vcmask 392192   ;;  %vm835_vm6 = vcmask 457728  }
   0xd   : > { %1402 = vmatpush3.bf16.msra.mxu0 %v1622_v0  ;;  %s381_s24 = scalar_lea.vmem %s1961_s0, %s1372_s21  ;;  %1561 = vset.pattern.permute.xlu1 %v1640_v10  ;;  %vm885_vm9 = vcmask 72704   ;;  %vm888_vm10 = vcmask 596992   ;;  %s1651_s15 = smov 127   ;;  %vm1275_vm12 = vcmask 523264   ;;  %vm1654_vm13 = vmmov 0  }
   0xe   : > { %v388_v1 = vld [vmem:[%s381_s24] sm:$0xff]  ;;  %v390_v2 = vld [vmem:[%s381_s24 + $0x10] sm:$0xff]  ;;  %v1735_v5 = vld [vmem:[%s381_s24 + $0x8] sm:$0xff]  ;;  %992 = vmatprep.subr.bf16.mxu1 %v1640_v10  ;;  %s1652_s16 = smov 110   ;;  %vm1104_vm14 = vcmask 1043456   ;;  %vm1655_vm15 = vmmov 1  }
   0xf   : > { %v1490_v3 = vpack.i.bf16 %v390_v2, %v388_v1  ;;  %v482_v4 = vpack.c.bf16 %v390_v2, %v388_v1  ;;  %v391_v6 = vld [vmem:[%s381_s24 + $0x18] sm:$0xff]  ;;  %s1642_s24 = smov 24   ;;  %vm1361_vm11 = vmpackc.low %vm888_vm10, %vm888_vm10 }
  0x10   : > { %v1525_v7 = vpack.i.bf16 %v391_v6, %v1735_v5  ;;  %v490_v8 = vpack.c.bf16 %v391_v6, %v1735_v5  ;;  %v857_v5 = vld [vmem:[%s1965_s4] sm:$0xff] }
  0x11   : > { %1491 = vrot.lane.b32.xlu0 %v1490_v3, %s1633_s25  ;;  %1501 = vrot.lane.b32.xlu1 %v1490_v3, %s1634_s26 }
  0x12   : > { %1403 = vmatprep.mubr.msk.bf16.mxu0 %vm504_vm0, %v482_v4  ;;  %v858_v4 = vld [vmem:[%s1965_s4 + $0x8] sm:$0xff] }
  0x15   : > { %1496 = vrot.lane.b32.xlu0 %v1490_v3, %s1635_s27  ;;  %1506 = vrot.lane.b32.xlu1 %v1490_v3, %s1636_s28 }
  0x19   : > { %1511 = vrot.lane.b32.xlu0 %v1490_v3, %s1637_s29  ;;  %1516 = vrot.lane.b32.xlu1 %v1490_v3, %s1638_s30 }
  0x1d   : > { %1521 = vrot.lane.b32.xlu0 %v1490_v3, %s1639_s12  ;;  %1526 = vrot.lane.b32.xlu1 %v1525_v7, %s1633_s25  ;;  %v844_v3 = vld [vmem:[%s1964_s3 + $0x8] sm:$0xff] }
  0x21   : > { %1531 = vrot.lane.b32.xlu0 %v1525_v7, %s1635_s27  ;;  %1536 = vrot.lane.b32.xlu1 %v1525_v7, %s1634_s26  ;;  %s1643_s26 = smov 40   ;;  %s1644_s27 = smov 56  }
  0x25   : > { %1541 = vrot.lane.b32.xlu0 %v1525_v7, %s1636_s28  ;;  %1546 = vrot.lane.b32.xlu1 %v1525_v7, %s1637_s29  ;;  %s1645_s28 = smov 9  }
  0x29   : > { %1551 = vrot.lane.b32.xlu0 %v1525_v7, %s1638_s30  ;;  %1556 = vrot.lane.b32.xlu1 %v1525_v7, %s1639_s12 }
  0x2d   : > { %847 = vperm.xlu0 %1560, %v843_v9   ;;  %852 = vperm.xlu1 %1561, %v844_v3  }
  0x31   : > { %866 = vperm.xlu0 %1560, %v858_v4   ;;  %861 = vperm.xlu1 %1561, %v857_v5  }
  0x83   : > { %v1492_v11 = vpop.permute.xlu0 %1491  ;;  %v1502_v12 = vpop.permute.xlu1 %1501 }
  0x84   : > { %v1494_v13 = vunpack.i.h.bf16 %v1492_v11  ;;  %v1493_v14 = vunpack.i.l.bf16 %v1492_v11  ;;  %v1504_v20 = vunpack.i.h.bf16 %v1502_v12  ;;  %v1503_v21 = vunpack.i.l.bf16 %v1502_v12 }
  0x86   : > { %v483_v15 = vpack.c.bf16 %v1494_v13, %v1493_v14  ;;  %v485_v25 = vpack.c.bf16 %v1504_v20, %v1503_v21 }
  0x87   : > { %v1497_v16 = vpop.permute.xlu0 %1496  ;;  %v1507_v17 = vpop.permute.xlu1 %1506 }
  0x88   : > { %1404 = vmatmul.mubr.msk.bf16.vlgmr.msra.gmra.mxu0 %vm504_vm0, %v483_v15  ;;  %v1499_v18 = vunpack.i.h.bf16 %v1497_v16  ;;  %v1498_v19 = vunpack.i.l.bf16 %v1497_v16  ;;  %v1509_v22 = vunpack.i.h.bf16 %v1507_v17  ;;  %v1508_v23 = vunpack.i.l.bf16 %v1507_v17 }
  0x8a   : > { %v484_v24 = vpack.c.bf16 %v1499_v18, %v1498_v19  ;;  %v486_v26 = vpack.c.bf16 %v1509_v22, %v1508_v23 }
  0x8b   : > { %v1512_v27 = vpop.permute.xlu0 %1511  ;;  %v1517_v28 = vpop.permute.xlu1 %1516 }
  0x8c   : > { %1407 = vmatprep.mubr.msk.bf16.mxu0 %vm504_vm0, %v484_v24  ;;  %v1514_v29 = vunpack.i.h.bf16 %v1512_v27  ;;  %v1513_v30 = vunpack.i.l.bf16 %v1512_v27  ;;  %v1519_v31 = vunpack.i.h.bf16 %v1517_v28  ;;  %v1518_v32 = vunpack.i.l.bf16 %v1517_v28 }
  0x8e   : > { %v487_v33 = vpack.c.bf16 %v1514_v29, %v1513_v30  ;;  %v488_v34 = vpack.c.bf16 %v1519_v31, %v1518_v32 }
  0x8f   : > { %v1522_v35 = vpop.permute.xlu0 %1521  ;;  %v1527_v39 = vpop.permute.xlu1 %1526 }
  0x90   : > { %1408 = vmatmul.mubr.msk.bf16.gmra.mxu0 %vm504_vm0, %v485_v25  ;;  %v1524_v36 = vunpack.i.h.bf16 %v1522_v35  ;;  %v1523_v37 = vunpack.i.l.bf16 %v1522_v35  ;;  %v1529_v41 = vunpack.i.h.bf16 %v1527_v39  ;;  %v1528_v42 = vunpack.i.l.bf16 %v1527_v39 }
  0x91   : > { %1411 = vmatprep.mubr.msk.bf16.mxu0 %vm504_vm0, %v486_v26 }
  0x92   : > { %v489_v38 = vpack.c.bf16 %v1524_v36, %v1523_v37  ;;  %v491_v45 = vpack.c.bf16 %v1529_v41, %v1528_v42 }
  0x93   : > { %v1532_v40 = vpop.permute.xlu0 %1531  ;;  %v1537_v47 = vpop.permute.xlu1 %1536 }
  0x94   : > { %v1534_v43 = vunpack.i.h.bf16 %v1532_v40  ;;  %v1533_v44 = vunpack.i.l.bf16 %v1532_v40  ;;  %v1539_v49 = vunpack.i.h.bf16 %v1537_v47  ;;  %v1538_v50 = vunpack.i.l.bf16 %v1537_v47 }
  0x96   : > { %v492_v46 = vpack.c.bf16 %v1534_v43, %v1533_v44  ;;  %v493_v53 = vpack.c.bf16 %v1539_v49, %v1538_v50 }
  0x97   : > { %v1542_v48 = vpop.permute.xlu0 %1541  ;;  %v1547_v55 = vpop.permute.xlu1 %1546 }
  0x98   : > { %1412 = vmatmul.mubr.msk.bf16.gmra.mxu0 %vm504_vm0, %v487_v33  ;;  %v1544_v51 = vunpack.i.h.bf16 %v1542_v48  ;;  %v1543_v52 = vunpack.i.l.bf16 %v1542_v48  ;;  %v1549_v57 = vunpack.i.h.bf16 %v1547_v55  ;;  %v1548_v58 = vunpack.i.l.bf16 %v1547_v55 }
  0x99   : > { %1415 = vmatprep.mubr.msk.bf16.mxu0 %vm504_vm0, %v488_v34 }
  0x9a   : > { %v494_v54 = vpack.c.bf16 %v1544_v51, %v1543_v52  ;;  %v495_v61 = vpack.c.bf16 %v1549_v57, %v1548_v58 }
  0x9b   : > { %v1552_v56 = vpop.permute.xlu0 %1551  ;;  %v1557_v63 = vpop.permute.xlu1 %1556 }
  0x9c   : > { %v1554_v59 = vunpack.i.h.bf16 %v1552_v56  ;;  %v1553_v60 = vunpack.i.l.bf16 %v1552_v56  ;;  %v1559_v0 = vunpack.i.h.bf16 %v1557_v63  ;;  %v1558_v1 = vunpack.i.l.bf16 %v1557_v63 }
  0x9e   : > { %v496_v62 = vpack.c.bf16 %v1554_v59, %v1553_v60  ;;  %v497_v2 = vpack.c.bf16 %v1559_v0, %v1558_v1 }
  0xa0   : > { %1416 = vmatmul.mubr.msk.bf16.gmra.mxu0 %vm504_vm0, %v489_v38 }
  0xa1   : > { %1419 = vmatprep.mubr.msk.bf16.mxu0 %vm504_vm0, %v490_v8 }
  0xa8   : > { %1420 = vmatmul.mubr.msk.bf16.gmra.mxu0 %vm504_vm0, %v491_v45 }
  0xa9   : > { %1423 = vmatprep.mubr.msk.bf16.mxu0 %vm504_vm0, %v492_v46 }
  0xb0   : > { %1424 = vmatmul.mubr.msk.bf16.gmra.mxu0 %vm504_vm0, %v493_v53 }
  0xb1   : > { %1427 = vmatprep.mubr.msk.bf16.mxu0 %vm504_vm0, %v494_v54 }
  0xb8   : > { %1428 = vmatmul.mubr.msk.bf16.gmra.mxu0 %vm504_vm0, %v495_v61 }
  0xb9   : > { %1431 = vmatprep.mubr.msk.bf16.mxu0 %vm504_vm0, %v496_v62 }
  0xc0   : > { %1432 = vmatmul.mubr.msk.bf16.gmra.mxu0 %vm504_vm0, %v497_v2 }
 0x148   : > { %v1405_v6 = vpop.f32.mrf.mxu0 }
 0x149   : > { %v716_v8 = vmul.f32 0.5, %v1405_v6 }
 0x14a   : > { %v587_v7 = vpop.f32.mrf.mxu0 }
 0x14b   : > { %v714_v9 = vmul.f32 0.5, %v587_v7 }
 0x14c   : > { %v1406_v11 = vpop.f32.mrf.mxu0 }
 0x14d   : > { %v1776_v12 = vadd.f32 %v716_v8, %v714_v9  ;;  %v717_v14 = vmul.f32 0.5, %v1406_v11 }
 0x14e   : > { %v590_v13 = vpop.f32.mrf.mxu0 }
 0x14f   : > { %v715_v15 = vmul.f32 0.5, %v590_v13 }
 0x150   : > { %v1409_v16 = vpop.f32.mrf.mxu0 }
 0x151   : > { %v1778_v17 = vadd.f32 %v717_v14, %v715_v15  ;;  %v722_v19 = vmul.f32 0.5, %v1409_v16 }
 0x152   : > { %v603_v18 = vpop.f32.mrf.mxu0 }
 0x153   : > { %v720_v20 = vmul.f32 0.5, %v603_v18 }
 0x154   : > { %v1410_v21 = vpop.f32.mrf.mxu0 }
 0x155   : > { %v724_v22 = vadd.f32 %v722_v19, %v720_v20  ;;  %v723_v24 = vmul.f32 0.5, %v1410_v21 }
 0x156   : > { %v606_v23 = vpop.f32.mrf.mxu0 }
 0x157   : > { %v721_v25 = vmul.f32 0.5, %v606_v23  ;;  %764 = vrot.lane.b32.xlu0 %v724_v22, %s1641_s23 }
 0x158   : > { %v1413_v26 = vpop.f32.mrf.mxu0 }
 0x159   : > { %v725_v27 = vadd.f32 %v723_v24, %v721_v25  ;;  %v728_v29 = vmul.f32 0.5, %v1413_v26  ;;  %v853_v26 = vpop.permute.xlu1 %852 }
 0x15a   : > { %v619_v28 = vpop.f32.mrf.mxu0 }
 0x15b   : > { %v726_v30 = vmul.f32 0.5, %v619_v28  ;;  %766 = vrot.lane.b32.xlu1 %v725_v27, %s1641_s23  ;;  %v848_v27 = vpop.permute.xlu0 %847 }
 0x15c   : > { %v1414_v31 = vpop.f32.mrf.mxu0 }
 0x15d   : > { %v730_v32 = vadd.f32 %v728_v29, %v726_v30  ;;  %v729_v34 = vmul.f32 0.5, %v1414_v31  ;;  %v862_v28 = vpop.permute.xlu1 %861 }
 0x15e   : > { %v622_v33 = vpop.f32.mrf.mxu0 }
 0x15f   : > { %v727_v35 = vmul.f32 0.5, %v622_v33  ;;  %772 = vrot.lane.b32.xlu0 %v730_v32, %s1639_s12  ;;  %v867_v29 = vpop.permute.xlu0 %866 }
 0x160   : > { %v1417_v36 = vpop.f32.mrf.mxu0 }
 0x161   : > { %v731_v37 = vadd.f32 %v729_v34, %v727_v35  ;;  %v734_v39 = vmul.f32 0.5, %v1417_v36 }
 0x162   : > { %v635_v38 = vpop.f32.mrf.mxu0 }
 0x163   : > { %v732_v40 = vmul.f32 0.5, %v635_v38  ;;  %774 = vrot.lane.b32.xlu1 %v731_v37, %s1639_s12  ;;  %s1648_s12 = smov 119  }
 0x164   : > { %v1418_v41 = vpop.f32.mrf.mxu0 }
 0x165   : > { %v736_v42 = vadd.f32 %v734_v39, %v732_v40  ;;  %v735_v44 = vmul.f32 0.5, %v1418_v41 }
 0x166   : > { %v638_v43 = vpop.f32.mrf.mxu0 }
 0x167   : > { %v733_v45 = vmul.f32 0.5, %v638_v43  ;;  %780 = vrot.lane.b32.xlu0 %v736_v42, %s1642_s24 }
 0x168   : > { %v1421_v46 = vpop.f32.mrf.mxu0 }
 0x169   : > { %v737_v47 = vadd.f32 %v735_v44, %v733_v45  ;;  %v740_v49 = vmul.f32 0.5, %v1421_v46  ;;  %v838_v44 = vlaneseq }
 0x16a   : > { %v651_v48 = vpop.f32.mrf.mxu0 }
 0x16b   : > { %v738_v50 = vmul.f32 0.5, %v651_v48  ;;  %782 = vrot.lane.b32.xlu1 %v737_v47, %s1642_s24 }
 0x16c   : > { %v1422_v51 = vpop.f32.mrf.mxu0 }
 0x16d   : > { %v742_v52 = vadd.f32 %v740_v49, %v738_v50  ;;  %v741_v54 = vmul.f32 0.5, %v1422_v51 }
 0x16e   : > { %v654_v53 = vpop.f32.mrf.mxu0 }
 0x16f   : > { %v739_v55 = vmul.f32 0.5, %v654_v53  ;;  %788 = vrot.lane.b32.xlu1 %v742_v52, %s1638_s30  ;;  %v839_v53 = vand.u32 127, %v838_v44 }
 0x170   : > { %v1425_v56 = vpop.f32.mrf.mxu0 }
 0x171   : > { %v743_v57 = vadd.f32 %v741_v54, %v739_v55  ;;  %v746_v59 = vmul.f32 0.5, %v1425_v56 }
 0x172   : > { %v667_v58 = vpop.f32.mrf.mxu0 }
 0x173   : > { %v744_v60 = vmul.f32 0.5, %v667_v58  ;;  %790 = vrot.lane.b32.xlu0 %v743_v57, %s1638_s30  ;;  %s1647_s30 = smov 118  }
 0x174   : > { %v1426_v61 = vpop.f32.mrf.mxu0 }
 0x175   : > { %v748_v62 = vadd.f32 %v746_v59, %v744_v60  ;;  %v747_v0 = vmul.f32 0.5, %v1426_v61  ;;  %v840_v60 = vand.u32 7, %v839_v53 }
 0x176   : > { %v670_v63 = vpop.f32.mrf.mxu0 }
 0x177   : > { %v745_v1 = vmul.f32 0.5, %v670_v63  ;;  %796 = vrot.lane.b32.xlu1 %v748_v62, %s1643_s26  ;;  %vm1806_vm7 = vcmp.le.s32.totalorder %v840_v60, 6  ;;  %vm1814_vm8 = vcmp.ge.s32.totalorder %v840_v60, 1 }
 0x178   : > { %v1429_v2 = vpop.f32.mrf.mxu0 }
 0x179   : > { %v749_v3 = vadd.f32 %v747_v0, %v745_v1  ;;  %v752_v5 = vmul.f32 0.5, %v1429_v2 }
 0x17a   : > { %v683_v4 = vpop.f32.mrf.mxu0 }
 0x17b   : > { %v750_v6 = vmul.f32 0.5, %v683_v4  ;;  %798 = vrot.lane.b32.xlu0 %v749_v3, %s1643_s26  ;;  %s1373_s26 = sshll.u32 %s1978_s18, 4 }
 0x17c   : > { %v1430_v7 = vpop.f32.mrf.mxu0  ;;  %s1880_s20 = scalar_lea.vmem %s1972_s11, %s1373_s26 }
 0x17d   : > { %v754_v8 = vadd.f32 %v752_v5, %v750_v6  ;;  %v753_v11 = vmul.f32 0.5, %v1430_v7 }
 0x17e   : > { %v686_v9 = vpop.f32.mrf.mxu0 }
 0x17f   : > { %v751_v13 = vmul.f32 0.5, %v686_v9  ;;  %804 = vrot.lane.b32.xlu1 %v754_v8, %s1637_s29 }
 0x180   : > { %v1433_v14 = vpop.f32.mrf.mxu0 }
 0x181   : > { %v755_v15 = vadd.f32 %v753_v11, %v751_v13  ;;  %v758_v18 = vmul.f32 0.5, %v1433_v14 }
 0x182   : > { %v699_v16 = vpop.f32.mrf.mxu0 }
 0x183   : > { %v756_v19 = vmul.f32 0.5, %v699_v16  ;;  %806 = vrot.lane.b32.xlu0 %v755_v15, %s1637_s29  ;;  %s1646_s29 = smov 111  }
 0x184   : > { %v1434_v20 = vpop.f32.mrf.mxu0 }
 0x185   : > { %v760_v21 = vadd.f32 %v758_v18, %v756_v19  ;;  %v759_v23 = vmul.f32 0.5, %v1434_v20 }
 0x186   : > { %v702_v22 = vpop.f32.mrf.mxu0 }
 0x187   : > { %v757_v24 = vmul.f32 0.5, %v702_v22  ;;  %812 = vrot.lane.b32.xlu1 %v760_v21, %s1644_s27 }
 0x189   : > { %v761_v25 = vadd.f32 %v759_v23, %v757_v24 }
 0x18b   : > { %814 = vrot.lane.b32.xlu0 %v761_v25, %s1644_s27 }
 0x1c9   : > { %v765_v32 = vpop.permute.xlu0 %764 }
 0x1ca   : > { %v819_v39 = vsel %vm818_vm1, %v1776_v12, %v765_v32 }
 0x1cd   : > { %v767_v30 = vpop.permute.xlu1 %766 }
 0x1ce   : > { %v820_v46 = vsel %vm818_vm1, %v1778_v17, %v767_v30  ;;  %vm1100_vm1 = vcmask 588800  }
 0x1d1   : > { %v773_v34 = vpop.permute.xlu0 %772 }
 0x1d2   : > { %v821_v40 = vsel %vm504_vm0, %v819_v39, %v773_v34  ;;  %v1039_v39 = vld [vmem:[%s1968_s7] sm:$0xff] }
 0x1d5   : > { %v775_v31 = vpop.permute.xlu1 %774 }
 0x1d6   : > { %v822_v48 = vsel %vm504_vm0, %v820_v46, %v775_v31 }
 0x1d9   : > { %v781_v35 = vpop.permute.xlu0 %780 }
 0x1da   : > { %v824_v43 = vsel %vm823_vm2, %v821_v40, %v781_v35  ;;  %v982_v40 = vld [vmem:[%s1963_s2] sm:$0xff] }
 0x1dd   : > { %v783_v33 = vpop.permute.xlu1 %782 }
 0x1de   : > { %v825_v51 = vsel %vm823_vm2, %v822_v48, %v783_v33  ;;  %vm1225_vm2 = vcmask 1041408  }
 0x1e1   : > { %v789_v36 = vpop.permute.xlu1 %788 }
 0x1e2   : > { %v827_v45 = vsel %vm826_vm3, %v824_v43, %v789_v36 }
 0x1e5   : > { %v791_v37 = vpop.permute.xlu0 %790 }
 0x1e6   : > { %v828_v54 = vsel %vm826_vm3, %v825_v51, %v791_v37  ;;  %vm1221_vm3 = vcmask 293888  }
 0x1e9   : > { %v797_v38 = vpop.permute.xlu1 %796 }
 0x1ea   : > { %v830_v47 = vsel %vm829_vm4, %v827_v45, %v797_v38  ;;  %v1032_v38 = vld [vmem:[%s1967_s6] sm:$0xff] }
 0x1ed   : > { %v799_v41 = vpop.permute.xlu0 %798 }
 0x1ee   : > { %v831_v17 = vsel %vm829_vm4, %v828_v54, %v799_v41  ;;  %v1360_v41 = vcombine.high %v982_v40, %v982_v40 }
 0x1f0   : > { %1364 = vmatprep.mubr.msk.bf16.mxu1 %vm504_vm0, %v1360_v41  ;;  %vm1365_vm0 = vmpackc.low %vm1655_vm15, %vm888_vm10 }
 0x1f1   : > { %v805_v42 = vpop.permute.xlu1 %804 }
 0x1f2   : > { %v833_v12 = vsel %vm832_vm5, %v830_v47, %v805_v42 }
 0x1f5   : > { %v807_v49 = vpop.permute.xlu0 %806 }
 0x1f6   : > { %v834_v56 = vsel %vm832_vm5, %v831_v17, %v807_v49 }
 0x1f9   : > { %v813_v50 = vpop.permute.xlu1 %812 }
 0x1fa   : > { %v1796_v52 = vsel %vm835_vm6, %v833_v12, %v813_v50 }
 0x1fb   : > { %v855_v55 = vmul.f32 %v848_v27, %v1796_v52 }
 0x1fd   : > { %v869_v57 = vadd.f32 %v862_v28, %v855_v55  ;;  %v815_v58 = vpop.permute.xlu0 %814 }
 0x1fe   : > { %v1803_v59 = vsel %vm835_vm6, %v834_v56, %v815_v58 }
 0x1ff   : > { %v856_v61 = vmul.f32 %v853_v26, %v1803_v59  ;;  %v871_v62 = vmax.f32 %v869_v57, 0.0 }
 0x201   : > { %v870_v63 = vadd.f32 %v867_v29, %v856_v61  ;;  %v875_v3 = vsel %vm1806_vm7, %v871_v62, 0.0  ;;  %v905_v8 = vsel %vm1814_vm8, %v871_v62, 0.0 }
 0x203   : > { %v872_v1 = vmax.f32 %v870_v63, 0.0 }
 0x205   : > { %v1562_v2 = vpack.i.bf16 %v872_v1, %v871_v62  ;;  %v876_v4 = vsel %vm1806_vm7, %v872_v1, 0.0  ;;  %v906_v7 = vsel %vm1814_vm8, %v872_v1, 0.0 }
 0x206   : > { %v1567_v6 = vpack.i.bf16 %v876_v4, %v875_v3  ;;  %v1572_v9 = vpack.i.bf16 %v906_v7, %v905_v8 }
 0x207   : > { %1563 = vrot.lane.b32.xlu1 %v1562_v2, %s1645_s28 }
 0x208   : > { %1568 = vrot.lane.b32.xlu0 %v1567_v6, %s1645_s28 }
 0x20b   : > { %1573 = vrot.lane.b32.xlu1 %v1572_v9, %s1645_s28 }
 0x279   : > { %v1564_v11 = vpop.permute.xlu1 %1563 }
 0x27a   : > { %v1566_v13 = vunpack.i.h.bf16 %v1564_v11  ;;  %v1565_v14 = vunpack.i.l.bf16 %v1564_v11  ;;  %v1569_v15 = vpop.permute.xlu0 %1568 }
 0x27b   : > { %v1571_v16 = vunpack.i.h.bf16 %v1569_v15  ;;  %v1570_v18 = vunpack.i.l.bf16 %v1569_v15 }
 0x27c   : > { %v900_v19 = vsel %vm885_vm9, 0.0, %v1566_v13  ;;  %v899_v20 = vsel %vm885_vm9, 0.0, %v1565_v14  ;;  %v1359_v14 = vcombine.low %v982_v40, %v982_v40 }
 0x27d   : > { %v902_v21 = vsel %vm888_vm10, %v900_v19, 0.0  ;;  %v901_v22 = vsel %vm888_vm10, %v899_v20, 0.0  ;;  %v1830_v23 = vsel %vm885_vm9, 0.0, %v1571_v16  ;;  %v1833_v24 = vsel %vm885_vm9, 0.0, %v1570_v18  ;;  %v1574_v25 = vpop.permute.xlu1 %1573 }
 0x27e   : > { %v890_v26 = vsel %vm888_vm10, %v1830_v23, 0.0  ;;  %v889_v27 = vsel %vm888_vm10, %v1833_v24, 0.0  ;;  %v1362_v28 = vpack.c.bf16 %v1830_v23, %v1833_v24  ;;  %v1576_v29 = vunpack.i.h.bf16 %v1574_v25 }
 0x27f   : > { %v1575_v30 = vunpack.i.l.bf16 %v1574_v25  ;;  %v1577_v31 = vpack.i.bf16 %v902_v21, %v901_v22  ;;  %v1582_v32 = vpack.i.bf16 %v890_v26, %v889_v27 }
 0x280   : > { %v916_v33 = vsel %vm885_vm9, 0.0, %v1576_v29 }
 0x281   : > { %v918_v34 = vsel %vm888_vm10, %v916_v33, 0.0  ;;  %v915_v35 = vsel %vm885_vm9, 0.0, %v1575_v30  ;;  %1578 = vrot.lane.b32.xlu0 %v1577_v31, %s1646_s29  ;;  %1583 = vrot.lane.b32.xlu1 %v1582_v32, %s1633_s25 }
 0x282   : > { %v917_v36 = vsel %vm888_vm10, %v915_v35, 0.0 }
 0x283   : > { %v1587_v37 = vpack.i.bf16 %v918_v34, %v917_v36 }
 0x285   : > { %1588 = vrot.lane.b32.xlu0 %v1587_v37, %s1647_s30  ;;  %1593 = vrot.lane.b32.xlu1 %v1577_v31, %s1648_s12 }
 0x289   : > { %1598 = vrot.lane.b32.xlu0 %v1582_v32, %s1649_s13  ;;  %1603 = vrot.lane.b32.xlu1 %v1587_v37, %s1650_s14 }
 0x28d   : > { %1608 = vrot.lane.b32.xlu0 %v1577_v31, %s1651_s15  ;;  %1613 = vrot.lane.b32.xlu1 %v1587_v37, %s1652_s16 }
 0x291   : > { %1035 = vperm.xlu0 %1560, %v1032_v38   ;;  %1042 = vperm.xlu1 %1561, %v1039_v39   ;;  %v1148_v38 = vld [vmem:[%s1970_s9] sm:$0xf] }
 0x292   : > { %v1155_v39 = vld [vmem:[%s1971_s10] sm:$0xf] }
 0x2f3   : > { %v1579_v42 = vpop.permute.xlu0 %1578  ;;  %v1584_v43 = vpop.permute.xlu1 %1583 }
 0x2f4   : > { %v1581_v44 = vunpack.i.h.bf16 %v1579_v42  ;;  %v1580_v45 = vunpack.i.l.bf16 %v1579_v42  ;;  %v1586_v46 = vunpack.i.h.bf16 %v1584_v43  ;;  %v1585_v47 = vunpack.i.l.bf16 %v1584_v43 }
 0x2f6   : > { %v980_v48 = vpack.c.bf16 %v1581_v44, %v1580_v45  ;;  %v979_v49 = vpack.c.bf16 %v1586_v46, %v1585_v47 }
 0x2f7   : > { %v1589_v12 = vpop.permute.xlu0 %1588  ;;  %v1594_v53 = vpop.permute.xlu1 %1593 }
 0x2f8   : > { %993 = vmatpush1.bf16.msra.mxu1 %v980_v48  ;;  %v1591_v50 = vunpack.i.h.bf16 %v1589_v12  ;;  %v1590_v51 = vunpack.i.l.bf16 %v1589_v12  ;;  %v1596_v55 = vunpack.i.h.bf16 %v1594_v53  ;;  %v1595_v17 = vunpack.i.l.bf16 %v1594_v53 }
 0x2f9   : > { %994 = vmatprep.subr.bf16.mxu1 %v1640_v10 }
 0x2fa   : > { %v978_v54 = vpack.c.bf16 %v1591_v50, %v1590_v51  ;;  %v977_v57 = vpack.c.bf16 %v1596_v55, %v1595_v17 }
 0x2fb   : > { %v1599_v56 = vpop.permute.xlu0 %1598  ;;  %v1604_v61 = vpop.permute.xlu1 %1603 }
 0x2fc   : > { %995 = vmatpush1.bf16.msra.mxu1 %v979_v49  ;;  %v1601_v58 = vunpack.i.h.bf16 %v1599_v56  ;;  %v1600_v60 = vunpack.i.l.bf16 %v1599_v56  ;;  %v1606_v63 = vunpack.i.h.bf16 %v1604_v61  ;;  %v1605_v1 = vunpack.i.l.bf16 %v1604_v61 }
 0x2fd   : > { %996 = vmatprep.subr.bf16.mxu1 %v1640_v10 }
 0x2fe   : > { %v976_v62 = vpack.c.bf16 %v1601_v58, %v1600_v60  ;;  %v975_v3 = vpack.c.bf16 %v1606_v63, %v1605_v1 }
 0x2ff   : > { %v1609_v2 = vpop.permute.xlu0 %1608  ;;  %v1614_v8 = vpop.permute.xlu1 %1613 }
 0x300   : > { %997 = vmatpush1.bf16.msra.mxu1 %v978_v54  ;;  %v1611_v4 = vunpack.i.h.bf16 %v1609_v2  ;;  %v1610_v6 = vunpack.i.l.bf16 %v1609_v2  ;;  %v1616_v9 = vunpack.i.h.bf16 %v1614_v8  ;;  %v1615_v11 = vunpack.i.l.bf16 %v1614_v8  ;;  %v1099_v54 = vld [vmem:[%s1966_s5] sm:$0x3] }
 0x301   : > { %998 = vmatprep.subr.bf16.mxu1 %v1640_v10 }
 0x302   : > { %v974_v7 = vpack.c.bf16 %v1611_v4, %v1610_v6  ;;  %v981_v13 = vpack.c.bf16 %v1616_v9, %v1615_v11 }
 0x304   : > { %999 = vmatpush1.bf16.msra.mxu1 %v977_v57 }
 0x305   : > { %1000 = vmatprep.subr.bf16.mxu1 %v1640_v10 }
 0x308   : > { %1001 = vmatpush1.bf16.msra.mxu1 %v976_v62 }
 0x309   : > { %1002 = vmatprep.subr.bf16.mxu1 %v1640_v10 }
 0x30c   : > { %1003 = vmatpush1.bf16.msra.mxu1 %v975_v3  ;;  %v1036_v15 = vpop.permute.xlu0 %1035  ;;  %v1043_v20 = vpop.permute.xlu1 %1042 }
 0x30d   : > { %1004 = vmatprep.subr.bf16.mxu1 %v1640_v10 }
 0x310   : > { %1005 = vmatpush1.bf16.msra.mxu1 %v974_v7 }
 0x311   : > { %1006 = vmatprep.subr.bf16.mxu1 %v1640_v10 }
 0x314   : > { %1363 = vmatpush1.bf16.msk.msra.mxu1 %vm1361_vm11, %v1362_v28 }
 0x315   : > { %1022 = vmatprep.subr.bf16.mxu1 %v1640_v10 }
 0x318   : > { %1023 = vmatpush2.bf16.msra.mxu1 %v981_v13 }
 0x31b   : > { %1025 = vmatmul.mubr.bf16.vlgmr.msra.gmra.mxu1 %v1359_v14 }
 0x3db   : > { %v1026_v16 = vpop.f32.mrf.mxu1 }
 0x3dc   : > { %v1038_v18 = vmul.f32 %v1036_v15, %v1026_v16  ;;  %v1273_v19 = vadd.f32 %v1026_v16, %v1796_v52  ;;  %v1653_v52 = vmov 0.0  }
 0x3dd   : > { %v1028_v21 = vpop.f32.mrf.mxu1  ;;  %1435 = vmatprep.subr.bf16.mxu1 %v1653_v52  ;;  %1449 = vmatprep.subr.bf16.mxu0 %v1653_v52 }
 0x3de   : > { %v1045_v10 = vadd.f32 %v1043_v20, %v1038_v18  ;;  %1276 = vst.msk [vmem:[%s1880_s20] sm:$0xff] %vm1275_vm12, %v1273_v19  ;;  %1445 = vmatprep.mubr.msk.bf16.mxu1 %vm1654_vm13, %v1653_v52  ;;  %1455 = vmatprep.mubr.msk.bf16.mxu0 %vm1654_vm13, %v1653_v52 }
 0x3df   : > { %v1029_v22 = vpop.f32.mrf.mxu1 }
 0x3e0   : > { %v1046_v23 = vmax.f32 %v1045_v10, 0.0 }
 0x3e1   : > { %v1030_v24 = vpop.f32.mrf.mxu1 }
 0x3e2   : > { %v1060_v25 = vsel %vm1814_vm8, %v1046_v23, 0.0  ;;  %v1047_v26 = vsel %vm1806_vm7, %v1046_v23, 0.0 }
 0x3e3   : > { %1062 = vrot.lane.b32.xlu0 %v1060_v25, %s1645_s28  ;;  %v1617_v27 = vpack.i.bf16 %v1046_v23, %v1047_v26 }
 0x3e5   : > { %1618 = vrot.lane.b32.xlu1 %v1617_v27, %s1645_s28 }
 0x455   : > { %v1063_v28 = vpop.permute.xlu0 %1062 }
 0x456   : > { %v1065_v29 = vsel %vm885_vm9, 0.0, %v1063_v28 }
 0x457   : > { %v1066_v30 = vsel %vm888_vm10, %v1065_v29, 0.0  ;;  %v1619_v31 = vpop.permute.xlu1 %1618 }
 0x458   : > { %v1621_v32 = vunpack.i.h.bf16 %v1619_v31  ;;  %v1620_v33 = vunpack.i.l.bf16 %v1619_v31  ;;  %1091 = vrot.lane.b32.xlu0 %v1066_v30, %s1652_s16 }
 0x45a   : > { %v1058_v34 = vsel %vm885_vm9, 0.0, %v1621_v32  ;;  %v1052_v35 = vsel %vm885_vm9, 0.0, %v1620_v33  ;;  %v1220_v32 = vld [vmem:[%s1969_s8] sm:$0x3] }
 0x45b   : > { %v1059_v36 = vsel %vm888_vm10, %v1058_v34, 0.0  ;;  %v1053_v37 = vsel %vm888_vm10, %v1052_v35, 0.0 }
 0x45c   : > { %1088 = vrot.lane.b32.xlu0 %v1059_v36, %s1646_s29  ;;  %1085 = vrot.lane.b32.xlu1 %v1053_v37, %s1633_s25 }
 0x460   : > { %1082 = vrot.lane.b32.xlu0 %v1066_v30, %s1647_s30  ;;  %1079 = vrot.lane.b32.xlu1 %v1059_v36, %s1648_s12 }
 0x464   : > { %1076 = vrot.lane.b32.xlu0 %v1053_v37, %s1649_s13  ;;  %1072 = vrot.lane.b32.xlu1 %v1066_v30, %s1650_s14 }
 0x468   : > { %1151 = vperm.xlu0 %1560, %v1148_v38   ;;  %1068 = vrot.lane.b32.xlu1 %v1059_v36, %s1651_s15 }
 0x46c   : > { %1158 = vperm.xlu1 %1561, %v1155_v39  }
 0x4ca   : > { %v1092_v40 = vpop.permute.xlu0 %1091 }
 0x4cb   : > { %v1098_v41 = vpack.c.bf16 %v1092_v40, %v1092_v40 }
 0x4cd   : > { %v1106_v42 = vsel %vm1104_vm14, %v1098_v41, 0 }
 0x4ce   : > { %1436 = vmatpush3.bf16.msra.mxu1 %v1106_v42  ;;  %v1089_v43 = vpop.permute.xlu0 %1088  ;;  %v1086_v44 = vpop.permute.xlu1 %1085 }
 0x4cf   : > { %v1097_v45 = vpack.c.bf16 %v1089_v43, %v1086_v44  ;;  %1437 = vmatprep.subr.bf16.mxu1 %v1653_v52 }
 0x4d2   : > { %v1083_v46 = vpop.permute.xlu0 %1082  ;;  %1438 = vmatpush3.bf16.msra.mxu1 %v1097_v45  ;;  %v1080_v47 = vpop.permute.xlu1 %1079 }
 0x4d3   : > { %v1096_v48 = vpack.c.bf16 %v1083_v46, %v1080_v47  ;;  %1439 = vmatprep.subr.bf16.mxu1 %v1653_v52 }
 0x4d6   : > { %v1077_v12 = vpop.permute.xlu0 %1076  ;;  %1440 = vmatpush3.bf16.msra.mxu1 %v1096_v48  ;;  %v1073_v49 = vpop.permute.xlu1 %1072 }
 0x4d7   : > { %v1095_v50 = vpack.c.bf16 %v1077_v12, %v1073_v49  ;;  %1441 = vmatprep.subr.bf16.mxu1 %v1653_v52 }
 0x4da   : > { %1442 = vmatpush3.bf16.msra.mxu1 %v1095_v50  ;;  %v1069_v51 = vpop.permute.xlu1 %1068 }
 0x4db   : > { %v1366_v53 = vpack.c.bf16 %v1069_v51, %v1052_v35  ;;  %1443 = vmatprep.subr.bf16.mxu1 %v1653_v52 }
 0x4de   : > { %1444 = vmatpush3.bf16.msk.msra.mxu1 %vm1365_vm0, %v1366_v53 }
 0x4e1   : > { %1446 = vmatmul.mubr.msk.bf16.vlgmr.msra.gmra.mxu1 %vm1100_vm1, %v1099_v54 }
 0x4e3   : > { %v1152_v55 = vpop.permute.xlu0 %1151 }
 0x4e7   : > { %v1159_v57 = vpop.permute.xlu1 %1158 }
 0x5a1   : > { %v1142_v17 = vpop.f32.mrf.mxu1 }
 0x5a2   : > { %v1154_v56 = vmul.f32 %v1152_v55, %v1142_v17 }
 0x5a3   : > { %v1447_v58 = vpop.f32.mrf.mxu1 }
 0x5a4   : > { %v1161_v60 = vadd.f32 %v1159_v57, %v1154_v56 }
 0x5a5   : > { %v1145_v61 = vpop.f32.mrf.mxu1 }
 0x5a6   : > { %v1162_v62 = vmax.f32 %v1161_v60, 0.0 }
 0x5a7   : > { %v1448_v63 = vpop.f32.mrf.mxu1 }
 0x5a8   : > { %1171 = vrot.lane.b32.xlu1 %v1162_v62, %s1645_s28  ;;  %v1176_v1 = vsel %vm1814_vm8, %v1162_v62, 0.0  ;;  %v1163_v2 = vsel %vm1806_vm7, %v1162_v62, 0.0 }
 0x5a9   : > { %1178 = vrot.lane.b32.xlu0 %v1176_v1, %s1645_s28 }
 0x5ad   : > { %1165 = vrot.lane.b32.xlu0 %v1163_v2, %s1645_s28 }
 0x61a   : > { %v1172_v3 = vpop.permute.xlu1 %1171 }
 0x61b   : > { %v1174_v4 = vsel %vm885_vm9, 0.0, %v1172_v3  ;;  %v1179_v6 = vpop.permute.xlu0 %1178 }
 0x61c   : > { %v1175_v7 = vsel %vm888_vm10, %v1174_v4, 0.0  ;;  %v1181_v8 = vsel %vm885_vm9, 0.0, %v1179_v6 }
 0x61d   : > { %v1182_v9 = vsel %vm888_vm10, %v1181_v8, 0.0  ;;  %1197 = vrot.lane.b32.xlu0 %v1175_v7, %s1648_s12  ;;  %v1184_v11 = vrot.slane %v1175_v7, 4 }
 0x61e   : > { %1210 = vrot.lane.b32.xlu1 %v1182_v9, %s1652_s16  ;;  %v1200_v14 = vrot.slane %v1182_v9, 4 }
 0x61f   : > { %v1166_v5 = vpop.permute.xlu0 %1165 }
 0x620   : > { %v1168_v0 = vsel %vm885_vm9, 0.0, %v1166_v5 }
 0x621   : > { %v1169_v13 = vsel %vm888_vm10, %v1168_v0, 0.0 }
 0x622   : > { %1207 = vrot.lane.b32.xlu1 %v1184_v11, %s1646_s29  ;;  %1204 = vrot.lane.b32.xlu0 %v1169_v13, %s1633_s25  ;;  %v1193_v15 = vrot.slane %v1169_v13, 4 }
 0x626   : > { %1201 = vrot.lane.b32.xlu1 %v1200_v14, %s1647_s30  ;;  %1185 = vrot.lane.b32.xlu0 %v1184_v11, %s1651_s15 }
 0x62a   : > { %1189 = vrot.lane.b32.xlu1 %v1182_v9, %s1650_s14  ;;  %1194 = vrot.lane.b32.xlu0 %v1193_v15, %s1649_s13 }
 0x68f   : > { %v1198_v16 = vpop.permute.xlu0 %1197 }
 0x690   : > { %v1211_v18 = vpop.permute.xlu1 %1210 }
 0x691   : > { %v1219_v19 = vpack.c.bf16 %v1211_v18, %v1211_v18 }
 0x693   : > { %v1227_v20 = vsel %vm1225_vm2, %v1219_v19, 0 }
 0x694   : > { %1450 = vmatpush3.bf16.msra.mxu0 %v1227_v20  ;;  %v1208_v21 = vpop.permute.xlu1 %1207  ;;  %v1205_v10 = vpop.permute.xlu0 %1204 }
 0x695   : > { %1451 = vmatprep.subr.bf16.mxu0 %v1653_v52  ;;  %v1216_v24 = vsel %vm1104_vm14, %v1205_v10, %v1208_v21 }
 0x698   : > { %v1202_v22 = vpop.permute.xlu1 %1201  ;;  %v1186_v23 = vpop.permute.xlu0 %1185 }
 0x699   : > { %v1215_v25 = vsel %vm1104_vm14, %v1198_v16, %v1202_v22  ;;  %v1213_v29 = vsel %vm1104_vm14, %v1169_v13, %v1186_v23 }
 0x69a   : > { %v1218_v26 = vpack.c.bf16 %v1216_v24, %v1215_v25 }
 0x69c   : > { %v1190_v27 = vpop.permute.xlu1 %1189  ;;  %1452 = vmatpush3.bf16.msra.mxu0 %v1218_v26  ;;  %v1195_v28 = vpop.permute.xlu0 %1194 }
 0x69d   : > { %v1214_v30 = vsel %vm1104_vm14, %v1190_v27, %v1195_v28  ;;  %1453 = vmatprep.subr.bf16.mxu0 %v1653_v52 }
 0x69e   : > { %v1217_v31 = vpack.c.bf16 %v1214_v30, %v1213_v29 }
 0x6a0   : > { %1454 = vmatpush3.bf16.msra.mxu0 %v1217_v31 }
 0x6a3   : > { %1456 = vmatmul.mubr.msk.bf16.vlgmr.msra.gmra.mxu0 %vm1221_vm3, %v1220_v32 }
 0x763   : > { %v1263_v33 = vpop.f32.mrf.mxu0 }
 0x764   : > { %v1270_v34 = vrot.slane %v1263_v33, 4 }
 0x765   : > { %v1457_v35 = vpop.f32.mrf.mxu0 }
 0x766   : > { %v1272_v36 = vsel %vm1104_vm14, %v1142_v17, %v1270_v34 }
 0x767   : > { %v1274_v37 = vadd.f32 %v1272_v36, %v1803_v59  ;;  %v1266_v38 = vpop.f32.mrf.mxu0 }
 0x769   : > { %1277 = vst.msk [vmem:[%s1880_s20 + $0x8] sm:$0xff] %vm1275_vm12, %v1274_v37  ;;  %v1458_v39 = vpop.f32.mrf.mxu0 }
 0x76a PF: > { %s21_s17 = sadd.s32 1, %s1631_s17  }
 0x76b   : > { %p18_p4 = scmp.ge.s32.totalorder %s21_s17, 4  }
 0x76d   :  { %20 = sbr.rel (!%p18_p4) target bundleno = 1 (0x1), region = 94 }

// kernel: hourglass_forward.11
= control target key start
LH: loop header
LB: loop body
LE: loop exit
PB: predicated region body
PF: predicated region fallthrough
CT: control target
= control target key end

     0   :  { %s1077_s13 = smov 0   ;;  %s1272_s0 = inlined_call_operand.vmem [shape: f32[2,16,16], index: 0, kind: input, shape index: {}]   ;;  %s1273_s1 = inlined_call_operand.vmem [shape: bf16[8,144], index: 1, kind: input, shape index: {}]   ;;  %s1274_s2 = inlined_call_operand.vmem [shape: f32[16,1], index: 2, kind: input, shape index: {}]   ;;  %s1275_s3 = inlined_call_operand.vmem [shape: f32[16,1], index: 3, kind: input, shape index: {}]   ;;  %s1276_s4 = inlined_call_operand.vmem [shape: bf16[4,72], index: 4, kind: input, shape index: {}]   ;;  %s1277_s5 = inlined_call_operand.vmem [shape: f32[8,1], index: 5, kind: input, shape index: {}]   ;;  %s1278_s6 = inlined_call_operand.vmem [shape: f32[8,1], index: 6, kind: input, shape index: {}]   ;;  %s1279_s7 = inlined_call_operand.vmem [shape: bf16[4,36], index: 7, kind: input, shape index: {}]   ;;  %s1280_s8 = inlined_call_operand.vmem [shape: f32[4,1], index: 8, kind: input, shape index: {}]   ;;  %s1281_s9 = inlined_call_operand.vmem [shape: f32[4,1], index: 9, kind: input, shape index: {}]   ;;  %s1282_s10 = inlined_call_operand.vmem [shape: f32[2,16,16], index: 10, kind: output, shape index: {}]  }
   0x1 LB: > { %s858_s14 = sadd.s32 4294967295, %s1007_s13   ;;  %p862_p0 = scmp.ge.s32.totalorder %s1007_s13, 1  ;;  %s1007_s13 = sphi %s1077_s13, %s20_s13  }
   0x2   : > { %p312_p1 = scmp.lt.s32.totalorder %s1007_s13, 3 }
   0x4   : > { %p313_p2 = pnand %p862_p0, %p312_p1 }
   0x5   : > { %p350_p3 = scmp.lt.s32.totalorder (!%p313_p2), %s858_s14, 1  ;;  %s1010_s27 = smov (!%p313_p2), 5  }
   0x6   : > { %316 = sbr.rel (%p313_p2) target bundleno = 1528 (0x5f8), region = 60  ;;  %s1011_s28 = smov (!%p313_p2), 119  }
   0x7   : > { %s1012_s29 = smov (!%p313_p2), 120   ;;  %s1013_s30 = smov (!%p313_p2), 122  }
   0x8   : > { %s1014_s11 = smov (!%p313_p2), 123   ;;  %s1015_s12 = smov (!%p313_p2), 124  }
   0x9   : > { %s1016_s15 = smov (!%p313_p2), 126   ;;  %s1017_s16 = smov (!%p313_p2), 127  }
   0xa   : > { %s1018_s17 = smov (!%p313_p2), 118  }
   0xb   : > { %v382_v0 = vld [vmem:[%s1275_s3] sm:$0xff]  ;;  %v1009_v2 = vmov 0   ;;  %v383_v3 = vld [vmem:[%s1275_s3 + $0x8] sm:$0xff]  ;;  %s1288_s14 = smov (!%p350_p3, %s858_s14), 1  ;;  %v363_v5 = vlaneseq  ;;  %vm410_vm2 = vcmask 39936   ;;  %vm413_vm3 = vcmask 171008  }
   0xc   : > { %v368_v1 = vld [vmem:[%s1274_s2] sm:$0xff]  ;;  %938 = vset.pattern.permute.xlu1 %v1009_v2  ;;  %937 = vset.pattern.permute.xlu0 %v1009_v2  ;;  %v369_v4 = vld [vmem:[%s1274_s2 + $0x8] sm:$0xff]  ;;  %s880_s23 = sshll.u32 %s1288_s14, 4  ;;  %vm514_vm4 = vcmask 130048   ;;  %vm869_vm5 = vmpackc.low %vm413_vm3, %vm413_vm3  ;;  %vm1020_vm6 = vmmov 0   ;;  %vm630_vm7 = vcmask 1043456  }
   0xd   : > { %386 = vperm.xlu1 %938, %v382_v0   ;;  %372 = vperm.xlu0 %937, %v368_v1   ;;  %s354_s26 = scalar_lea.vmem %s1272_s0, %s880_s23  ;;  %v364_v9 = vand.u32 127, %v363_v5  ;;  %v558_v54 = vld [vmem:[%s1277_s5] sm:$0xff]  ;;  %s1189_s18 = scalar_lea.vmem %s1282_s10, %s880_s23  ;;  %vm1021_vm8 = vmmov 1   ;;  %vm626_vm10 = vcmask 588800   ;;  %vm751_vm11 = vcmask 1041408  }
   0xe   : > { %518 = vmatprep.subr.bf16.mxu0 %v1009_v2  ;;  %v1108_v6 = vld [vmem:[%s354_s26] sm:$0xff]  ;;  %v1111_v11 = vld [vmem:[%s354_s26 + $0x8] sm:$0xff]  ;;  %vm873_vm9 = vmpackc.low %vm1021_vm8, %vm413_vm3  ;;  %vm747_vm12 = vcmask 293888  }
   0xf   : > { %v365_v14 = vand.u32 3, %v364_v9  ;;  %v565_v55 = vld [vmem:[%s1278_s6] sm:$0xff] }
  0x10   : > { %v507_v56 = vld [vmem:[%s1273_s1] sm:$0xff] }
  0x11   : > { %391 = vperm.xlu1 %938, %v383_v3   ;;  %377 = vperm.xlu0 %937, %v369_v4   ;;  %vm1114_vm0 = vcmp.le.s32.totalorder %v365_v14, 2  ;;  %vm1122_vm1 = vcmp.ge.s32.totalorder %v365_v14, 1  ;;  %v868_v57 = vcombine.high %v507_v56, %v507_v56 }
  0x13   : > { %872 = vmatprep.mubr.msk.bf16.mxu0 %vm514_vm4, %v868_v57 }
  0x88   : > { %v387_v7 = vpop.permute.xlu1 %386  ;;  %v373_v8 = vpop.permute.xlu0 %372 }
  0x89   : > { %v380_v10 = vmul.f32 %v373_v8, %v1108_v6 }
  0x8b   : > { %v394_v12 = vadd.f32 %v387_v7, %v380_v10 }
  0x8c   : > { %v378_v13 = vpop.permute.xlu0 %377  ;;  %v392_v16 = vpop.permute.xlu1 %391 }
  0x8d   : > { %v381_v15 = vmul.f32 %v378_v13, %v1111_v11  ;;  %v396_v17 = vmax.f32 %v394_v12, 0.0 }
  0x8f   : > { %v395_v18 = vadd.f32 %v392_v16, %v381_v15  ;;  %v400_v22 = vsel %vm1114_vm0, %v396_v17, 0.0  ;;  %v430_v27 = vsel %vm1122_vm1, %v396_v17, 0.0 }
  0x91   : > { %v397_v20 = vmax.f32 %v395_v18, 0.0 }
  0x93   : > { %v939_v21 = vpack.i.bf16 %v397_v20, %v396_v17  ;;  %v401_v23 = vsel %vm1114_vm0, %v397_v20, 0.0  ;;  %v431_v26 = vsel %vm1122_vm1, %v397_v20, 0.0 }
  0x94   : > { %v944_v25 = vpack.i.bf16 %v401_v23, %v400_v22  ;;  %v949_v28 = vpack.i.bf16 %v431_v26, %v430_v27 }
  0x95   : > { %940 = vrot.lane.b32.xlu0 %v939_v21, %s1010_s27 }
  0x96   : > { %945 = vrot.lane.b32.xlu1 %v944_v25, %s1010_s27 }
  0x99   : > { %950 = vrot.lane.b32.xlu0 %v949_v28, %s1010_s27 }
 0x107   : > { %v941_v29 = vpop.permute.xlu0 %940 }
 0x108   : > { %v943_v30 = vunpack.i.h.bf16 %v941_v29  ;;  %v942_v31 = vunpack.i.l.bf16 %v941_v29  ;;  %v946_v32 = vpop.permute.xlu1 %945 }
 0x109   : > { %v948_v33 = vunpack.i.h.bf16 %v946_v32  ;;  %v947_v34 = vunpack.i.l.bf16 %v946_v32 }
 0x10a   : > { %v425_v35 = vsel %vm410_vm2, 0.0, %v943_v30  ;;  %v424_v36 = vsel %vm410_vm2, 0.0, %v942_v31  ;;  %v867_v31 = vcombine.low %v507_v56, %v507_v56 }
 0x10b   : > { %v427_v37 = vsel %vm413_vm3, %v425_v35, 0.0  ;;  %v426_v38 = vsel %vm413_vm3, %v424_v36, 0.0  ;;  %v1138_v39 = vsel %vm410_vm2, 0.0, %v948_v33  ;;  %v1141_v40 = vsel %vm410_vm2, 0.0, %v947_v34  ;;  %v951_v41 = vpop.permute.xlu0 %950 }
 0x10c   : > { %v415_v42 = vsel %vm413_vm3, %v1138_v39, 0.0  ;;  %v414_v43 = vsel %vm413_vm3, %v1141_v40, 0.0  ;;  %v870_v44 = vpack.c.bf16 %v1138_v39, %v1141_v40  ;;  %v953_v45 = vunpack.i.h.bf16 %v951_v41 }
 0x10d   : > { %v952_v46 = vunpack.i.l.bf16 %v951_v41  ;;  %v954_v47 = vpack.i.bf16 %v427_v37, %v426_v38  ;;  %v959_v48 = vpack.i.bf16 %v415_v42, %v414_v43 }
 0x10e   : > { %v441_v49 = vsel %vm410_vm2, 0.0, %v953_v45 }
 0x10f   : > { %v443_v50 = vsel %vm413_vm3, %v441_v49, 0.0  ;;  %v440_v51 = vsel %vm410_vm2, 0.0, %v952_v46  ;;  %955 = vrot.lane.b32.xlu1 %v954_v47, %s1011_s28  ;;  %960 = vrot.lane.b32.xlu0 %v959_v48, %s1012_s29 }
 0x110   : > { %v442_v52 = vsel %vm413_vm3, %v440_v51, 0.0 }
 0x111   : > { %v964_v53 = vpack.i.bf16 %v443_v50, %v442_v52 }
 0x113   : > { %965 = vrot.lane.b32.xlu1 %v964_v53, %s1013_s30  ;;  %970 = vrot.lane.b32.xlu0 %v954_v47, %s1014_s11 }
 0x117   : > { %975 = vrot.lane.b32.xlu1 %v959_v48, %s1015_s12  ;;  %980 = vrot.lane.b32.xlu0 %v964_v53, %s1016_s15 }
 0x11b   : > { %985 = vrot.lane.b32.xlu1 %v954_v47, %s1017_s16  ;;  %990 = vrot.lane.b32.xlu0 %v964_v53, %s1018_s17 }
 0x11f   : > { %561 = vperm.xlu1 %938, %v558_v54   ;;  %568 = vperm.xlu0 %937, %v565_v55   ;;  %v674_v54 = vld [vmem:[%s1280_s8] sm:$0xf] }
 0x120   : > { %v681_v55 = vld [vmem:[%s1281_s9] sm:$0xf] }
 0x181   : > { %v956_v58 = vpop.permute.xlu1 %955  ;;  %v961_v59 = vpop.permute.xlu0 %960 }
 0x182   : > { %v958_v60 = vunpack.i.h.bf16 %v956_v58  ;;  %v957_v61 = vunpack.i.l.bf16 %v956_v58  ;;  %v963_v62 = vunpack.i.h.bf16 %v961_v59  ;;  %v962_v63 = vunpack.i.l.bf16 %v961_v59 }
 0x184   : > { %v505_v0 = vpack.c.bf16 %v958_v60, %v957_v61  ;;  %v504_v3 = vpack.c.bf16 %v963_v62, %v962_v63 }
 0x185   : > { %v966_v1 = vpop.permute.xlu1 %965  ;;  %v971_v7 = vpop.permute.xlu0 %970 }
 0x186   : > { %519 = vmatpush1.bf16.msra.mxu0 %v505_v0  ;;  %v968_v4 = vunpack.i.h.bf16 %v966_v1  ;;  %v967_v5 = vunpack.i.l.bf16 %v966_v1  ;;  %v973_v9 = vunpack.i.h.bf16 %v971_v7  ;;  %v972_v10 = vunpack.i.l.bf16 %v971_v7 }
 0x187   : > { %520 = vmatprep.subr.bf16.mxu0 %v1009_v2 }
 0x188   : > { %v503_v8 = vpack.c.bf16 %v968_v4, %v967_v5  ;;  %v502_v13 = vpack.c.bf16 %v973_v9, %v972_v10 }
 0x189   : > { %v976_v12 = vpop.permute.xlu1 %975  ;;  %v981_v16 = vpop.permute.xlu0 %980 }
 0x18a   : > { %521 = vmatpush1.bf16.msra.mxu0 %v504_v3  ;;  %v978_v14 = vunpack.i.h.bf16 %v976_v12  ;;  %v977_v15 = vunpack.i.l.bf16 %v976_v12  ;;  %v983_v18 = vunpack.i.h.bf16 %v981_v16  ;;  %v982_v20 = vunpack.i.l.bf16 %v981_v16 }
 0x18b   : > { %522 = vmatprep.subr.bf16.mxu0 %v1009_v2 }
 0x18c   : > { %v501_v17 = vpack.c.bf16 %v978_v14, %v977_v15  ;;  %v500_v22 = vpack.c.bf16 %v983_v18, %v982_v20 }
 0x18d   : > { %v986_v21 = vpop.permute.xlu1 %985  ;;  %v991_v27 = vpop.permute.xlu0 %990 }
 0x18e   : > { %523 = vmatpush1.bf16.msra.mxu0 %v503_v8  ;;  %v988_v23 = vunpack.i.h.bf16 %v986_v21  ;;  %v987_v25 = vunpack.i.l.bf16 %v986_v21  ;;  %v993_v28 = vunpack.i.h.bf16 %v991_v27  ;;  %v992_v29 = vunpack.i.l.bf16 %v991_v27  ;;  %v625_v8 = vld [vmem:[%s1276_s4] sm:$0x3] }
 0x18f   : > { %524 = vmatprep.subr.bf16.mxu0 %v1009_v2 }
 0x190   : > { %v499_v26 = vpack.c.bf16 %v988_v23, %v987_v25  ;;  %v506_v30 = vpack.c.bf16 %v993_v28, %v992_v29 }
 0x192   : > { %525 = vmatpush1.bf16.msra.mxu0 %v502_v13 }
 0x193   : > { %526 = vmatprep.subr.bf16.mxu0 %v1009_v2 }
 0x196   : > { %527 = vmatpush1.bf16.msra.mxu0 %v501_v17 }
 0x197   : > { %528 = vmatprep.subr.bf16.mxu0 %v1009_v2 }
 0x19a   : > { %529 = vmatpush1.bf16.msra.mxu0 %v500_v22  ;;  %v562_v32 = vpop.permute.xlu1 %561  ;;  %v569_v36 = vpop.permute.xlu0 %568 }
 0x19b   : > { %530 = vmatprep.subr.bf16.mxu0 %v1009_v2 }
 0x19e   : > { %531 = vmatpush1.bf16.msra.mxu0 %v499_v26 }
 0x19f   : > { %532 = vmatprep.subr.bf16.mxu0 %v1009_v2 }
 0x1a2   : > { %871 = vmatpush1.bf16.msk.msra.mxu0 %vm869_vm5, %v870_v44 }
 0x1a3   : > { %548 = vmatprep.subr.bf16.mxu0 %v1009_v2 }
 0x1a6   : > { %549 = vmatpush2.bf16.msra.mxu0 %v506_v30 }
 0x1a9   : > { %551 = vmatmul.mubr.bf16.vlgmr.msra.gmra.mxu0 %v867_v31 }
 0x269   : > { %v552_v33 = vpop.f32.mrf.mxu0 }
 0x26a   : > { %v564_v34 = vmul.f32 %v562_v32, %v552_v33  ;;  %v799_v35 = vadd.f32 %v552_v33, %v1108_v6  ;;  %v1019_v6 = vmov 0.0  }
 0x26b   : > { %v554_v37 = vpop.f32.mrf.mxu0  ;;  %892 = vmatprep.subr.bf16.mxu1 %v1019_v6  ;;  %902 = vmatprep.mubr.msk.bf16.mxu1 %vm1020_vm6, %v1019_v6 }
 0x26c   : > { %v571_v38 = vadd.f32 %v569_v36, %v564_v34  ;;  %801 = vst.msk [vmem:[%s1189_s18] sm:$0xff] %vm514_vm4, %v799_v35 }
 0x26d   : > { %v555_v2 = vpop.f32.mrf.mxu0 }
 0x26e   : > { %v572_v39 = vmax.f32 %v571_v38, 0.0 }
 0x26f   : > { %v556_v40 = vpop.f32.mrf.mxu0 }
 0x270   : > { %v586_v41 = vsel %vm1122_vm1, %v572_v39, 0.0  ;;  %v573_v42 = vsel %vm1114_vm0, %v572_v39, 0.0 }
 0x271   : > { %588 = vrot.lane.b32.xlu1 %v586_v41, %s1010_s27  ;;  %v994_v43 = vpack.i.bf16 %v572_v39, %v573_v42 }
 0x273   : > { %995 = vrot.lane.b32.xlu0 %v994_v43, %s1010_s27 }
 0x2e3   : > { %v589_v44 = vpop.permute.xlu1 %588 }
 0x2e4   : > { %v591_v45 = vsel %vm410_vm2, 0.0, %v589_v44 }
 0x2e5   : > { %v592_v46 = vsel %vm413_vm3, %v591_v45, 0.0  ;;  %v996_v47 = vpop.permute.xlu0 %995 }
 0x2e6   : > { %v998_v48 = vunpack.i.h.bf16 %v996_v47  ;;  %v997_v49 = vunpack.i.l.bf16 %v996_v47  ;;  %617 = vrot.lane.b32.xlu1 %v592_v46, %s1018_s17 }
 0x2e8   : > { %v584_v50 = vsel %vm410_vm2, 0.0, %v998_v48  ;;  %v578_v51 = vsel %vm410_vm2, 0.0, %v997_v49  ;;  %v746_v48 = vld [vmem:[%s1279_s7] sm:$0x3] }
 0x2e9   : > { %v585_v52 = vsel %vm413_vm3, %v584_v50, 0.0  ;;  %v579_v53 = vsel %vm413_vm3, %v578_v51, 0.0 }
 0x2ea   : > { %614 = vrot.lane.b32.xlu1 %v585_v52, %s1011_s28  ;;  %611 = vrot.lane.b32.xlu0 %v579_v53, %s1012_s29 }
 0x2ee   : > { %608 = vrot.lane.b32.xlu1 %v592_v46, %s1013_s30  ;;  %605 = vrot.lane.b32.xlu0 %v585_v52, %s1014_s11 }
 0x2f2   : > { %602 = vrot.lane.b32.xlu1 %v579_v53, %s1015_s12  ;;  %598 = vrot.lane.b32.xlu0 %v592_v46, %s1016_s15 }
 0x2f6   : > { %677 = vperm.xlu1 %938, %v674_v54   ;;  %594 = vrot.lane.b32.xlu0 %v585_v52, %s1017_s16 }
 0x2fa   : > { %684 = vperm.xlu0 %937, %v681_v55  }
 0x358   : > { %v618_v56 = vpop.permute.xlu1 %617 }
 0x359   : > { %v624_v57 = vpack.c.bf16 %v618_v56, %v618_v56 }
 0x35b   : > { %v632_v58 = vsel %vm630_vm7, %v624_v57, 0 }
 0x35c   : > { %893 = vmatpush3.bf16.msra.mxu1 %v632_v58  ;;  %v615_v59 = vpop.permute.xlu1 %614  ;;  %v612_v60 = vpop.permute.xlu0 %611 }
 0x35d   : > { %v623_v61 = vpack.c.bf16 %v615_v59, %v612_v60  ;;  %894 = vmatprep.subr.bf16.mxu1 %v1019_v6 }
 0x360   : > { %v609_v62 = vpop.permute.xlu1 %608  ;;  %895 = vmatpush3.bf16.msra.mxu1 %v623_v61  ;;  %v606_v63 = vpop.permute.xlu0 %605 }
 0x361   : > { %v622_v0 = vpack.c.bf16 %v609_v62, %v606_v63  ;;  %896 = vmatprep.subr.bf16.mxu1 %v1019_v6 }
 0x364   : > { %v603_v1 = vpop.permute.xlu1 %602  ;;  %897 = vmatpush3.bf16.msra.mxu1 %v622_v0  ;;  %v599_v3 = vpop.permute.xlu0 %598 }
 0x365   : > { %v621_v4 = vpack.c.bf16 %v603_v1, %v599_v3  ;;  %898 = vmatprep.subr.bf16.mxu1 %v1019_v6 }
 0x368   : > { %899 = vmatpush3.bf16.msra.mxu1 %v621_v4  ;;  %v595_v5 = vpop.permute.xlu0 %594 }
 0x369   : > { %v874_v7 = vpack.c.bf16 %v595_v5, %v578_v51  ;;  %900 = vmatprep.subr.bf16.mxu1 %v1019_v6 }
 0x36c   : > { %901 = vmatpush3.bf16.msk.msra.mxu1 %vm873_vm9, %v874_v7 }
 0x36d   : > { %906 = vmatprep.subr.bf16.mxu1 %v1019_v6 }
 0x36f   : > { %903 = vmatmul.mubr.msk.bf16.vlgmr.msra.gmra.mxu1 %vm626_vm10, %v625_v8 }
 0x370   : > { %912 = vmatprep.mubr.msk.bf16.mxu1 %vm1020_vm6, %v1019_v6 }
 0x371   : > { %v678_v9 = vpop.permute.xlu1 %677 }
 0x375   : > { %v685_v13 = vpop.permute.xlu0 %684 }
 0x42f   : > { %v668_v10 = vpop.f32.mrf.mxu1 }
 0x430   : > { %v680_v12 = vmul.f32 %v678_v9, %v668_v10 }
 0x431   : > { %v904_v14 = vpop.f32.mrf.mxu1 }
 0x432   : > { %v687_v15 = vadd.f32 %v685_v13, %v680_v12 }
 0x433   : > { %v671_v16 = vpop.f32.mrf.mxu1 }
 0x434   : > { %v688_v17 = vmax.f32 %v687_v15, 0.0 }
 0x435   : > { %v905_v18 = vpop.f32.mrf.mxu1 }
 0x436   : > { %697 = vrot.lane.b32.xlu0 %v688_v17, %s1010_s27  ;;  %v702_v20 = vsel %vm1122_vm1, %v688_v17, 0.0  ;;  %v689_v21 = vsel %vm1114_vm0, %v688_v17, 0.0 }
 0x437   : > { %704 = vrot.lane.b32.xlu1 %v702_v20, %s1010_s27 }
 0x43b   : > { %691 = vrot.lane.b32.xlu1 %v689_v21, %s1010_s27 }
 0x4a8   : > { %v698_v22 = vpop.permute.xlu0 %697 }
 0x4a9   : > { %v700_v23 = vsel %vm410_vm2, 0.0, %v698_v22  ;;  %v705_v25 = vpop.permute.xlu1 %704 }
 0x4aa   : > { %v701_v26 = vsel %vm413_vm3, %v700_v23, 0.0  ;;  %v707_v27 = vsel %vm410_vm2, 0.0, %v705_v25 }
 0x4ab   : > { %v708_v28 = vsel %vm413_vm3, %v707_v27, 0.0  ;;  %723 = vrot.lane.b32.xlu1 %v701_v26, %s1014_s11  ;;  %v710_v29 = vrot.slane %v701_v26, 4 }
 0x4ac   : > { %736 = vrot.lane.b32.xlu0 %v708_v28, %s1018_s17  ;;  %v726_v31 = vrot.slane %v708_v28, 4 }
 0x4ad   : > { %v692_v24 = vpop.permute.xlu1 %691 }
 0x4ae   : > { %v694_v19 = vsel %vm410_vm2, 0.0, %v692_v24 }
 0x4af   : > { %v695_v30 = vsel %vm413_vm3, %v694_v19, 0.0 }
 0x4b0   : > { %733 = vrot.lane.b32.xlu0 %v710_v29, %s1011_s28  ;;  %730 = vrot.lane.b32.xlu1 %v695_v30, %s1012_s29  ;;  %v719_v32 = vrot.slane %v695_v30, 4 }
 0x4b4   : > { %727 = vrot.lane.b32.xlu0 %v726_v31, %s1013_s30  ;;  %711 = vrot.lane.b32.xlu1 %v710_v29, %s1017_s16 }
 0x4b8   : > { %715 = vrot.lane.b32.xlu0 %v708_v28, %s1016_s15  ;;  %720 = vrot.lane.b32.xlu1 %v719_v32, %s1015_s12 }
 0x51d   : > { %v724_v33 = vpop.permute.xlu1 %723 }
 0x51e   : > { %v737_v34 = vpop.permute.xlu0 %736 }
 0x51f   : > { %v745_v35 = vpack.c.bf16 %v737_v34, %v737_v34 }
 0x521   : > { %v753_v36 = vsel %vm751_vm11, %v745_v35, 0 }
 0x522   : > { %907 = vmatpush3.bf16.msra.mxu1 %v753_v36  ;;  %v734_v37 = vpop.permute.xlu0 %733  ;;  %v731_v38 = vpop.permute.xlu1 %730 }
 0x523   : > { %908 = vmatprep.subr.bf16.mxu1 %v1019_v6  ;;  %v742_v40 = vsel %vm630_vm7, %v731_v38, %v734_v37 }
 0x526   : > { %v728_v2 = vpop.permute.xlu0 %727  ;;  %v712_v39 = vpop.permute.xlu1 %711 }
 0x527   : > { %v741_v41 = vsel %vm630_vm7, %v724_v33, %v728_v2  ;;  %v739_v45 = vsel %vm630_vm7, %v695_v30, %v712_v39 }
 0x528   : > { %v744_v42 = vpack.c.bf16 %v742_v40, %v741_v41 }
 0x52a   : > { %v716_v43 = vpop.permute.xlu0 %715  ;;  %909 = vmatpush3.bf16.msra.mxu1 %v744_v42  ;;  %v721_v44 = vpop.permute.xlu1 %720 }
 0x52b   : > { %v740_v46 = vsel %vm630_vm7, %v716_v43, %v721_v44  ;;  %910 = vmatprep.subr.bf16.mxu1 %v1019_v6 }
 0x52c   : > { %v743_v47 = vpack.c.bf16 %v740_v46, %v739_v45 }
 0x52e   : > { %911 = vmatpush3.bf16.msra.mxu1 %v743_v47 }
 0x531   : > { %913 = vmatmul.mubr.msk.bf16.vlgmr.msra.gmra.mxu1 %vm747_vm12, %v746_v48 }
 0x5f1   : > { %v789_v49 = vpop.f32.mrf.mxu1 }
 0x5f2   : > { %v796_v50 = vrot.slane %v789_v49, 4 }
 0x5f3   : > { %v914_v51 = vpop.f32.mrf.mxu1 }
 0x5f4   : > { %v798_v52 = vsel %vm630_vm7, %v668_v10, %v796_v50 }
 0x5f5   : > { %v800_v53 = vadd.f32 %v798_v52, %v1111_v11  ;;  %v792_v54 = vpop.f32.mrf.mxu1 }
 0x5f7   : > { %802 = vst.msk [vmem:[%s1189_s18 + $0x8] sm:$0xff] %vm514_vm4, %v800_v53  ;;  %v915_v55 = vpop.f32.mrf.mxu1 }
 0x5f8 PF: > { %s20_s13 = sadd.s32 1, %s1007_s13  }
 0x5f9   : > { %p17_p4 = scmp.ge.s32.totalorder %s20_s13, 4  }
 0x5fb   :  { %19 = sbr.rel (!%p17_p4) target bundleno = 1 (0x1), region = 90 }

// kernel: hourglass_forward.12
= control target key start
LH: loop header
LB: loop body
LE: loop exit
PB: predicated region body
PF: predicated region fallthrough
CT: control target
= control target key end

     0   :  { %s1481_s21 = smov 0   ;;  %s1737_s0 = inlined_call_operand.vmem [shape: f32[2,16,16], index: 0, kind: input, shape index: {}]   ;;  %s1738_s1 = inlined_call_operand.vmem [shape: bf16[8,144], index: 1, kind: input, shape index: {}]   ;;  %s1739_s2 = inlined_call_operand.vmem [shape: f32[16,1], index: 2, kind: input, shape index: {}]   ;;  %s1740_s3 = inlined_call_operand.vmem [shape: f32[16,1], index: 3, kind: input, shape index: {}]   ;;  %s1741_s4 = inlined_call_operand.vmem [shape: bf16[4,72], index: 4, kind: input, shape index: {}]   ;;  %s1742_s5 = inlined_call_operand.vmem [shape: f32[8,1], index: 5, kind: input, shape index: {}]   ;;  %s1743_s6 = inlined_call_operand.vmem [shape: f32[8,1], index: 6, kind: input, shape index: {}]   ;;  %s1744_s7 = inlined_call_operand.vmem [shape: bf16[4,36], index: 7, kind: input, shape index: {}]   ;;  %s1745_s8 = inlined_call_operand.vmem [shape: f32[4,1], index: 8, kind: input, shape index: {}]   ;;  %s1746_s9 = inlined_call_operand.vmem [shape: f32[4,1], index: 9, kind: input, shape index: {}]   ;;  %s1747_s10 = inlined_call_operand.vmem [shape: bf16[4,8], index: 10, kind: input, shape index: {}]   ;;  %s1748_s11 = inlined_call_operand.vmem [shape: f32[2,16,64], index: 11, kind: input, shape index: {}]   ;;  %s1749_s12 = inlined_call_operand.vmem [shape: f32[2,16,64], index: 12, kind: output, shape index: {}]  }
   0x1 LB: > { %s1195_s22 = sadd.s32 4294967295, %s1393_s21   ;;  %p1199_p0 = scmp.ge.s32.totalorder %s1393_s21, 1  ;;  %s1393_s21 = sphi %s1481_s21, %s22_s21  }
   0x2   : > { %p372_p1 = scmp.lt.s32.totalorder %s1393_s21, 3 }
   0x4   : > { %p373_p2 = pnand %p1199_p0, %p372_p1 }
   0x5   : > { %p419_p3 = scmp.lt.s32.totalorder (!%p373_p2), %s1195_s22, 1  ;;  %s1396_s17 = smov (!%p373_p2), 5  }
   0x6   : > { %376 = sbr.rel (%p373_p2) target bundleno = 1998 (0x7ce), region = 68  ;;  %s1397_s18 = smov (!%p373_p2), 119  }
   0x7   : > { %s1398_s19 = smov (!%p373_p2), 120   ;;  %s1399_s20 = smov (!%p373_p2), 122  }
   0x8   : > { %s1401_s23 = smov (!%p373_p2), 124   ;;  %s1402_s24 = smov (!%p373_p2), 126  }
   0x9   : > { %s1403_s25 = smov (!%p373_p2), 127   ;;  %s1404_s26 = smov (!%p373_p2), 118  }
   0xa   : > { %s1413_s15 = smov (!%p373_p2), 24   ;;  %s1415_s27 = smov (!%p373_p2), 56  }
   0xb   : > { %v456_v0 = vld [vmem:[%s1740_s3] sm:$0xff]  ;;  %v1395_v2 = vmov 0   ;;  %v457_v3 = vld [vmem:[%s1740_s3 + $0x8] sm:$0xff]  ;;  %s1755_s22 = smov (!%p419_p3, %s1195_s22), 1  ;;  %v437_v5 = vlaneseq  ;;  %vm484_vm2 = vcmask 39936   ;;  %vm487_vm3 = vcmask 171008  }
   0xc   : > { %v442_v1 = vld [vmem:[%s1739_s2] sm:$0xff]  ;;  %1309 = vset.pattern.permute.xlu1 %v1395_v2  ;;  %1308 = vset.pattern.permute.xlu0 %v1395_v2  ;;  %v443_v4 = vld [vmem:[%s1739_s2 + $0x8] sm:$0xff]  ;;  %s1504_s13 = sshll.u32 %s1755_s22, 4  ;;  %s1400_s22 = smov 123   ;;  %vm588_vm4 = vcmask 130048   ;;  %vm1208_vm5 = vmpackc.low %vm487_vm3, %vm487_vm3  ;;  %vm1406_vm6 = vmmov 0  }
   0xd   : > { %460 = vperm.xlu1 %1309, %v456_v0   ;;  %446 = vperm.xlu0 %1308, %v442_v1   ;;  %s423_s16 = scalar_lea.vmem %s1737_s0, %s1504_s13  ;;  %v438_v9 = vand.u32 127, %v437_v5  ;;  %v632_v54 = vld [vmem:[%s1742_s5] sm:$0xff]  ;;  %vm704_vm7 = vcmask 1043456   ;;  %vm1407_vm8 = vmmov 1   ;;  %vm700_vm10 = vcmask 588800   ;;  %s428_s30 = scalar_lea.vmem %s1748_s11, %s1504_s13 }
   0xe   : > { %592 = vmatprep.subr.bf16.mxu0 %v1395_v2  ;;  %v1510_v6 = vld [vmem:[%s423_s16] sm:$0xff]  ;;  %v1513_v11 = vld [vmem:[%s423_s16 + $0x8] sm:$0xff]  ;;  %vm1212_vm9 = vmpackc.low %vm1407_vm8, %vm487_vm3  ;;  %vm825_vm11 = vcmask 1041408   ;;  %vm821_vm12 = vcmask 293888   ;;  %vm900_vm13 = vcmask 31744   ;;  %s1414_s16 = smov 32  }
   0xf   : > { %v439_v14 = vand.u32 3, %v438_v9  ;;  %v639_v55 = vld [vmem:[%s1743_s6] sm:$0xff]  ;;  %vm1101_vm14 = vcmask 64512   ;;  %vm1106_vm15 = vcmask 195584  }
  0x10   : > { %v581_v56 = vld [vmem:[%s1738_s1] sm:$0xff] }
  0x11   : > { %465 = vperm.xlu1 %1309, %v457_v3   ;;  %451 = vperm.xlu0 %1308, %v443_v4   ;;  %vm1516_vm0 = vcmp.le.s32.totalorder %v439_v14, 2  ;;  %vm1524_vm1 = vcmp.ge.s32.totalorder %v439_v14, 1  ;;  %v1207_v57 = vcombine.high %v581_v56, %v581_v56 }
  0x13   : > { %1211 = vmatprep.mubr.msk.bf16.mxu0 %vm588_vm4, %v1207_v57 }
  0x88   : > { %v461_v7 = vpop.permute.xlu1 %460  ;;  %v447_v8 = vpop.permute.xlu0 %446 }
  0x89   : > { %v454_v10 = vmul.f32 %v447_v8, %v1510_v6 }
  0x8b   : > { %v468_v12 = vadd.f32 %v461_v7, %v454_v10 }
  0x8c   : > { %v452_v13 = vpop.permute.xlu0 %451  ;;  %v466_v16 = vpop.permute.xlu1 %465 }
  0x8d   : > { %v455_v15 = vmul.f32 %v452_v13, %v1513_v11  ;;  %v470_v17 = vmax.f32 %v468_v12, 0.0 }
  0x8f   : > { %v469_v18 = vadd.f32 %v466_v16, %v455_v15  ;;  %v474_v22 = vsel %vm1516_vm0, %v470_v17, 0.0  ;;  %v504_v27 = vsel %vm1524_vm1, %v470_v17, 0.0 }
  0x91   : > { %v471_v20 = vmax.f32 %v469_v18, 0.0 }
  0x93   : > { %v1310_v21 = vpack.i.bf16 %v471_v20, %v470_v17  ;;  %v475_v23 = vsel %vm1516_vm0, %v471_v20, 0.0  ;;  %v505_v26 = vsel %vm1524_vm1, %v471_v20, 0.0 }
  0x94   : > { %v1315_v25 = vpack.i.bf16 %v475_v23, %v474_v22  ;;  %v1320_v28 = vpack.i.bf16 %v505_v26, %v504_v27 }
  0x95   : > { %1311 = vrot.lane.b32.xlu0 %v1310_v21, %s1396_s17 }
  0x96   : > { %1316 = vrot.lane.b32.xlu1 %v1315_v25, %s1396_s17 }
  0x99   : > { %1321 = vrot.lane.b32.xlu0 %v1320_v28, %s1396_s17 }
 0x107   : > { %v1312_v29 = vpop.permute.xlu0 %1311 }
 0x108   : > { %v1314_v30 = vunpack.i.h.bf16 %v1312_v29  ;;  %v1313_v31 = vunpack.i.l.bf16 %v1312_v29  ;;  %v1317_v32 = vpop.permute.xlu1 %1316 }
 0x109   : > { %v1319_v33 = vunpack.i.h.bf16 %v1317_v32  ;;  %v1318_v34 = vunpack.i.l.bf16 %v1317_v32 }
 0x10a   : > { %v499_v35 = vsel %vm484_vm2, 0.0, %v1314_v30  ;;  %v498_v36 = vsel %vm484_vm2, 0.0, %v1313_v31  ;;  %v1206_v31 = vcombine.low %v581_v56, %v581_v56 }
 0x10b   : > { %v501_v37 = vsel %vm487_vm3, %v499_v35, 0.0  ;;  %v500_v38 = vsel %vm487_vm3, %v498_v36, 0.0  ;;  %v1540_v39 = vsel %vm484_vm2, 0.0, %v1319_v33  ;;  %v1543_v40 = vsel %vm484_vm2, 0.0, %v1318_v34  ;;  %v1322_v41 = vpop.permute.xlu0 %1321 }
 0x10c   : > { %v489_v42 = vsel %vm487_vm3, %v1540_v39, 0.0  ;;  %v488_v43 = vsel %vm487_vm3, %v1543_v40, 0.0  ;;  %v1209_v44 = vpack.c.bf16 %v1540_v39, %v1543_v40  ;;  %v1324_v45 = vunpack.i.h.bf16 %v1322_v41 }
 0x10d   : > { %v1323_v46 = vunpack.i.l.bf16 %v1322_v41  ;;  %v1325_v47 = vpack.i.bf16 %v501_v37, %v500_v38  ;;  %v1330_v48 = vpack.i.bf16 %v489_v42, %v488_v43  ;;  %v1405_v43 = vmov 0.0  }
 0x10e   : > { %v515_v49 = vsel %vm484_vm2, 0.0, %v1324_v45  ;;  %1241 = vmatprep.subr.bf16.mxu1 %v1405_v43  ;;  %1251 = vmatprep.mubr.msk.bf16.mxu1 %vm1406_vm6, %v1405_v43 }
 0x10f   : > { %v517_v50 = vsel %vm487_vm3, %v515_v49, 0.0  ;;  %v514_v51 = vsel %vm484_vm2, 0.0, %v1323_v46  ;;  %1326 = vrot.lane.b32.xlu1 %v1325_v47, %s1397_s18  ;;  %1331 = vrot.lane.b32.xlu0 %v1330_v48, %s1398_s19 }
 0x110   : > { %v516_v52 = vsel %vm487_vm3, %v514_v51, 0.0 }
 0x111   : > { %v1335_v53 = vpack.i.bf16 %v517_v50, %v516_v52 }
 0x113   : > { %1336 = vrot.lane.b32.xlu1 %v1335_v53, %s1399_s20  ;;  %1341 = vrot.lane.b32.xlu0 %v1325_v47, %s1400_s22 }
 0x117   : > { %1346 = vrot.lane.b32.xlu1 %v1330_v48, %s1401_s23  ;;  %1351 = vrot.lane.b32.xlu0 %v1335_v53, %s1402_s24 }
 0x11b   : > { %1356 = vrot.lane.b32.xlu1 %v1325_v47, %s1403_s25  ;;  %1361 = vrot.lane.b32.xlu0 %v1335_v53, %s1404_s26 }
 0x11f   : > { %635 = vperm.xlu1 %1309, %v632_v54   ;;  %642 = vperm.xlu0 %1308, %v639_v55   ;;  %v748_v54 = vld [vmem:[%s1745_s8] sm:$0xf] }
 0x120   : > { %v755_v55 = vld [vmem:[%s1746_s9] sm:$0xf] }
 0x181   : > { %v1327_v58 = vpop.permute.xlu1 %1326  ;;  %v1332_v59 = vpop.permute.xlu0 %1331 }
 0x182   : > { %v1329_v60 = vunpack.i.h.bf16 %v1327_v58  ;;  %v1328_v61 = vunpack.i.l.bf16 %v1327_v58  ;;  %v1334_v62 = vunpack.i.h.bf16 %v1332_v59  ;;  %v1333_v63 = vunpack.i.l.bf16 %v1332_v59 }
 0x184   : > { %v579_v0 = vpack.c.bf16 %v1329_v60, %v1328_v61  ;;  %v578_v3 = vpack.c.bf16 %v1334_v62, %v1333_v63 }
 0x185   : > { %v1337_v1 = vpop.permute.xlu1 %1336  ;;  %v1342_v7 = vpop.permute.xlu0 %1341 }
 0x186   : > { %593 = vmatpush1.bf16.msra.mxu0 %v579_v0  ;;  %v1339_v4 = vunpack.i.h.bf16 %v1337_v1  ;;  %v1338_v5 = vunpack.i.l.bf16 %v1337_v1  ;;  %v1344_v9 = vunpack.i.h.bf16 %v1342_v7  ;;  %v1343_v10 = vunpack.i.l.bf16 %v1342_v7 }
 0x187   : > { %594 = vmatprep.subr.bf16.mxu0 %v1395_v2 }
 0x188   : > { %v577_v8 = vpack.c.bf16 %v1339_v4, %v1338_v5  ;;  %v576_v13 = vpack.c.bf16 %v1344_v9, %v1343_v10 }
 0x189   : > { %v1347_v12 = vpop.permute.xlu1 %1346  ;;  %v1352_v16 = vpop.permute.xlu0 %1351 }
 0x18a   : > { %595 = vmatpush1.bf16.msra.mxu0 %v578_v3  ;;  %v1349_v14 = vunpack.i.h.bf16 %v1347_v12  ;;  %v1348_v15 = vunpack.i.l.bf16 %v1347_v12  ;;  %v1354_v18 = vunpack.i.h.bf16 %v1352_v16  ;;  %v1353_v20 = vunpack.i.l.bf16 %v1352_v16 }
 0x18b   : > { %596 = vmatprep.subr.bf16.mxu0 %v1395_v2 }
 0x18c   : > { %v575_v17 = vpack.c.bf16 %v1349_v14, %v1348_v15  ;;  %v574_v22 = vpack.c.bf16 %v1354_v18, %v1353_v20 }
 0x18d   : > { %v1357_v21 = vpop.permute.xlu1 %1356  ;;  %v1362_v27 = vpop.permute.xlu0 %1361 }
 0x18e   : > { %597 = vmatpush1.bf16.msra.mxu0 %v577_v8  ;;  %v1359_v23 = vunpack.i.h.bf16 %v1357_v21  ;;  %v1358_v25 = vunpack.i.l.bf16 %v1357_v21  ;;  %v1364_v28 = vunpack.i.h.bf16 %v1362_v27  ;;  %v1363_v29 = vunpack.i.l.bf16 %v1362_v27  ;;  %v699_v8 = vld [vmem:[%s1741_s4] sm:$0x3] }
 0x18f   : > { %598 = vmatprep.subr.bf16.mxu0 %v1395_v2 }
 0x190   : > { %v573_v26 = vpack.c.bf16 %v1359_v23, %v1358_v25  ;;  %v580_v30 = vpack.c.bf16 %v1364_v28, %v1363_v29 }
 0x192   : > { %599 = vmatpush1.bf16.msra.mxu0 %v576_v13 }
 0x193   : > { %600 = vmatprep.subr.bf16.mxu0 %v1395_v2 }
 0x196   : > { %601 = vmatpush1.bf16.msra.mxu0 %v575_v17 }
 0x197   : > { %602 = vmatprep.subr.bf16.mxu0 %v1395_v2 }
 0x19a   : > { %603 = vmatpush1.bf16.msra.mxu0 %v574_v22  ;;  %v636_v32 = vpop.permute.xlu1 %635  ;;  %v643_v35 = vpop.permute.xlu0 %642 }
 0x19b   : > { %604 = vmatprep.subr.bf16.mxu0 %v1395_v2 }
 0x19e   : > { %605 = vmatpush1.bf16.msra.mxu0 %v573_v26 }
 0x19f   : > { %606 = vmatprep.subr.bf16.mxu0 %v1395_v2 }
 0x1a2   : > { %1210 = vmatpush1.bf16.msk.msra.mxu0 %vm1208_vm5, %v1209_v44  ;;  %vm1125_vm5 = vcmask 523264  }
 0x1a3   : > { %622 = vmatprep.subr.bf16.mxu0 %v1395_v2 }
 0x1a6   : > { %623 = vmatpush2.bf16.msra.mxu0 %v580_v30 }
 0x1a9   : > { %625 = vmatmul.mubr.bf16.vlgmr.msra.gmra.mxu0 %v1206_v31 }
 0x269   : > { %v1586_v33 = vpop.f32.mrf.mxu0 }
 0x26a   : > { %v638_v34 = vmul.f32 %v636_v32, %v1586_v33 }
 0x26b   : > { %v628_v36 = vpop.f32.mrf.mxu0 }
 0x26c   : > { %v645_v37 = vadd.f32 %v643_v35, %v638_v34 }
 0x26d   : > { %v629_v38 = vpop.f32.mrf.mxu0 }
 0x26e   : > { %v646_v41 = vmax.f32 %v645_v37, 0.0 }
 0x26f   : > { %v630_v42 = vpop.f32.mrf.mxu0 }
 0x270   : > { %v660_v39 = vsel %vm1524_vm1, %v646_v41, 0.0  ;;  %v647_v2 = vsel %vm1516_vm0, %v646_v41, 0.0 }
 0x271   : > { %662 = vrot.lane.b32.xlu1 %v660_v39, %s1396_s17  ;;  %v1365_v40 = vpack.i.bf16 %v646_v41, %v647_v2 }
 0x273   : > { %1366 = vrot.lane.b32.xlu0 %v1365_v40, %s1396_s17 }
 0x2e3   : > { %v663_v44 = vpop.permute.xlu1 %662 }
 0x2e4   : > { %v665_v45 = vsel %vm484_vm2, 0.0, %v663_v44 }
 0x2e5   : > { %v666_v46 = vsel %vm487_vm3, %v665_v45, 0.0  ;;  %v1367_v47 = vpop.permute.xlu0 %1366 }
 0x2e6   : > { %v1369_v48 = vunpack.i.h.bf16 %v1367_v47  ;;  %v1368_v49 = vunpack.i.l.bf16 %v1367_v47  ;;  %691 = vrot.lane.b32.xlu1 %v666_v46, %s1404_s26 }
 0x2e8   : > { %v658_v50 = vsel %vm484_vm2, 0.0, %v1369_v48  ;;  %v652_v51 = vsel %vm484_vm2, 0.0, %v1368_v49 }
 0x2e9   : > { %v659_v52 = vsel %vm487_vm3, %v658_v50, 0.0  ;;  %v653_v53 = vsel %vm487_vm3, %v652_v51, 0.0  ;;  %v820_v50 = vld [vmem:[%s1744_s7] sm:$0x3] }
 0x2ea   : > { %688 = vrot.lane.b32.xlu1 %v659_v52, %s1397_s18  ;;  %685 = vrot.lane.b32.xlu0 %v653_v53, %s1398_s19 }
 0x2ee   : > { %682 = vrot.lane.b32.xlu1 %v666_v46, %s1399_s20  ;;  %679 = vrot.lane.b32.xlu0 %v659_v52, %s1400_s22 }
 0x2f2   : > { %676 = vrot.lane.b32.xlu1 %v653_v53, %s1401_s23  ;;  %672 = vrot.lane.b32.xlu0 %v666_v46, %s1402_s24 }
 0x2f6   : > { %751 = vperm.xlu1 %1309, %v748_v54   ;;  %668 = vrot.lane.b32.xlu0 %v659_v52, %s1403_s25 }
 0x2fa   : > { %758 = vperm.xlu0 %1308, %v755_v55  }
 0x358   : > { %v692_v56 = vpop.permute.xlu1 %691 }
 0x359   : > { %v698_v57 = vpack.c.bf16 %v692_v56, %v692_v56  ;;  %v873_v56 = vadd.f32 %v1586_v33, %v1510_v6 }
 0x35b   : > { %v706_v58 = vsel %vm704_vm7, %v698_v57, 0 }
 0x35c   : > { %1242 = vmatpush3.bf16.msra.mxu1 %v706_v58  ;;  %v689_v59 = vpop.permute.xlu1 %688  ;;  %v686_v60 = vpop.permute.xlu0 %685 }
 0x35d   : > { %v697_v61 = vpack.c.bf16 %v689_v59, %v686_v60  ;;  %1243 = vmatprep.subr.bf16.mxu1 %v1405_v43 }
 0x360   : > { %v683_v62 = vpop.permute.xlu1 %682  ;;  %1244 = vmatpush3.bf16.msra.mxu1 %v697_v61  ;;  %v680_v63 = vpop.permute.xlu0 %679 }
 0x361   : > { %v696_v0 = vpack.c.bf16 %v683_v62, %v680_v63  ;;  %1245 = vmatprep.subr.bf16.mxu1 %v1405_v43 }
 0x364   : > { %v677_v1 = vpop.permute.xlu1 %676  ;;  %1246 = vmatpush3.bf16.msra.mxu1 %v696_v0  ;;  %v673_v3 = vpop.permute.xlu0 %672 }
 0x365   : > { %v695_v4 = vpack.c.bf16 %v677_v1, %v673_v3  ;;  %1247 = vmatprep.subr.bf16.mxu1 %v1405_v43 }
 0x368   : > { %1248 = vmatpush3.bf16.msra.mxu1 %v695_v4  ;;  %v669_v5 = vpop.permute.xlu0 %668 }
 0x369   : > { %v1213_v7 = vpack.c.bf16 %v669_v5, %v652_v51  ;;  %1249 = vmatprep.subr.bf16.mxu1 %v1405_v43  ;;  %v875_v51 = vld [vmem:[%s1747_s10] sm:$0x3] }
 0x36a   : > { %1277 = vmatprep.subr.msk.bf16.mxu0 %vm825_vm11, %v875_v51  ;;  %v914_v52 = vsel %vm825_vm11, %v875_v51, 0 }
 0x36b   : > { %1266 = vmatpush3.bf16.msra.mxu0 %v914_v52 }
 0x36c   : > { %1250 = vmatpush3.bf16.msk.msra.mxu1 %vm1212_vm9, %v1213_v7 }
 0x36d   : > { %1255 = vmatprep.subr.bf16.mxu1 %v1405_v43 }
 0x36f   : > { %1252 = vmatmul.mubr.msk.bf16.vlgmr.msra.gmra.mxu1 %vm700_vm10, %v699_v8 }
 0x370   : > { %1261 = vmatprep.mubr.msk.bf16.mxu1 %vm1406_vm6, %v1405_v43 }
 0x371   : > { %v752_v9 = vpop.permute.xlu1 %751 }
 0x375   : > { %v759_v13 = vpop.permute.xlu0 %758 }
 0x42f   : > { %v1630_v10 = vpop.f32.mrf.mxu1 }
 0x430   : > { %v754_v12 = vmul.f32 %v752_v9, %v1630_v10 }
 0x431   : > { %v1253_v14 = vpop.f32.mrf.mxu1 }
 0x432   : > { %v761_v15 = vadd.f32 %v759_v13, %v754_v12 }
 0x433   : > { %v745_v16 = vpop.f32.mrf.mxu1 }
 0x434   : > { %v762_v17 = vmax.f32 %v761_v15, 0.0 }
 0x435   : > { %v1254_v18 = vpop.f32.mrf.mxu1 }
 0x436   : > { %771 = vrot.lane.b32.xlu0 %v762_v17, %s1396_s17  ;;  %v776_v20 = vsel %vm1524_vm1, %v762_v17, 0.0  ;;  %v763_v21 = vsel %vm1516_vm0, %v762_v17, 0.0  ;;  %vm1109_vm0 = vcmask 261120   ;;  %vm1112_vm1 = vcmask 326656  }
 0x437   : > { %778 = vrot.lane.b32.xlu1 %v776_v20, %s1396_s17 }
 0x43b   : > { %765 = vrot.lane.b32.xlu1 %v763_v21, %s1396_s17 }
 0x4a8   : > { %v772_v22 = vpop.permute.xlu0 %771 }
 0x4a9   : > { %v774_v23 = vsel %vm484_vm2, 0.0, %v772_v22  ;;  %v779_v25 = vpop.permute.xlu1 %778 }
 0x4aa   : > { %v775_v26 = vsel %vm487_vm3, %v774_v23, 0.0  ;;  %v781_v27 = vsel %vm484_vm2, 0.0, %v779_v25 }
 0x4ab   : > { %v782_v28 = vsel %vm487_vm3, %v781_v27, 0.0  ;;  %797 = vrot.lane.b32.xlu1 %v775_v26, %s1400_s22  ;;  %v784_v29 = vrot.slane %v775_v26, 4 }
 0x4ac   : > { %810 = vrot.lane.b32.xlu0 %v782_v28, %s1404_s26  ;;  %v800_v31 = vrot.slane %v782_v28, 4  ;;  %s1412_s26 = smov 48  }
 0x4ad   : > { %v766_v24 = vpop.permute.xlu1 %765 }
 0x4ae   : > { %v768_v19 = vsel %vm484_vm2, 0.0, %v766_v24  ;;  %vm1115_vm2 = vcmask 392192  }
 0x4af   : > { %v769_v30 = vsel %vm487_vm3, %v768_v19, 0.0  ;;  %vm1118_vm3 = vcmask 457728  }
 0x4b0   : > { %807 = vrot.lane.b32.xlu0 %v784_v29, %s1397_s18  ;;  %804 = vrot.lane.b32.xlu1 %v769_v30, %s1398_s19  ;;  %v793_v32 = vrot.slane %v769_v30, 4  ;;  %s433_s18 = scalar_lea.vmem %s1749_s12, %s1504_s13 }
 0x4b4   : > { %801 = vrot.lane.b32.xlu0 %v800_v31, %s1399_s20  ;;  %785 = vrot.lane.b32.xlu1 %v784_v29, %s1403_s25  ;;  %s1411_s25 = smov 40  }
 0x4b8   : > { %789 = vrot.lane.b32.xlu0 %v782_v28, %s1402_s24  ;;  %794 = vrot.lane.b32.xlu1 %v793_v32, %s1401_s23  ;;  %s1408_s24 = smov 116  }
 0x51d   : > { %v798_v34 = vpop.permute.xlu1 %797 }
 0x51e   : > { %v811_v35 = vpop.permute.xlu0 %810 }
 0x51f   : > { %v819_v36 = vpack.c.bf16 %v811_v35, %v811_v35 }
 0x521   : > { %v827_v37 = vsel %vm825_vm11, %v819_v36, 0 }
 0x522   : > { %1256 = vmatpush3.bf16.msra.mxu1 %v827_v37  ;;  %v808_v38 = vpop.permute.xlu0 %807  ;;  %v805_v41 = vpop.permute.xlu1 %804 }
 0x523   : > { %1257 = vmatprep.subr.bf16.mxu1 %v1405_v43  ;;  %v816_v2 = vsel %vm704_vm7, %v805_v41, %v808_v38 }
 0x526   : > { %v802_v42 = vpop.permute.xlu0 %801  ;;  %v786_v39 = vpop.permute.xlu1 %785 }
 0x527   : > { %v815_v40 = vsel %vm704_vm7, %v798_v34, %v802_v42  ;;  %v813_v47 = vsel %vm704_vm7, %v769_v30, %v786_v39 }
 0x528   : > { %v818_v44 = vpack.c.bf16 %v816_v2, %v815_v40 }
 0x52a   : > { %v790_v45 = vpop.permute.xlu0 %789  ;;  %1258 = vmatpush3.bf16.msra.mxu1 %v818_v44  ;;  %v795_v46 = vpop.permute.xlu1 %794 }
 0x52b   : > { %v814_v48 = vsel %vm704_vm7, %v790_v45, %v795_v46  ;;  %1259 = vmatprep.subr.bf16.mxu1 %v1405_v43 }
 0x52c   : > { %v817_v49 = vpack.c.bf16 %v814_v48, %v813_v47 }
 0x52e   : > { %1260 = vmatpush3.bf16.msra.mxu1 %v817_v49 }
 0x52f   : > { %1278 = vmatprep.subr.msk.bf16.mxu1 %vm825_vm11, %v875_v51 }
 0x531   : > { %1262 = vmatmul.mubr.msk.bf16.vlgmr.msra.gmra.mxu1 %vm821_vm12, %v820_v50 }
 0x532   : > { %1276 = vmatpush3.bf16.msra.mxu1 %v914_v52 }
 0x5f1   : > { %v863_v43 = vpop.f32.mrf.mxu1 }
 0x5f2   : > { %v870_v53 = vrot.slane %v863_v43, 4 }
 0x5f3   : > { %v1263_v54 = vpop.f32.mrf.mxu1 }
 0x5f4   : > { %v872_v55 = vsel %vm704_vm7, %v1630_v10, %v870_v53 }
 0x5f5   : > { %v874_v57 = vadd.f32 %v872_v55, %v1513_v11  ;;  %v866_v58 = vpop.f32.mrf.mxu1 }
 0x5f7   : > { %v1264_v59 = vpop.f32.mrf.mxu1  ;;  %v1375_v60 = vpack.i.bf16 %v874_v57, %v873_v56  ;;  %v896_v61 = vpack.c.bf16 %v874_v57, %v873_v56 }
 0x5f9   : > { %1376 = vrot.lane.b32.xlu1 %v1375_v60, %s1398_s19  ;;  %1371 = vrot.lane.b32.xlu0 %v1375_v60, %s1401_s23  ;;  %s1409_s19 = smov 8   ;;  %s1410_s23 = smov 16  }
 0x5fa   : > { %1267 = vmatprep.mubr.msk.bf16.mxu0 %vm900_vm13, %v896_v61 }
 0x5fd   : > { %1381 = vrot.lane.b32.xlu0 %v1375_v60, %s1408_s24 }
 0x66b   : > { %v1377_v62 = vpop.permute.xlu1 %1376  ;;  %v1372_v63 = vpop.permute.xlu0 %1371 }
 0x66c   : > { %v1379_v0 = vunpack.i.h.bf16 %v1377_v62  ;;  %v1378_v1 = vunpack.i.l.bf16 %v1377_v62  ;;  %v1374_v6 = vunpack.i.h.bf16 %v1372_v63  ;;  %v1373_v33 = vunpack.i.l.bf16 %v1372_v63 }
 0x66e   : > { %v898_v11 = vpack.c.bf16 %v1379_v0, %v1378_v1  ;;  %v897_v3 = vpack.c.bf16 %v1374_v6, %v1373_v33 }
 0x66f   : > { %v1382_v4 = vpop.permute.xlu0 %1381 }
 0x670   : > { %v1384_v5 = vunpack.i.h.bf16 %v1382_v4  ;;  %v1383_v7 = vunpack.i.l.bf16 %v1382_v4  ;;  %1268 = vmatmul.mubr.msk.bf16.vlgmr.msra.gmra.mxu0 %vm900_vm13, %v897_v3  ;;  %1271 = vmatprep.mubr.msk.bf16.mxu1 %vm900_vm13, %v898_v11 }
 0x672   : > { %v899_v8 = vpack.c.bf16 %v1384_v5, %v1383_v7 }
 0x674   : > { %1272 = vmatmul.mubr.msk.bf16.vlgmr.msra.gmra.mxu1 %vm900_vm13, %v899_v8 }
 0x730   : > { %v1269_v9 = vpop.f32.mrf.mxu0 }
 0x731   : > { %v983_v17 = vmul.f32 0.49854228, %v1269_v9  ;;  %v993_v28 = vmul.f32 0.95772594, %v1269_v9  ;;  %v1027_v32 = vmul.f32 -0.0787172, %v1269_v9 }
 0x732   : > { %v1681_v10 = vpop.f32.mrf.mxu0  ;;  %v1001_v47 = vmul.f32 0.84548104, %v1269_v9  ;;  %v1015_v59 = vmul.f32 0.30758017, %v1269_v9 }
 0x733   : > { %v981_v14 = vmul.f32 0.5801749, %v1681_v10  ;;  %v991_v23 = vmul.f32 0.12099125, %v1681_v10  ;;  %v999_v2 = vmul.f32 -0.10932945, %v1681_v10 }
 0x734   : > { %v1683_v12 = vpop.f32.mrf.mxu0  ;;  %v1685_v13 = vpop.f32.mrf.mxu1  ;;  %v1013_v43 = vmul.f32 -0.04373178, %v1681_v10 }
 0x735   : > { %v985_v21 = vadd.f32 %v983_v17, %v981_v14  ;;  %v984_v25 = vmul.f32 0.49854228, %v1683_v12  ;;  %v995_v31 = vadd.f32 %v993_v28, %v991_v23  ;;  %v994_v36 = vmul.f32 0.95772594, %v1683_v12 }
 0x736   : > { %v1688_v15 = vpop.f32.mrf.mxu0  ;;  %v966_v16 = vpop.f32.mrf.mxu1  ;;  %v1028_v39 = vmul.f32 -0.0787172, %v1683_v12  ;;  %v1033_v40 = vmul.f32 0.12099125, %v1685_v13  ;;  %v1041_v53 = vmul.f32 0.5801749, %v1685_v13  ;;  %v1003_v54 = vadd.f32 %v1001_v47, %v999_v2 }
 0x737   : > { %v982_v18 = vmul.f32 0.5801749, %v1688_v15  ;;  %v987_v22 = vmul.f32 -0.0787172, %v966_v16  ;;  %v1029_v24 = vmul.f32 0.95772594, %v966_v16  ;;  %v1017_v33 = vadd.f32 %v1015_v59, %v1013_v43 }
 0x738   : > { %v1691_v20 = vpop.f32.mrf.mxu1  ;;  %v992_v29 = vmul.f32 0.12099125, %v1688_v15  ;;  %v1037_v41 = vmul.f32 0.49854228, %v966_v16  ;;  %v1005_v50 = vmul.f32 0.30758017, %v966_v16 }
 0x739   : > { %v989_v27 = vadd.f32 %v987_v22, %v985_v21  ;;  %v986_v30 = vadd.f32 %v984_v25, %v982_v18  ;;  %v997_v37 = vadd.f32 %v995_v31, %v987_v22  ;;  %v1031_v38 = vadd.f32 %v1029_v24, %v1027_v32  ;;  %v1122_v47 = vld [vmem:[%s428_s30 + $0x8] sm:$0xff] }
 0x73a   : > { %v969_v26 = vpop.f32.mrf.mxu1  ;;  %v996_v42 = vadd.f32 %v994_v36, %v992_v29  ;;  %v1039_v49 = vadd.f32 %v1037_v41, %v1027_v32  ;;  %v1000_v51 = vmul.f32 -0.10932945, %v1688_v15  ;;  %v1034_v52 = vmul.f32 0.12099125, %v1691_v20 }
 0x73b   : > { %v988_v19 = vmul.f32 -0.0787172, %v969_v26  ;;  %1047 = vrot.lane.b32.xlu1 %v989_v27, %s1409_s19  ;;  %v1030_v34 = vmul.f32 0.95772594, %v969_v26  ;;  %v1038_v44 = vmul.f32 0.49854228, %v969_v26  ;;  %v1035_v48 = vadd.f32 %v1033_v40, %v1031_v38 }
 0x73c   : > { %v1002_v55 = vmul.f32 0.84548104, %v1683_v12  ;;  %v1006_v56 = vmul.f32 0.30758017, %v969_v26  ;;  %v1043_v60 = vadd.f32 %v1041_v53, %v1039_v49  ;;  %v1007_v61 = vadd.f32 %v1005_v50, %v1003_v54 }
 0x73d   : > { %v990_v35 = vadd.f32 %v988_v19, %v986_v30  ;;  %v998_v45 = vadd.f32 %v996_v42, %v988_v19  ;;  %v1032_v46 = vadd.f32 %v1030_v34, %v1028_v39  ;;  %v1040_v58 = vadd.f32 %v1038_v44, %v1028_v39  ;;  %v1121_v42 = vld [vmem:[%s428_s30] sm:$0xff] }
 0x73e   : > { %v1019_v62 = vmul.f32 0.84548104, %v966_v16  ;;  %v1004_v63 = vadd.f32 %v1002_v55, %v1000_v51  ;;  %v1014_v0 = vmul.f32 -0.04373178, %v1688_v15  ;;  %v1042_v1 = vmul.f32 0.5801749, %v1691_v20 }
 0x73f   : > { %1049 = vrot.lane.b32.xlu0 %v990_v35, %s1409_s19  ;;  %1055 = vrot.lane.b32.xlu1 %v997_v37, %s1410_s23  ;;  %v1036_v57 = vadd.f32 %v1034_v52, %v1032_v46  ;;  %v1009_v6 = vmul.f32 -0.04373178, %v1685_v13  ;;  %v1016_v11 = vmul.f32 0.30758017, %v1683_v12  ;;  %v1020_v3 = vmul.f32 0.84548104, %v969_v26 }
 0x740   : > { %v1044_v4 = vadd.f32 %v1042_v1, %v1040_v58  ;;  %v1008_v5 = vadd.f32 %v1006_v56, %v1004_v63  ;;  %v1021_v8 = vadd.f32 %v1019_v62, %v1017_v33  ;;  %v1010_v14 = vmul.f32 -0.04373178, %v1691_v20 }
 0x741   : > { %v1011_v7 = vadd.f32 %v1009_v6, %v1007_v61  ;;  %v1018_v9 = vadd.f32 %v1016_v11, %v1014_v0  ;;  %v1023_v16 = vmul.f32 -0.10932945, %v1685_v13  ;;  %v1024_v22 = vmul.f32 -0.10932945, %v1691_v20 }
 0x742   : > { %v1012_v17 = vadd.f32 %v1010_v14, %v1008_v5 }
 0x743   : > { %1057 = vrot.lane.b32.xlu0 %v998_v45, %s1410_s23  ;;  %1079 = vrot.lane.b32.xlu1 %v1035_v48, %s1411_s25  ;;  %v1022_v18 = vadd.f32 %v1020_v3, %v1018_v9  ;;  %v1025_v21 = vadd.f32 %v1023_v16, %v1021_v8 }
 0x745   : > { %v1026_v12 = vadd.f32 %v1024_v22, %v1022_v18 }
 0x747   : > { %1081 = vrot.lane.b32.xlu0 %v1036_v57, %s1411_s25  ;;  %1087 = vrot.lane.b32.xlu1 %v1043_v60, %s1412_s26 }
 0x74b   : > { %1089 = vrot.lane.b32.xlu0 %v1044_v4, %s1412_s26  ;;  %1063 = vrot.lane.b32.xlu1 %v1011_v7, %s1413_s15 }
 0x74f   : > { %1065 = vrot.lane.b32.xlu0 %v1012_v17, %s1413_s15  ;;  %1071 = vrot.lane.b32.xlu1 %v1025_v21, %s1414_s16 }
 0x753   : > { %1073 = vrot.lane.b32.xlu0 %v1026_v12, %s1414_s16  ;;  %1095 = vrot.lane.b32.xlu1 %v1685_v13, %s1415_s27 }
 0x757   : > { %1097 = vrot.lane.b32.xlu0 %v1691_v20, %s1415_s27 }
 0x7ad   : > { %v1048_v23 = vpop.permute.xlu1 %1047 }
 0x7ae   : > { %v1102_v31 = vsel %vm1101_vm14, %v1681_v10, %v1048_v23 }
 0x7b1   : > { %v1050_v25 = vpop.permute.xlu0 %1049  ;;  %v1056_v26 = vpop.permute.xlu1 %1055 }
 0x7b2   : > { %v1104_v32 = vsel %vm588_vm4, %v1102_v31, %v1056_v26  ;;  %v1103_v35 = vsel %vm1101_vm14, %v1688_v15, %v1050_v25 }
 0x7b5   : > { %v1058_v27 = vpop.permute.xlu0 %1057  ;;  %v1080_v28 = vpop.permute.xlu1 %1079 }
 0x7b6   : > { %v1105_v37 = vsel %vm588_vm4, %v1103_v35, %v1058_v27 }
 0x7b9   : > { %v1082_v24 = vpop.permute.xlu0 %1081  ;;  %v1088_v29 = vpop.permute.xlu1 %1087 }
 0x7bd   : > { %v1090_v19 = vpop.permute.xlu0 %1089  ;;  %v1064_v30 = vpop.permute.xlu1 %1063 }
 0x7be   : > { %v1107_v20 = vsel %vm1106_vm15, %v1104_v32, %v1064_v30 }
 0x7c1   : > { %v1066_v13 = vpop.permute.xlu0 %1065  ;;  %v1072_v34 = vpop.permute.xlu1 %1071 }
 0x7c2   : > { %v1110_v36 = vsel %vm1109_vm0, %v1107_v20, %v1072_v34  ;;  %v1108_v38 = vsel %vm1106_vm15, %v1105_v37, %v1066_v13 }
 0x7c3   : > { %v1113_v10 = vsel %vm1112_vm1, %v1110_v36, %v1080_v28 }
 0x7c4   : > { %v1116_v41 = vsel %vm1115_vm2, %v1113_v10, %v1088_v29 }
 0x7c5   : > { %v1074_v39 = vpop.permute.xlu0 %1073  ;;  %v1096_v2 = vpop.permute.xlu1 %1095 }
 0x7c6   : > { %v1111_v40 = vsel %vm1109_vm0, %v1108_v38, %v1074_v39  ;;  %v1119_v15 = vsel %vm1118_vm3, %v1116_v41, %v1096_v2 }
 0x7c7   : > { %v1114_v44 = vsel %vm1112_vm1, %v1111_v40, %v1082_v24  ;;  %v1123_v45 = vadd.f32 %v1121_v42, %v1119_v15 }
 0x7c8   : > { %v1117_v46 = vsel %vm1115_vm2, %v1114_v44, %v1090_v19 }
 0x7c9   : > { %v1098_v48 = vpop.permute.xlu0 %1097  ;;  %1126 = vst.msk [vmem:[%s433_s18] sm:$0xff] %vm1125_vm5, %v1123_v45 }
 0x7ca   : > { %v1120_v49 = vsel %vm1118_vm3, %v1117_v46, %v1098_v48 }
 0x7cb   : > { %v1124_v50 = vadd.f32 %v1122_v47, %v1120_v49 }
 0x7cd   : > { %1127 = vst.msk [vmem:[%s433_s18 + $0x8] sm:$0xff] %vm1125_vm5, %v1124_v50 }
 0x7ce PF: > { %s22_s21 = sadd.s32 1, %s1393_s21  }
 0x7cf   : > { %p19_p4 = scmp.ge.s32.totalorder %s22_s21, 4  }
 0x7d1   :  { %21 = sbr.rel (!%p19_p4) target bundleno = 1 (0x1), region = 101 }

// kernel: hourglass_forward.13
= control target key start
LH: loop header
LB: loop body
LE: loop exit
PB: predicated region body
PF: predicated region fallthrough
CT: control target
= control target key end

     0   :  { %s1779_s21 = smov 0   ;;  %s2197_s0 = inlined_call_operand.vmem [shape: f32[2,16,64], index: 0, kind: input, shape index: {}]   ;;  %s2198_s1 = inlined_call_operand.vmem [shape: bf16[8,144], index: 1, kind: input, shape index: {}]   ;;  %s2199_s2 = inlined_call_operand.vmem [shape: f32[16,1], index: 2, kind: input, shape index: {}]   ;;  %s2200_s3 = inlined_call_operand.vmem [shape: f32[16,1], index: 3, kind: input, shape index: {}]   ;;  %s2201_s4 = inlined_call_operand.vmem [shape: bf16[4,72], index: 4, kind: input, shape index: {}]   ;;  %s2202_s5 = inlined_call_operand.vmem [shape: f32[8,1], index: 5, kind: input, shape index: {}]   ;;  %s2203_s6 = inlined_call_operand.vmem [shape: f32[8,1], index: 6, kind: input, shape index: {}]   ;;  %s2204_s7 = inlined_call_operand.vmem [shape: bf16[4,36], index: 7, kind: input, shape index: {}]   ;;  %s2205_s8 = inlined_call_operand.vmem [shape: f32[4,1], index: 8, kind: input, shape index: {}]   ;;  %s2206_s9 = inlined_call_operand.vmem [shape: f32[4,1], index: 9, kind: input, shape index: {}]   ;;  %s2207_s10 = inlined_call_operand.vmem [shape: bf16[8,16], index: 10, kind: input, shape index: {}]   ;;  %s2208_s11 = inlined_call_operand.vmem [shape: f32[2,16,256], index: 11, kind: input, shape index: {}]   ;;  %s2209_s12 = inlined_call_operand.vmem [shape: f32[2,16,256], index: 12, kind: output, shape index: {}]  }
   0x1 LB: > { %s1458_s22 = sadd.s32 4294967295, %s1690_s21   ;;  %p1462_p0 = scmp.ge.s32.totalorder %s1690_s21, 1  ;;  %s1690_s21 = sphi %s1779_s21, %s22_s21  }
   0x2   : > { %p372_p1 = scmp.lt.s32.totalorder %s1690_s21, 3 }
   0x4   : > { %p373_p2 = pnand %p1462_p0, %p372_p1 }
   0x5   : > { %p419_p3 = scmp.lt.s32.totalorder (!%p373_p2), %s1458_s22, 1  ;;  %s1693_s17 = smov (!%p373_p2), 9  }
   0x6   : > { %376 = sbr.rel (%p373_p2) target bundleno = 2030 (0x7ee), region = 68  ;;  %s1694_s18 = smov (!%p373_p2), 111  }
   0x7   : > { %s1695_s19 = smov (!%p373_p2), 112   ;;  %s1696_s20 = smov (!%p373_p2), 118  }
   0x8   : > { %s1697_s23 = smov (!%p373_p2), 119   ;;  %s1698_s24 = smov (!%p373_p2), 120  }
   0x9   : > { %s1699_s25 = smov (!%p373_p2), 126   ;;  %s1700_s26 = smov (!%p373_p2), 127  }
   0xa   : > { %s1701_s27 = smov (!%p373_p2), 110   ;;  %s1708_s15 = smov (!%p373_p2), 88  }
   0xb   : > { %v456_v0 = vld [vmem:[%s2200_s3] sm:$0xff]  ;;  %v1692_v2 = vmov 0   ;;  %v457_v3 = vld [vmem:[%s2200_s3 + $0x8] sm:$0xff]  ;;  %s2215_s22 = smov (!%p419_p3, %s1458_s22), 1  ;;  %v437_v5 = vlaneseq  ;;  %vm484_vm2 = vcmask 72704   ;;  %vm487_vm3 = vcmask 596992  }
   0xc   : > { %v442_v1 = vld [vmem:[%s2199_s2] sm:$0xff]  ;;  %1586 = vset.pattern.permute.xlu1 %v1692_v2  ;;  %1585 = vset.pattern.permute.xlu0 %v1692_v2  ;;  %v443_v4 = vld [vmem:[%s2199_s2 + $0x8] sm:$0xff]  ;;  %s1490_s13 = sshll.u32 %s2215_s22, 4  ;;  %vm588_vm4 = vcmask 130048   ;;  %vm1471_vm5 = vmpackc.low %vm487_vm3, %vm487_vm3  ;;  %vm1703_vm6 = vmmov 0   ;;  %vm704_vm7 = vcmask 1043456  }
   0xd   : > { %460 = vperm.xlu1 %1586, %v456_v0   ;;  %446 = vperm.xlu0 %1585, %v442_v1   ;;  %s423_s16 = scalar_lea.vmem %s2197_s0, %s1490_s13  ;;  %v438_v9 = vand.u32 127, %v437_v5  ;;  %v632_v54 = vld [vmem:[%s2202_s5] sm:$0xff]  ;;  %vm1704_vm8 = vmmov 1   ;;  %vm700_vm10 = vcmask 588800   ;;  %vm825_vm11 = vcmask 1041408   ;;  %s1711_s28 = smov 32  }
   0xe   : > { %592 = vmatprep.subr.bf16.mxu0 %v1692_v2  ;;  %v1808_v6 = vld [vmem:[%s423_s16] sm:$0xff]  ;;  %v1811_v11 = vld [vmem:[%s423_s16 + $0x8] sm:$0xff]  ;;  %vm1475_vm9 = vmpackc.low %vm1704_vm8, %vm487_vm3  ;;  %vm821_vm12 = vcmask 293888   ;;  %vm928_vm13 = vcmask 64512   ;;  %s1709_s16 = smov 72   ;;  %s1712_s29 = smov 48  }
   0xf   : > { %v439_v14 = vand.u32 7, %v438_v9  ;;  %v639_v55 = vld [vmem:[%s2203_s6] sm:$0xff]  ;;  %s1713_s30 = smov 64   ;;  %s1491_s13 = sshll.u32 %s2215_s22, 5  ;;  %vm1347_vm14 = vcmask 261120   ;;  %vm1350_vm15 = vcmask 392192  }
  0x10   : > { %v581_v56 = vld [vmem:[%s2198_s1] sm:$0xff] }
  0x11   : > { %465 = vperm.xlu1 %1586, %v457_v3   ;;  %451 = vperm.xlu0 %1585, %v443_v4   ;;  %vm1814_vm0 = vcmp.le.s32.totalorder %v439_v14, 6  ;;  %vm1822_vm1 = vcmp.ge.s32.totalorder %v439_v14, 1  ;;  %v1470_v57 = vcombine.high %v581_v56, %v581_v56 }
  0x13   : > { %1474 = vmatprep.mubr.msk.bf16.mxu0 %vm588_vm4, %v1470_v57 }
  0x88   : > { %v461_v7 = vpop.permute.xlu1 %460  ;;  %v447_v8 = vpop.permute.xlu0 %446 }
  0x89   : > { %v454_v10 = vmul.f32 %v447_v8, %v1808_v6 }
  0x8b   : > { %v468_v12 = vadd.f32 %v461_v7, %v454_v10 }
  0x8c   : > { %v452_v13 = vpop.permute.xlu0 %451  ;;  %v466_v16 = vpop.permute.xlu1 %465 }
  0x8d   : > { %v455_v15 = vmul.f32 %v452_v13, %v1811_v11  ;;  %v470_v17 = vmax.f32 %v468_v12, 0.0 }
  0x8f   : > { %v469_v18 = vadd.f32 %v466_v16, %v455_v15  ;;  %v474_v22 = vsel %vm1814_vm0, %v470_v17, 0.0  ;;  %v504_v27 = vsel %vm1822_vm1, %v470_v17, 0.0 }
  0x91   : > { %v471_v20 = vmax.f32 %v469_v18, 0.0 }
  0x93   : > { %v1587_v21 = vpack.i.bf16 %v471_v20, %v470_v17  ;;  %v475_v23 = vsel %vm1814_vm0, %v471_v20, 0.0  ;;  %v505_v26 = vsel %vm1822_vm1, %v471_v20, 0.0 }
  0x94   : > { %v1592_v25 = vpack.i.bf16 %v475_v23, %v474_v22  ;;  %v1597_v28 = vpack.i.bf16 %v505_v26, %v504_v27 }
  0x95   : > { %1588 = vrot.lane.b32.xlu0 %v1587_v21, %s1693_s17 }
  0x96   : > { %1593 = vrot.lane.b32.xlu1 %v1592_v25, %s1693_s17 }
  0x99   : > { %1598 = vrot.lane.b32.xlu0 %v1597_v28, %s1693_s17 }
 0x107   : > { %v1589_v29 = vpop.permute.xlu0 %1588 }
 0x108   : > { %v1591_v30 = vunpack.i.h.bf16 %v1589_v29  ;;  %v1590_v31 = vunpack.i.l.bf16 %v1589_v29  ;;  %v1594_v32 = vpop.permute.xlu1 %1593 }
 0x109   : > { %v1596_v33 = vunpack.i.h.bf16 %v1594_v32  ;;  %v1595_v34 = vunpack.i.l.bf16 %v1594_v32 }
 0x10a   : > { %v499_v35 = vsel %vm484_vm2, 0.0, %v1591_v30  ;;  %v498_v36 = vsel %vm484_vm2, 0.0, %v1590_v31  ;;  %v1469_v31 = vcombine.low %v581_v56, %v581_v56 }
 0x10b   : > { %v501_v37 = vsel %vm487_vm3, %v499_v35, 0.0  ;;  %v500_v38 = vsel %vm487_vm3, %v498_v36, 0.0  ;;  %v1838_v39 = vsel %vm484_vm2, 0.0, %v1596_v33  ;;  %v1841_v40 = vsel %vm484_vm2, 0.0, %v1595_v34  ;;  %v1599_v41 = vpop.permute.xlu0 %1598 }
 0x10c   : > { %v489_v42 = vsel %vm487_vm3, %v1838_v39, 0.0  ;;  %v488_v43 = vsel %vm487_vm3, %v1841_v40, 0.0  ;;  %v1472_v44 = vpack.c.bf16 %v1838_v39, %v1841_v40  ;;  %v1601_v45 = vunpack.i.h.bf16 %v1599_v41 }
 0x10d   : > { %v1600_v46 = vunpack.i.l.bf16 %v1599_v41  ;;  %v1602_v47 = vpack.i.bf16 %v501_v37, %v500_v38  ;;  %v1607_v48 = vpack.i.bf16 %v489_v42, %v488_v43  ;;  %v1702_v43 = vmov 0.0  }
 0x10e   : > { %v515_v49 = vsel %vm484_vm2, 0.0, %v1601_v45  ;;  %1512 = vmatprep.subr.bf16.mxu1 %v1702_v43  ;;  %1522 = vmatprep.mubr.msk.bf16.mxu1 %vm1703_vm6, %v1702_v43 }
 0x10f   : > { %v517_v50 = vsel %vm487_vm3, %v515_v49, 0.0  ;;  %v514_v51 = vsel %vm484_vm2, 0.0, %v1600_v46  ;;  %1603 = vrot.lane.b32.xlu1 %v1602_v47, %s1694_s18  ;;  %1608 = vrot.lane.b32.xlu0 %v1607_v48, %s1695_s19 }
 0x110   : > { %v516_v52 = vsel %vm487_vm3, %v514_v51, 0.0 }
 0x111   : > { %v1612_v53 = vpack.i.bf16 %v517_v50, %v516_v52 }
 0x113   : > { %1613 = vrot.lane.b32.xlu1 %v1612_v53, %s1696_s20  ;;  %1618 = vrot.lane.b32.xlu0 %v1602_v47, %s1697_s23 }
 0x117   : > { %1623 = vrot.lane.b32.xlu1 %v1607_v48, %s1698_s24  ;;  %1628 = vrot.lane.b32.xlu0 %v1612_v53, %s1699_s25 }
 0x11b   : > { %1633 = vrot.lane.b32.xlu1 %v1602_v47, %s1700_s26  ;;  %1638 = vrot.lane.b32.xlu0 %v1612_v53, %s1701_s27 }
 0x11f   : > { %635 = vperm.xlu1 %1586, %v632_v54   ;;  %642 = vperm.xlu0 %1585, %v639_v55   ;;  %v748_v54 = vld [vmem:[%s2205_s8] sm:$0xf] }
 0x120   : > { %v755_v55 = vld [vmem:[%s2206_s9] sm:$0xf] }
 0x181   : > { %v1604_v58 = vpop.permute.xlu1 %1603  ;;  %v1609_v59 = vpop.permute.xlu0 %1608 }
 0x182   : > { %v1606_v60 = vunpack.i.h.bf16 %v1604_v58  ;;  %v1605_v61 = vunpack.i.l.bf16 %v1604_v58  ;;  %v1611_v62 = vunpack.i.h.bf16 %v1609_v59  ;;  %v1610_v63 = vunpack.i.l.bf16 %v1609_v59 }
 0x184   : > { %v579_v0 = vpack.c.bf16 %v1606_v60, %v1605_v61  ;;  %v578_v3 = vpack.c.bf16 %v1611_v62, %v1610_v63 }
 0x185   : > { %v1614_v1 = vpop.permute.xlu1 %1613  ;;  %v1619_v7 = vpop.permute.xlu0 %1618 }
 0x186   : > { %593 = vmatpush1.bf16.msra.mxu0 %v579_v0  ;;  %v1616_v4 = vunpack.i.h.bf16 %v1614_v1  ;;  %v1615_v5 = vunpack.i.l.bf16 %v1614_v1  ;;  %v1621_v9 = vunpack.i.h.bf16 %v1619_v7  ;;  %v1620_v10 = vunpack.i.l.bf16 %v1619_v7 }
 0x187   : > { %594 = vmatprep.subr.bf16.mxu0 %v1692_v2 }
 0x188   : > { %v577_v8 = vpack.c.bf16 %v1616_v4, %v1615_v5  ;;  %v576_v13 = vpack.c.bf16 %v1621_v9, %v1620_v10 }
 0x189   : > { %v1624_v12 = vpop.permute.xlu1 %1623  ;;  %v1629_v16 = vpop.permute.xlu0 %1628 }
 0x18a   : > { %595 = vmatpush1.bf16.msra.mxu0 %v578_v3  ;;  %v1626_v14 = vunpack.i.h.bf16 %v1624_v12  ;;  %v1625_v15 = vunpack.i.l.bf16 %v1624_v12  ;;  %v1631_v18 = vunpack.i.h.bf16 %v1629_v16  ;;  %v1630_v20 = vunpack.i.l.bf16 %v1629_v16 }
 0x18b   : > { %596 = vmatprep.subr.bf16.mxu0 %v1692_v2 }
 0x18c   : > { %v575_v17 = vpack.c.bf16 %v1626_v14, %v1625_v15  ;;  %v574_v22 = vpack.c.bf16 %v1631_v18, %v1630_v20 }
 0x18d   : > { %v1634_v21 = vpop.permute.xlu1 %1633  ;;  %v1639_v27 = vpop.permute.xlu0 %1638 }
 0x18e   : > { %597 = vmatpush1.bf16.msra.mxu0 %v577_v8  ;;  %v1636_v23 = vunpack.i.h.bf16 %v1634_v21  ;;  %v1635_v25 = vunpack.i.l.bf16 %v1634_v21  ;;  %v1641_v28 = vunpack.i.h.bf16 %v1639_v27  ;;  %v1640_v29 = vunpack.i.l.bf16 %v1639_v27  ;;  %v699_v8 = vld [vmem:[%s2201_s4] sm:$0x3] }
 0x18f   : > { %598 = vmatprep.subr.bf16.mxu0 %v1692_v2 }
 0x190   : > { %v573_v26 = vpack.c.bf16 %v1636_v23, %v1635_v25  ;;  %v580_v30 = vpack.c.bf16 %v1641_v28, %v1640_v29 }
 0x192   : > { %599 = vmatpush1.bf16.msra.mxu0 %v576_v13 }
 0x193   : > { %600 = vmatprep.subr.bf16.mxu0 %v1692_v2 }
 0x196   : > { %601 = vmatpush1.bf16.msra.mxu0 %v575_v17 }
 0x197   : > { %602 = vmatprep.subr.bf16.mxu0 %v1692_v2 }
 0x19a   : > { %603 = vmatpush1.bf16.msra.mxu0 %v574_v22  ;;  %v636_v32 = vpop.permute.xlu1 %635  ;;  %v643_v35 = vpop.permute.xlu0 %642 }
 0x19b   : > { %604 = vmatprep.subr.bf16.mxu0 %v1692_v2 }
 0x19e   : > { %605 = vmatpush1.bf16.msra.mxu0 %v573_v26 }
 0x19f   : > { %606 = vmatprep.subr.bf16.mxu0 %v1692_v2 }
 0x1a2   : > { %1473 = vmatpush1.bf16.msk.msra.mxu0 %vm1471_vm5, %v1472_v44 }
 0x1a3   : > { %622 = vmatprep.subr.bf16.mxu0 %v1692_v2 }
 0x1a6   : > { %623 = vmatpush2.bf16.msra.mxu0 %v580_v30 }
 0x1a7   : > { %1526 = vmatprep.subr.bf16.mxu0 %v1702_v43 }
 0x1a9   : > { %625 = vmatmul.mubr.bf16.vlgmr.msra.gmra.mxu0 %v1469_v31 }
 0x1aa   : > { %1532 = vmatprep.mubr.msk.bf16.mxu0 %vm1703_vm6, %v1702_v43 }
 0x269   : > { %v1884_v33 = vpop.f32.mrf.mxu0 }
 0x26a   : > { %v638_v34 = vmul.f32 %v636_v32, %v1884_v33 }
 0x26b   : > { %v628_v36 = vpop.f32.mrf.mxu0 }
 0x26c   : > { %v645_v37 = vadd.f32 %v643_v35, %v638_v34 }
 0x26d   : > { %v629_v38 = vpop.f32.mrf.mxu0 }
 0x26e   : > { %v646_v41 = vmax.f32 %v645_v37, 0.0 }
 0x26f   : > { %v630_v42 = vpop.f32.mrf.mxu0 }
 0x270   : > { %v660_v39 = vsel %vm1822_vm1, %v646_v41, 0.0  ;;  %v647_v2 = vsel %vm1814_vm0, %v646_v41, 0.0 }
 0x271   : > { %662 = vrot.lane.b32.xlu1 %v660_v39, %s1693_s17  ;;  %v1642_v40 = vpack.i.bf16 %v646_v41, %v647_v2 }
 0x273   : > { %1643 = vrot.lane.b32.xlu0 %v1642_v40, %s1693_s17 }
 0x2e3   : > { %v663_v44 = vpop.permute.xlu1 %662 }
 0x2e4   : > { %v665_v45 = vsel %vm484_vm2, 0.0, %v663_v44 }
 0x2e5   : > { %v666_v46 = vsel %vm487_vm3, %v665_v45, 0.0  ;;  %v1644_v47 = vpop.permute.xlu0 %1643 }
 0x2e6   : > { %v1646_v48 = vunpack.i.h.bf16 %v1644_v47  ;;  %v1645_v49 = vunpack.i.l.bf16 %v1644_v47  ;;  %691 = vrot.lane.b32.xlu1 %v666_v46, %s1701_s27 }
 0x2e8   : > { %v658_v50 = vsel %vm484_vm2, 0.0, %v1646_v48  ;;  %v652_v51 = vsel %vm484_vm2, 0.0, %v1645_v49 }
 0x2e9   : > { %v659_v52 = vsel %vm487_vm3, %v658_v50, 0.0  ;;  %v653_v53 = vsel %vm487_vm3, %v652_v51, 0.0  ;;  %v820_v50 = vld [vmem:[%s2204_s7] sm:$0x3] }
 0x2ea   : > { %688 = vrot.lane.b32.xlu1 %v659_v52, %s1694_s18  ;;  %685 = vrot.lane.b32.xlu0 %v653_v53, %s1695_s19 }
 0x2ee   : > { %682 = vrot.lane.b32.xlu1 %v666_v46, %s1696_s20  ;;  %679 = vrot.lane.b32.xlu0 %v659_v52, %s1697_s23 }
 0x2f2   : > { %676 = vrot.lane.b32.xlu1 %v653_v53, %s1698_s24  ;;  %672 = vrot.lane.b32.xlu0 %v666_v46, %s1699_s25 }
 0x2f6   : > { %751 = vperm.xlu1 %1586, %v748_v54   ;;  %668 = vrot.lane.b32.xlu0 %v659_v52, %s1700_s26 }
 0x2fa   : > { %758 = vperm.xlu0 %1585, %v755_v55  }
 0x358   : > { %v692_v56 = vpop.permute.xlu1 %691 }
 0x359   : > { %v698_v57 = vpack.c.bf16 %v692_v56, %v692_v56  ;;  %v873_v56 = vadd.f32 %v1884_v33, %v1808_v6 }
 0x35b   : > { %v706_v58 = vsel %vm704_vm7, %v698_v57, 0 }
 0x35c   : > { %1513 = vmatpush3.bf16.msra.mxu1 %v706_v58  ;;  %v689_v59 = vpop.permute.xlu1 %688  ;;  %v686_v60 = vpop.permute.xlu0 %685 }
 0x35d   : > { %v697_v61 = vpack.c.bf16 %v689_v59, %v686_v60  ;;  %1514 = vmatprep.subr.bf16.mxu1 %v1702_v43 }
 0x360   : > { %v683_v62 = vpop.permute.xlu1 %682  ;;  %1515 = vmatpush3.bf16.msra.mxu1 %v697_v61  ;;  %v680_v63 = vpop.permute.xlu0 %679 }
 0x361   : > { %v696_v0 = vpack.c.bf16 %v683_v62, %v680_v63  ;;  %1516 = vmatprep.subr.bf16.mxu1 %v1702_v43 }
 0x364   : > { %v677_v1 = vpop.permute.xlu1 %676  ;;  %1517 = vmatpush3.bf16.msra.mxu1 %v696_v0  ;;  %v673_v3 = vpop.permute.xlu0 %672 }
 0x365   : > { %v695_v4 = vpack.c.bf16 %v677_v1, %v673_v3  ;;  %1518 = vmatprep.subr.bf16.mxu1 %v1702_v43 }
 0x368   : > { %1519 = vmatpush3.bf16.msra.mxu1 %v695_v4  ;;  %v669_v5 = vpop.permute.xlu0 %668 }
 0x369   : > { %v1476_v7 = vpack.c.bf16 %v669_v5, %v652_v51  ;;  %1520 = vmatprep.subr.bf16.mxu1 %v1702_v43  ;;  %v875_v51 = vld [vmem:[%s2207_s10] sm:$0xf] }
 0x36a   : > { %v954_v52 = vsel %vm704_vm7, %v875_v51, 0 }
 0x36c   : > { %1521 = vmatpush3.bf16.msk.msra.mxu1 %vm1475_vm9, %v1476_v7 }
 0x36d   : > { %1554 = vmatprep.subr.msk.bf16.mxu1 %vm704_vm7, %v875_v51 }
 0x36f   : > { %1523 = vmatmul.mubr.msk.bf16.vlgmr.msra.gmra.mxu1 %vm700_vm10, %v699_v8 }
 0x370   : > { %1537 = vmatpush3.bf16.msra.mxu1 %v954_v52 }
 0x371   : > { %v752_v9 = vpop.permute.xlu1 %751 }
 0x375   : > { %v759_v13 = vpop.permute.xlu0 %758 }
 0x42f   : > { %v1926_v10 = vpop.f32.mrf.mxu1 }
 0x430   : > { %v754_v12 = vmul.f32 %v752_v9, %v1926_v10 }
 0x431   : > { %v1524_v14 = vpop.f32.mrf.mxu1 }
 0x432   : > { %v761_v15 = vadd.f32 %v759_v13, %v754_v12 }
 0x433   : > { %v745_v16 = vpop.f32.mrf.mxu1 }
 0x434   : > { %v762_v17 = vmax.f32 %v761_v15, 0.0 }
 0x435   : > { %v1525_v18 = vpop.f32.mrf.mxu1 }
 0x436   : > { %771 = vrot.lane.b32.xlu0 %v762_v17, %s1693_s17  ;;  %v776_v20 = vsel %vm1822_vm1, %v762_v17, 0.0  ;;  %v763_v21 = vsel %vm1814_vm0, %v762_v17, 0.0  ;;  %vm1353_vm0 = vcmask 523264   ;;  %vm1356_vm1 = vcmask 654336  }
 0x437   : > { %778 = vrot.lane.b32.xlu1 %v776_v20, %s1693_s17 }
 0x43b   : > { %765 = vrot.lane.b32.xlu1 %v763_v21, %s1693_s17  ;;  %s2150_s17 = scalar_lea.vmem %s2208_s11, %s1491_s13 }
 0x4a8   : > { %v772_v22 = vpop.permute.xlu0 %771 }
 0x4a9   : > { %v774_v23 = vsel %vm484_vm2, 0.0, %v772_v22  ;;  %v779_v25 = vpop.permute.xlu1 %778 }
 0x4aa   : > { %v775_v26 = vsel %vm487_vm3, %v774_v23, 0.0  ;;  %v781_v27 = vsel %vm484_vm2, 0.0, %v779_v25 }
 0x4ab   : > { %v782_v28 = vsel %vm487_vm3, %v781_v27, 0.0  ;;  %797 = vrot.lane.b32.xlu1 %v775_v26, %s1697_s23  ;;  %v784_v29 = vrot.slane %v775_v26, 4 }
 0x4ac   : > { %810 = vrot.lane.b32.xlu0 %v782_v28, %s1701_s27  ;;  %v800_v31 = vrot.slane %v782_v28, 4  ;;  %s1707_s27 = smov 80  }
 0x4ad   : > { %v766_v24 = vpop.permute.xlu1 %765 }
 0x4ae   : > { %v768_v19 = vsel %vm484_vm2, 0.0, %v766_v24  ;;  %vm1359_vm2 = vcmask 785408  }
 0x4af   : > { %v769_v30 = vsel %vm487_vm3, %v768_v19, 0.0  ;;  %vm1362_vm3 = vcmask 916480  }
 0x4b0   : > { %807 = vrot.lane.b32.xlu0 %v784_v29, %s1694_s18  ;;  %804 = vrot.lane.b32.xlu1 %v769_v30, %s1695_s19  ;;  %v793_v32 = vrot.slane %v769_v30, 4 }
 0x4b4   : > { %801 = vrot.lane.b32.xlu0 %v800_v31, %s1696_s20  ;;  %785 = vrot.lane.b32.xlu1 %v784_v29, %s1700_s26  ;;  %s1706_s26 = smov 104   ;;  %s2163_s20 = scalar_lea.vmem %s2209_s12, %s1491_s13 }
 0x4b8   : > { %789 = vrot.lane.b32.xlu0 %v782_v28, %s1699_s25  ;;  %794 = vrot.lane.b32.xlu1 %v793_v32, %s1698_s24  ;;  %s1705_s25 = smov 96  }
 0x51d   : > { %v798_v34 = vpop.permute.xlu1 %797 }
 0x51e   : > { %v811_v35 = vpop.permute.xlu0 %810 }
 0x51f   : > { %v819_v36 = vpack.c.bf16 %v811_v35, %v811_v35 }
 0x521   : > { %v827_v37 = vsel %vm825_vm11, %v819_v36, 0 }
 0x522   : > { %1527 = vmatpush3.bf16.msra.mxu0 %v827_v37  ;;  %v808_v38 = vpop.permute.xlu0 %807  ;;  %v805_v41 = vpop.permute.xlu1 %804 }
 0x523   : > { %1528 = vmatprep.subr.bf16.mxu0 %v1702_v43  ;;  %v816_v2 = vsel %vm704_vm7, %v805_v41, %v808_v38 }
 0x526   : > { %v802_v42 = vpop.permute.xlu0 %801  ;;  %v786_v39 = vpop.permute.xlu1 %785 }
 0x527   : > { %v815_v40 = vsel %vm704_vm7, %v798_v34, %v802_v42  ;;  %v813_v47 = vsel %vm704_vm7, %v769_v30, %v786_v39 }
 0x528   : > { %v818_v44 = vpack.c.bf16 %v816_v2, %v815_v40 }
 0x52a   : > { %v790_v45 = vpop.permute.xlu0 %789  ;;  %1529 = vmatpush3.bf16.msra.mxu0 %v818_v44  ;;  %v795_v46 = vpop.permute.xlu1 %794 }
 0x52b   : > { %v814_v48 = vsel %vm704_vm7, %v790_v45, %v795_v46  ;;  %1530 = vmatprep.subr.bf16.mxu0 %v1702_v43 }
 0x52c   : > { %v817_v49 = vpack.c.bf16 %v814_v48, %v813_v47 }
 0x52e   : > { %1531 = vmatpush3.bf16.msra.mxu0 %v817_v49 }
 0x531   : > { %1533 = vmatmul.mubr.msk.bf16.vlgmr.msra.gmra.mxu0 %vm821_vm12, %v820_v50 }
 0x5f1   : > { %v863_v53 = vpop.f32.mrf.mxu0 }
 0x5f2   : > { %v870_v54 = vrot.slane %v863_v53, 4 }
 0x5f3   : > { %v1534_v43 = vpop.f32.mrf.mxu0 }
 0x5f4   : > { %v872_v55 = vsel %vm704_vm7, %v1926_v10, %v870_v54 }
 0x5f5   : > { %v874_v57 = vadd.f32 %v872_v55, %v1811_v11  ;;  %v866_v58 = vpop.f32.mrf.mxu0 }
 0x5f7   : > { %v1535_v59 = vpop.f32.mrf.mxu0  ;;  %v1652_v60 = vpack.i.bf16 %v874_v57, %v873_v56  ;;  %v920_v61 = vpack.c.bf16 %v874_v57, %v873_v56 }
 0x5f9   : > { %1653 = vrot.lane.b32.xlu1 %v1652_v60, %s1695_s19  ;;  %1648 = vrot.lane.b32.xlu0 %v1652_v60, %s1698_s24  ;;  %s1710_s24 = smov 16  }
 0x5fa   : > { %1538 = vmatprep.mubr.msk.bf16.mxu1 %vm928_vm13, %v920_v61 }
 0x5fd   : > { %1663 = vrot.lane.b32.xlu1 %v1652_v60, %s1705_s25  ;;  %1658 = vrot.lane.b32.xlu0 %v1652_v60, %s1706_s26 }
 0x601   : > { %1673 = vrot.lane.b32.xlu1 %v1652_v60, %s1707_s27  ;;  %1668 = vrot.lane.b32.xlu0 %v1652_v60, %s1708_s15 }
 0x605   : > { %1678 = vrot.lane.b32.xlu0 %v1652_v60, %s1709_s16 }
 0x66b   : > { %v1654_v6 = vpop.permute.xlu1 %1653  ;;  %v1649_v11 = vpop.permute.xlu0 %1648 }
 0x66c   : > { %v1656_v33 = vunpack.i.h.bf16 %v1654_v6  ;;  %v1655_v62 = vunpack.i.l.bf16 %v1654_v6  ;;  %v1651_v63 = vunpack.i.h.bf16 %v1649_v11  ;;  %v1650_v0 = vunpack.i.l.bf16 %v1649_v11 }
 0x66e   : > { %v922_v1 = vpack.c.bf16 %v1656_v33, %v1655_v62  ;;  %v921_v3 = vpack.c.bf16 %v1651_v63, %v1650_v0 }
 0x66f   : > { %v1659_v4 = vpop.permute.xlu0 %1658  ;;  %v1664_v5 = vpop.permute.xlu1 %1663 }
 0x670   : > { %1539 = vmatmul.mubr.msk.bf16.vlgmr.msra.gmra.mxu1 %vm928_vm13, %v921_v3  ;;  %v1661_v7 = vunpack.i.h.bf16 %v1659_v4  ;;  %v1660_v8 = vunpack.i.l.bf16 %v1659_v4  ;;  %v1666_v9 = vunpack.i.h.bf16 %v1664_v5  ;;  %v1665_v10 = vunpack.i.l.bf16 %v1664_v5 }
 0x671   : > { %1542 = vmatprep.mubr.msk.bf16.mxu1 %vm928_vm13, %v922_v1 }
 0x672   : > { %v923_v12 = vpack.c.bf16 %v1661_v7, %v1660_v8  ;;  %v924_v13 = vpack.c.bf16 %v1666_v9, %v1665_v10 }
 0x673   : > { %v1669_v14 = vpop.permute.xlu0 %1668  ;;  %v1674_v15 = vpop.permute.xlu1 %1673 }
 0x674   : > { %v1671_v16 = vunpack.i.h.bf16 %v1669_v14  ;;  %v1670_v17 = vunpack.i.l.bf16 %v1669_v14  ;;  %v1676_v18 = vunpack.i.h.bf16 %v1674_v15  ;;  %v1675_v20 = vunpack.i.l.bf16 %v1674_v15 }
 0x676   : > { %v925_v21 = vpack.c.bf16 %v1671_v16, %v1670_v17  ;;  %v926_v22 = vpack.c.bf16 %v1676_v18, %v1675_v20 }
 0x677   : > { %v1679_v23 = vpop.permute.xlu0 %1678 }
 0x678   : > { %1543 = vmatmul.mubr.msk.bf16.gmra.mxu1 %vm928_vm13, %v923_v12  ;;  %v1681_v25 = vunpack.i.h.bf16 %v1679_v23  ;;  %v1680_v26 = vunpack.i.l.bf16 %v1679_v23 }
 0x679   : > { %1546 = vmatprep.mubr.msk.bf16.mxu1 %vm928_vm13, %v924_v13 }
 0x67a   : > { %v927_v27 = vpack.c.bf16 %v1681_v25, %v1680_v26 }
 0x680   : > { %1547 = vmatmul.mubr.msk.bf16.gmra.mxu1 %vm928_vm13, %v925_v21 }
 0x681   : > { %1550 = vmatprep.mubr.msk.bf16.mxu1 %vm928_vm13, %v926_v22 }
 0x688   : > { %1551 = vmatmul.mubr.msk.bf16.gmra.mxu1 %vm928_vm13, %v927_v27 }
 0x730   : > { %v1540_v28 = vpop.f32.mrf.mxu1 }
 0x731   : > { %v1055_v32 = vmul.f32 0.5496296, %v1540_v28  ;;  %v1065_v39 = vmul.f32 0.9903704, %v1540_v28  ;;  %v1075_v40 = vmul.f32 0.72, %v1540_v28 }
 0x732   : > { %v1981_v24 = vpop.f32.mrf.mxu1  ;;  %v1089_v51 = vmul.f32 0.1237037, %v1540_v28  ;;  %v1101_v9 = vmul.f32 -0.11111111, %v1540_v28  ;;  %v1115_v17 = vmul.f32 -0.024, %v1540_v28 }
 0x733   : > { %v1053_v30 = vmul.f32 0.5374815, %v1981_v24  ;;  %v1073_v34 = vmul.f32 -0.108, %v1981_v24  ;;  %v1063_v36 = vmul.f32 0.053185184, %v1981_v24 }
 0x734   : > { %v1983_v29 = vpop.f32.mrf.mxu1  ;;  %v1087_v47 = vmul.f32 -0.011555555, %v1981_v24 }
 0x735   : > { %v1057_v37 = vadd.f32 %v1055_v32, %v1053_v30  ;;  %v1056_v45 = vmul.f32 0.5496296, %v1983_v29  ;;  %v1067_v49 = vadd.f32 %v1065_v39, %v1063_v36  ;;  %v1077_v50 = vadd.f32 %v1075_v40, %v1073_v34 }
 0x736   : > { %v1985_v19 = vpop.f32.mrf.mxu1  ;;  %v1066_v57 = vmul.f32 0.9903704, %v1983_v29  ;;  %v1076_v59 = vmul.f32 0.72, %v1983_v29  ;;  %v1091_v63 = vadd.f32 %v1089_v51, %v1087_v47  ;;  %v1090_v8 = vmul.f32 0.1237037, %v1983_v29 }
 0x737   : > { %v1054_v41 = vmul.f32 0.5374815, %v1985_v19  ;;  %v1074_v52 = vmul.f32 -0.108, %v1985_v19  ;;  %v1064_v43 = vmul.f32 0.053185184, %v1985_v19 }
 0x738   : > { %v1988_v31 = vpop.f32.mrf.mxu1  ;;  %v1088_v33 = vmul.f32 -0.011555555, %v1985_v19  ;;  %v1102_v26 = vmul.f32 -0.11111111, %v1983_v29 }
 0x739   : > { %v1058_v53 = vadd.f32 %v1056_v45, %v1054_v41  ;;  %v1083_v0 = vmul.f32 -0.072, %v1988_v31  ;;  %v1068_v1 = vadd.f32 %v1066_v57, %v1064_v43  ;;  %v1078_v3 = vadd.f32 %v1076_v59, %v1074_v52 }
 0x73a   : > { %v1991_v35 = vpop.f32.mrf.mxu1  ;;  %v1097_v16 = vmul.f32 -0.07511111, %v1988_v31  ;;  %v1092_v21 = vadd.f32 %v1090_v8, %v1088_v33  ;;  %v1107_v25 = vmul.f32 0.37037036, %v1988_v31  ;;  %v1121_v45 = vmul.f32 0.92, %v1988_v31 }
 0x73b   : > { %v1059_v38 = vmul.f32 -0.08711111, %v1991_v35  ;;  %v1069_v2 = vmul.f32 -0.043555554, %v1991_v35  ;;  %v1079_v46 = vmul.f32 0.46, %v1991_v35 }
 0x73c   : > { %v1996_v42 = vpop.f32.mrf.mxu1  ;;  %v1093_v58 = vmul.f32 0.962963, %v1991_v35  ;;  %v1103_v4 = vmul.f32 0.7962963, %v1991_v35  ;;  %v1117_v18 = vmul.f32 0.2, %v1991_v35 }
 0x73d   : > { %v1061_v44 = vadd.f32 %v1059_v38, %v1057_v37  ;;  %v1071_v56 = vadd.f32 %v1069_v2, %v1067_v49  ;;  %v1081_v61 = vadd.f32 %v1079_v46, %v1077_v50  ;;  %v1084_v20 = vmul.f32 -0.072, %v1996_v42 }
 0x73e   : > { %v2002_v48 = vpop.f32.mrf.mxu1  ;;  %v1095_v7 = vadd.f32 %v1093_v58, %v1091_v63  ;;  %v1105_v22 = vadd.f32 %v1103_v4, %v1101_v9  ;;  %v1129_v27 = vmul.f32 -0.10755555, %v1991_v35  ;;  %v1119_v37 = vadd.f32 %v1117_v18, %v1115_v17 }
 0x73f   : > { %1235 = vrot.lane.b32.xlu1 %v1061_v44, %s1710_s24  ;;  %v1060_v54 = vmul.f32 -0.08711111, %v2002_v48  ;;  %v1070_v6 = vmul.f32 -0.043555554, %v2002_v48  ;;  %v1080_v11 = vmul.f32 0.46, %v2002_v48  ;;  %v1085_v10 = vadd.f32 %v1083_v0, %v1081_v61 }
 0x740   : > { %v2008_v55 = vpop.f32.mrf.mxu1  ;;  %v1094_v14 = vmul.f32 0.962963, %v2002_v48  ;;  %v1104_v23 = vmul.f32 0.7962963, %v2002_v48  ;;  %v1099_v30 = vadd.f32 %v1097_v16, %v1095_v7  ;;  %v1131_v38 = vmul.f32 0.8637037, %v1988_v31 }
 0x741   : > { %v1062_v60 = vadd.f32 %v1060_v54, %v1058_v53  ;;  %v1072_v12 = vadd.f32 %v1070_v6, %v1068_v1  ;;  %v1082_v13 = vadd.f32 %v1080_v11, %v1078_v3  ;;  %v1098_v39 = vmul.f32 -0.07511111, %v1996_v42 }
 0x742   : > { %v2016_v62 = vpop.f32.mrf.mxu1  ;;  %v1096_v34 = vadd.f32 %v1094_v14, %v1092_v21  ;;  %v1109_v2 = vadd.f32 %v1107_v25, %v1105_v22  ;;  %v1106_v40 = vadd.f32 %v1104_v23, %v1102_v26  ;;  %v1118_v44 = vmul.f32 0.2, %v2002_v48 }
 0x743   : > { %1243 = vrot.lane.b32.xlu1 %v1071_v56, %s1711_s28  ;;  %1237 = vrot.lane.b32.xlu0 %v1062_v60, %s1710_s24  ;;  %v1086_v32 = vadd.f32 %v1084_v20, %v1082_v13  ;;  %v1111_v36 = vmul.f32 -0.055555556, %v2016_v62  ;;  %v1135_v41 = vmul.f32 0.28296295, %v2016_v62  ;;  %v1125_v46 = vmul.f32 -0.096, %v2016_v62 }
 0x744   : > { %v2022_v5 = vpop.f32.mrf.mxu1  ;;  %v1133_v47 = vadd.f32 %v1131_v38, %v1129_v27  ;;  %v1116_v49 = vmul.f32 -0.024, %v1983_v29  ;;  %v1100_v51 = vadd.f32 %v1098_v39, %v1096_v34  ;;  %v1108_v53 = vmul.f32 0.37037036, %v1996_v42 }
 0x745   : > { %v1113_v52 = vadd.f32 %v1111_v36, %v1109_v2  ;;  %v1123_v43 = vadd.f32 %v1121_v45, %v1119_v37  ;;  %v1130_v57 = vmul.f32 -0.10755555, %v2002_v48  ;;  %v1159_v29 = vmul.f32 0.92, %v2016_v62 }
 0x746   : > { %v2026_v15 = vpop.f32.mrf.mxu1  ;;  %v1137_v56 = vadd.f32 %v1135_v41, %v1133_v47  ;;  %v1110_v58 = vadd.f32 %v1108_v53, %v1106_v40  ;;  %v1120_v59 = vadd.f32 %v1118_v44, %v1116_v49  ;;  %v1139_v61 = vmul.f32 -0.03911111, %v2008_v55 }
 0x747   : > { %1251 = vrot.lane.b32.xlu1 %v1085_v10, %s1712_s29  ;;  %1245 = vrot.lane.b32.xlu0 %v1072_v12, %s1711_s28  ;;  %v1112_v54 = vmul.f32 -0.055555556, %v2026_v15  ;;  %v1127_v60 = vadd.f32 %v1125_v46, %v1123_v43  ;;  %v1132_v6 = vmul.f32 0.8637037, %v1996_v42  ;;  %v1136_v11 = vmul.f32 0.28296295, %v2026_v15 }
 0x748   : > { %v2037_v28 = vpop.f32.mrf.mxu1  ;;  %v1122_v0 = vmul.f32 0.92, %v1996_v42  ;;  %v1126_v1 = vmul.f32 -0.096, %v2026_v15  ;;  %v1157_v3 = vmul.f32 -0.096, %v1988_v31  ;;  %v1141_v4 = vadd.f32 %v1139_v61, %v1137_v56 }
 0x749   : > { %v1114_v63 = vadd.f32 %v1112_v54, %v1110_v58  ;;  %v1134_v7 = vadd.f32 %v1132_v6, %v1130_v57  ;;  %v1173_v8 = vmul.f32 0.37037036, %v2016_v62  ;;  %v1160_v9 = vmul.f32 0.92, %v2026_v15 }
 0x74a   : > { %v2049_v50 = vpop.f32.mrf.mxu1  ;;  %v1124_v10 = vadd.f32 %v1122_v0, %v1120_v59  ;;  %v1161_v12 = vadd.f32 %v1159_v29, %v1157_v3  ;;  %v1163_v13 = vmul.f32 0.2, %v2008_v55  ;;  %v1185_v14 = vmul.f32 -0.07511111, %v2016_v62 }
 0x74b   : > { %1259 = vrot.lane.b32.xlu1 %v1099_v30, %s1713_s30  ;;  %1253 = vrot.lane.b32.xlu0 %v1086_v32, %s1712_s29  ;;  %v1138_v16 = vadd.f32 %v1136_v11, %v1134_v7  ;;  %v1167_v17 = vmul.f32 -0.024, %v2049_v50  ;;  %v1171_v18 = vmul.f32 -0.055555556, %v1988_v31  ;;  %v1158_v20 = vmul.f32 -0.096, %v1996_v42 }
 0x74c   : > { %v2060_v33 = vpop.f32.mrf.mxu1  ;;  %v1128_v22 = vadd.f32 %v1126_v1, %v1124_v10  ;;  %v1187_v23 = vmul.f32 0.962963, %v2008_v55  ;;  %v1191_v25 = vmul.f32 0.1237037, %v2049_v50  ;;  %v1174_v26 = vmul.f32 0.37037036, %v2026_v15 }
 0x74d   : > { %v1140_v27 = vmul.f32 -0.03911111, %v2022_v5  ;;  %v1175_v30 = vadd.f32 %v1173_v8, %v1171_v18  ;;  %v1177_v32 = vmul.f32 0.7962963, %v2008_v55  ;;  %v1162_v34 = vadd.f32 %v1160_v9, %v1158_v20 }
 0x74e   : > { %v2074_v21 = vpop.f32.mrf.mxu1  ;;  %v1165_v36 = vadd.f32 %v1163_v13, %v1161_v12  ;;  %v1181_v37 = vmul.f32 -0.11111111, %v2049_v50  ;;  %v1189_v38 = vadd.f32 %v1187_v23, %v1185_v14  ;;  %v1172_v41 = vmul.f32 -0.055555556, %v1996_v42 }
 0x74f   : > { %1261 = vrot.lane.b32.xlu0 %v1100_v51, %s1713_s30  ;;  %1267 = vrot.lane.b32.xlu1 %v1113_v52, %s1707_s27  ;;  %v1164_v39 = vmul.f32 0.2, %v2022_v5  ;;  %v1168_v2 = vmul.f32 -0.024, %v2074_v21  ;;  %v1199_v40 = vmul.f32 -0.072, %v2016_v62  ;;  %v1142_v44 = vadd.f32 %v1140_v27, %v1138_v16 }
 0x750   : > { %v1169_v45 = vadd.f32 %v1167_v17, %v1165_v36  ;;  %v1193_v46 = vadd.f32 %v1191_v25, %v1189_v38  ;;  %v1176_v47 = vadd.f32 %v1174_v26, %v1172_v41  ;;  %v1179_v49 = vadd.f32 %v1177_v32, %v1175_v30 }
 0x751   : > { %v1166_v51 = vadd.f32 %v1164_v39, %v1162_v34  ;;  %v1201_v52 = vmul.f32 0.46, %v2008_v55  ;;  %v1205_v53 = vmul.f32 0.72, %v2049_v50  ;;  %v1195_v54 = vmul.f32 -0.011555555, %v2037_v28 }
 0x752   : > { %v1178_v43 = vmul.f32 0.7962963, %v2022_v5  ;;  %v1186_v56 = vmul.f32 -0.07511111, %v2026_v15  ;;  %v1183_v57 = vadd.f32 %v1181_v37, %v1179_v49  ;;  %v1182_v59 = vmul.f32 -0.11111111, %v2074_v21 }
 0x753   : > { %1275 = vrot.lane.b32.xlu1 %v1127_v60, %s1705_s25  ;;  %1269 = vrot.lane.b32.xlu0 %v1114_v63, %s1707_s27  ;;  %v1170_v58 = vadd.f32 %v1168_v2, %v1166_v51  ;;  %v1203_v29 = vadd.f32 %v1201_v52, %v1199_v40  ;;  %v1197_v60 = vadd.f32 %v1195_v54, %v1193_v46  ;;  %v1188_v6 = vmul.f32 0.962963, %v2022_v5 }
 0x754   : > { %v1180_v61 = vadd.f32 %v1178_v43, %v1176_v47  ;;  %v1192_v11 = vmul.f32 0.1237037, %v2074_v21  ;;  %v1143_v0 = vmul.f32 -0.03911111, %v1991_v35  ;;  %v1145_v1 = vmul.f32 0.28296295, %v1988_v31 }
 0x755   : > { %v1207_v63 = vadd.f32 %v1205_v53, %v1203_v29  ;;  %v1149_v3 = vmul.f32 0.8637037, %v2016_v62  ;;  %v1200_v7 = vmul.f32 -0.072, %v2026_v15  ;;  %v1144_v8 = vmul.f32 -0.03911111, %v2002_v48 }
 0x756   : > { %v1146_v9 = vmul.f32 0.28296295, %v1996_v42  ;;  %v1184_v10 = vadd.f32 %v1182_v59, %v1180_v61  ;;  %v1215_v12 = vmul.f32 0.9903704, %v2049_v50  ;;  %v1147_v13 = vadd.f32 %v1145_v1, %v1143_v0 }
 0x757   : > { %1283 = vrot.lane.b32.xlu1 %v1141_v4, %s1695_s19  ;;  %1277 = vrot.lane.b32.xlu0 %v1128_v22, %s1705_s25  ;;  %v1190_v4 = vadd.f32 %v1188_v6, %v1186_v56  ;;  %v1150_v35 = vmul.f32 0.8637037, %v2026_v15  ;;  %v1202_v62 = vmul.f32 0.46, %v2022_v5  ;;  %v1206_v14 = vmul.f32 0.72, %v2074_v21 }
 0x758   : > { %v1148_v16 = vadd.f32 %v1146_v9, %v1144_v8  ;;  %v1209_v17 = vmul.f32 -0.108, %v2037_v28  ;;  %v1213_v18 = vmul.f32 -0.043555554, %v2008_v55  ;;  %v1151_v20 = vadd.f32 %v1149_v3, %v1147_v13  ;;  %v1379_v3 = vld [vmem:[%s2150_s17] sm:$0xff] }
 0x759   : > { %v1194_v31 = vadd.f32 %v1192_v11, %v1190_v4  ;;  %v1153_v48 = vmul.f32 -0.10755555, %v2008_v55  ;;  %v1196_v42 = vmul.f32 -0.011555555, %v2060_v33  ;;  %v1204_v15 = vadd.f32 %v1202_v62, %v1200_v7 }
 0x75a   : > { %v1152_v22 = vadd.f32 %v1150_v35, %v1148_v16  ;;  %v1154_v23 = vmul.f32 -0.10755555, %v2022_v5  ;;  %v1211_v25 = vadd.f32 %v1209_v17, %v1207_v63  ;;  %v1217_v26 = vadd.f32 %v1215_v12, %v1213_v18 }
 0x75b   : > { %1285 = vrot.lane.b32.xlu0 %v1142_v44, %s1695_s19  ;;  %1291 = vrot.lane.b32.xlu1 %v1169_v45, %s1710_s24  ;;  %v1225_v27 = vmul.f32 0.5496296, %v2049_v50  ;;  %v2118_v30 = vadd.f32 %v1153_v48, %v1151_v20  ;;  %v1198_v32 = vadd.f32 %v1196_v42, %v1194_v31  ;;  %v1208_v34 = vadd.f32 %v1206_v14, %v1204_v15  ;;  %v1381_v31 = vld [vmem:[%s2150_s17 + $0x10] sm:$0xff] }
 0x75c   : > { %v1216_v36 = vmul.f32 0.9903704, %v2074_v21  ;;  %v2121_v37 = vadd.f32 %v1154_v23, %v1152_v22  ;;  %v1219_v38 = vmul.f32 0.053185184, %v2037_v28  ;;  %v1210_v41 = vmul.f32 -0.108, %v2060_v33 }
 0x75d   : > { %v1223_v39 = vmul.f32 -0.08711111, %v2008_v55  ;;  %v1214_v50 = vmul.f32 -0.043555554, %v2022_v5  ;;  %v1226_v46 = vmul.f32 0.5496296, %v2074_v21 }
 0x75e   : > { %v1221_v2 = vadd.f32 %v1219_v38, %v1217_v26  ;;  %v1212_v40 = vadd.f32 %v1210_v41, %v1208_v34  ;;  %v1229_v47 = vmul.f32 0.5374815, %v2037_v28  ;;  %v1220_v49 = vmul.f32 0.053185184, %v2060_v33 }
 0x75f   : > { %1299 = vrot.lane.b32.xlu1 %v1183_v57, %s1711_s28  ;;  %1293 = vrot.lane.b32.xlu0 %v1170_v58, %s1710_s24  ;;  %v1227_v44 = vadd.f32 %v1225_v27, %v1223_v39  ;;  %v1218_v45 = vadd.f32 %v1216_v36, %v1214_v50  ;;  %v1224_v51 = vmul.f32 -0.08711111, %v2022_v5  ;;  %v1230_v21 = vmul.f32 0.5374815, %v2060_v33 }
 0x761   : > { %v1231_v52 = vadd.f32 %v1229_v47, %v1227_v44  ;;  %v1222_v55 = vadd.f32 %v1220_v49, %v1218_v45  ;;  %v1228_v53 = vadd.f32 %v1226_v46, %v1224_v51 }
 0x763   : > { %1307 = vrot.lane.b32.xlu1 %v1197_v60, %s1712_s29  ;;  %1301 = vrot.lane.b32.xlu0 %v1184_v10, %s1711_s28  ;;  %v1232_v54 = vadd.f32 %v1230_v21, %v1228_v53 }
 0x767   : > { %1315 = vrot.lane.b32.xlu1 %v1211_v25, %s1713_s30  ;;  %1309 = vrot.lane.b32.xlu0 %v1198_v32, %s1712_s29 }
 0x76b   : > { %1323 = vrot.lane.b32.xlu1 %v1221_v2, %s1707_s27  ;;  %1317 = vrot.lane.b32.xlu0 %v1212_v40, %s1713_s30  ;;  %v1380_v2 = vld [vmem:[%s2150_s17 + $0x8] sm:$0xff] }
 0x76f   : > { %1331 = vrot.lane.b32.xlu1 %v1231_v52, %s1705_s25  ;;  %1325 = vrot.lane.b32.xlu0 %v1222_v55, %s1707_s27 }
 0x773   : > { %1339 = vrot.lane.b32.xlu1 %v2037_v28, %s1695_s19  ;;  %1333 = vrot.lane.b32.xlu0 %v1232_v54, %s1705_s25 }
 0x777   : > { %1341 = vrot.lane.b32.xlu0 %v2060_v33, %s1695_s19 }
 0x7b1   : > { %v1236_v5 = vpop.permute.xlu1 %1235 }
 0x7b2   : > { %v1345_v28 = vsel %vm588_vm4, %v1981_v24, %v1236_v5 }
 0x7b5   : > { %v1244_v43 = vpop.permute.xlu1 %1243  ;;  %v1238_v56 = vpop.permute.xlu0 %1237 }
 0x7b6   : > { %v1348_v6 = vsel %vm1347_vm14, %v1345_v28, %v1244_v43  ;;  %v1346_v24 = vsel %vm588_vm4, %v1985_v19, %v1238_v56 }
 0x7b9   : > { %v1252_v57 = vpop.permute.xlu1 %1251  ;;  %v1246_v58 = vpop.permute.xlu0 %1245 }
 0x7ba   : > { %v1351_v63 = vsel %vm1350_vm15, %v1348_v6, %v1252_v57  ;;  %v1349_v4 = vsel %vm1347_vm14, %v1346_v24, %v1246_v58 }
 0x7bd   : > { %v1260_v59 = vpop.permute.xlu1 %1259  ;;  %v1254_v29 = vpop.permute.xlu0 %1253 }
 0x7be   : > { %v1354_v0 = vsel %vm1353_vm0, %v1351_v63, %v1260_v59  ;;  %v1352_v10 = vsel %vm1350_vm15, %v1349_v4, %v1254_v29 }
 0x7c1   : > { %v1262_v60 = vpop.permute.xlu0 %1261  ;;  %v1268_v61 = vpop.permute.xlu1 %1267 }
 0x7c2   : > { %v1357_v1 = vsel %vm1356_vm1, %v1354_v0, %v1268_v61  ;;  %v1355_v12 = vsel %vm1353_vm0, %v1352_v10, %v1262_v60 }
 0x7c5   : > { %v1276_v33 = vpop.permute.xlu1 %1275  ;;  %v1270_v11 = vpop.permute.xlu0 %1269 }
 0x7c6   : > { %v1360_v7 = vsel %vm1359_vm2, %v1357_v1, %v1276_v33  ;;  %v1358_v35 = vsel %vm1356_vm1, %v1355_v12, %v1270_v11 }
 0x7c9   : > { %v1284_v8 = vpop.permute.xlu1 %1283  ;;  %v1278_v9 = vpop.permute.xlu0 %1277 }
 0x7ca   : > { %v1363_v19 = vsel %vm1362_vm3, %v1360_v7, %v1284_v8  ;;  %v1361_v62 = vsel %vm1359_vm2, %v1358_v35, %v1278_v9 }
 0x7cb   : > { %v1383_v13 = vadd.f32 %v1379_v3, %v1363_v19 }
 0x7cd   : > { %1387 = vst [vmem:[%s2163_s20] sm:$0xff] %v1383_v13  ;;  %v1286_v14 = vpop.permute.xlu0 %1285  ;;  %v1292_v16 = vpop.permute.xlu1 %1291 }
 0x7ce   : > { %v1364_v17 = vsel %vm1362_vm3, %v1361_v62, %v1286_v14  ;;  %v1365_v27 = vsel %vm588_vm4, %v2118_v30, %v1292_v16 }
 0x7cf   : > { %v1385_v18 = vadd.f32 %v1381_v31, %v1364_v17 }
 0x7d1   : > { %1389 = vst [vmem:[%s2163_s20 + $0x10] sm:$0xff] %v1385_v18  ;;  %v1300_v20 = vpop.permute.xlu1 %1299  ;;  %v1294_v48 = vpop.permute.xlu0 %1293 }
 0x7d2   : > { %v1367_v32 = vsel %vm1347_vm14, %v1365_v27, %v1300_v20  ;;  %v1366_v39 = vsel %vm588_vm4, %v2121_v37, %v1294_v48  ;;  %v1382_v37 = vld [vmem:[%s2150_s17 + $0x18] sm:$0xff] }
 0x7d5   : > { %v1308_v42 = vpop.permute.xlu1 %1307  ;;  %v1302_v15 = vpop.permute.xlu0 %1301 }
 0x7d6   : > { %v1369_v38 = vsel %vm1350_vm15, %v1367_v32, %v1308_v42  ;;  %v1368_v40 = vsel %vm1347_vm14, %v1366_v39, %v1302_v15 }
 0x7d9   : > { %v1316_v22 = vpop.permute.xlu1 %1315  ;;  %v1310_v23 = vpop.permute.xlu0 %1309 }
 0x7da   : > { %v1371_v41 = vsel %vm1353_vm0, %v1369_v38, %v1316_v22  ;;  %v1370_v46 = vsel %vm1350_vm15, %v1368_v40, %v1310_v23 }
 0x7dd   : > { %v1324_v25 = vpop.permute.xlu1 %1323  ;;  %v1318_v26 = vpop.permute.xlu0 %1317 }
 0x7de   : > { %v1373_v50 = vsel %vm1356_vm1, %v1371_v41, %v1324_v25  ;;  %v1372_v49 = vsel %vm1353_vm0, %v1370_v46, %v1318_v26 }
 0x7e1   : > { %v1332_v34 = vpop.permute.xlu1 %1331  ;;  %v1326_v36 = vpop.permute.xlu0 %1325 }
 0x7e2   : > { %v1375_v30 = vsel %vm1359_vm2, %v1373_v50, %v1332_v34  ;;  %v1374_v52 = vsel %vm1356_vm1, %v1372_v49, %v1326_v36 }
 0x7e5   : > { %v1340_v44 = vpop.permute.xlu1 %1339  ;;  %v1334_v45 = vpop.permute.xlu0 %1333 }
 0x7e6   : > { %v1377_v47 = vsel %vm1362_vm3, %v1375_v30, %v1340_v44  ;;  %v1376_v55 = vsel %vm1359_vm2, %v1374_v52, %v1334_v45 }
 0x7e7   : > { %v1384_v51 = vadd.f32 %v1380_v2, %v1377_v47 }
 0x7e9   : > { %1388 = vst [vmem:[%s2163_s20 + $0x8] sm:$0xff] %v1384_v51  ;;  %v1342_v53 = vpop.permute.xlu0 %1341 }
 0x7ea   : > { %v1378_v21 = vsel %vm1362_vm3, %v1376_v55, %v1342_v53 }
 0x7eb   : > { %v1386_v54 = vadd.f32 %v1382_v37, %v1378_v21 }
 0x7ed   : > { %1390 = vst [vmem:[%s2163_s20 + $0x18] sm:$0xff] %v1386_v54 }
 0x7ee PF: > { %s22_s21 = sadd.s32 1, %s1690_s21  }
 0x7ef   : > { %p19_p4 = scmp.ge.s32.totalorder %s22_s21, 4  }
 0x7f1   :  { %21 = sbr.rel (!%p19_p4) target bundleno = 1 (0x1), region = 101 }

</bundles_post_ra>
